<compile_context>
chip_gen: v7x
topology: tpu7x:2x2x1
jax: 0.10.0
libtpu: 0.0.40
codegen_flags: <defaults>
</compile_context>

<pallas_src>
import functools

import jax
import jax.numpy as jnp
from jax.experimental import pallas as pl
from jax.experimental.pallas import tpu as pltpu


def _gat_attn_kernel(a_dst_ref, a_srcT_ref, adj_ref, xp_ref, out_ref,
                     m_sc, l_sc, acc_sc, *, num_heads, head_dim):
    """One (dst-row tile, src-col tile) step: masked online softmax + aggregation."""
    H, C = num_heads, head_dim
    k = pl.program_id(1)

    @pl.when(k == 0)
    def _init():
        m_sc[...] = jnp.full(m_sc.shape, -jnp.inf, m_sc.dtype)
        l_sc[...] = jnp.zeros(l_sc.shape, l_sc.dtype)
        acc_sc[...] = jnp.zeros(acc_sc.shape, acc_sc.dtype)

    # int8 adjacency -> additive f32 mask, converted ONCE per tile (shared by heads):
    # 0 on edges, -1e30 on non-edges.
    madd = (adj_ref[...].astype(jnp.float32) - 1.0) * jnp.float32(1e30)   # [TM, TN]

    a_dst = a_dst_ref[...]            # [TM, H]  dst scores for this row tile
    a_src = a_srcT_ref[...]           # [H, TN]  src scores, lane-contiguous over nodes

    for h in range(H):                # static unroll over heads
        e = a_dst[:, h:h + 1] + a_src[h:h + 1, :]              # [TM, TN]
        e = jnp.maximum(e, 0.2 * e)                            # LeakyReLU(0.2)
        e = e + madd                                           # mask non-edges
        m_prev = m_sc[h]                                       # [TM, 1]
        m_new = jnp.maximum(m_prev, jnp.max(e, axis=-1, keepdims=True))
        corr = jnp.exp(m_prev - m_new)                         # rescale running stats
        p = jnp.exp(e - m_new)                                 # masked entries -> 0
        l_sc[h] = corr * l_sc[h] + jnp.sum(p, axis=-1, keepdims=True)
        # bf16 MXU operands, f32 accumulation (softmax math stays f32)
        acc_sc[h] = corr * acc_sc[h] + jnp.dot(
            p.astype(jnp.bfloat16), xp_ref[h],
            preferred_element_type=jnp.float32)                # [TM, C]
        m_sc[h] = m_new

    @pl.when(k == pl.num_programs(1) - 1)
    def _finalize():
        pieces = []
        for h in range(H):
            # exact normalization (finalize-only, negligible cost; avoids the
            # approx-reciprocal error flagged in review)
            pieces.append(acc_sc[h] * pl.reciprocal(l_sc[h], approx=False))
        pieces += [m_sc[h] for h in range(H)]
        pieces += [l_sc[h] for h in range(H)]
        # single lane-contiguous store: [out_heads | row max | denom]
        out_ref[...] = jnp.concatenate(pieces, axis=-1)


def gat_forward(x, edge_index, params, *, num_heads):
    """GATModel.forward equivalent: returns (out, (edge_index_with_self_loops, alpha))."""
    w, att_src, att_dst, bias = params
    n, f_in = x.shape
    hc = w.shape[1]
    h = num_heads
    c = hc // h

    # GATConv adds self loops before propagation and reports them in the returned
    # edge_index.
    # TODO(synk): assumes the input edge list has no duplicate edges / pre-existing
    # self loops (the dense adjacency silently dedupes; PyG's edge-wise softmax
    # would differ for multigraphs).
    idx = jnp.arange(n, dtype=edge_index.dtype)
    edge_index = jnp.concatenate([edge_index, jnp.stack([idx, idx])], axis=1)
    src, dst = edge_index[0], edge_index[1]

    # ---------------- tiling ----------------
    n_pad = max(pl.cdiv(n, 128) * 128, 128)
    # guarantee >= 2 destination-row tiles so the "parallel" axis feeds both
    # TensorCores on v7x (costs one extra ~0.35us grid step on 1-TC chips)
    tm = 128 if n_pad >= 256 else 64
    if n_pad % 512 == 0:
        tn = 512
    elif n_pad % 256 == 0:
        tn = 256
    else:
        tn = 128
    grid = (n_pad // tm, n_pad // tn)

    # ------- hoisted tile-invariant projections (plain XLA, computed once) -------
    x_p = jnp.zeros((n_pad, f_in), jnp.float32).at[:n].set(x.astype(jnp.float32))
    xp = x_p @ w                                              # [n_pad, hc]
    xp_h = xp.reshape(n_pad, h, c)
    a_src_n = jnp.einsum('nhc,hc->nh', xp_h, att_src)         # [n_pad, h]
    a_dst_n = jnp.einsum('nhc,hc->nh', xp_h, att_dst)         # [n_pad, h]
    a_srcT = a_src_n.T                                        # [h, n_pad]
    # per-head value blocks as a leading-axis view; bf16 MXU operand
    xp_heads = jnp.transpose(xp_h, (1, 0, 2)).astype(jnp.bfloat16)   # [h, n_pad, c]

    # int8 dense adjacency: adj[i, j] = 1 iff edge j -> i exists (incl. self loops)
    adj = jnp.zeros((n_pad, n_pad), jnp.int8).at[dst, src].set(jnp.int8(1))

    # ---------------- VMEM budget (v7x: 64 MiB physical per TC) ----------------
    lane = 128
    buf_bytes = (tm * lane * 4            # a_dst rows (lane-padded)
                 + 8 * tn * 4             # a_srcT cols (sublane-padded)
                 + tm * tn                # int8 adjacency tile
                 + h * tn * lane * 2      # per-head bf16 values (lane-padded)
                 + tm * lane * 4)         # merged output block (lane-padded)
    scratch_bytes = 3 * h * tm * lane * 4
    needed = 2 * buf_bytes + scratch_bytes + (2 << 20)
    try:
        info = pltpu.get_tpu_info()
        vmem_cap = int(getattr(info, "vmem_capacity_bytes", 64 * 2**20))
    except Exception:
        vmem_cap = 64 * 2**20
    vmem_limit = int(max(8 * 2**20, min(vmem_cap - 8 * 2**20, needed + 4 * 2**20)))

    # advisory cost: exp / VPU heavy, not matmul heavy
    grid_rows = n_pad // tm
    cost = pl.CostEstimate(
        flops=int(2 * h * c * n_pad * n_pad + 8 * h * n_pad * n_pad),
        transcendentals=int(h * n_pad * n_pad),
        bytes_accessed=int(n_pad * n_pad
                           + grid_rows * h * n_pad * (2 * c + 4)
                           + n_pad * h * 4
                           + n_pad * (hc + 2 * h) * 4),
    )

    kern = functools.partial(_gat_attn_kernel, num_heads=h, head_dim=c)
    merged = pl.pallas_call(
        kern,
        grid_spec=pltpu.PrefetchScalarGridSpec(
            num_scalar_prefetch=0,
            grid=grid,
            in_specs=[
                pl.BlockSpec((tm, h), lambda i, k: (i, 0)),        # dst scores rows
                pl.BlockSpec((h, tn), lambda i, k: (0, k)),        # src scores cols
                pl.BlockSpec((tm, tn), lambda i, k: (i, k)),       # int8 adjacency tile
                pl.BlockSpec((h, tn, c), lambda i, k: (0, k, 0)),  # per-head values
            ],
            out_specs=pl.BlockSpec((tm, hc + 2 * h), lambda i, k: (i, 0)),
            scratch_shapes=[
                pltpu.VMEM((h, tm, 1), jnp.float32),   # running row max
                pltpu.VMEM((h, tm, 1), jnp.float32),   # running denom
                pltpu.VMEM((h, tm, c), jnp.float32),   # running weighted value sum
            ],
        ),
        out_shape=jax.ShapeDtypeStruct((n_pad, hc + 2 * h), jnp.float32),
        compiler_params=pltpu.CompilerParams(
            dimension_semantics=("parallel", "arbitrary"),
            vmem_limit_bytes=vmem_limit),
        cost_estimate=cost,
    )(a_dst_n, a_srcT, adj, xp_heads)

    out = merged[:n, :hc] + bias[None, :]
    m_n = merged[:n, hc:hc + h]          # per-node per-head row max
    l_n = merged[:n, hc + h:hc + 2 * h]  # per-node per-head softmax denom

    # per-edge attention weights from per-node stats (no dense [H,N,N] writeback):
    # alpha_e = exp(LReLU(a_dst[dst] + a_src[src]) - m[dst]) / denom[dst]
    e = a_dst_n[:n][dst] + a_src_n[:n][src]
    e = jnp.maximum(e, 0.2 * e)
    alpha = jnp.exp(e - m_n[dst]) / l_n[dst]
    return out, (edge_index, alpha)


if __name__ == "__main__":
    N, F_IN, OUT, HEADS = 256, 16, 32, 4   # OUT is split across heads (C = 8)
    C = OUT // HEADS

    key = jax.random.PRNGKey(0)
    kx, kw, ks, kd, kb = jax.random.split(key, 5)
    x = jax.random.normal(kx, (N, F_IN), jnp.float32)
    # GATConv params: lin weight [F_in, H*C], att_src/att_dst [H, C], bias [H*C]
    w = jax.random.normal(kw, (F_IN, OUT), jnp.float32) / jnp.sqrt(F_IN)
    att_src = jax.random.normal(ks, (HEADS, C), jnp.float32) / jnp.sqrt(C)
    att_dst = jax.random.normal(kd, (HEADS, C), jnp.float32) / jnp.sqrt(C)
    bias = jax.random.normal(kb, (OUT,), jnp.float32) * 0.1

    # deterministic directed graph: i -> (i+1)%N and i -> (i+3)%N
    # (no self loops in the input; the wrapper adds them, as GATConv does)
    idx = jnp.arange(N, dtype=jnp.int32)
    src0 = jnp.concatenate([idx, idx])
    dst0 = jnp.concatenate([(idx + 1) % N, (idx + 3) % N])
    edge_index = jnp.stack([src0, dst0])

    out, (ei, alpha) = gat_forward(
        x, edge_index, (w, att_src, att_dst, bias), num_heads=HEADS)
    jax.block_until_ready((out, alpha))

    # pure-JAX edge-wise reference (PyG GATConv semantics, eval mode, all f32)
    src, dst = ei[0], ei[1]
    xp = (x @ w).reshape(N, HEADS, C)
    a_s = (xp * att_src[None]).sum(-1)          # [N, H]
    a_d = (xp * att_dst[None]).sum(-1)          # [N, H]
    e = a_d[dst] + a_s[src]
    e = jnp.where(e > 0, e, 0.2 * e)
    e_max = jax.ops.segment_max(e, dst, num_segments=N)
    p = jnp.exp(e - e_max[dst])
    denom = jax.ops.segment_sum(p, dst, num_segments=N)
    alpha_ref = p / denom[dst]
    out_ref = jax.ops.segment_sum(
        alpha_ref[:, :, None] * xp[src], dst, num_segments=N
    ).reshape(N, OUT) + bias

    # alpha path (scores, max, denom) is fully f32 -> tight tolerance
    assert jnp.allclose(alpha, alpha_ref, atol=1e-4, rtol=1e-4), \
        float(jnp.max(jnp.abs(alpha - alpha_ref)))
    # out tolerance covers bf16 MXU operand quantization (f32 accumulation)
    assert jnp.allclose(out, out_ref, atol=2e-2, rtol=2e-2), \
        float(jnp.max(jnp.abs(out - out_ref)))
    print("KERNEL_OK")
</pallas_src>

<mosaic_0001>
module attributes {stable_mosaic.version = 11 : i64} {
  func.func @_gat_attn_kernel(%arg0: i32, %arg1: i32, %arg2: memref<128x4xf32, #tpu.memory_space<vmem>>, %arg3: memref<4x256xf32, #tpu.memory_space<vmem>>, %arg4: memref<128x256xi8, #tpu.memory_space<vmem>>, %arg5: memref<4x256x8xbf16, #tpu.memory_space<vmem>>, %arg6: memref<128x40xf32, #tpu.memory_space<vmem>>, %arg7: memref<4x128x1xf32, #tpu.memory_space<vmem>>, %arg8: memref<4x128x1xf32, #tpu.memory_space<vmem>>, %arg9: memref<4x128x8xf32, #tpu.memory_space<vmem>>) attributes {dimension_semantics = [#tpu.dimension_semantics<parallel>, #tpu.dimension_semantics<arbitrary>], iteration_bounds = array<i64: 2, 1>, scalar_prefetch = 0 : i64, scratch_operands = 3 : i64, tpu.core_type = #tpu.core_type<tc>, window_params = [{transform_indices = @transform_0, window_bounds = array<i64: 128, 4>}, {transform_indices = @transform_1, window_bounds = array<i64: 4, 256>}, {transform_indices = @transform_2, window_bounds = array<i64: 128, 256>}, {transform_indices = @transform_3, window_bounds = array<i64: 4, 256, 8>}, {transform_indices = @transform_4, window_bounds = array<i64: 128, 40>}]} {
    %c0_i32 = arith.constant 0 : i32
    %0 = arith.cmpi eq, %arg1, %c0_i32 : i32
    %1 = arith.extui %0 : i1 to i32
    %c0_i32_0 = arith.constant 0 : i32
    %2 = arith.cmpi ne, %1, %c0_i32_0 : i32
    scf.if %2 {
      %cst_106 = arith.constant 0xFF800000 : f32
      %186 = vector.broadcast %cst_106 : f32 to vector<4x128x1xf32>
      %c0_107 = arith.constant 0 : index
      %c0_108 = arith.constant 0 : index
      %c0_109 = arith.constant 0 : index
      %187 = vector.load %arg7[%c0_107, %c0_108, %c0_109] : memref<4x128x1xf32, #tpu.memory_space<vmem>>, vector<4x128x1xf32>
      tpu.vector_store %arg7[%c0_107, %c0_108, %c0_109], %186 {strides = array<i32>} : memref<4x128x1xf32, #tpu.memory_space<vmem>>, vector<4x128x1xf32>,
      %cst_110 = arith.constant 0.000000e+00 : f32
      %188 = vector.broadcast %cst_110 : f32 to vector<4x128x1xf32>
      %c0_111 = arith.constant 0 : index
      %c0_112 = arith.constant 0 : index
      %c0_113 = arith.constant 0 : index
      %189 = vector.load %arg8[%c0_111, %c0_112, %c0_113] : memref<4x128x1xf32, #tpu.memory_space<vmem>>, vector<4x128x1xf32>
      tpu.vector_store %arg8[%c0_111, %c0_112, %c0_113], %188 {strides = array<i32>} : memref<4x128x1xf32, #tpu.memory_space<vmem>>, vector<4x128x1xf32>,
      %cst_114 = arith.constant 0.000000e+00 : f32
      %190 = vector.broadcast %cst_114 : f32 to vector<4x128x8xf32>
      %c0_115 = arith.constant 0 : index
      %c0_116 = arith.constant 0 : index
      %c0_117 = arith.constant 0 : index
      %191 = vector.load %arg9[%c0_115, %c0_116, %c0_117] : memref<4x128x8xf32, #tpu.memory_space<vmem>>, vector<4x128x8xf32>
      tpu.vector_store %arg9[%c0_115, %c0_116, %c0_117], %190 {strides = array<i32>} : memref<4x128x8xf32, #tpu.memory_space<vmem>>, vector<4x128x8xf32>,
    } else {
    }
    %c0 = arith.constant 0 : index
    %c0_1 = arith.constant 0 : index
    %3 = vector.load %arg4[%c0, %c0_1] : memref<128x256xi8, #tpu.memory_space<vmem>>, vector<128x256xi8>
    %4 = arith.sitofp %3 : vector<128x256xi8> to vector<128x256xf32>
    %cst = arith.constant 1.000000e+00 : f32
    %5 = vector.broadcast %cst : f32 to vector<128x256xf32>
    %6 = arith.subf %4, %5 : vector<128x256xf32>
    %cst_2 = arith.constant 1.000000e+30 : f32
    %7 = vector.broadcast %cst_2 : f32 to vector<128x256xf32>
    %8 = arith.mulf %6, %7 : vector<128x256xf32>
    %c0_3 = arith.constant 0 : index
    %c0_4 = arith.constant 0 : index
    %9 = vector.load %arg2[%c0_3, %c0_4] : memref<128x4xf32, #tpu.memory_space<vmem>>, vector<128x4xf32>
    %c0_5 = arith.constant 0 : index
    %c0_6 = arith.constant 0 : index
    %10 = vector.load %arg3[%c0_5, %c0_6] : memref<4x256xf32, #tpu.memory_space<vmem>>, vector<4x256xf32>
    %11 = vector.extract_strided_slice %9 {offsets = [0, 0], sizes = [128, 1], strides = [1, 1]} : vector<128x4xf32> to vector<128x1xf32>
    %12 = vector.extract_strided_slice %10 {offsets = [0, 0], sizes = [1, 256], strides = [1, 1]} : vector<4x256xf32> to vector<1x256xf32>
    %13 = vector.broadcast %11 : vector<128x1xf32> to vector<128x256xf32>
    %14 = vector.broadcast %12 : vector<1x256xf32> to vector<128x256xf32>
    %15 = arith.addf %13, %14 : vector<128x256xf32>
    %cst_7 = arith.constant 2.000000e-01 : f32
    %16 = vector.broadcast %cst_7 : f32 to vector<128x256xf32>
    %17 = arith.mulf %16, %15 : vector<128x256xf32>
    %18 = arith.maximumf %15, %17 : vector<128x256xf32>
    %19 = arith.addf %18, %8 : vector<128x256xf32>
    %c0_8 = arith.constant 0 : index
    %c0_9 = arith.constant 0 : index
    %c0_10 = arith.constant 0 : index
    %20 = vector.load %arg7[%c0_8, %c0_9, %c0_10] : memref<4x128x1xf32, #tpu.memory_space<vmem>>, vector<1x128x1xf32>
    %21 = vector.shape_cast %20 : vector<1x128x1xf32> to vector<128x1xf32>
    %cst_11 = arith.constant dense<0xFF800000> : vector<128xf32>
    %22 = vector.multi_reduction <maximumf>, %19, %cst_11 [1] : vector<128x256xf32> to vector<128xf32>
    %23 = vector.shape_cast %22 : vector<128xf32> to vector<128x1xf32>
    %24 = arith.maximumf %21, %23 : vector<128x1xf32>
    %25 = arith.subf %21, %24 : vector<128x1xf32>
    %26 = math.exp %25 : vector<128x1xf32>
    %27 = vector.broadcast %24 : vector<128x1xf32> to vector<128x256xf32>
    %28 = arith.subf %19, %27 : vector<128x256xf32>
    %29 = math.exp %28 : vector<128x256xf32>
    %c0_12 = arith.constant 0 : index
    %c0_13 = arith.constant 0 : index
    %c0_14 = arith.constant 0 : index
    %30 = vector.load %arg8[%c0_12, %c0_13, %c0_14] : memref<4x128x1xf32, #tpu.memory_space<vmem>>, vector<1x128x1xf32>
    %31 = vector.shape_cast %30 : vector<1x128x1xf32> to vector<128x1xf32>
    %32 = arith.mulf %26, %31 : vector<128x1xf32>
    %cst_15 = arith.constant dense<0.000000e+00> : vector<128xf32>
    %33 = vector.multi_reduction <add>, %29, %cst_15 [1] : vector<128x256xf32> to vector<128xf32>
    %34 = vector.shape_cast %33 : vector<128xf32> to vector<128x1xf32>
    %35 = arith.addf %32, %34 : vector<128x1xf32>
    %c0_16 = arith.constant 0 : index
    %c0_17 = arith.constant 0 : index
    %c0_18 = arith.constant 0 : index
    %36 = vector.load %arg8[%c0_16, %c0_17, %c0_18] : memref<4x128x1xf32, #tpu.memory_space<vmem>>, vector<1x128x1xf32>
    %37 = vector.shape_cast %36 : vector<1x128x1xf32> to vector<128x1xf32>
    %38 = vector.shape_cast %35 : vector<128x1xf32> to vector<1x128x1xf32>
    tpu.vector_store %arg8[%c0_16, %c0_17, %c0_18], %38 {strides = array<i32>} : memref<4x128x1xf32, #tpu.memory_space<vmem>>, vector<1x128x1xf32>,
    %c0_19 = arith.constant 0 : index
    %c0_20 = arith.constant 0 : index
    %c0_21 = arith.constant 0 : index
    %39 = vector.load %arg9[%c0_19, %c0_20, %c0_21] : memref<4x128x8xf32, #tpu.memory_space<vmem>>, vector<1x128x8xf32>
    %40 = vector.shape_cast %39 : vector<1x128x8xf32> to vector<128x8xf32>
    %41 = vector.broadcast %26 : vector<128x1xf32> to vector<128x8xf32>
    %42 = arith.mulf %41, %40 : vector<128x8xf32>
    %43 = arith.truncf %29 : vector<128x256xf32> to vector<128x256xbf16>
    %c0_22 = arith.constant 0 : index
    %c0_23 = arith.constant 0 : index
    %c0_24 = arith.constant 0 : index
    %44 = vector.load %arg5[%c0_22, %c0_23, %c0_24] : memref<4x256x8xbf16, #tpu.memory_space<vmem>>, vector<1x256x8xbf16>
    %45 = vector.shape_cast %44 : vector<1x256x8xbf16> to vector<256x8xbf16>
    %cst_25 = arith.constant dense<0.000000e+00> : vector<128x8xf32>
    %46 = tpu.matmul %43, %45, %cst_25 {dimension_numbers = #tpu.dot_dimension_numbers<[1], [0], [0], [1], [0, 0, 1, 1], [], []>} : vector<128x256xbf16>, vector<256x8xbf16>, vector<128x8xf32> -> vector<128x8xf32>
    %47 = arith.addf %42, %46 : vector<128x8xf32>
    %c0_26 = arith.constant 0 : index
    %c0_27 = arith.constant 0 : index
    %c0_28 = arith.constant 0 : index
    %48 = vector.load %arg9[%c0_26, %c0_27, %c0_28] : memref<4x128x8xf32, #tpu.memory_space<vmem>>, vector<1x128x8xf32>
    %49 = vector.shape_cast %48 : vector<1x128x8xf32> to vector<128x8xf32>
    %50 = vector.shape_cast %47 : vector<128x8xf32> to vector<1x128x8xf32>
    tpu.vector_store %arg9[%c0_26, %c0_27, %c0_28], %50 {strides = array<i32>} : memref<4x128x8xf32, #tpu.memory_space<vmem>>, vector<1x128x8xf32>,
    %c0_29 = arith.constant 0 : index
    %c0_30 = arith.constant 0 : index
    %c0_31 = arith.constant 0 : index
    %51 = vector.load %arg7[%c0_29, %c0_30, %c0_31] : memref<4x128x1xf32, #tpu.memory_space<vmem>>, vector<1x128x1xf32>
    %52 = vector.shape_cast %51 : vector<1x128x1xf32> to vector<128x1xf32>
    %53 = vector.shape_cast %24 : vector<128x1xf32> to vector<1x128x1xf32>
    tpu.vector_store %arg7[%c0_29, %c0_30, %c0_31], %53 {strides = array<i32>} : memref<4x128x1xf32, #tpu.memory_space<vmem>>, vector<1x128x1xf32>,
    %54 = vector.extract_strided_slice %9 {offsets = [0, 1], sizes = [128, 1], strides = [1, 1]} : vector<128x4xf32> to vector<128x1xf32>
    %55 = vector.extract_strided_slice %10 {offsets = [1, 0], sizes = [1, 256], strides = [1, 1]} : vector<4x256xf32> to vector<1x256xf32>
    %56 = vector.broadcast %54 : vector<128x1xf32> to vector<128x256xf32>
    %57 = vector.broadcast %55 : vector<1x256xf32> to vector<128x256xf32>
    %58 = arith.addf %56, %57 : vector<128x256xf32>
    %cst_32 = arith.constant 2.000000e-01 : f32
    %59 = vector.broadcast %cst_32 : f32 to vector<128x256xf32>
    %60 = arith.mulf %59, %58 : vector<128x256xf32>
    %61 = arith.maximumf %58, %60 : vector<128x256xf32>
    %62 = arith.addf %61, %8 : vector<128x256xf32>
    %c1 = arith.constant 1 : index
    %c0_33 = arith.constant 0 : index
    %c0_34 = arith.constant 0 : index
    %63 = vector.load %arg7[%c1, %c0_33, %c0_34] : memref<4x128x1xf32, #tpu.memory_space<vmem>>, vector<1x128x1xf32>
    %64 = vector.shape_cast %63 : vector<1x128x1xf32> to vector<128x1xf32>
    %cst_35 = arith.constant dense<0xFF800000> : vector<128xf32>
    %65 = vector.multi_reduction <maximumf>, %62, %cst_35 [1] : vector<128x256xf32> to vector<128xf32>
    %66 = vector.shape_cast %65 : vector<128xf32> to vector<128x1xf32>
    %67 = arith.maximumf %64, %66 : vector<128x1xf32>
    %68 = arith.subf %64, %67 : vector<128x1xf32>
    %69 = math.exp %68 : vector<128x1xf32>
    %70 = vector.broadcast %67 : vector<128x1xf32> to vector<128x256xf32>
    %71 = arith.subf %62, %70 : vector<128x256xf32>
    %72 = math.exp %71 : vector<128x256xf32>
    %c1_36 = arith.constant 1 : index
    %c0_37 = arith.constant 0 : index
    %c0_38 = arith.constant 0 : index
    %73 = vector.load %arg8[%c1_36, %c0_37, %c0_38] : memref<4x128x1xf32, #tpu.memory_space<vmem>>, vector<1x128x1xf32>
    %74 = vector.shape_cast %73 : vector<1x128x1xf32> to vector<128x1xf32>
    %75 = arith.mulf %69, %74 : vector<128x1xf32>
    %cst_39 = arith.constant dense<0.000000e+00> : vector<128xf32>
    %76 = vector.multi_reduction <add>, %72, %cst_39 [1] : vector<128x256xf32> to vector<128xf32>
    %77 = vector.shape_cast %76 : vector<128xf32> to vector<128x1xf32>
    %78 = arith.addf %75, %77 : vector<128x1xf32>
    %c1_40 = arith.constant 1 : index
    %c0_41 = arith.constant 0 : index
    %c0_42 = arith.constant 0 : index
    %79 = vector.load %arg8[%c1_40, %c0_41, %c0_42] : memref<4x128x1xf32, #tpu.memory_space<vmem>>, vector<1x128x1xf32>
    %80 = vector.shape_cast %79 : vector<1x128x1xf32> to vector<128x1xf32>
    %81 = vector.shape_cast %78 : vector<128x1xf32> to vector<1x128x1xf32>
    tpu.vector_store %arg8[%c1_40, %c0_41, %c0_42], %81 {strides = array<i32>} : memref<4x128x1xf32, #tpu.memory_space<vmem>>, vector<1x128x1xf32>,
    %c1_43 = arith.constant 1 : index
    %c0_44 = arith.constant 0 : index
    %c0_45 = arith.constant 0 : index
    %82 = vector.load %arg9[%c1_43, %c0_44, %c0_45] : memref<4x128x8xf32, #tpu.memory_space<vmem>>, vector<1x128x8xf32>
    %83 = vector.shape_cast %82 : vector<1x128x8xf32> to vector<128x8xf32>
    %84 = vector.broadcast %69 : vector<128x1xf32> to vector<128x8xf32>
    %85 = arith.mulf %84, %83 : vector<128x8xf32>
    %86 = arith.truncf %72 : vector<128x256xf32> to vector<128x256xbf16>
    %c1_46 = arith.constant 1 : index
    %c0_47 = arith.constant 0 : index
    %c0_48 = arith.constant 0 : index
    %87 = vector.load %arg5[%c1_46, %c0_47, %c0_48] : memref<4x256x8xbf16, #tpu.memory_space<vmem>>, vector<1x256x8xbf16>
    %88 = vector.shape_cast %87 : vector<1x256x8xbf16> to vector<256x8xbf16>
    %cst_49 = arith.constant dense<0.000000e+00> : vector<128x8xf32>
    %89 = tpu.matmul %86, %88, %cst_49 {dimension_numbers = #tpu.dot_dimension_numbers<[1], [0], [0], [1], [0, 0, 1, 1], [], []>} : vector<128x256xbf16>, vector<256x8xbf16>, vector<128x8xf32> -> vector<128x8xf32>
    %90 = arith.addf %85, %89 : vector<128x8xf32>
    %c1_50 = arith.constant 1 : index
    %c0_51 = arith.constant 0 : index
    %c0_52 = arith.constant 0 : index
    %91 = vector.load %arg9[%c1_50, %c0_51, %c0_52] : memref<4x128x8xf32, #tpu.memory_space<vmem>>, vector<1x128x8xf32>
    %92 = vector.shape_cast %91 : vector<1x128x8xf32> to vector<128x8xf32>
    %93 = vector.shape_cast %90 : vector<128x8xf32> to vector<1x128x8xf32>
    tpu.vector_store %arg9[%c1_50, %c0_51, %c0_52], %93 {strides = array<i32>} : memref<4x128x8xf32, #tpu.memory_space<vmem>>, vector<1x128x8xf32>,
    %c1_53 = arith.constant 1 : index
    %c0_54 = arith.constant 0 : index
    %c0_55 = arith.constant 0 : index
    %94 = vector.load %arg7[%c1_53, %c0_54, %c0_55] : memref<4x128x1xf32, #tpu.memory_space<vmem>>, vector<1x128x1xf32>
    %95 = vector.shape_cast %94 : vector<1x128x1xf32> to vector<128x1xf32>
    %96 = vector.shape_cast %67 : vector<128x1xf32> to vector<1x128x1xf32>
    tpu.vector_store %arg7[%c1_53, %c0_54, %c0_55], %96 {strides = array<i32>} : memref<4x128x1xf32, #tpu.memory_space<vmem>>, vector<1x128x1xf32>,
    %97 = vector.extract_strided_slice %9 {offsets = [0, 2], sizes = [128, 1], strides = [1, 1]} : vector<128x4xf32> to vector<128x1xf32>
    %98 = vector.extract_strided_slice %10 {offsets = [2, 0], sizes = [1, 256], strides = [1, 1]} : vector<4x256xf32> to vector<1x256xf32>
    %99 = vector.broadcast %97 : vector<128x1xf32> to vector<128x256xf32>
    %100 = vector.broadcast %98 : vector<1x256xf32> to vector<128x256xf32>
    %101 = arith.addf %99, %100 : vector<128x256xf32>
    %cst_56 = arith.constant 2.000000e-01 : f32
    %102 = vector.broadcast %cst_56 : f32 to vector<128x256xf32>
    %103 = arith.mulf %102, %101 : vector<128x256xf32>
    %104 = arith.maximumf %101, %103 : vector<128x256xf32>
    %105 = arith.addf %104, %8 : vector<128x256xf32>
    %c2 = arith.constant 2 : index
    %c0_57 = arith.constant 0 : index
    %c0_58 = arith.constant 0 : index
    %106 = vector.load %arg7[%c2, %c0_57, %c0_58] : memref<4x128x1xf32, #tpu.memory_space<vmem>>, vector<1x128x1xf32>
    %107 = vector.shape_cast %106 : vector<1x128x1xf32> to vector<128x1xf32>
    %cst_59 = arith.constant dense<0xFF800000> : vector<128xf32>
    %108 = vector.multi_reduction <maximumf>, %105, %cst_59 [1] : vector<128x256xf32> to vector<128xf32>
    %109 = vector.shape_cast %108 : vector<128xf32> to vector<128x1xf32>
    %110 = arith.maximumf %107, %109 : vector<128x1xf32>
    %111 = arith.subf %107, %110 : vector<128x1xf32>
    %112 = math.exp %111 : vector<128x1xf32>
    %113 = vector.broadcast %110 : vector<128x1xf32> to vector<128x256xf32>
    %114 = arith.subf %105, %113 : vector<128x256xf32>
    %115 = math.exp %114 : vector<128x256xf32>
    %c2_60 = arith.constant 2 : index
    %c0_61 = arith.constant 0 : index
    %c0_62 = arith.constant 0 : index
    %116 = vector.load %arg8[%c2_60, %c0_61, %c0_62] : memref<4x128x1xf32, #tpu.memory_space<vmem>>, vector<1x128x1xf32>
    %117 = vector.shape_cast %116 : vector<1x128x1xf32> to vector<128x1xf32>
    %118 = arith.mulf %112, %117 : vector<128x1xf32>
    %cst_63 = arith.constant dense<0.000000e+00> : vector<128xf32>
    %119 = vector.multi_reduction <add>, %115, %cst_63 [1] : vector<128x256xf32> to vector<128xf32>
    %120 = vector.shape_cast %119 : vector<128xf32> to vector<128x1xf32>
    %121 = arith.addf %118, %120 : vector<128x1xf32>
    %c2_64 = arith.constant 2 : index
    %c0_65 = arith.constant 0 : index
    %c0_66 = arith.constant 0 : index
    %122 = vector.load %arg8[%c2_64, %c0_65, %c0_66] : memref<4x128x1xf32, #tpu.memory_space<vmem>>, vector<1x128x1xf32>
    %123 = vector.shape_cast %122 : vector<1x128x1xf32> to vector<128x1xf32>
    %124 = vector.shape_cast %121 : vector<128x1xf32> to vector<1x128x1xf32>
    tpu.vector_store %arg8[%c2_64, %c0_65, %c0_66], %124 {strides = array<i32>} : memref<4x128x1xf32, #tpu.memory_space<vmem>>, vector<1x128x1xf32>,
    %c2_67 = arith.constant 2 : index
    %c0_68 = arith.constant 0 : index
    %c0_69 = arith.constant 0 : index
    %125 = vector.load %arg9[%c2_67, %c0_68, %c0_69] : memref<4x128x8xf32, #tpu.memory_space<vmem>>, vector<1x128x8xf32>
    %126 = vector.shape_cast %125 : vector<1x128x8xf32> to vector<128x8xf32>
    %127 = vector.broadcast %112 : vector<128x1xf32> to vector<128x8xf32>
    %128 = arith.mulf %127, %126 : vector<128x8xf32>
    %129 = arith.truncf %115 : vector<128x256xf32> to vector<128x256xbf16>
    %c2_70 = arith.constant 2 : index
    %c0_71 = arith.constant 0 : index
    %c0_72 = arith.constant 0 : index
    %130 = vector.load %arg5[%c2_70, %c0_71, %c0_72] : memref<4x256x8xbf16, #tpu.memory_space<vmem>>, vector<1x256x8xbf16>
    %131 = vector.shape_cast %130 : vector<1x256x8xbf16> to vector<256x8xbf16>
    %cst_73 = arith.constant dense<0.000000e+00> : vector<128x8xf32>
    %132 = tpu.matmul %129, %131, %cst_73 {dimension_numbers = #tpu.dot_dimension_numbers<[1], [0], [0], [1], [0, 0, 1, 1], [], []>} : vector<128x256xbf16>, vector<256x8xbf16>, vector<128x8xf32> -> vector<128x8xf32>
    %133 = arith.addf %128, %132 : vector<128x8xf32>
    %c2_74 = arith.constant 2 : index
    %c0_75 = arith.constant 0 : index
    %c0_76 = arith.constant 0 : index
    %134 = vector.load %arg9[%c2_74, %c0_75, %c0_76] : memref<4x128x8xf32, #tpu.memory_space<vmem>>, vector<1x128x8xf32>
    %135 = vector.shape_cast %134 : vector<1x128x8xf32> to vector<128x8xf32>
    %136 = vector.shape_cast %133 : vector<128x8xf32> to vector<1x128x8xf32>
    tpu.vector_store %arg9[%c2_74, %c0_75, %c0_76], %136 {strides = array<i32>} : memref<4x128x8xf32, #tpu.memory_space<vmem>>, vector<1x128x8xf32>,
    %c2_77 = arith.constant 2 : index
    %c0_78 = arith.constant 0 : index
    %c0_79 = arith.constant 0 : index
    %137 = vector.load %arg7[%c2_77, %c0_78, %c0_79] : memref<4x128x1xf32, #tpu.memory_space<vmem>>, vector<1x128x1xf32>
    %138 = vector.shape_cast %137 : vector<1x128x1xf32> to vector<128x1xf32>
    %139 = vector.shape_cast %110 : vector<128x1xf32> to vector<1x128x1xf32>
    tpu.vector_store %arg7[%c2_77, %c0_78, %c0_79], %139 {strides = array<i32>} : memref<4x128x1xf32, #tpu.memory_space<vmem>>, vector<1x128x1xf32>,
    %140 = vector.extract_strided_slice %9 {offsets = [0, 3], sizes = [128, 1], strides = [1, 1]} : vector<128x4xf32> to vector<128x1xf32>
    %141 = vector.extract_strided_slice %10 {offsets = [3, 0], sizes = [1, 256], strides = [1, 1]} : vector<4x256xf32> to vector<1x256xf32>
    %142 = vector.broadcast %140 : vector<128x1xf32> to vector<128x256xf32>
    %143 = vector.broadcast %141 : vector<1x256xf32> to vector<128x256xf32>
    %144 = arith.addf %142, %143 : vector<128x256xf32>
    %cst_80 = arith.constant 2.000000e-01 : f32
    %145 = vector.broadcast %cst_80 : f32 to vector<128x256xf32>
    %146 = arith.mulf %145, %144 : vector<128x256xf32>
    %147 = arith.maximumf %144, %146 : vector<128x256xf32>
    %148 = arith.addf %147, %8 : vector<128x256xf32>
    %c3 = arith.constant 3 : index
    %c0_81 = arith.constant 0 : index
    %c0_82 = arith.constant 0 : index
    %149 = vector.load %arg7[%c3, %c0_81, %c0_82] : memref<4x128x1xf32, #tpu.memory_space<vmem>>, vector<1x128x1xf32>
    %150 = vector.shape_cast %149 : vector<1x128x1xf32> to vector<128x1xf32>
    %cst_83 = arith.constant dense<0xFF800000> : vector<128xf32>
    %151 = vector.multi_reduction <maximumf>, %148, %cst_83 [1] : vector<128x256xf32> to vector<128xf32>
    %152 = vector.shape_cast %151 : vector<128xf32> to vector<128x1xf32>
    %153 = arith.maximumf %150, %152 : vector<128x1xf32>
    %154 = arith.subf %150, %153 : vector<128x1xf32>
    %155 = math.exp %154 : vector<128x1xf32>
    %156 = vector.broadcast %153 : vector<128x1xf32> to vector<128x256xf32>
    %157 = arith.subf %148, %156 : vector<128x256xf32>
    %158 = math.exp %157 : vector<128x256xf32>
    %c3_84 = arith.constant 3 : index
    %c0_85 = arith.constant 0 : index
    %c0_86 = arith.constant 0 : index
    %159 = vector.load %arg8[%c3_84, %c0_85, %c0_86] : memref<4x128x1xf32, #tpu.memory_space<vmem>>, vector<1x128x1xf32>
    %160 = vector.shape_cast %159 : vector<1x128x1xf32> to vector<128x1xf32>
    %161 = arith.mulf %155, %160 : vector<128x1xf32>
    %cst_87 = arith.constant dense<0.000000e+00> : vector<128xf32>
    %162 = vector.multi_reduction <add>, %158, %cst_87 [1] : vector<128x256xf32> to vector<128xf32>
    %163 = vector.shape_cast %162 : vector<128xf32> to vector<128x1xf32>
    %164 = arith.addf %161, %163 : vector<128x1xf32>
    %c3_88 = arith.constant 3 : index
    %c0_89 = arith.constant 0 : index
    %c0_90 = arith.constant 0 : index
    %165 = vector.load %arg8[%c3_88, %c0_89, %c0_90] : memref<4x128x1xf32, #tpu.memory_space<vmem>>, vector<1x128x1xf32>
    %166 = vector.shape_cast %165 : vector<1x128x1xf32> to vector<128x1xf32>
    %167 = vector.shape_cast %164 : vector<128x1xf32> to vector<1x128x1xf32>
    tpu.vector_store %arg8[%c3_88, %c0_89, %c0_90], %167 {strides = array<i32>} : memref<4x128x1xf32, #tpu.memory_space<vmem>>, vector<1x128x1xf32>,
    %c3_91 = arith.constant 3 : index
    %c0_92 = arith.constant 0 : index
    %c0_93 = arith.constant 0 : index
    %168 = vector.load %arg9[%c3_91, %c0_92, %c0_93] : memref<4x128x8xf32, #tpu.memory_space<vmem>>, vector<1x128x8xf32>
    %169 = vector.shape_cast %168 : vector<1x128x8xf32> to vector<128x8xf32>
    %170 = vector.broadcast %155 : vector<128x1xf32> to vector<128x8xf32>
    %171 = arith.mulf %170, %169 : vector<128x8xf32>
    %172 = arith.truncf %158 : vector<128x256xf32> to vector<128x256xbf16>
    %c3_94 = arith.constant 3 : index
    %c0_95 = arith.constant 0 : index
    %c0_96 = arith.constant 0 : index
    %173 = vector.load %arg5[%c3_94, %c0_95, %c0_96] : memref<4x256x8xbf16, #tpu.memory_space<vmem>>, vector<1x256x8xbf16>
    %174 = vector.shape_cast %173 : vector<1x256x8xbf16> to vector<256x8xbf16>
    %cst_97 = arith.constant dense<0.000000e+00> : vector<128x8xf32>
    %175 = tpu.matmul %172, %174, %cst_97 {dimension_numbers = #tpu.dot_dimension_numbers<[1], [0], [0], [1], [0, 0, 1, 1], [], []>} : vector<128x256xbf16>, vector<256x8xbf16>, vector<128x8xf32> -> vector<128x8xf32>
    %176 = arith.addf %171, %175 : vector<128x8xf32>
    %c3_98 = arith.constant 3 : index
    %c0_99 = arith.constant 0 : index
    %c0_100 = arith.constant 0 : index
    %177 = vector.load %arg9[%c3_98, %c0_99, %c0_100] : memref<4x128x8xf32, #tpu.memory_space<vmem>>, vector<1x128x8xf32>
    %178 = vector.shape_cast %177 : vector<1x128x8xf32> to vector<128x8xf32>
    %179 = vector.shape_cast %176 : vector<128x8xf32> to vector<1x128x8xf32>
    tpu.vector_store %arg9[%c3_98, %c0_99, %c0_100], %179 {strides = array<i32>} : memref<4x128x8xf32, #tpu.memory_space<vmem>>, vector<1x128x8xf32>,
    %c3_101 = arith.constant 3 : index
    %c0_102 = arith.constant 0 : index
    %c0_103 = arith.constant 0 : index
    %180 = vector.load %arg7[%c3_101, %c0_102, %c0_103] : memref<4x128x1xf32, #tpu.memory_space<vmem>>, vector<1x128x1xf32>
    %181 = vector.shape_cast %180 : vector<1x128x1xf32> to vector<128x1xf32>
    %182 = vector.shape_cast %153 : vector<128x1xf32> to vector<1x128x1xf32>
    tpu.vector_store %arg7[%c3_101, %c0_102, %c0_103], %182 {strides = array<i32>} : memref<4x128x1xf32, #tpu.memory_space<vmem>>, vector<1x128x1xf32>,
    %c0_i32_104 = arith.constant 0 : i32
    %183 = arith.cmpi eq, %arg1, %c0_i32_104 : i32
    %184 = arith.extui %183 : i1 to i32
    %c0_i32_105 = arith.constant 0 : i32
    %185 = arith.cmpi ne, %184, %c0_i32_105 : i32
    scf.if %185 {
      %c0_106 = arith.constant 0 : index
      %c0_107 = arith.constant 0 : index
      %c0_108 = arith.constant 0 : index
      %186 = vector.load %arg9[%c0_106, %c0_107, %c0_108] : memref<4x128x8xf32, #tpu.memory_space<vmem>>, vector<1x128x8xf32>
      %187 = vector.shape_cast %186 : vector<1x128x8xf32> to vector<128x8xf32>
      %c0_109 = arith.constant 0 : index
      %c0_110 = arith.constant 0 : index
      %c0_111 = arith.constant 0 : index
      %188 = vector.load %arg8[%c0_109, %c0_110, %c0_111] : memref<4x128x1xf32, #tpu.memory_space<vmem>>, vector<1x128x1xf32>
      %189 = vector.shape_cast %188 : vector<1x128x1xf32> to vector<128x1xf32>
      %190 = tpu.reciprocal %189 : vector<128x1xf32> -> vector<128x1xf32>
      %191 = vector.broadcast %190 : vector<128x1xf32> to vector<128x8xf32>
      %192 = arith.mulf %187, %191 : vector<128x8xf32>
      %c1_112 = arith.constant 1 : index
      %c0_113 = arith.constant 0 : index
      %c0_114 = arith.constant 0 : index
      %193 = vector.load %arg9[%c1_112, %c0_113, %c0_114] : memref<4x128x8xf32, #tpu.memory_space<vmem>>, vector<1x128x8xf32>
      %194 = vector.shape_cast %193 : vector<1x128x8xf32> to vector<128x8xf32>
      %c1_115 = arith.constant 1 : index
      %c0_116 = arith.constant 0 : index
      %c0_117 = arith.constant 0 : index
      %195 = vector.load %arg8[%c1_115, %c0_116, %c0_117] : memref<4x128x1xf32, #tpu.memory_space<vmem>>, vector<1x128x1xf32>
      %196 = vector.shape_cast %195 : vector<1x128x1xf32> to vector<128x1xf32>
      %197 = tpu.reciprocal %196 : vector<128x1xf32> -> vector<128x1xf32>
      %198 = vector.broadcast %197 : vector<128x1xf32> to vector<128x8xf32>
      %199 = arith.mulf %194, %198 : vector<128x8xf32>
      %c2_118 = arith.constant 2 : index
      %c0_119 = arith.constant 0 : index
      %c0_120 = arith.constant 0 : index
      %200 = vector.load %arg9[%c2_118, %c0_119, %c0_120] : memref<4x128x8xf32, #tpu.memory_space<vmem>>, vector<1x128x8xf32>
      %201 = vector.shape_cast %200 : vector<1x128x8xf32> to vector<128x8xf32>
      %c2_121 = arith.constant 2 : index
      %c0_122 = arith.constant 0 : index
      %c0_123 = arith.constant 0 : index
      %202 = vector.load %arg8[%c2_121, %c0_122, %c0_123] : memref<4x128x1xf32, #tpu.memory_space<vmem>>, vector<1x128x1xf32>
      %203 = vector.shape_cast %202 : vector<1x128x1xf32> to vector<128x1xf32>
      %204 = tpu.reciprocal %203 : vector<128x1xf32> -> vector<128x1xf32>
      %205 = vector.broadcast %204 : vector<128x1xf32> to vector<128x8xf32>
      %206 = arith.mulf %201, %205 : vector<128x8xf32>
      %c3_124 = arith.constant 3 : index
      %c0_125 = arith.constant 0 : index
      %c0_126 = arith.constant 0 : index
      %207 = vector.load %arg9[%c3_124, %c0_125, %c0_126] : memref<4x128x8xf32, #tpu.memory_space<vmem>>, vector<1x128x8xf32>
      %208 = vector.shape_cast %207 : vector<1x128x8xf32> to vector<128x8xf32>
      %c3_127 = arith.constant 3 : index
      %c0_128 = arith.constant 0 : index
      %c0_129 = arith.constant 0 : index
      %209 = vector.load %arg8[%c3_127, %c0_128, %c0_129] : memref<4x128x1xf32, #tpu.memory_space<vmem>>, vector<1x128x1xf32>
      %210 = vector.shape_cast %209 : vector<1x128x1xf32> to vector<128x1xf32>
      %211 = tpu.reciprocal %210 : vector<128x1xf32> -> vector<128x1xf32>
      %212 = vector.broadcast %211 : vector<128x1xf32> to vector<128x8xf32>
      %213 = arith.mulf %208, %212 : vector<128x8xf32>
      %c0_130 = arith.constant 0 : index
      %c0_131 = arith.constant 0 : index
      %c0_132 = arith.constant 0 : index
      %214 = vector.load %arg7[%c0_130, %c0_131, %c0_132] : memref<4x128x1xf32, #tpu.memory_space<vmem>>, vector<1x128x1xf32>
      %215 = vector.shape_cast %214 : vector<1x128x1xf32> to vector<128x1xf32>
      %c1_133 = arith.constant 1 : index
      %c0_134 = arith.constant 0 : index
      %c0_135 = arith.constant 0 : index
      %216 = vector.load %arg7[%c1_133, %c0_134, %c0_135] : memref<4x128x1xf32, #tpu.memory_space<vmem>>, vector<1x128x1xf32>
      %217 = vector.shape_cast %216 : vector<1x128x1xf32> to vector<128x1xf32>
      %c2_136 = arith.constant 2 : index
      %c0_137 = arith.constant 0 : index
      %c0_138 = arith.constant 0 : index
      %218 = vector.load %arg7[%c2_136, %c0_137, %c0_138] : memref<4x128x1xf32, #tpu.memory_space<vmem>>, vector<1x128x1xf32>
      %219 = vector.shape_cast %218 : vector<1x128x1xf32> to vector<128x1xf32>
      %c3_139 = arith.constant 3 : index
      %c0_140 = arith.constant 0 : index
      %c0_141 = arith.constant 0 : index
      %220 = vector.load %arg7[%c3_139, %c0_140, %c0_141] : memref<4x128x1xf32, #tpu.memory_space<vmem>>, vector<1x128x1xf32>
      %221 = vector.shape_cast %220 : vector<1x128x1xf32> to vector<128x1xf32>
      %c0_142 = arith.constant 0 : index
      %c0_143 = arith.constant 0 : index
      %c0_144 = arith.constant 0 : index
      %222 = vector.load %arg8[%c0_142, %c0_143, %c0_144] : memref<4x128x1xf32, #tpu.memory_space<vmem>>, vector<1x128x1xf32>
      %223 = vector.shape_cast %222 : vector<1x128x1xf32> to vector<128x1xf32>
      %c1_145 = arith.constant 1 : index
      %c0_146 = arith.constant 0 : index
      %c0_147 = arith.constant 0 : index
      %224 = vector.load %arg8[%c1_145, %c0_146, %c0_147] : memref<4x128x1xf32, #tpu.memory_space<vmem>>, vector<1x128x1xf32>
      %225 = vector.shape_cast %224 : vector<1x128x1xf32> to vector<128x1xf32>
      %c2_148 = arith.constant 2 : index
      %c0_149 = arith.constant 0 : index
      %c0_150 = arith.constant 0 : index
      %226 = vector.load %arg8[%c2_148, %c0_149, %c0_150] : memref<4x128x1xf32, #tpu.memory_space<vmem>>, vector<1x128x1xf32>
      %227 = vector.shape_cast %226 : vector<1x128x1xf32> to vector<128x1xf32>
      %c3_151 = arith.constant 3 : index
      %c0_152 = arith.constant 0 : index
      %c0_153 = arith.constant 0 : index
      %228 = vector.load %arg8[%c3_151, %c0_152, %c0_153] : memref<4x128x1xf32, #tpu.memory_space<vmem>>, vector<1x128x1xf32>
      %229 = vector.shape_cast %228 : vector<1x128x1xf32> to vector<128x1xf32>
      %230 = tpu.concatenate %192, %199, %206, %213, %215, %217, %219, %221, %223, %225, %227, %229 in 1 : vector<128x8xf32>, vector<128x8xf32>, vector<128x8xf32>, vector<128x8xf32>, vector<128x1xf32>, vector<128x1xf32>, vector<128x1xf32>, vector<128x1xf32>, vector<128x1xf32>, vector<128x1xf32>, vector<128x1xf32>, vector<128x1xf32> -> vector<128x40xf32>
      %c0_154 = arith.constant 0 : index
      %c0_155 = arith.constant 0 : index
      %231 = vector.load %arg6[%c0_154, %c0_155] : memref<128x40xf32, #tpu.memory_space<vmem>>, vector<128x40xf32>
      tpu.vector_store %arg6[%c0_154, %c0_155], %230 {strides = array<i32>} : memref<128x40xf32, #tpu.memory_space<vmem>>, vector<128x40xf32>,
    } else {
    }
    return
  }
  func.func @transform_0(%arg0: i32, %arg1: i32) -> (i32, i32) {
    %c0_i32 = arith.constant 0 : i32
    %c0_i32_0 = arith.constant 0 : i32
    return %arg0, %c0_i32 : i32, i32
  }
  func.func @transform_1(%arg0: i32, %arg1: i32) -> (i32, i32) {
    %c0_i32 = arith.constant 0 : i32
    %c0_i32_0 = arith.constant 0 : i32
    return %c0_i32, %arg1 : i32, i32
  }
  func.func @transform_2(%arg0: i32, %arg1: i32) -> (i32, i32) {
    %c0_i32 = arith.constant 0 : i32
    return %arg0, %arg1 : i32, i32
  }
  func.func @transform_3(%arg0: i32, %arg1: i32) -> (i32, i32, i32) {
    %c0_i32 = arith.constant 0 : i32
    %c0_i32_0 = arith.constant 0 : i32
    %c0_i32_1 = arith.constant 0 : i32
    return %c0_i32, %arg1, %c0_i32_0 : i32, i32, i32
  }
  func.func @transform_4(%arg0: i32, %arg1: i32) -> (i32, i32) {
    %c0_i32 = arith.constant 0 : i32
    %c0_i32_0 = arith.constant 0 : i32
    return %arg0, %c0_i32 : i32, i32
  }
}

</mosaic_0001>

<bundles_post_ra>
// kernel: tpu_custom_call.1
= control target key start
LH: loop header
LB: loop body
LE: loop exit
PB: predicated region body
PF: predicated region fallthrough
CT: control target
= control target key end

     0   :  { %s7711_s15 = smov 0   ;;  %s7713_s16 = smov 0   ;;  %s11823_s0 = inlined_call_operand.vmem [shape: f32[256,4], index: 0, kind: input, shape index: {}]   ;;  %s11824_s1 = inlined_call_operand.vmem [shape: f32[4,256], index: 1, kind: input, shape index: {}]   ;;  %s11825_s2 = inlined_call_operand.vmem [shape: s8[256,256], index: 2, kind: input, shape index: {}]   ;;  %s11826_s3 = inlined_call_operand.vmem [shape: bf16[4,256,8], index: 3, kind: input, shape index: {}]   ;;  %s11827_s4 = inlined_call_operand.vmem [shape: f32[256,40], index: 4, kind: output, shape index: {}]  }
   0x1   :  { %s7715_s17 = smov 0  }
   0x2 LB: > { %s26_s18 = sadd.s32 1, %s7663_s16  ;;  %p6458_p0 = scmp.ge.s32.totalorder %s7667_s17, 1  ;;  %s7667_s17 = sphi %s7715_s17, %s14_s17   ;;  %s7663_s16 = sphi %s7713_s16, %s12636_s16   ;;  %s7659_s15 = sphi %s7711_s15, %s12635_s15  }
   0x3   : > { %p28_p1 = scmp.ge.s32.totalorder %s26_s18, 2  ;;  %p216_p2 = scmp.lt.s32.totalorder %s7667_s17, 3 }
   0x5   : > { %s12638_s18 = smov (%p28_p1, %s26_s18), 0  ;;  %p217_p3 = pnand %p6458_p0, %p216_p2 }
   0x7   : > { %220 = sbr.rel (%p217_p3) target bundleno = 2440 (0x988), region = 36 }
   0xe   : > { %s6459_s19 = sshll.u32 %s7659_s15, 4  ;;  %v7669_v0 = vmov 1   ;;  %v11828_v1 = vmov 0   ;;  %s6461_s24 = sshll.u32 %s7659_s15, 2  ;;  %v731_v18 = vlaneseq  ;;  %vm303_vm0 = vcmask 7168   ;;  %v649_v32 = vld [vmem:[%s11824_s1] sm:$0xff] }
   0xf   : > { %6959 = vset.pattern.permute.xlu0 %v7669_v0  ;;  %p263_p4 = scmp.lt.s32.totalorder %s6459_s19, 31  ;;  %6958 = vset.pattern.permute.xlu1 %v11828_v1  ;;  %p276_p5 = scmp.lt.s32.totalorder %s6461_s24, 7  ;;  %v7671_v19 = vmov -inf   ;;  %vm432_vm1 = vcmask 64512   ;;  %vm6152_vm2 = vcmask 130048   ;;  %vm6169_vm3 = vcmask 195584  }
  0x10   : > { %304 = vst.msk [vmem:[#allocation2] sm:$0xff] %vm303_vm0, %v7671_v19  ;;  %305 = vst.msk [vmem:[#allocation2 + $0x8] sm:$0xff] %vm303_vm0, %v7671_v19  ;;  %v7899_v21 = vshrl.u32 %v731_v18, 7  ;;  %s7675_s15 = smov 8   ;;  %s7676_s21 = smov 16   ;;  %vm6186_vm4 = vcmask 261120  }
  0x11   : > { %s12640_s19 = smov (!%p263_p4, %s6459_s19), 31  ;;  %s12642_s24 = smov (!%p276_p5, %s6461_s24), 7  ;;  %306 = vst.msk [vmem:[#allocation2 + $0x10] sm:$0xff] %vm303_vm0, %v7671_v19  ;;  %307 = vst.msk [vmem:[#allocation2 + $0x18] sm:$0xff] %vm303_vm0, %v7671_v19  ;;  %vm6203_vm5 = vcmask 269312   ;;  %vm6220_vm6 = vcmask 277504  }
  0x12   : > { %s6460_s20 = sshll.u32 %s12640_s19, 3  ;;  %s6660_s25 = sshll.u32 %s12642_s24, 4  ;;  %308 = vst.msk [vmem:[#allocation2 + $0x20] sm:$0xff] %vm303_vm0, %v7671_v19  ;;  %309 = vst.msk [vmem:[#allocation2 + $0x28] sm:$0xff] %vm303_vm0, %v7671_v19  ;;  %v1762_v29 = vsub.s32 1, %v7899_v21  ;;  %v1766_v33 = vsub.s32 5, %v7899_v21 }
  0x13   : > { %s7741_s23 = scalar_lea.vmem %s11823_s0, %s6460_s20  ;;  %s7765_s28 = scalar_lea.vmem %s11825_s2, %s6660_s25  ;;  %310 = vst.msk [vmem:[#allocation2 + $0x30] sm:$0xff] %vm303_vm0, %v7671_v19  ;;  %311 = vst.msk [vmem:[#allocation2 + $0x38] sm:$0xff] %vm303_vm0, %v7671_v19  ;;  %v7922_v34 = vsub.s32 0, %v7899_v21  ;;  %v737_v43 = vsub.s32 4, %v7899_v21  ;;  %vm6237_vm7 = vcmask 285696   ;;  %vm6254_vm8 = vcmask 293888  }
  0x14   : > { %v633_v2 = vld [vmem:[%s7741_s23] sm:$0xff]  ;;  %v635_v3 = vld [vmem:[%s7741_s23 + $0x10] sm:$0xff]  ;;  %v636_v4 = vld [vmem:[%s7741_s23 + $0x18] sm:$0xff]  ;;  %312 = vst.msk [vmem:[#allocation2 + $0x40] sm:$0xff] %vm303_vm0, %v7671_v19  ;;  %v1763_v39 = vrot.slane %v649_v32, %v1762_v29  ;;  %v1767_v42 = vrot.slane %v649_v32, %v1766_v33  ;;  %s7677_s22 = smov 24   ;;  %s7678_s24 = smov 32  }
  0x15   : > { %1697 = vperm.xlu0 %6959, %v633_v2   ;;  %662 = vperm.xlu1 %6958, %v635_v3   ;;  %v638_v5 = vld [vmem:[%s7741_s23 + $0x28] sm:$0xff]  ;;  %v640_v6 = vld [vmem:[%s7741_s23 + $0x38] sm:$0xff]  ;;  %v637_v12 = vld [vmem:[%s7741_s23 + $0x20] sm:$0xff]  ;;  %313 = vst.msk [vmem:[#allocation2 + $0x48] sm:$0xff] %vm303_vm0, %v7671_v19  ;;  %v734_v44 = vrot.slane %v649_v32, %v7922_v34  ;;  %v7938_v57 = vrot.slane %v649_v32, %v737_v43  ;;  %s7679_s25 = smov 33   ;;  %s7680_s26 = smov 34  }
  0x16   : > { %v642_v7 = vld [vmem:[%s7741_s23 + $0x48] sm:$0xff]  ;;  %v644_v8 = vld [vmem:[%s7741_s23 + $0x58] sm:$0xff]  ;;  %v639_v13 = vld [vmem:[%s7741_s23 + $0x30] sm:$0xff]  ;;  %314 = vst.msk [vmem:[#allocation2 + $0x50] sm:$0xff] %vm303_vm0, %v7671_v19  ;;  %v7933_v52 = vrot.slane %v1763_v39, %v1762_v29  ;;  %v7936_v56 = vrot.slane %v1767_v42, %v1762_v29  ;;  %s7681_s27 = smov 35   ;;  %s7684_s29 = smov 38  }
  0x17   : > { %v646_v9 = vld [vmem:[%s7741_s23 + $0x68] sm:$0xff]  ;;  %v648_v10 = vld [vmem:[%s7741_s23 + $0x78] sm:$0xff]  ;;  %v641_v14 = vld [vmem:[%s7741_s23 + $0x40] sm:$0xff]  ;;  %315 = vst.msk [vmem:[#allocation2 + $0x58] sm:$0xff] %vm303_vm0, %v7671_v19  ;;  %v7946_v61 = vrot.slane %v734_v44, %v7922_v34  ;;  %s7685_s30 = smov 39   ;;  %vm6271_vm9 = vcmask 302080   ;;  %s11700_s7 = scalar_lea.vmem %s11827_s4, %s6460_s20 }
  0x18   : > { %v634_v11 = vld [vmem:[%s7741_s23 + $0x8] sm:$0xff]  ;;  %v643_v15 = vld [vmem:[%s7741_s23 + $0x50] sm:$0xff]  ;;  %v645_v16 = vld [vmem:[%s7741_s23 + $0x60] sm:$0xff]  ;;  %316 = vst.msk [vmem:[#allocation2 + $0x60] sm:$0xff] %vm303_vm0, %v7671_v19  ;;  %vm6288_vm10 = vcmask 310272   ;;  %vm6305_vm11 = vcmask 318464  }
  0x19   : > { %1709 = vperm.xlu0 %6959, %v636_v4   ;;  %667 = vperm.xlu1 %6958, %v636_v4   ;;  %v647_v17 = vld [vmem:[%s7741_s23 + $0x70] sm:$0xff]  ;;  %317 = vst.msk [vmem:[#allocation2 + $0x68] sm:$0xff] %vm303_vm0, %v7671_v19  ;;  %318 = vst.msk [vmem:[#allocation2 + $0x70] sm:$0xff] %vm303_vm0, %v7671_v19  ;;  %v7896_v20 = vld [vmem:[%s7765_s28] sm:$0xff]  ;;  %vm6322_vm12 = vcmask 326656  }
  0x1a   : > { %319 = vst.msk [vmem:[#allocation2 + $0x78] sm:$0xff] %vm303_vm0, %v7671_v19  ;;  %320 = vst.msk [vmem:[#allocation2 + $0x80] sm:$0xff] %vm303_vm0, %v7671_v19  ;;  %v7902_v22 = vld [vmem:[%s7765_s28 + $0x8] sm:$0xff]  ;;  %v7905_v23 = vld [vmem:[%s7765_s28 + $0x10] sm:$0xff]  ;;  %v505_v25 = vunpack.c.0.s8 %v7896_v20  ;;  %v511_v27 = vunpack.c.3.s8 %v7896_v20 }
  0x1b   : > { %321 = vst.msk [vmem:[#allocation2 + $0x88] sm:$0xff] %vm303_vm0, %v7671_v19  ;;  %322 = vst.msk [vmem:[#allocation2 + $0x90] sm:$0xff] %vm303_vm0, %v7671_v19  ;;  %v7908_v24 = vld [vmem:[%s7765_s28 + $0x18] sm:$0xff]  ;;  %v506_v26 = vunpack.c.0.s8 %v7902_v22  ;;  %v512_v28 = vunpack.c.3.s8 %v7902_v22  ;;  %v515_v30 = vunpack.c.1.s8 %v7905_v23  ;;  %v519_v46 = vunpack.c.3.s8 %v7905_v23  ;;  %v7928_v47 = vld [vmem:[%s7765_s28 + $0x20] sm:$0xff] }
  0x1c   : > { %323 = vst.msk [vmem:[#allocation2 + $0x98] sm:$0xff] %vm303_vm0, %v7671_v19  ;;  %324 = vst.msk [vmem:[#allocation2 + $0xa0] sm:$0xff] %vm303_vm0, %v7671_v19  ;;  %v516_v31 = vunpack.c.1.s8 %v7908_v24  ;;  %v537_v35 = vcvt.s32.f32 %v505_v25  ;;  %v543_v37 = vcvt.s32.f32 %v511_v27  ;;  %v7931_v48 = vld [vmem:[%s7765_s28 + $0x28] sm:$0xff]  ;;  %v520_v55 = vunpack.c.3.s8 %v7908_v24  ;;  %v7943_v60 = vld [vmem:[%s7765_s28 + $0x30] sm:$0xff] }
  0x1d   : > { %1717 = vperm.xlu0 %6959, %v638_v5   ;;  %677 = vperm.xlu1 %6958, %v638_v5   ;;  %325 = vst.msk [vmem:[#allocation2 + $0xa8] sm:$0xff] %vm303_vm0, %v7671_v19  ;;  %326 = vst.msk [vmem:[#allocation2 + $0xb0] sm:$0xff] %vm303_vm0, %v7671_v19  ;;  %v538_v36 = vcvt.s32.f32 %v506_v26  ;;  %v544_v38 = vcvt.s32.f32 %v512_v28  ;;  %v547_v40 = vcvt.s32.f32 %v515_v30  ;;  %v523_v58 = vunpack.c.1.s8 %v7928_v47 }
  0x1e   : > { %327 = vst.msk [vmem:[#allocation2 + $0xb8] sm:$0xff] %vm303_vm0, %v7671_v19  ;;  %328 = vst.msk [vmem:[#allocation2 + $0xc0] sm:$0xff] %vm303_vm0, %v7671_v19  ;;  %v548_v41 = vcvt.s32.f32 %v516_v31  ;;  %v6466_v45 = vadd.f32 -1.0, %v537_v35  ;;  %v6472_v50 = vadd.f32 -1.0, %v543_v37  ;;  %v524_v59 = vunpack.c.1.s8 %v7931_v48 }
  0x1f   : > { %329 = vst.msk [vmem:[#allocation2 + $0xc8] sm:$0xff] %vm303_vm0, %v7671_v19  ;;  %330 = vst.msk [vmem:[#allocation2 + $0xd0] sm:$0xff] %vm303_vm0, %v7671_v19  ;;  %v6467_v49 = vadd.f32 -1.0, %v538_v36  ;;  %v6473_v51 = vadd.f32 -1.0, %v544_v38  ;;  %v6476_v53 = vadd.f32 -1.0, %v547_v40  ;;  %v551_v63 = vcvt.s32.f32 %v519_v46 }
  0x20   : > { %331 = vst.msk [vmem:[#allocation2 + $0xd8] sm:$0xff] %vm303_vm0, %v7671_v19  ;;  %332 = vst.msk [vmem:[#allocation2 + $0xe0] sm:$0xff] %vm303_vm0, %v7671_v19  ;;  %v6477_v54 = vadd.f32 -1.0, %v548_v41  ;;  %v7948_v62 = vmul.f32 1e+30, %v6466_v45  ;;  %v510_v26 = vunpack.c.2.s8 %v7902_v22  ;;  %v507_v27 = vunpack.c.1.s8 %v7896_v20 }
  0x21   : > { %1725 = vperm.xlu0 %6959, %v640_v6   ;;  %687 = vperm.xlu1 %6958, %v640_v6   ;;  %333 = vst.msk [vmem:[#allocation2 + $0xe8] sm:$0xff] %vm303_vm0, %v7671_v19  ;;  %334 = vst.msk [vmem:[#allocation2 + $0xf0] sm:$0xff] %vm303_vm0, %v7671_v19  ;;  %v7956_v4 = vmul.f32 1e+30, %v6472_v50  ;;  %v7958_v5 = vmul.f32 1e+30, %v6473_v51  ;;  %v528_v6 = vunpack.c.3.s8 %v7931_v48  ;;  %v508_v28 = vunpack.c.1.s8 %v7902_v22 }
  0x22   : > { %335 = vst.msk [vmem:[#allocation2 + $0xf8] sm:$0xff] %vm303_vm0, %v7671_v19  ;;  %336 = vst.msk [vmem:[#allocation2 + $0x100] sm:$0xff] %vm303_vm0, %v7671_v19  ;;  %v6480_v18 = vadd.f32 -1.0, %v551_v63  ;;  %v513_v32 = vunpack.c.0.s8 %v7905_v23  ;;  %v514_v33 = vunpack.c.0.s8 %v7908_v24  ;;  %v542_v43 = vcvt.s32.f32 %v510_v26 }
  0x23   : > { %337 = vst.msk [vmem:[#allocation2 + $0x108] sm:$0xff] %vm303_vm0, %v7671_v19  ;;  %338 = vst.msk [vmem:[#allocation2 + $0x110] sm:$0xff] %vm303_vm0, %v7671_v19  ;;  %v560_v29 = vcvt.s32.f32 %v528_v6  ;;  %v539_v44 = vcvt.s32.f32 %v507_v27  ;;  %v540_v45 = vcvt.s32.f32 %v508_v28  ;;  %v518_v26 = vunpack.c.2.s8 %v7908_v24 }
  0x24   : > { %339 = vst.msk [vmem:[#allocation2 + $0x118] sm:$0xff] %vm303_vm0, %v7671_v19  ;;  %340 = vst.msk [vmem:[#allocation2 + $0x120] sm:$0xff] %vm303_vm0, %v7671_v19  ;;  %v7983_v42 = vmul.f32 1e+30, %v6480_v18  ;;  %v545_v51 = vcvt.s32.f32 %v513_v32  ;;  %v521_v28 = vunpack.c.0.s8 %v7928_v47  ;;  %v8020_v24 = vrot.slane %v7938_v57, %v7922_v34 }
  0x25   : > { %1733 = vperm.xlu0 %6959, %v642_v7   ;;  %697 = vperm.xlu1 %6958, %v642_v7   ;;  %341 = vst.msk [vmem:[#allocation2 + $0x128] sm:$0xff] %vm303_vm0, %v7671_v19  ;;  %342 = vst.msk [vmem:[#allocation2 + $0x130] sm:$0xff] %vm303_vm0, %v7671_v19  ;;  %v6489_v46 = vadd.f32 -1.0, %v560_v29 }
  0x26   : > { %343 = vst.msk [vmem:[#allocation2 + $0x138] sm:$0xff] %vm303_vm0, %v7671_v19  ;;  %344 = vst.msk [vmem:[#allocation2 + $0x140] sm:$0xff] %vm303_vm0, %v7671_v19  ;;  %v553_v57 = vcvt.s32.f32 %v521_v28 }
  0x27   : > { %345 = vst.msk [vmem:[#allocation2 + $0x148] sm:$0xff] %vm303_vm0, %v7671_v19  ;;  %346 = vst.msk [vmem:[#allocation2 + $0x150] sm:$0xff] %vm303_vm0, %v7671_v19 }
  0x28   : > { %347 = vst.msk [vmem:[#allocation2 + $0x158] sm:$0xff] %vm303_vm0, %v7671_v19  ;;  %348 = vst.msk [vmem:[#allocation2 + $0x160] sm:$0xff] %vm303_vm0, %v7671_v19 }
  0x29   : > { %1741 = vperm.xlu0 %6959, %v644_v8   ;;  %707 = vperm.xlu1 %6958, %v644_v8   ;;  %349 = vst.msk [vmem:[#allocation2 + $0x168] sm:$0xff] %vm303_vm0, %v7671_v19  ;;  %350 = vst.msk [vmem:[#allocation2 + $0x170] sm:$0xff] %vm303_vm0, %v7671_v19 }
  0x2a   : > { %351 = vst.msk [vmem:[#allocation2 + $0x178] sm:$0xff] %vm303_vm0, %v7671_v19  ;;  %352 = vst.msk [vmem:[#allocation2 + $0x180] sm:$0xff] %vm303_vm0, %v7671_v19 }
  0x2b   : > { %353 = vst.msk [vmem:[#allocation2 + $0x188] sm:$0xff] %vm303_vm0, %v7671_v19  ;;  %354 = vst.msk [vmem:[#allocation2 + $0x190] sm:$0xff] %vm303_vm0, %v7671_v19 }
  0x2c   : > { %355 = vst.msk [vmem:[#allocation2 + $0x198] sm:$0xff] %vm303_vm0, %v7671_v19  ;;  %356 = vst.msk [vmem:[#allocation2 + $0x1a0] sm:$0xff] %vm303_vm0, %v7671_v19 }
  0x2d   : > { %1749 = vperm.xlu0 %6959, %v646_v9   ;;  %717 = vperm.xlu1 %6958, %v646_v9   ;;  %357 = vst.msk [vmem:[#allocation2 + $0x1a8] sm:$0xff] %vm303_vm0, %v7671_v19  ;;  %358 = vst.msk [vmem:[#allocation2 + $0x1b0] sm:$0xff] %vm303_vm0, %v7671_v19  ;;  %v7965_v9 = vmul.f32 1e+30, %v6476_v53  ;;  %v546_v53 = vcvt.s32.f32 %v514_v33 }
  0x2e   : > { %359 = vst.msk [vmem:[#allocation2 + $0x1b8] sm:$0xff] %vm303_vm0, %v7671_v19  ;;  %360 = vst.msk [vmem:[#allocation2 + $0x1c0] sm:$0xff] %vm303_vm0, %v7671_v19 }
  0x2f   : > { %361 = vst.msk [vmem:[#allocation2 + $0x1c8] sm:$0xff] %vm303_vm0, %v7671_v19  ;;  %362 = vst.msk [vmem:[#allocation2 + $0x1d0] sm:$0xff] %vm303_vm0, %v7671_v19 }
  0x30   : > { %363 = vst.msk [vmem:[#allocation2 + $0x1d8] sm:$0xff] %vm303_vm0, %v7671_v19  ;;  %364 = vst.msk [vmem:[#allocation2 + $0x1e0] sm:$0xff] %vm303_vm0, %v7671_v19 }
  0x31   : > { %1757 = vperm.xlu0 %6959, %v648_v10   ;;  %727 = vperm.xlu1 %6958, %v648_v10   ;;  %365 = vst.msk [vmem:[#allocation2 + $0x1e8] sm:$0xff] %vm303_vm0, %v7671_v19  ;;  %366 = vst.msk [vmem:[#allocation2 + $0x1f0] sm:$0xff] %vm303_vm0, %v7671_v19  ;;  %v7967_v10 = vmul.f32 1e+30, %v6477_v54 }
  0x32   : > { %367 = vst.msk [vmem:[#allocation2 + $0x1f8] sm:$0xff] %vm303_vm0, %v7671_v19  ;;  %12050 = vst [vmem:[#allocation5_spill] sm:$0xff] %v7899_v21 }
  0x33   : > { %12051 = vst [vmem:[#allocation6_spill] sm:$0xff] %v7948_v62  ;;  %12053 = vst [vmem:[#allocation8_spill] sm:$0xff] %v7956_v4 }
  0x34   : > { %12054 = vst [vmem:[#allocation9_spill] sm:$0xff] %v7958_v5  ;;  %12055 = vst [vmem:[#allocation10_spill] sm:$0xff] %v7965_v9 }
  0x35   : > { %6961 = vset.pattern.permute.xlu0 %v11828_v1  ;;  %6960 = vset.pattern.permute.xlu1 %v7669_v0  ;;  %v527_v0 = vunpack.c.3.s8 %v7928_v47  ;;  %12056 = vst [vmem:[#allocation11_spill] sm:$0xff] %v7967_v10  ;;  %12057 = vst [vmem:[#allocation12_spill] sm:$0xff] %v7983_v42 }
  0x36   : > { %652 = vperm.xlu0 %6961, %v633_v2   ;;  %1701 = vperm.xlu1 %6960, %v634_v11   ;;  %v7952_v2 = vld [vmem:[%s7765_s28 + $0x38] sm:$0xff]  ;;  %s7682_s28 = smov 36  }
  0x37   : > { %v559_v19 = vcvt.s32.f32 %v527_v0  ;;  %v536_v25 = vunpack.c.3.s8 %v7952_v2 }
  0x39   : > { %v568_v22 = vcvt.s32.f32 %v536_v25  ;;  %v6475_v25 = vadd.f32 -1.0, %v546_v53 }
  0x3a   : > { %657 = vperm.xlu0 %6961, %v634_v11   ;;  %1705 = vperm.xlu1 %6960, %v635_v3   ;;  %v7954_v3 = vmul.f32 1e+30, %v6467_v49  ;;  %v552_v11 = vcvt.s32.f32 %v520_v55 }
  0x3c   : > { %12052 = vst [vmem:[#allocation7_spill] sm:$0xff] %v7954_v3  ;;  %v6481_v35 = vadd.f32 -1.0, %v552_v11  ;;  %v517_v11 = vunpack.c.2.s8 %v7905_v23  ;;  %v522_v23 = vunpack.c.0.s8 %v7931_v48 }
  0x3e   : > { %672 = vperm.xlu0 %6961, %v637_v12   ;;  %1713 = vperm.xlu1 %6960, %v637_v12   ;;  %v531_v12 = vunpack.c.1.s8 %v7943_v60  ;;  %v7989_v54 = vmul.f32 1e+30, %v6481_v35 }
  0x40   : > { %v563_v36 = vcvt.s32.f32 %v531_v12  ;;  %12058 = vst [vmem:[#allocation13_spill] sm:$0xff] %v7989_v54 }
  0x42   : > { %682 = vperm.xlu0 %6961, %v639_v13   ;;  %1721 = vperm.xlu1 %6960, %v639_v13   ;;  %v555_v13 = vcvt.s32.f32 %v523_v58  ;;  %v6492_v55 = vadd.f32 -1.0, %v563_v36  ;;  %v549_v36 = vcvt.s32.f32 %v517_v11  ;;  %v533_v11 = vunpack.c.2.s8 %v7943_v60 }
  0x44   : > { %v6484_v37 = vadd.f32 -1.0, %v555_v13  ;;  %v6497_v13 = vadd.f32 -1.0, %v568_v22  ;;  %v8003_v27 = vmul.f32 1e+30, %v6492_v55  ;;  %v529_v55 = vunpack.c.0.s8 %v7943_v60 }
  0x45   : > { %v565_v21 = vcvt.s32.f32 %v533_v11 }
  0x46   : > { %692 = vperm.xlu0 %6961, %v641_v14   ;;  %1729 = vperm.xlu1 %6960, %v641_v14   ;;  %v556_v14 = vcvt.s32.f32 %v524_v59  ;;  %v7991_v58 = vmul.f32 1e+30, %v6484_v37  ;;  %12063 = vst [vmem:[#allocation18_spill] sm:$0xff] %v8003_v27  ;;  %v525_v37 = vunpack.c.2.s8 %v7928_v47  ;;  %v8034_v47 = vmul.f32 1e+30, %v6475_v25 }
  0x48   : > { %v6485_v38 = vadd.f32 -1.0, %v556_v14  ;;  %12059 = vst [vmem:[#allocation14_spill] sm:$0xff] %v7991_v58  ;;  %v6471_v14 = vadd.f32 -1.0, %v542_v43  ;;  %12073 = vst [vmem:[#allocation28_spill] sm:$0xff] %v8034_v47  ;;  %v557_v53 = vcvt.s32.f32 %v525_v37 }
  0x4a   : > { %702 = vperm.xlu0 %6961, %v643_v15   ;;  %1737 = vperm.xlu1 %6960, %v643_v15   ;;  %v532_v15 = vunpack.c.1.s8 %v7952_v2  ;;  %v7993_v59 = vmul.f32 1e+30, %v6485_v38  ;;  %v8016_v38 = vmul.f32 1e+30, %v6497_v13 }
  0x4c   : > { %v564_v39 = vcvt.s32.f32 %v532_v15  ;;  %12060 = vst [vmem:[#allocation15_spill] sm:$0xff] %v7993_v59  ;;  %v6468_v15 = vadd.f32 -1.0, %v539_v44  ;;  %12067 = vst [vmem:[#allocation22_spill] sm:$0xff] %v8016_v38  ;;  %v550_v44 = vcvt.s32.f32 %v518_v26  ;;  %v6482_v26 = vadd.f32 -1.0, %v553_v57 }
  0x4e   : > { %712 = vperm.xlu0 %6961, %v645_v16   ;;  %1745 = vperm.xlu1 %6960, %v645_v16   ;;  %v535_v16 = vunpack.c.3.s8 %v7943_v60  ;;  %v6493_v63 = vadd.f32 -1.0, %v564_v39  ;;  %v8022_v39 = vmul.f32 1e+30, %v6471_v14  ;;  %v6486_v60 = vadd.f32 -1.0, %v557_v53 }
  0x4f   : > { %v8061_v57 = vmul.f32 1e+30, %v6482_v26 }
  0x50   : > { %v567_v40 = vcvt.s32.f32 %v535_v16  ;;  %v6469_v16 = vadd.f32 -1.0, %v540_v45  ;;  %v8007_v29 = vmul.f32 1e+30, %v6493_v63  ;;  %12068 = vst [vmem:[#allocation23_spill] sm:$0xff] %v8022_v39  ;;  %v554_v45 = vcvt.s32.f32 %v522_v23 }
  0x51   : > { %v530_v63 = vunpack.c.0.s8 %v7952_v2  ;;  %12078 = vst [vmem:[#allocation33_spill] sm:$0xff] %v8061_v57 }
  0x52   : > { %722 = vperm.xlu0 %6961, %v647_v17   ;;  %1753 = vperm.xlu1 %6960, %v647_v17   ;;  %v509_v17 = vunpack.c.2.s8 %v7896_v20  ;;  %v6488_v20 = vadd.f32 -1.0, %v559_v19  ;;  %v6496_v0 = vadd.f32 -1.0, %v567_v40  ;;  %v6474_v19 = vadd.f32 -1.0, %v545_v51  ;;  %12064 = vst [vmem:[#allocation19_spill] sm:$0xff] %v8007_v29 }
  0x53   : > { %v8024_v40 = vmul.f32 1e+30, %v6468_v15  ;;  %v6478_v51 = vadd.f32 -1.0, %v549_v36  ;;  %v6483_v28 = vadd.f32 -1.0, %v554_v45  ;;  %v562_v36 = vcvt.s32.f32 %v530_v63 }
  0x54   : > { %v541_v41 = vcvt.s32.f32 %v509_v17  ;;  %v7996_v12 = vmul.f32 1e+30, %v6488_v20  ;;  %v7998_v17 = vmul.f32 1e+30, %v6489_v46  ;;  %v8009_v32 = vmul.f32 1e+30, %v6496_v0 }
  0x55   : > { %12069 = vst [vmem:[#allocation24_spill] sm:$0xff] %v8024_v40  ;;  %v8032_v43 = vmul.f32 1e+30, %v6474_v19  ;;  %v526_v46 = vunpack.c.2.s8 %v7931_v48  ;;  %v6479_v19 = vadd.f32 -1.0, %v550_v44  ;;  %v8055_v23 = vmul.f32 1e+30, %v6478_v51 }
  0x56   : > { %6962 = vset.pattern.permute.xlu1 %v11828_v1  ;;  %v6470_v6 = vadd.f32 -1.0, %v541_v41  ;;  %12061 = vst [vmem:[#allocation16_spill] sm:$0xff] %v7996_v12  ;;  %12062 = vst [vmem:[#allocation17_spill] sm:$0xff] %v7998_v17  ;;  %v8026_v41 = vmul.f32 1e+30, %v6469_v16  ;;  %v6491_v11 = vadd.f32 -1.0, %v562_v36 }
  0x57   : > { %12065 = vst [vmem:[#allocation20_spill] sm:$0xff] %v8009_v32  ;;  %12072 = vst [vmem:[#allocation27_spill] sm:$0xff] %v8032_v43  ;;  %v8059_v29 = vmul.f32 1e+30, %v6479_v19  ;;  %v8063_v45 = vmul.f32 1e+30, %v6483_v28 }
  0x58   : > { %v8013_v35 = vmul.f32 1e+30, %v6470_v6  ;;  %12070 = vst [vmem:[#allocation25_spill] sm:$0xff] %v8026_v41  ;;  %12075 = vst [vmem:[#allocation30_spill] sm:$0xff] %v8055_v23 }
  0x59   : > { %12077 = vst [vmem:[#allocation32_spill] sm:$0xff] %v8059_v29  ;;  %12079 = vst [vmem:[#allocation34_spill] sm:$0xff] %v8063_v45 }
  0x5a   : > { %12066 = vst [vmem:[#allocation21_spill] sm:$0xff] %v8013_v35 }
  0x94   : > { %v7961_v7 = vpop.permute.xlu0 %1697  ;;  %v7963_v8 = vpop.permute.xlu1 %662 }
  0x95   : > { %v753_v20 = vadd.f32 %v7946_v61, %v7963_v8  ;;  %v754_v34 = vadd.f32 %v8020_v24, %v7963_v8  ;;  %v1778_v0 = vadd.f32 %v7933_v52, %v7961_v7  ;;  %v1779_v6 = vadd.f32 %v7936_v56, %v7961_v7 }
  0x96   : > { %v534_v8 = vunpack.c.2.s8 %v7952_v2  ;;  %v558_v7 = vcvt.s32.f32 %v526_v46  ;;  %v561_v2 = vcvt.s32.f32 %v529_v55  ;;  %v8071_v55 = vmul.f32 1e+30, %v6486_v60 }
  0x97   : > { %v785_v13 = vmul.f32 0.2, %v753_v20  ;;  %v786_v25 = vmul.f32 0.2, %v754_v34  ;;  %v1810_v37 = vmul.f32 0.2, %v1778_v0 }
  0x98   : > { %v7977_v30 = vpop.permute.xlu0 %1709  ;;  %v7979_v31 = vpop.permute.xlu1 %667  ;;  %v1811_v1 = vmul.f32 0.2, %v1779_v6  ;;  %v566_v38 = vcvt.s32.f32 %v534_v8  ;;  %v6487_v46 = vadd.f32 -1.0, %v558_v7  ;;  %12080 = vst [vmem:[#allocation35_spill] sm:$0xff] %v8071_v55  ;;  %v6490_v63 = vadd.f32 -1.0, %v561_v2 }
  0x99   : > { %v755_v48 = vadd.f32 %v7946_v61, %v7979_v31  ;;  %v756_v14 = vadd.f32 %v8020_v24, %v7979_v31  ;;  %v818_v44 = vmax.f32 %v754_v34, %v786_v25  ;;  %v8067_v51 = vadd.f32 %v7933_v52, %v7977_v30 }
  0x9a   : > { %v6494_v8 = vadd.f32 -1.0, %v565_v21  ;;  %v1843_v19 = vmax.f32 %v1779_v6, %v1811_v1  ;;  %v8075_v34 = vadd.f32 %v7936_v56, %v7977_v30  ;;  %v8104_v6 = vmul.f32 1e+30, %v6490_v63 }
  0x9b   : > { %v787_v32 = vmul.f32 0.2, %v755_v48  ;;  %v788_v31 = vmul.f32 0.2, %v756_v14  ;;  %v8095_v30 = vadd.f32 %v818_v44, %v8022_v39 }
  0x9c   : > { %v7985_v49 = vpop.permute.xlu0 %1717  ;;  %v7987_v50 = vpop.permute.xlu1 %677  ;;  %12087 = vst [vmem:[#allocation42_spill] sm:$0xff] %v8104_v6  ;;  %v8117_v2 = vmul.f32 0.2, %v8075_v34 }
  0x9d   : > { %v819_v28 = vmax.f32 %v755_v48, %v787_v32  ;;  %v820_v7 = vmax.f32 %v756_v14, %v788_v31  ;;  %v8084_v60 = vadd.f32 %v7933_v52, %v7985_v49  ;;  %v8088_v21 = vadd.f32 %v7946_v61, %v7987_v50  ;;  %12084 = vst [vmem:[#allocation39_spill] sm:$0xff] %v8095_v30 }
  0x9e   : > { %v8092_v1 = vadd.f32 %v8020_v24, %v7987_v50  ;;  %v8100_v32 = vadd.f32 %v7936_v56, %v7985_v49  ;;  %v8106_v48 = vmul.f32 1e+30, %v6491_v11  ;;  %v8108_v14 = vmul.f32 1e+30, %v6494_v8 }
  0x9f   : > { %12083 = vst [vmem:[#allocation38_spill] sm:$0xff] %v8084_v60  ;;  %v8122_v49 = vadd.f32 %v819_v28, %v7956_v4  ;;  %v8130_v44 = vmul.f32 0.2, %v8084_v60 }
  0xa0   : > { %v8000_v18 = vpop.permute.xlu0 %1725  ;;  %v8011_v33 = vpop.permute.xlu1 %687  ;;  %12085 = vst [vmem:[#allocation40_spill] sm:$0xff] %v8100_v32  ;;  %12088 = vst [vmem:[#allocation43_spill] sm:$0xff] %v8106_v48  ;;  %v792_v63 = vmul.f32 0.2, %v8092_v1 }
  0xa1   : > { %12089 = vst [vmem:[#allocation44_spill] sm:$0xff] %v8108_v14  ;;  %12092 = vst [vmem:[#allocation47_spill] sm:$0xff] %v8122_v49  ;;  %v8156_v39 = vadd.f32 %v7936_v56, %v8000_v18 }
  0xa2   : > { %12095 = vst [vmem:[#allocation50_spill] sm:$0xff] %v8130_v44  ;;  %v824_v8 = vmax.f32 %v8092_v1, %v792_v63 }
  0xa3   : > { %12098 = vst [vmem:[#allocation53_spill] sm:$0xff] %v8156_v39 }
  0xa4   : > { %v8030_v22 = vpop.permute.xlu0 %1733  ;;  %v8053_v16 = vpop.permute.xlu1 %697 }
  0xa5   : > { %12071 = vst [vmem:[#allocation26_spill] sm:$0xff] %v8030_v22 }
  0xa8   : > { %v8051_v15 = vpop.permute.xlu0 %1741  ;;  %v8069_v53 = vpop.permute.xlu1 %707 }
  0xa9   : > { %12074 = vst [vmem:[#allocation29_spill] sm:$0xff] %v8051_v15  ;;  %v817_v15 = vmax.f32 %v753_v20, %v785_v13  ;;  %v6495_v20 = vadd.f32 -1.0, %v566_v38  ;;  %v1842_v13 = vmax.f32 %v1778_v0, %v1810_v37  ;;  %v1816_v38 = vmul.f32 0.2, %v8067_v51 }
  0xaa   : > { %v8102_v0 = vmul.f32 1e+30, %v6487_v46  ;;  %v8125_v37 = vadd.f32 %v820_v7, %v7958_v5  ;;  %v791_v46 = vmul.f32 0.2, %v8088_v21  ;;  %v8144_v7 = vadd.f32 %v7933_v52, %v8000_v18 }
  0xab   : > { %v8080_v26 = vadd.f32 %v817_v15, %v8013_v35  ;;  %v8111_v50 = vadd.f32 %v1842_v13, %v7948_v62  ;;  %v8114_v15 = vadd.f32 %v1843_v19, %v7954_v3  ;;  %v8127_v31 = vmul.f32 1e+30, %v6495_v20 }
  0xac   : > { %v8057_v22 = vpop.permute.xlu0 %1749  ;;  %12086 = vst [vmem:[#allocation41_spill] sm:$0xff] %v8102_v0  ;;  %v8119_v36 = vpop.permute.xlu1 %717  ;;  %12093 = vst [vmem:[#allocation48_spill] sm:$0xff] %v8125_v37  ;;  %v8137_v13 = vmul.f32 0.2, %v8100_v32  ;;  %v1848_v20 = vmax.f32 %v8067_v51, %v1816_v38  ;;  %v767_v35 = vadd.f32 %v7946_v61, %v8053_v16  ;;  %v768_v32 = vadd.f32 %v8020_v24, %v8053_v16 }
  0xad   : > { %12076 = vst [vmem:[#allocation31_spill] sm:$0xff] %v8057_v22  ;;  %12082 = vst [vmem:[#allocation37_spill] sm:$0xff] %v8080_v26  ;;  %v8150_v22 = vadd.f32 %v8020_v24, %v8011_v33  ;;  %v8171_v38 = vmul.f32 0.2, %v8144_v7  ;;  %v1849_v16 = vmax.f32 %v8075_v34, %v8117_v2 }
  0xae   : > { %12090 = vst [vmem:[#allocation45_spill] sm:$0xff] %v8111_v50  ;;  %12091 = vst [vmem:[#allocation46_spill] sm:$0xff] %v8114_v15 }
  0xaf   : > { %12094 = vst [vmem:[#allocation49_spill] sm:$0xff] %v8127_v31  ;;  %12096 = vst [vmem:[#allocation51_spill] sm:$0xff] %v8137_v13  ;;  %v823_v13 = vmax.f32 %v8088_v21, %v791_v46  ;;  %v796_v14 = vmul.f32 0.2, %v8150_v22 }
  0xb0   : > { %v8077_v25 = vpop.permute.xlu0 %1757  ;;  %12097 = vst [vmem:[#allocation52_spill] sm:$0xff] %v8144_v7  ;;  %v8166_v15 = vpop.permute.xlu1 %727  ;;  %12099 = vst [vmem:[#allocation54_spill] sm:$0xff] %v8171_v38 }
  0xb1   : > { %12081 = vst [vmem:[#allocation36_spill] sm:$0xff] %v8077_v25  ;;  %v763_v25 = vadd.f32 %v7946_v61, %v8011_v33 }
  0xb3   : > { %v795_v31 = vmul.f32 0.2, %v763_v25 }
  0xb5   : > { %v653_v11 = vpop.permute.xlu0 %652 }
  0xb6   : > { %v749_v19 = vadd.f32 %v7946_v61, %v653_v11  ;;  %v750_v28 = vadd.f32 %v8020_v24, %v653_v11 }
  0xb8   : > { %v781_v11 = vmul.f32 0.2, %v749_v19  ;;  %v782_v51 = vmul.f32 0.2, %v750_v28 }
  0xb9   : > { %v658_v33 = vpop.permute.xlu0 %657 }
  0xba   : > { %v751_v18 = vadd.f32 %v7946_v61, %v658_v33  ;;  %v752_v50 = vadd.f32 %v8020_v24, %v658_v33  ;;  %v813_v60 = vmax.f32 %v749_v19, %v781_v11  ;;  %v814_v44 = vmax.f32 %v750_v28, %v782_v51 }
  0xbb   : > { %v8183_v19 = vmul.f32 0.2, %v8156_v39  ;;  %v799_v28 = vmul.f32 0.2, %v767_v35  ;;  %v800_v11 = vmul.f32 0.2, %v768_v32  ;;  %v8186_v33 = vadd.f32 %v1848_v20, %v7956_v4 }
  0xbc   : > { %v783_v21 = vmul.f32 0.2, %v751_v18  ;;  %v784_v46 = vmul.f32 0.2, %v752_v50  ;;  %v8177_v1 = vadd.f32 %v813_v60, %v7948_v62  ;;  %v8180_v63 = vadd.f32 %v814_v44, %v7954_v3  ;;  %v8192_v62 = vpop.permute.xlu1 %1701 }
  0xbd   : > { %12101 = vst [vmem:[#allocation56_spill] sm:$0xff] %v8183_v19  ;;  %v673_v51 = vpop.permute.xlu0 %672  ;;  %12102 = vst [vmem:[#allocation57_spill] sm:$0xff] %v8186_v33  ;;  %v8195_v3 = vadd.f32 %v823_v13, %v7965_v9  ;;  %v8198_v39 = vadd.f32 %v824_v8, %v7967_v10  ;;  %v827_v19 = vmax.f32 %v763_v25, %v795_v31 }
  0xbe   : > { %12100 = vst [vmem:[#allocation55_spill] sm:$0xff] %v8180_v63  ;;  %v757_v7 = vadd.f32 %v7946_v61, %v673_v51  ;;  %v758_v34 = vadd.f32 %v8020_v24, %v673_v51  ;;  %v893_v60 = vmax.f32 %v8177_v1, %v8180_v63  ;;  %v815_v2 = vmax.f32 %v751_v18, %v783_v21  ;;  %v12148_v63 = vld [vmem:[#allocation46_spill] sm:$0xff] }
  0xbf   : > { %v816_v44 = vmax.f32 %v752_v50, %v784_v46  ;;  %12103 = vst [vmem:[#allocation58_spill] sm:$0xff] %v8195_v3  ;;  %12104 = vst [vmem:[#allocation59_spill] sm:$0xff] %v8198_v39  ;;  %v828_v51 = vmax.f32 %v8150_v22, %v796_v14  ;;  %v8206_v18 = vadd.f32 %v7946_v61, %v8069_v53 }
  0xc0   : > { %v789_v20 = vmul.f32 0.2, %v757_v7  ;;  %v790_v4 = vmul.f32 0.2, %v758_v34  ;;  %894 = vmax.xlane.f32.xlu0 %v893_v60  ;;  %v8201_v38 = vadd.f32 %v815_v2, %v8024_v40  ;;  %v831_v21 = vmax.f32 %v767_v35, %v799_v28 }
  0xc1   : > { %v683_v50 = vpop.permute.xlu0 %682  ;;  %v8209_v13 = vadd.f32 %v816_v44, %v8026_v41  ;;  %v832_v8 = vmax.f32 %v768_v32, %v800_v11  ;;  %v772_v2 = vadd.f32 %v8020_v24, %v8069_v53  ;;  %v8218_v14 = vadd.f32 %v827_v19, %v7983_v42 }
  0xc2   : > { %12105 = vst [vmem:[#allocation60_spill] sm:$0xff] %v8201_v38  ;;  %v761_v25 = vadd.f32 %v7946_v61, %v683_v50  ;;  %v762_v31 = vadd.f32 %v8020_v24, %v683_v50  ;;  %v821_v46 = vmax.f32 %v757_v7, %v789_v20  ;;  %v822_v60 = vmax.f32 %v758_v34, %v790_v4  ;;  %v8232_v7 = vpop.permute.xlu1 %1705 }
  0xc3   : > { %12106 = vst [vmem:[#allocation61_spill] sm:$0xff] %v8209_v13  ;;  %v896_v22 = vmax.f32 %v8201_v38, %v8209_v13  ;;  %12107 = vst [vmem:[#allocation62_spill] sm:$0xff] %v8218_v14  ;;  %v8221_v44 = vadd.f32 %v1849_v16, %v7958_v5  ;;  %v12109_v28 = vmax.f32 %v8080_v26, %v8095_v30  ;;  %v803_v19 = vmul.f32 0.2, %v8206_v18  ;;  %v12142_v30 = vld [vmem:[#allocation29_spill] sm:$0xff] }
  0xc4   : > { %v793_v35 = vmul.f32 0.2, %v761_v25  ;;  %v794_v32 = vmul.f32 0.2, %v762_v31  ;;  %v8227_v4 = vadd.f32 %v821_v46, %v8032_v43  ;;  %v8230_v53 = vadd.f32 %v822_v60, %v8034_v47  ;;  %v12147_v26 = vld [vmem:[#allocation45_spill] sm:$0xff] }
  0xc5   : > { %12108 = vst [vmem:[#allocation63_spill] sm:$0xff] %v8221_v44  ;;  %900 = vmax.xlane.f32.xlu0 %v12109_v28  ;;  %897 = vmax.xlane.f32.xlu1 %v896_v22  ;;  %v693_v11 = vpop.permute.xlu0 %692  ;;  %v8236_v16 = vadd.f32 %v828_v51, %v7989_v54  ;;  %v8239_v34 = vadd.f32 %v831_v21, %v7991_v58  ;;  %v804_v5 = vmul.f32 0.2, %v772_v2 }
  0xc6   : > { %12110 = vst [vmem:[#allocation64_spill] sm:$0xff] %v8227_v4  ;;  %12111 = vst [vmem:[#allocation65_spill] sm:$0xff] %v8230_v53  ;;  %v8242_v20 = vadd.f32 %v832_v8, %v7993_v59  ;;  %v765_v50 = vadd.f32 %v7946_v61, %v693_v11  ;;  %v766_v46 = vadd.f32 %v8020_v24, %v693_v11 }
  0xc7   : > { %12112 = vst [vmem:[#allocation66_spill] sm:$0xff] %v8236_v16  ;;  %12113 = vst [vmem:[#allocation67_spill] sm:$0xff] %v8239_v34  ;;  %v905_v60 = vmax.f32 %v8227_v4, %v8230_v53  ;;  %v825_v28 = vmax.f32 %v761_v25, %v793_v35  ;;  %v8250_v22 = vadd.f32 %v7946_v61, %v8119_v36  ;;  %v1714_v4 = vpop.permute.xlu1 %1713 }
  0xc8   : > { %12114 = vst [vmem:[#allocation68_spill] sm:$0xff] %v8242_v20  ;;  %v8254_v51 = vadd.f32 %v8020_v24, %v8119_v36  ;;  %v826_v21 = vmax.f32 %v762_v31, %v794_v32  ;;  %v797_v8 = vmul.f32 0.2, %v765_v50  ;;  %v798_v13 = vmul.f32 0.2, %v766_v46 }
  0xc9   : > { %v12115_v38 = vmax.f32 %v8122_v49, %v8125_v37  ;;  %v908_v11 = vmax.f32 %v8195_v3, %v8198_v39  ;;  %v8262_v25 = vadd.f32 %v825_v28, %v8055_v23  ;;  %906 = vmax.xlane.f32.xlu1 %v905_v60  ;;  %v703_v35 = vpop.permute.xlu0 %702  ;;  %v914_v36 = vmax.f32 %v8218_v14, %v8236_v16 }
  0xca   : > { %v8265_v53 = vadd.f32 %v826_v21, %v8059_v29  ;;  %v920_v31 = vmax.f32 %v8239_v34, %v8242_v20  ;;  %v835_v32 = vmax.f32 %v8206_v18, %v803_v19  ;;  %v770_v39 = vadd.f32 %v8020_v24, %v703_v35 }
  0xcb   : > { %903 = vmax.xlane.f32.xlu0 %v12115_v38  ;;  %12116 = vst [vmem:[#allocation69_spill] sm:$0xff] %v8262_v25  ;;  %v769_v38 = vadd.f32 %v7946_v61, %v703_v35  ;;  %v829_v3 = vmax.f32 %v765_v50, %v797_v8  ;;  %v830_v28 = vmax.f32 %v766_v46, %v798_v13  ;;  %v807_v60 = vmul.f32 0.2, %v8250_v22 }
  0xcc   : > { %12117 = vst [vmem:[#allocation70_spill] sm:$0xff] %v8265_v53  ;;  %v808_v21 = vmul.f32 0.2, %v8254_v51  ;;  %v911_v37 = vmax.f32 %v8262_v25, %v8265_v53  ;;  %v836_v16 = vmax.f32 %v772_v2, %v804_v5  ;;  %v802_v49 = vmul.f32 0.2, %v770_v39  ;;  %v1722_v25 = vpop.permute.xlu1 %1721 }
  0xcd   : > { %v801_v14 = vmul.f32 0.2, %v769_v38  ;;  %v8279_v18 = vadd.f32 %v829_v3, %v8061_v57  ;;  %v8282_v19 = vadd.f32 %v830_v28, %v8063_v45  ;;  %v8286_v13 = vadd.f32 %v7946_v61, %v8166_v15  ;;  %v713_v46 = vpop.permute.xlu0 %712 }
  0xce   : > { %v8290_v50 = vadd.f32 %v8020_v24, %v8166_v15  ;;  %912 = vmax.xlane.f32.xlu1 %v911_v37  ;;  %v8293_v5 = vadd.f32 %v835_v32, %v7996_v12  ;;  %v8297_v3 = vadd.f32 %v7933_v52, %v8192_v62  ;;  %v773_v2 = vadd.f32 %v7946_v61, %v713_v46 }
  0xcf   : > { %909 = vmax.xlane.f32.xlu0 %v908_v11  ;;  %12118 = vst [vmem:[#allocation71_spill] sm:$0xff] %v8279_v18  ;;  %12119 = vst [vmem:[#allocation72_spill] sm:$0xff] %v8282_v19  ;;  %v774_v8 = vadd.f32 %v8020_v24, %v713_v46  ;;  %v917_v11 = vmax.f32 %v8279_v18, %v8282_v19  ;;  %v833_v35 = vmax.f32 %v769_v38, %v801_v14 }
  0xd0   : > { %12120 = vst [vmem:[#allocation73_spill] sm:$0xff] %v8293_v5  ;;  %v834_v28 = vmax.f32 %v770_v39, %v802_v49  ;;  %v8304_v15 = vadd.f32 %v836_v16, %v7998_v17  ;;  %v1781_v37 = vadd.f32 %v7936_v56, %v8192_v62  ;;  %v839_v32 = vmax.f32 %v8250_v22, %v807_v60 }
  0xd1   : > { %v805_v20 = vmul.f32 0.2, %v773_v2  ;;  %v806_v34 = vmul.f32 0.2, %v774_v8  ;;  %v8310_v53 = vadd.f32 %v833_v35, %v8071_v55  ;;  %v840_v46 = vmax.f32 %v8254_v51, %v808_v21  ;;  %v723_v49 = vpop.permute.xlu0 %722 }
  0xd2   : > { %12121 = vst [vmem:[#allocation74_spill] sm:$0xff] %v8304_v15  ;;  %v811_v14 = vmul.f32 0.2, %v8286_v13  ;;  %v812_v39 = vmul.f32 0.2, %v8290_v50  ;;  %918 = vmax.xlane.f32.xlu1 %v917_v11  ;;  %v8316_v16 = vadd.f32 %v834_v28, %v8102_v0  ;;  %v777_v22 = vadd.f32 %v7946_v61, %v723_v49 }
  0xd3   : > { %915 = vmax.xlane.f32.xlu0 %v914_v36  ;;  %12122 = vst [vmem:[#allocation75_spill] sm:$0xff] %v8310_v53  ;;  %v1812_v62 = vmul.f32 0.2, %v8297_v3  ;;  %v778_v36 = vadd.f32 %v8020_v24, %v723_v49  ;;  %v837_v38 = vmax.f32 %v773_v2, %v805_v20  ;;  %v838_v60 = vmax.f32 %v774_v8, %v806_v34  ;;  %v12127_v20 = vld [vmem:[#allocation19_spill] sm:$0xff] }
  0xd4   : > { %12123 = vst [vmem:[#allocation76_spill] sm:$0xff] %v8316_v16  ;;  %v923_v51 = vmax.f32 %v8310_v53, %v8316_v16  ;;  %v1813_v21 = vmul.f32 0.2, %v1781_v37  ;;  %v1782_v35 = vadd.f32 %v7933_v52, %v8232_v7  ;;  %v1783_v11 = vadd.f32 %v7936_v56, %v8232_v7 }
  0xd5   : > { %v809_v28 = vmul.f32 0.2, %v777_v22  ;;  %v810_v19 = vmul.f32 0.2, %v778_v36  ;;  %v8328_v18 = vadd.f32 %v837_v38, %v8104_v6  ;;  %v8331_v61 = vadd.f32 %v838_v60, %v8106_v48  ;;  %v1730_v60 = vpop.permute.xlu1 %1729 }
  0xd6   : > { %924 = vmax.xlane.f32.xlu1 %v923_v51  ;;  %v926_v24 = vmax.f32 %v8293_v5, %v8304_v15  ;;  %v8336_v34 = vadd.f32 %v839_v32, %v8003_v27  ;;  %v8339_v2 = vadd.f32 %v840_v46, %v12127_v20  ;;  %v843_v7 = vmax.f32 %v8286_v13, %v811_v14  ;;  %v12129_v46 = vld [vmem:[#allocation44_spill] sm:$0xff]  ;;  %v12131_v13 = vld [vmem:[#allocation49_spill] sm:$0xff] }
  0xd7   : > { %921 = vmax.xlane.f32.xlu0 %v920_v31  ;;  %12124 = vst [vmem:[#allocation77_spill] sm:$0xff] %v8328_v18  ;;  %12125 = vst [vmem:[#allocation78_spill] sm:$0xff] %v8331_v61  ;;  %v929_v31 = vmax.f32 %v8328_v18, %v8331_v61  ;;  %v841_v8 = vmax.f32 %v777_v22, %v809_v28  ;;  %v842_v49 = vmax.f32 %v778_v36, %v810_v19  ;;  %v12133_v19 = vld [vmem:[#allocation26_spill] sm:$0xff] }
  0xd8   : > { %12126 = vst [vmem:[#allocation79_spill] sm:$0xff] %v8336_v34  ;;  %12128 = vst [vmem:[#allocation80_spill] sm:$0xff] %v8339_v2  ;;  %v844_v38 = vmax.f32 %v8290_v50, %v812_v39  ;;  %v1814_v51 = vmul.f32 0.2, %v1782_v35  ;;  %v1786_v16 = vadd.f32 %v7933_v52, %v1714_v4  ;;  %v1787_v15 = vadd.f32 %v7936_v56, %v1714_v4  ;;  %v12136_v28 = vld [vmem:[#allocation22_spill] sm:$0xff] }
  0xd9   : > { %v1844_v32 = vmax.f32 %v8297_v3, %v1812_v62  ;;  %v8349_v5 = vadd.f32 %v841_v8, %v12129_v46  ;;  %v8352_v14 = vadd.f32 %v842_v49, %v12131_v13  ;;  %v1815_v61 = vmul.f32 0.2, %v1783_v11  ;;  %v12134_v3 = vld [vmem:[#allocation20_spill] sm:$0xff]  ;;  %v1738_v18 = vpop.permute.xlu1 %1737 }
  0xda   : > { %v1845_v22 = vmax.f32 %v1781_v37, %v1813_v21  ;;  %v8356_v50 = vadd.f32 %v7933_v52, %v12133_v19  ;;  %v8360_v39 = vadd.f32 %v7936_v56, %v12133_v19  ;;  %930 = vmax.xlane.f32.xlu1 %v929_v31  ;;  %v932_v4 = vmax.f32 %v8336_v34, %v8339_v2  ;;  %v12138_v19 = vld [vmem:[#allocation50_spill] sm:$0xff] }
  0xdb   : > { %927 = vmax.xlane.f32.xlu0 %v926_v24  ;;  %12130 = vst [vmem:[#allocation81_spill] sm:$0xff] %v8349_v5  ;;  %12132 = vst [vmem:[#allocation82_spill] sm:$0xff] %v8352_v14  ;;  %v8365_v62 = vadd.f32 %v843_v7, %v12134_v3  ;;  %v935_v36 = vmax.f32 %v8349_v5, %v8352_v14  ;;  %v8370_v37 = vadd.f32 %v844_v38, %v12136_v28  ;;  %v12139_v2 = vld [vmem:[#allocation38_spill] sm:$0xff] }
  0xdc   : > { %v1790_v21 = vadd.f32 %v7933_v52, %v1722_v25  ;;  %v1791_v24 = vadd.f32 %v7936_v56, %v1722_v25  ;;  %v1818_v8 = vmul.f32 0.2, %v1786_v16  ;;  %v1819_v49 = vmul.f32 0.2, %v1787_v15 }
  0xdd   : > { %12135 = vst [vmem:[#allocation26_spill] sm:$0xff] %v8365_v62  ;;  %12137 = vst [vmem:[#allocation83_spill] sm:$0xff] %v8370_v37  ;;  %v1932_v31 = vmax.f32 %v8186_v33, %v8221_v44  ;;  %v1852_v34 = vmax.f32 %v12139_v2, %v12138_v19  ;;  %v8379_v7 = vadd.f32 %v1844_v32, %v8024_v40  ;;  %v1828_v25 = vmul.f32 0.2, %v8356_v50  ;;  %v12143_v2 = vld [vmem:[#allocation51_spill] sm:$0xff] }
  0xde   : > { %v8382_v14 = vadd.f32 %v1845_v22, %v8026_v41  ;;  %v1846_v38 = vmax.f32 %v1782_v35, %v1814_v51  ;;  %v1847_v5 = vmax.f32 %v1783_v11, %v1815_v61  ;;  %v1829_v53 = vmul.f32 0.2, %v8360_v39  ;;  %936 = vmax.xlane.f32.xlu1 %v935_v36  ;;  %v12146_v33 = vld [vmem:[#allocation23_spill] sm:$0xff] }
  0xdf   : > { %933 = vmax.xlane.f32.xlu0 %v932_v4  ;;  %12140 = vst [vmem:[#allocation50_spill] sm:$0xff] %v8379_v7  ;;  %v8388_v44 = vadd.f32 %v7933_v52, %v12142_v30  ;;  %v12144_v4 = vld [vmem:[#allocation40_spill] sm:$0xff]  ;;  %v8394_v32 = vadd.f32 %v7936_v56, %v12142_v30  ;;  %v938_v35 = vmax.f32 %v8365_v62, %v8370_v37  ;;  %v1822_v11 = vmul.f32 0.2, %v1790_v21  ;;  %v12145_v30 = vld [vmem:[#allocation21_spill] sm:$0xff] }
  0xe0   : > { %12141 = vst [vmem:[#allocation38_spill] sm:$0xff] %v8382_v14  ;;  %v1853_v19 = vmax.f32 %v12144_v4, %v12143_v2  ;;  %v1823_v61 = vmul.f32 0.2, %v1791_v24  ;;  %v1794_v51 = vadd.f32 %v7933_v52, %v1730_v60  ;;  %v1795_v22 = vadd.f32 %v7936_v56, %v1730_v60 }
  0xe1   : > { %v1850_v41 = vmax.f32 %v1786_v16, %v1818_v8  ;;  %v1851_v40 = vmax.f32 %v1787_v15, %v1819_v49  ;;  %v1926_v36 = vmax.f32 %v8379_v7, %v8382_v14  ;;  %v8403_v2 = vadd.f32 %v1852_v34, %v7965_v9  ;;  %v12150_v16 = vld [vmem:[#allocation54_spill] sm:$0xff]  ;;  %v12151_v8 = vld [vmem:[#allocation52_spill] sm:$0xff] }
  0xe2   : > { %v8406_v4 = vadd.f32 %v1846_v38, %v12145_v30  ;;  %v8409_v37 = vadd.f32 %v1847_v5, %v12146_v33  ;;  %v1832_v62 = vmul.f32 0.2, %v8388_v44  ;;  %v12149_v60 = vmax.f32 %v12147_v26, %v12148_v63  ;;  %v12152_v34 = vld [vmem:[#allocation56_spill] sm:$0xff]  ;;  %v12154_v38 = vld [vmem:[#allocation31_spill] sm:$0xff] }
  0xe3   : > { %939 = vmax.xlane.f32.xlu0 %v938_v35  ;;  %v8416_v15 = vadd.f32 %v1853_v19, %v7967_v10  ;;  %v1856_v49 = vmax.f32 %v12151_v8, %v12150_v16  ;;  %v12153_v35 = vld [vmem:[#allocation53_spill] sm:$0xff]  ;;  %v8424_v30 = vadd.f32 %v7933_v52, %v12154_v38  ;;  %v8428_v5 = vadd.f32 %v7936_v56, %v12154_v38 }
  0xe4   : > { %1924 = vmax.xlane.f32.xlu1 %v12149_v60  ;;  %v1857_v9 = vmax.f32 %v12153_v35, %v12152_v34  ;;  %v1854_v33 = vmax.f32 %v1790_v21, %v1822_v11  ;;  %v1855_v14 = vmax.f32 %v1791_v24, %v1823_v61  ;;  %v1746_v60 = vpop.permute.xlu1 %1745  ;;  %v1826_v7 = vmul.f32 0.2, %v1794_v51 }
  0xe5   : > { %v1827_v19 = vmul.f32 0.2, %v1795_v22  ;;  %v8431_v10 = vadd.f32 %v1850_v41, %v8032_v43  ;;  %v8434_v16 = vadd.f32 %v1851_v40, %v8034_v47  ;;  %v1833_v8 = vmul.f32 0.2, %v8394_v32 }
  0xe6   : > { %v1929_v34 = vmax.f32 %v8406_v4, %v8409_v37  ;;  %v1798_v35 = vadd.f32 %v7933_v52, %v1738_v18  ;;  %v1799_v21 = vadd.f32 %v7936_v56, %v1738_v18  ;;  %v1938_v24 = vmax.f32 %v8403_v2, %v8416_v15 }
  0xe7   : > { %1927 = vmax.xlane.f32.xlu0 %v1926_v36  ;;  %v8444_v41 = vadd.f32 %v1856_v49, %v7983_v42  ;;  %v8447_v40 = vadd.f32 %v1857_v9, %v7989_v54  ;;  %v1860_v11 = vmax.f32 %v8356_v50, %v1828_v25  ;;  %v1836_v61 = vmul.f32 0.2, %v8424_v30 }
  0xe8   : > { %1933 = vmax.xlane.f32.xlu1 %v1932_v31  ;;  %v1861_v36 = vmax.f32 %v8360_v39, %v1829_v53  ;;  %v8453_v38 = vadd.f32 %v1854_v33, %v8055_v23  ;;  %v8456_v18 = vadd.f32 %v1855_v14, %v8059_v29  ;;  %v1837_v31 = vmul.f32 0.2, %v8428_v5  ;;  %v1754_v39 = vpop.permute.xlu1 %1753  ;;  %v12156_v33 = vld [vmem:[#allocation36_spill] sm:$0xff] }
  0xe9   : > { %12155 = vst [vmem:[#allocation29_spill] sm:$0xff] %v8447_v40  ;;  %v1935_v49 = vmax.f32 %v8431_v10, %v8434_v16  ;;  %v1858_v42 = vmax.f32 %v1794_v51, %v1826_v7  ;;  %v1859_v9 = vmax.f32 %v1795_v22, %v1827_v19  ;;  %v1830_v54 = vmul.f32 0.2, %v1798_v35 }
  0xea   : > { %v1831_v50 = vmul.f32 0.2, %v1799_v21  ;;  %v1802_v25 = vadd.f32 %v7933_v52, %v1746_v60  ;;  %v1803_v53 = vadd.f32 %v7936_v56, %v1746_v60  ;;  %v1808_v23 = vadd.f32 %v7933_v52, %v12156_v33 }
  0xeb   : > { %1930 = vmax.xlane.f32.xlu0 %v1929_v34  ;;  %v1809_v14 = vadd.f32 %v7936_v56, %v12156_v33  ;;  %v1944_v29 = vmax.f32 %v8444_v41, %v8447_v40  ;;  %v8470_v7 = vadd.f32 %v1860_v11, %v7991_v58  ;;  %v8473_v51 = vadd.f32 %v1861_v36, %v7993_v59 }
  0xec   : > { %1939 = vmax.xlane.f32.xlu1 %v1938_v24  ;;  %v1941_v22 = vmax.f32 %v8453_v38, %v8456_v18  ;;  %v1864_v60 = vmax.f32 %v8388_v44, %v1832_v62  ;;  %v1865_v19 = vmax.f32 %v8394_v32, %v1833_v8  ;;  %v8480_v34 = vadd.f32 %v1858_v42, %v8061_v57 }
  0xed   : > { %v8483_v24 = vadd.f32 %v1859_v9, %v8063_v45  ;;  %v1806_v33 = vadd.f32 %v7933_v52, %v1754_v39  ;;  %v1807_v11 = vadd.f32 %v7936_v56, %v1754_v39  ;;  %v1834_v36 = vmul.f32 0.2, %v1802_v25 }
  0xee   : > { %v1835_v59 = vmul.f32 0.2, %v1803_v53  ;;  %v1862_v58 = vmax.f32 %v1798_v35, %v1830_v54  ;;  %v1863_v47 = vmax.f32 %v1799_v21, %v1831_v50  ;;  %v1840_v43 = vmul.f32 0.2, %v1808_v23 }
  0xef   : > { %1936 = vmax.xlane.f32.xlu0 %v1935_v49  ;;  %v1841_v40 = vmul.f32 0.2, %v1809_v14  ;;  %v1950_v44 = vmax.f32 %v8470_v7, %v8473_v51  ;;  %v8490_v42 = vadd.f32 %v1864_v60, %v7996_v12  ;;  %v8493_v62 = vadd.f32 %v1865_v19, %v7998_v17  ;;  %v9052_v12 = vld [vmem:[#allocation2 + $0xb8] sm:$0xff] }
  0xf0   : > { %1945 = vmax.xlane.f32.xlu1 %v1944_v29  ;;  %v1868_v52 = vmax.f32 %v8424_v30, %v1836_v61  ;;  %v1947_v56 = vmax.f32 %v8480_v34, %v8483_v24  ;;  %v1838_v32 = vmul.f32 0.2, %v1806_v33  ;;  %v1839_v54 = vmul.f32 0.2, %v1807_v11  ;;  %12169 = vst [vmem:[#allocation85_spill] sm:$0xff] %v9052_v12 }
  0xf1   : > { %v1869_v8 = vmax.f32 %v8428_v5, %v1837_v31  ;;  %v8500_v29 = vadd.f32 %v1862_v58, %v8071_v55  ;;  %v8503_v35 = vadd.f32 %v1863_v47, %v8102_v0  ;;  %v1866_v21 = vmax.f32 %v1802_v25, %v1834_v36  ;;  %v6973_v36 = vld [vmem:[%s11826_s3 + $0x48] sm:$0xff]  }
  0xf2   : > { %v1867_v49 = vmax.f32 %v1803_v53, %v1835_v59  ;;  %v1956_v30 = vmax.f32 %v8490_v42, %v8493_v62  ;;  %v8508_v61 = vadd.f32 %v1868_v52, %v8003_v27  ;;  %v1872_v5 = vmax.f32 %v1808_v23, %v1840_v43  ;;  %v6975_v52 = vld [vmem:[%s11826_s3 + $0x50] sm:$0xff]  }
  0xf3   : > { %1942 = vmax.xlane.f32.xlu0 %v1941_v22  ;;  %v8511_v9 = vadd.f32 %v1869_v8, %v12127_v20  ;;  %v1873_v31 = vmax.f32 %v1809_v14, %v1841_v40  ;;  %v1870_v50 = vmax.f32 %v1806_v33, %v1838_v32  ;;  %v1953_v58 = vmax.f32 %v8500_v29, %v8503_v35  ;;  %v6971_v33 = vld [vmem:[%s11826_s3 + $0x40] sm:$0xff]  }
  0xf4   : > { %1951 = vmax.xlane.f32.xlu1 %v1950_v44  ;;  %v8516_v47 = vadd.f32 %v1866_v21, %v8104_v6  ;;  %v8519_v59 = vadd.f32 %v1867_v49, %v8106_v48  ;;  %v1871_v25 = vmax.f32 %v1807_v11, %v1839_v54  ;;  %v8524_v39 = vadd.f32 %v1872_v5, %v12134_v3  ;;  %v6972_v11 = vld [vmem:[%s11826_s3] sm:$0xff]   ;;  %v6974_v44 = vld [vmem:[%s11826_s3 + $0x8] sm:$0xff]   ;;  %v8695_v21 = vld [vmem:[#allocation2 + $0x10] sm:$0xff] }
  0xf5   : > { %v1962_v53 = vmax.f32 %v8508_v61, %v8511_v9  ;;  %v8527_v43 = vadd.f32 %v1873_v31, %v12136_v28  ;;  %v8532_v40 = vadd.f32 %v1870_v50, %v12129_v46  ;;  %v11921_v19 = vmov 0.0   ;;  %6661 = vmatprep.subr.bf16.mxu0 %v6971_v33  ;;  %v8690_v32 = vld [vmem:[#allocation2] sm:$0xff]  ;;  %v878_v49 = vld [vmem:[#allocation2 + $0x8] sm:$0xff]  ;;  %v8782_v48 = vld [vmem:[#allocation2 + $0x58] sm:$0xff] }
  0xf6   : > { %v1959_v23 = vmax.f32 %v8516_v47, %v8519_v59  ;;  %v8535_v14 = vadd.f32 %v1871_v25, %v12131_v13  ;;  %368 = vst.msk [vmem:[#allocation3] sm:$0xff] %vm303_vm0, %v11921_v19  ;;  %369 = vst.msk [vmem:[#allocation3 + $0x8] sm:$0xff] %vm303_vm0, %v11921_v19  ;;  %6662 = vmatpush3.bf16.msra.mxu0 %v6972_v11  ;;  %v8708_v25 = vld [vmem:[#allocation2 + $0x20] sm:$0xff]  ;;  %v8757_v3 = vld [vmem:[#allocation2 + $0x48] sm:$0xff] }
  0xf7   : > { %1948 = vmax.xlane.f32.xlu0 %v1947_v56  ;;  %v1968_v22 = vmax.f32 %v8524_v39, %v8527_v43  ;;  %370 = vst.msk [vmem:[#allocation3 + $0x10] sm:$0xff] %vm303_vm0, %v11921_v19  ;;  %371 = vst.msk [vmem:[#allocation3 + $0x18] sm:$0xff] %vm303_vm0, %v11921_v19  ;;  %6663 = vmatprep.subr.bf16.mxu0 %v6973_v36  ;;  %v6976_v56 = vld [vmem:[%s11826_s3 + $0x10] sm:$0xff]   ;;  %v8721_v36 = vld [vmem:[#allocation2 + $0x28] sm:$0xff] }
  0xf8   : > { %1957 = vmax.xlane.f32.xlu1 %v1956_v30  ;;  %v1965_v60 = vmax.f32 %v8532_v40, %v8535_v14  ;;  %372 = vst.msk [vmem:[#allocation3 + $0x20] sm:$0xff] %vm303_vm0, %v11921_v19  ;;  %373 = vst.msk [vmem:[#allocation3 + $0x28] sm:$0xff] %vm303_vm0, %v11921_v19  ;;  %v6981_v13 = vld [vmem:[%s11826_s3 + $0x68] sm:$0xff]  }
  0xf9   : > { %374 = vst.msk [vmem:[#allocation3 + $0x30] sm:$0xff] %vm303_vm0, %v11921_v19  ;;  %375 = vst.msk [vmem:[#allocation3 + $0x38] sm:$0xff] %vm303_vm0, %v11921_v19  ;;  %v6982_v46 = vld [vmem:[%s11826_s3 + $0x28] sm:$0xff]  }
  0xfa   : > { %376 = vst.msk [vmem:[#allocation3 + $0x40] sm:$0xff] %vm303_vm0, %v11921_v19  ;;  %377 = vst.msk [vmem:[#allocation3 + $0x48] sm:$0xff] %vm303_vm0, %v11921_v19  ;;  %6664 = vmatpush3.bf16.msra.mxu0 %v6974_v44  ;;  %v8726_v44 = vld [vmem:[#allocation2 + $0x30] sm:$0xff] }
  0xfb   : > { %1954 = vmax.xlane.f32.xlu0 %v1953_v58  ;;  %378 = vst.msk [vmem:[#allocation3 + $0x50] sm:$0xff] %vm303_vm0, %v11921_v19  ;;  %379 = vst.msk [vmem:[#allocation3 + $0x58] sm:$0xff] %vm303_vm0, %v11921_v19  ;;  %6665 = vmatprep.subr.bf16.mxu0 %v6975_v52  ;;  %v8703_v58 = vld [vmem:[#allocation2 + $0x18] sm:$0xff] }
  0xfc   : > { %1963 = vmax.xlane.f32.xlu1 %v1962_v53  ;;  %380 = vst.msk [vmem:[#allocation3 + $0x60] sm:$0xff] %vm303_vm0, %v11921_v19  ;;  %381 = vst.msk [vmem:[#allocation3 + $0x68] sm:$0xff] %vm303_vm0, %v11921_v19 }
  0xfd   : > { %382 = vst.msk [vmem:[#allocation3 + $0x70] sm:$0xff] %vm303_vm0, %v11921_v19  ;;  %383 = vst.msk [vmem:[#allocation3 + $0x78] sm:$0xff] %vm303_vm0, %v11921_v19 }
  0xfe   : > { %384 = vst.msk [vmem:[#allocation3 + $0x80] sm:$0xff] %vm303_vm0, %v11921_v19  ;;  %385 = vst.msk [vmem:[#allocation3 + $0x88] sm:$0xff] %vm303_vm0, %v11921_v19  ;;  %6666 = vmatpush3.bf16.msra.mxu0 %v6976_v56 }
  0xff   : > { %1960 = vmax.xlane.f32.xlu0 %v1959_v23  ;;  %386 = vst.msk [vmem:[#allocation3 + $0x90] sm:$0xff] %vm303_vm0, %v11921_v19  ;;  %387 = vst.msk [vmem:[#allocation3 + $0x98] sm:$0xff] %vm303_vm0, %v11921_v19  ;;  %v6977_v23 = vld [vmem:[%s11826_s3 + $0x58] sm:$0xff]  }
 0x100   : > { %1969 = vmax.xlane.f32.xlu1 %v1968_v22  ;;  %388 = vst.msk [vmem:[#allocation3 + $0xa0] sm:$0xff] %vm303_vm0, %v11921_v19  ;;  %389 = vst.msk [vmem:[#allocation3 + $0xa8] sm:$0xff] %vm303_vm0, %v11921_v19  ;;  %v6978_v22 = vld [vmem:[%s11826_s3 + $0x18] sm:$0xff]   ;;  %6667 = vmatprep.subr.bf16.mxu0 %v6977_v23  ;;  %v6980_v23 = vld [vmem:[%s11826_s3 + $0x20] sm:$0xff]  }
 0x101   : > { %390 = vst.msk [vmem:[#allocation3 + $0xb0] sm:$0xff] %vm303_vm0, %v11921_v19  ;;  %391 = vst.msk [vmem:[#allocation3 + $0xb8] sm:$0xff] %vm303_vm0, %v11921_v19 }
 0x102   : > { %392 = vst.msk [vmem:[#allocation3 + $0xc0] sm:$0xff] %vm303_vm0, %v11921_v19  ;;  %393 = vst.msk [vmem:[#allocation3 + $0xc8] sm:$0xff] %vm303_vm0, %v11921_v19  ;;  %6668 = vmatpush3.bf16.msra.mxu0 %v6978_v22  ;;  %v8746_v22 = vld [vmem:[#allocation2 + $0x40] sm:$0xff] }
 0x103   : > { %394 = vst.msk [vmem:[#allocation3 + $0xd0] sm:$0xff] %vm303_vm0, %v11921_v19  ;;  %395 = vst.msk [vmem:[#allocation3 + $0xd8] sm:$0xff] %vm303_vm0, %v11921_v19  ;;  %1966 = vmax.xlane.f32.xlu0 %v1965_v60 }
 0x104   : > { %396 = vst.msk [vmem:[#allocation3 + $0xe0] sm:$0xff] %vm303_vm0, %v11921_v19  ;;  %397 = vst.msk [vmem:[#allocation3 + $0xe8] sm:$0xff] %vm303_vm0, %v11921_v19 }
 0x105   : > { %398 = vst.msk [vmem:[#allocation3 + $0xf0] sm:$0xff] %vm303_vm0, %v11921_v19  ;;  %399 = vst.msk [vmem:[#allocation3 + $0xf8] sm:$0xff] %vm303_vm0, %v11921_v19 }
 0x106   : > { %400 = vst.msk [vmem:[#allocation3 + $0x100] sm:$0xff] %vm303_vm0, %v11921_v19  ;;  %401 = vst.msk [vmem:[#allocation3 + $0x108] sm:$0xff] %vm303_vm0, %v11921_v19 }
 0x107   : > { %402 = vst.msk [vmem:[#allocation3 + $0x110] sm:$0xff] %vm303_vm0, %v11921_v19  ;;  %403 = vst.msk [vmem:[#allocation3 + $0x118] sm:$0xff] %vm303_vm0, %v11921_v19 }
 0x108   : > { %404 = vst.msk [vmem:[#allocation3 + $0x120] sm:$0xff] %vm303_vm0, %v11921_v19  ;;  %405 = vst.msk [vmem:[#allocation3 + $0x128] sm:$0xff] %vm303_vm0, %v11921_v19 }
 0x109   : > { %406 = vst.msk [vmem:[#allocation3 + $0x130] sm:$0xff] %vm303_vm0, %v11921_v19  ;;  %407 = vst.msk [vmem:[#allocation3 + $0x138] sm:$0xff] %vm303_vm0, %v11921_v19 }
 0x10a   : > { %408 = vst.msk [vmem:[#allocation3 + $0x140] sm:$0xff] %vm303_vm0, %v11921_v19  ;;  %409 = vst.msk [vmem:[#allocation3 + $0x148] sm:$0xff] %vm303_vm0, %v11921_v19 }
 0x10b   : > { %410 = vst.msk [vmem:[#allocation3 + $0x150] sm:$0xff] %vm303_vm0, %v11921_v19  ;;  %411 = vst.msk [vmem:[#allocation3 + $0x158] sm:$0xff] %vm303_vm0, %v11921_v19 }
 0x10c   : > { %412 = vst.msk [vmem:[#allocation3 + $0x160] sm:$0xff] %vm303_vm0, %v11921_v19  ;;  %413 = vst.msk [vmem:[#allocation3 + $0x168] sm:$0xff] %vm303_vm0, %v11921_v19 }
 0x10d   : > { %414 = vst.msk [vmem:[#allocation3 + $0x170] sm:$0xff] %vm303_vm0, %v11921_v19  ;;  %415 = vst.msk [vmem:[#allocation3 + $0x178] sm:$0xff] %vm303_vm0, %v11921_v19 }
 0x10e   : > { %416 = vst.msk [vmem:[#allocation3 + $0x180] sm:$0xff] %vm303_vm0, %v11921_v19  ;;  %417 = vst.msk [vmem:[#allocation3 + $0x188] sm:$0xff] %vm303_vm0, %v11921_v19 }
 0x10f   : > { %418 = vst.msk [vmem:[#allocation3 + $0x190] sm:$0xff] %vm303_vm0, %v11921_v19  ;;  %419 = vst.msk [vmem:[#allocation3 + $0x198] sm:$0xff] %vm303_vm0, %v11921_v19 }
 0x110   : > { %420 = vst.msk [vmem:[#allocation3 + $0x1a0] sm:$0xff] %vm303_vm0, %v11921_v19  ;;  %421 = vst.msk [vmem:[#allocation3 + $0x1a8] sm:$0xff] %vm303_vm0, %v11921_v19 }
 0x111   : > { %422 = vst.msk [vmem:[#allocation3 + $0x1b0] sm:$0xff] %vm303_vm0, %v11921_v19  ;;  %423 = vst.msk [vmem:[#allocation3 + $0x1b8] sm:$0xff] %vm303_vm0, %v11921_v19 }
 0x112   : > { %424 = vst.msk [vmem:[#allocation3 + $0x1c0] sm:$0xff] %vm303_vm0, %v11921_v19  ;;  %425 = vst.msk [vmem:[#allocation3 + $0x1c8] sm:$0xff] %vm303_vm0, %v11921_v19 }
 0x113   : > { %426 = vst.msk [vmem:[#allocation3 + $0x1d0] sm:$0xff] %vm303_vm0, %v11921_v19  ;;  %427 = vst.msk [vmem:[#allocation3 + $0x1d8] sm:$0xff] %vm303_vm0, %v11921_v19 }
 0x114   : > { %428 = vst.msk [vmem:[#allocation3 + $0x1e0] sm:$0xff] %vm303_vm0, %v11921_v19  ;;  %429 = vst.msk [vmem:[#allocation3 + $0x1e8] sm:$0xff] %vm303_vm0, %v11921_v19 }
 0x115   : > { %430 = vst.msk [vmem:[#allocation3 + $0x1f0] sm:$0xff] %vm303_vm0, %v11921_v19  ;;  %431 = vst.msk [vmem:[#allocation3 + $0x1f8] sm:$0xff] %vm303_vm0, %v11921_v19 }
 0x14d   : > { %v895_v54 = vpop.xlane.xlu0 %894 }
 0x14e   : > { %v8693_v8 = vmax.f32 %v8690_v32, %v895_v54 }
 0x150   : > { %1680 = vst.msk [vmem:[#allocation2] sm:$0xff] %vm303_vm0, %v8693_v8  ;;  %1007 = vperm.xlu1 %6962, %v8693_v8  }
 0x152   : > { %v901_v30 = vpop.xlane.xlu0 %900  ;;  %v898_v5 = vpop.xlane.xlu1 %897 }
 0x153   : > { %v8701_v31 = vmax.f32 %v8695_v21, %v901_v30  ;;  %v942_v50 = vmax.f32 %v878_v49, %v898_v5  ;;  %v8735_v5 = vld [vmem:[#allocation2 + $0x38] sm:$0xff] }
 0x155   : > { %1682 = vst.msk [vmem:[#allocation2 + $0x10] sm:$0xff] %vm303_vm0, %v8701_v31  ;;  %1017 = vperm.xlu1 %6962, %v8701_v31   ;;  %1681 = vst.msk [vmem:[#allocation2 + $0x8] sm:$0xff] %vm303_vm0, %v942_v50  ;;  %1012 = vperm.xlu0 %6961, %v942_v50  }
 0x156   : > { %v907_v60 = vpop.xlane.xlu1 %906 }
 0x157   : > { %v945_v11 = vmax.f32 %v8708_v25, %v907_v60 }
 0x158   : > { %v904_v53 = vpop.xlane.xlu0 %903 }
 0x159   : > { %v8718_v33 = vmax.f32 %v8703_v58, %v904_v53  ;;  %1684 = vst.msk [vmem:[#allocation2 + $0x20] sm:$0xff] %vm303_vm0, %v945_v11  ;;  %1027 = vperm.xlu0 %6961, %v945_v11   ;;  %v6979_v53 = vld [vmem:[%s11826_s3 + $0x60] sm:$0xff]  }
 0x15a   : > { %6669 = vmatprep.subr.bf16.mxu0 %v6979_v53 }
 0x15b   : > { %1683 = vst.msk [vmem:[#allocation2 + $0x18] sm:$0xff] %vm303_vm0, %v8718_v33  ;;  %1022 = vperm.xlu1 %6962, %v8718_v33   ;;  %v913_v56 = vpop.xlane.xlu1 %912  ;;  %6670 = vmatpush3.bf16.msra.mxu0 %v6980_v23 }
 0x15c   : > { %v910_v52 = vpop.xlane.xlu0 %909  ;;  %v8733_v30 = vmax.f32 %v8726_v44, %v913_v56  ;;  %6671 = vmatprep.subr.bf16.mxu0 %v6981_v13  ;;  %v6984_v13 = vld [vmem:[%s11826_s3 + $0x30] sm:$0xff]  }
 0x15d   : > { %v8730_v54 = vmax.f32 %v8721_v36, %v910_v52  ;;  %v958_v52 = vsub.f32 %v878_v49, %v942_v50  ;;  %v8768_v49 = vld [vmem:[#allocation2 + $0x50] sm:$0xff]  ;;  %v957_v50 = vsub.f32 %v8690_v32, %v8693_v8  ;;  %v8793_v8 = vld [vmem:[#allocation2 + $0x60] sm:$0xff] }
 0x15e   : > { %1686 = vst.msk [vmem:[#allocation2 + $0x30] sm:$0xff] %vm303_vm0, %v8733_v30  ;;  %1037 = vperm.xlu0 %6961, %v8733_v30   ;;  %v6983_v32 = vld [vmem:[%s11826_s3 + $0x70] sm:$0xff]  }
 0x15f   : > { %1685 = vst.msk [vmem:[#allocation2 + $0x28] sm:$0xff] %vm303_vm0, %v8730_v54  ;;  %1032 = vperm.xlu1 %6962, %v8730_v54   ;;  %v919_v56 = vpop.xlane.xlu1 %918  ;;  %v975_v23 = vmul.f32 1.442695, %v958_v52  ;;  %6672 = vmatpush3.bf16.msra.mxu0 %v6982_v46  ;;  %v973_v46 = vmul.f32 1.442695, %v957_v50 }
 0x160   : > { %v916_v60 = vpop.xlane.xlu0 %915  ;;  %v8755_v28 = vmax.f32 %v8746_v22, %v919_v56  ;;  %6673 = vmatprep.subr.bf16.mxu0 %v6983_v32 }
 0x161   : > { %v8752_v19 = vmax.f32 %v8735_v5, %v916_v60  ;;  %v961_v60 = vsub.f32 %v8708_v25, %v945_v11  ;;  %v959_v25 = vsub.f32 %v8695_v21, %v8701_v31  ;;  %7035 = vpow2.f32 %v975_v23  ;;  %v8808_v21 = vld [vmem:[#allocation2 + $0x68] sm:$0xff]  ;;  %v6985_v31 = vld [vmem:[%s11826_s3 + $0x78] sm:$0xff]  }
 0x162   : > { %1688 = vst.msk [vmem:[#allocation2 + $0x40] sm:$0xff] %vm303_vm0, %v8755_v28  ;;  %1047 = vperm.xlu0 %6961, %v8755_v28   ;;  %v6986_v23 = vld [vmem:[%s11826_s3 + $0x38] sm:$0xff]   ;;  %7037 = vpow2.f32 %v973_v46 }
 0x163   : > { %1687 = vst.msk [vmem:[#allocation2 + $0x38] sm:$0xff] %vm303_vm0, %v8752_v19  ;;  %1042 = vperm.xlu1 %6962, %v8752_v19   ;;  %v925_v56 = vpop.xlane.xlu1 %924  ;;  %v981_v52 = vmul.f32 1.442695, %v961_v60  ;;  %6674 = vmatpush3.bf16.msra.mxu0 %v6984_v13  ;;  %v960_v60 = vsub.f32 %v8703_v58, %v8718_v33  ;;  %v8834_v58 = vld [vmem:[#allocation2 + $0x78] sm:$0xff]  ;;  %v962_v33 = vsub.f32 %v8721_v36, %v8730_v54 }
 0x164   : > { %v922_v53 = vpop.xlane.xlu0 %921  ;;  %v8780_v27 = vmax.f32 %v8768_v49, %v925_v56  ;;  %6675 = vmatprep.subr.bf16.mxu0 %v6985_v31 }
 0x165   : > { %v8777_v20 = vmax.f32 %v8757_v3, %v922_v53  ;;  %v963_v53 = vsub.f32 %v8726_v44, %v8733_v30  ;;  %v8819_v44 = vld [vmem:[#allocation2 + $0x70] sm:$0xff]  ;;  %v977_v30 = vmul.f32 1.442695, %v959_v25  ;;  %7039 = vpow2.f32 %v981_v52  ;;  %v8841_v25 = vld [vmem:[#allocation2 + $0x80] sm:$0xff] }
 0x166   : > { %1690 = vst.msk [vmem:[#allocation2 + $0x50] sm:$0xff] %vm303_vm0, %v8780_v27  ;;  %1057 = vperm.xlu0 %6961, %v8780_v27   ;;  %12157 = vst [vmem:[#allocation51_spill] sm:$0xff] %v8841_v25  ;;  %v967_v36 = vsub.f32 %v8768_v49, %v8780_v27  ;;  %v964_v27 = vsub.f32 %v8735_v5, %v8752_v19  ;;  %v8880_v5 = vld [vmem:[#allocation2 + $0x90] sm:$0xff] }
 0x167   : > { %1689 = vst.msk [vmem:[#allocation2 + $0x48] sm:$0xff] %vm303_vm0, %v8777_v20  ;;  %1052 = vperm.xlu1 %6962, %v8777_v20   ;;  %v931_v56 = vpop.xlane.xlu1 %930  ;;  %v985_v13 = vmul.f32 1.442695, %v963_v53  ;;  %6676 = vmatpush3.bf16.msra.mxu0 %v6986_v23  ;;  %7041 = vpow2.f32 %v977_v30  ;;  %v8854_v23 = vld [vmem:[#allocation2 + $0x88] sm:$0xff]  ;;  %12163 = vst [vmem:[#allocation56_spill] sm:$0xff] %v8880_v5 }
 0x168   : > { %v928_v11 = vpop.xlane.xlu0 %927  ;;  %v8806_v50 = vmax.f32 %v8793_v8, %v931_v56  ;;  %12159 = vst [vmem:[#allocation45_spill] sm:$0xff] %v8854_v23 }
 0x169   : > { %v8803_v6 = vmax.f32 %v8782_v48, %v928_v11  ;;  %v965_v11 = vsub.f32 %v8746_v22, %v8755_v28  ;;  %v979_v28 = vmul.f32 1.442695, %v960_v60  ;;  %7043 = vpow2.f32 %v985_v13 }
 0x16a   : > { %1692 = vst.msk [vmem:[#allocation2 + $0x60] sm:$0xff] %vm303_vm0, %v8806_v50  ;;  %1067 = vperm.xlu0 %6961, %v8806_v50   ;;  %v983_v60 = vmul.f32 1.442695, %v962_v33 }
 0x16b   : > { %1691 = vst.msk [vmem:[#allocation2 + $0x58] sm:$0xff] %vm303_vm0, %v8803_v6  ;;  %1062 = vperm.xlu1 %6962, %v8803_v6   ;;  %v937_v56 = vpop.xlane.xlu1 %936  ;;  %v989_v52 = vmul.f32 1.442695, %v965_v11  ;;  %v8856_v30 = vpop.eup %7035  ;;  %7045 = vpow2.f32 %v979_v28  ;;  %v993_v11 = vmul.f32 1.442695, %v967_v36  ;;  %v12166_v36 = vmov 0.0  }
 0x16c   : > { %v934_v32 = vpop.xlane.xlu0 %933  ;;  %v8832_v46 = vmax.f32 %v8819_v44, %v937_v56  ;;  %v969_v56 = vsub.f32 %v8793_v8, %v8806_v50  ;;  %v8889_v8 = vld [vmem:[#allocation2 + $0xa8] sm:$0xff]  ;;  %v8891_v50 = vmul.f32 1.442695, %v964_v27  ;;  %434 = vst.msk [vmem:[#allocation4 + $0x8] sm:$0xff] %vm432_vm1, %v12166_v36  ;;  %433 = vst.msk [vmem:[#allocation4] sm:$0xff] %vm432_vm1, %v12166_v36  ;;  %v968_v0 = vsub.f32 %v8782_v48, %v8803_v6 }
 0x16d   : > { %v8829_v17 = vmax.f32 %v8808_v21, %v934_v32  ;;  %v8861_v32 = vld [vmem:[#allocation2 + $0x98] sm:$0xff]  ;;  %7047 = vpow2.f32 %v989_v52  ;;  %12164 = vst [vmem:[#allocation53_spill] sm:$0xff] %v8889_v8  ;;  %435 = vst.msk [vmem:[#allocation4 + $0x10] sm:$0xff] %vm432_vm1, %v12166_v36 }
 0x16e   : > { %1694 = vst.msk [vmem:[#allocation2 + $0x70] sm:$0xff] %vm303_vm0, %v8832_v46  ;;  %1077 = vperm.xlu0 %6961, %v8832_v46   ;;  %12160 = vst [vmem:[#allocation46_spill] sm:$0xff] %v8861_v32  ;;  %7049 = vpow2.f32 %v983_v60 }
 0x16f   : > { %1693 = vst.msk [vmem:[#allocation2 + $0x68] sm:$0xff] %vm303_vm0, %v8829_v17  ;;  %1072 = vperm.xlu1 %6962, %v8829_v17   ;;  %7051 = vpow2.f32 %v993_v11 }
 0x170   : > { %v940_v22 = vpop.xlane.xlu0 %939  ;;  %436 = vst.msk [vmem:[#allocation4 + $0x18] sm:$0xff] %vm432_vm1, %v12166_v36  ;;  %437 = vst.msk [vmem:[#allocation4 + $0x20] sm:$0xff] %vm432_vm1, %v12166_v36  ;;  %7053 = vpow2.f32 %v8891_v50  ;;  %v12171_v50 = vsub.f32 %v8819_v44, %v8832_v46  ;;  %v9086_v44 = vld [vmem:[#allocation2 + $0xc8] sm:$0xff]  ;;  %v995_v46 = vmul.f32 1.442695, %v968_v0 }
 0x171   : > { %v1925_v54 = vpop.xlane.xlu1 %1924  ;;  %v8849_v53 = vmax.f32 %v8834_v58, %v940_v22  ;;  %v8875_v22 = vpop.eup %7037  ;;  %438 = vst.msk [vmem:[#allocation4 + $0x28] sm:$0xff] %vm432_vm1, %v12166_v36  ;;  %439 = vst.msk [vmem:[#allocation4 + $0x30] sm:$0xff] %vm432_vm1, %v12166_v36 }
 0x172   : > { %v8852_v31 = vmax.f32 %v8841_v25, %v1925_v54  ;;  %1317 = vperm.xlu0 %6961, %v8856_v30   ;;  %v8882_v54 = vpop.eup %7039  ;;  %440 = vst.msk [vmem:[#allocation4 + $0x38] sm:$0xff] %vm432_vm1, %v12166_v36  ;;  %441 = vst.msk [vmem:[#allocation4 + $0x40] sm:$0xff] %vm432_vm1, %v12166_v36  ;;  %v1001_v45 = vmul.f32 1.442695, %v12171_v50 }
 0x173   : > { %1695 = vst.msk [vmem:[#allocation2 + $0x78] sm:$0xff] %vm303_vm0, %v8849_v53  ;;  %1082 = vperm.xlu1 %6962, %v8849_v53   ;;  %v9037_v11 = vpop.eup %7041  ;;  %12176 = vst [vmem:[#allocation90_spill] sm:$0xff] %v9086_v44 }
 0x174   : > { %12158 = vst [vmem:[#allocation40_spill] sm:$0xff] %v8852_v31  ;;  %2711 = vst.msk [vmem:[#allocation2 + $0x80] sm:$0xff] %vm303_vm0, %v8852_v31  ;;  %v1928_v13 = vpop.xlane.xlu0 %1927 }
 0x175   : > { %v1934_v33 = vpop.xlane.xlu1 %1933  ;;  %v8873_v28 = vmax.f32 %v8854_v23, %v1928_v13  ;;  %442 = vst.msk [vmem:[#allocation4 + $0x48] sm:$0xff] %vm432_vm1, %v12166_v36  ;;  %443 = vst.msk [vmem:[#allocation4 + $0x50] sm:$0xff] %vm432_vm1, %v12166_v36  ;;  %v9045_v13 = vpop.eup %7043  ;;  %v9151_v23 = vld [vmem:[#allocation2 + $0xe0] sm:$0xff] }
 0x176   : > { %v8878_v19 = vmax.f32 %v8861_v32, %v1934_v33  ;;  %1332 = vperm.xlu0 %6961, %v8882_v54   ;;  %v8900_v33 = vmul.f32 1.442695, %v969_v56  ;;  %444 = vst.msk [vmem:[#allocation4 + $0x58] sm:$0xff] %vm432_vm1, %v12166_v36  ;;  %445 = vst.msk [vmem:[#allocation4 + $0x60] sm:$0xff] %vm432_vm1, %v12166_v36  ;;  %v9072_v6 = vpop.eup %7045 }
 0x177   : > { %12161 = vst [vmem:[#allocation54_spill] sm:$0xff] %v8873_v28  ;;  %2712 = vst.msk [vmem:[#allocation2 + $0x88] sm:$0xff] %vm303_vm0, %v8873_v28  ;;  %1312 = vperm.xlu1 %6962, %v8875_v22   ;;  %v9079_v55 = vpop.eup %7047 }
 0x178   : > { %12162 = vst [vmem:[#allocation52_spill] sm:$0xff] %v8878_v19  ;;  %2714 = vst.msk [vmem:[#allocation2 + $0x98] sm:$0xff] %vm303_vm0, %v8878_v19  ;;  %v1931_v60 = vpop.xlane.xlu0 %1930  ;;  %7055 = vpow2.f32 %v8900_v33  ;;  %v9095_v33 = vpop.eup %7049 }
 0x179   : > { %v8904_v52 = vpop.xlane.xlu1 %1939  ;;  %v8907_v49 = vmax.f32 %v8880_v5, %v1931_v60  ;;  %446 = vst.msk [vmem:[#allocation4 + $0x68] sm:$0xff] %vm432_vm1, %v12166_v36  ;;  %447 = vst.msk [vmem:[#allocation4 + $0x70] sm:$0xff] %vm432_vm1, %v12166_v36  ;;  %v9043_v60 = vld [vmem:[#allocation2 + $0xa0] sm:$0xff] }
 0x17a   : > { %448 = vst.msk [vmem:[#allocation4 + $0x78] sm:$0xff] %vm432_vm1, %v12166_v36  ;;  %449 = vst.msk [vmem:[#allocation4 + $0x80] sm:$0xff] %vm432_vm1, %v12166_v36  ;;  %v9041_v56 = vmax.f32 %v8889_v8, %v8904_v52  ;;  %v12170_v52 = vsub.f32 %v8757_v3, %v8777_v20  ;;  %1342 = vperm.xlu0 %6961, %v9045_v13  }
 0x17b   : > { %12165 = vst [vmem:[#allocation31_spill] sm:$0xff] %v8907_v49  ;;  %450 = vst.msk [vmem:[#allocation4 + $0x88] sm:$0xff] %vm432_vm1, %v12166_v36  ;;  %1322 = vperm.xlu1 %6962, %v9037_v11  }
 0x17c   : > { %451 = vst.msk [vmem:[#allocation4 + $0x90] sm:$0xff] %vm432_vm1, %v12166_v36  ;;  %452 = vst.msk [vmem:[#allocation4 + $0x98] sm:$0xff] %vm432_vm1, %v12166_v36  ;;  %v1937_v27 = vpop.xlane.xlu0 %1936 }
 0x17d   : > { %453 = vst.msk [vmem:[#allocation4 + $0xa0] sm:$0xff] %vm432_vm1, %v12166_v36  ;;  %454 = vst.msk [vmem:[#allocation4 + $0xa8] sm:$0xff] %vm432_vm1, %v12166_v36  ;;  %v1946_v20 = vpop.xlane.xlu1 %1945  ;;  %v9070_v3 = vmax.f32 %v9043_v60, %v1937_v27  ;;  %v970_v27 = vsub.f32 %v8808_v21, %v8829_v17  ;;  %v9103_v17 = vld [vmem:[#allocation2 + $0xc0] sm:$0xff]  ;;  %v9105_v21 = vpop.eup %7051 }
 0x17e   : > { %455 = vst.msk [vmem:[#allocation4 + $0xb0] sm:$0xff] %vm432_vm1, %v12166_v36  ;;  %456 = vst.msk [vmem:[#allocation4 + $0xb8] sm:$0xff] %vm432_vm1, %v12166_v36  ;;  %v9075_v48 = vmax.f32 %v9052_v12, %v1946_v20  ;;  %1352 = vperm.xlu0 %6961, %v9079_v55  }
 0x17f   : > { %457 = vst.msk [vmem:[#allocation4 + $0xc0] sm:$0xff] %vm432_vm1, %v12166_v36  ;;  %458 = vst.msk [vmem:[#allocation4 + $0xc8] sm:$0xff] %vm432_vm1, %v12166_v36  ;;  %1327 = vperm.xlu1 %6962, %v9072_v6  }
 0x180   : > { %459 = vst.msk [vmem:[#allocation4 + $0xd0] sm:$0xff] %vm432_vm1, %v12166_v36  ;;  %460 = vst.msk [vmem:[#allocation4 + $0xd8] sm:$0xff] %vm432_vm1, %v12166_v36  ;;  %v1943_v20 = vpop.xlane.xlu0 %1942 }
 0x181   : > { %461 = vst.msk [vmem:[#allocation4 + $0xe0] sm:$0xff] %vm432_vm1, %v12166_v36  ;;  %462 = vst.msk [vmem:[#allocation4 + $0xe8] sm:$0xff] %vm432_vm1, %v12166_v36  ;;  %v1952_v57 = vpop.xlane.xlu1 %1951 }
 0x182   : > { %463 = vst.msk [vmem:[#allocation4 + $0xf0] sm:$0xff] %vm432_vm1, %v12166_v36  ;;  %464 = vst.msk [vmem:[#allocation4 + $0xf8] sm:$0xff] %vm432_vm1, %v12166_v36  ;;  %v9101_v0 = vmax.f32 %v9086_v44, %v1952_v57  ;;  %1362 = vperm.xlu0 %6961, %v9105_v21   ;;  %v9136_v44 = vld [vmem:[#allocation2 + $0xe8] sm:$0xff] }
 0x183   : > { %465 = vst.msk [vmem:[#allocation4 + $0x100] sm:$0xff] %vm432_vm1, %v12166_v36  ;;  %466 = vst.msk [vmem:[#allocation4 + $0x108] sm:$0xff] %vm432_vm1, %v12166_v36  ;;  %1337 = vperm.xlu1 %6962, %v9095_v33  }
 0x184   : > { %467 = vst.msk [vmem:[#allocation4 + $0x110] sm:$0xff] %vm432_vm1, %v12166_v36  ;;  %468 = vst.msk [vmem:[#allocation4 + $0x118] sm:$0xff] %vm432_vm1, %v12166_v36  ;;  %v1949_v50 = vpop.xlane.xlu0 %1948 }
 0x185   : > { %469 = vst.msk [vmem:[#allocation4 + $0x120] sm:$0xff] %vm432_vm1, %v12166_v36  ;;  %470 = vst.msk [vmem:[#allocation4 + $0x128] sm:$0xff] %vm432_vm1, %v12166_v36  ;;  %v1958_v12 = vpop.xlane.xlu1 %1957 }
 0x186   : > { %471 = vst.msk [vmem:[#allocation4 + $0x130] sm:$0xff] %vm432_vm1, %v12166_v36  ;;  %472 = vst.msk [vmem:[#allocation4 + $0x138] sm:$0xff] %vm432_vm1, %v12166_v36 }
 0x187   : > { %473 = vst.msk [vmem:[#allocation4 + $0x140] sm:$0xff] %vm432_vm1, %v12166_v36  ;;  %474 = vst.msk [vmem:[#allocation4 + $0x148] sm:$0xff] %vm432_vm1, %v12166_v36 }
 0x188   : > { %475 = vst.msk [vmem:[#allocation4 + $0x150] sm:$0xff] %vm432_vm1, %v12166_v36  ;;  %476 = vst.msk [vmem:[#allocation4 + $0x158] sm:$0xff] %vm432_vm1, %v12166_v36 }
 0x189   : > { %477 = vst.msk [vmem:[#allocation4 + $0x160] sm:$0xff] %vm432_vm1, %v12166_v36  ;;  %478 = vst.msk [vmem:[#allocation4 + $0x168] sm:$0xff] %vm432_vm1, %v12166_v36  ;;  %v1964_v32 = vpop.xlane.xlu1 %1963 }
 0x18a   : > { %479 = vst.msk [vmem:[#allocation4 + $0x170] sm:$0xff] %vm432_vm1, %v12166_v36  ;;  %480 = vst.msk [vmem:[#allocation4 + $0x178] sm:$0xff] %vm432_vm1, %v12166_v36  ;;  %v9149_v5 = vmax.f32 %v9136_v44, %v1964_v32 }
 0x18b   : > { %481 = vst.msk [vmem:[#allocation4 + $0x180] sm:$0xff] %vm432_vm1, %v12166_v36  ;;  %482 = vst.msk [vmem:[#allocation4 + $0x188] sm:$0xff] %vm432_vm1, %v12166_v36 }
 0x18c   : > { %483 = vst.msk [vmem:[#allocation4 + $0x190] sm:$0xff] %vm432_vm1, %v12166_v36  ;;  %484 = vst.msk [vmem:[#allocation4 + $0x198] sm:$0xff] %vm432_vm1, %v12166_v36 }
 0x18d   : > { %485 = vst.msk [vmem:[#allocation4 + $0x1a0] sm:$0xff] %vm432_vm1, %v12166_v36  ;;  %486 = vst.msk [vmem:[#allocation4 + $0x1a8] sm:$0xff] %vm432_vm1, %v12166_v36 }
 0x18e   : > { %487 = vst.msk [vmem:[#allocation4 + $0x1b0] sm:$0xff] %vm432_vm1, %v12166_v36  ;;  %488 = vst.msk [vmem:[#allocation4 + $0x1b8] sm:$0xff] %vm432_vm1, %v12166_v36 }
 0x18f   : > { %489 = vst.msk [vmem:[#allocation4 + $0x1c0] sm:$0xff] %vm432_vm1, %v12166_v36  ;;  %490 = vst.msk [vmem:[#allocation4 + $0x1c8] sm:$0xff] %vm432_vm1, %v12166_v36 }
 0x190   : > { %491 = vst.msk [vmem:[#allocation4 + $0x1d0] sm:$0xff] %vm432_vm1, %v12166_v36  ;;  %492 = vst.msk [vmem:[#allocation4 + $0x1d8] sm:$0xff] %vm432_vm1, %v12166_v36 }
 0x191   : > { %493 = vst.msk [vmem:[#allocation4 + $0x1e0] sm:$0xff] %vm432_vm1, %v12166_v36  ;;  %494 = vst.msk [vmem:[#allocation4 + $0x1e8] sm:$0xff] %vm432_vm1, %v12166_v36 }
 0x192   : > { %495 = vst.msk [vmem:[#allocation4 + $0x1f0] sm:$0xff] %vm432_vm1, %v12166_v36  ;;  %496 = vst.msk [vmem:[#allocation4 + $0x1f8] sm:$0xff] %vm432_vm1, %v12166_v36  ;;  %v991_v36 = vmul.f32 1.442695, %v12170_v52  ;;  %v9077_v52 = vld [vmem:[#allocation2 + $0xb0] sm:$0xff] }
 0x193   : > { %12167 = vst [vmem:[#allocation36_spill] sm:$0xff] %v9041_v56  ;;  %12168 = vst [vmem:[#allocation84_spill] sm:$0xff] %v9043_v60  ;;  %v9098_v8 = vmax.f32 %v9077_v52, %v1943_v20  ;;  %v999_v20 = vmul.f32 1.442695, %v970_v27 }
 0x194   : > { %2713 = vst.msk [vmem:[#allocation2 + $0x90] sm:$0xff] %vm303_vm0, %v8907_v49  ;;  %2716 = vst.msk [vmem:[#allocation2 + $0xa8] sm:$0xff] %vm303_vm0, %v9041_v56  ;;  %7057 = vpow2.f32 %v991_v36  ;;  %v9120_v36 = vmax.f32 %v9103_v17, %v1949_v50  ;;  %v6987_v50 = vld [vmem:[%s11826_s3 + $0xc0] sm:$0xff]  }
 0x195   : > { %12172 = vst [vmem:[#allocation86_spill] sm:$0xff] %v9070_v3  ;;  %12173 = vst [vmem:[#allocation87_spill] sm:$0xff] %v9075_v48  ;;  %7059 = vpow2.f32 %v1001_v45  ;;  %v9112_v45 = vld [vmem:[#allocation2 + $0xd8] sm:$0xff]  ;;  %6725 = vmatprep.subr.bf16.mxu1 %v6987_v50 }
 0x196   : > { %12174 = vst [vmem:[#allocation88_spill] sm:$0xff] %v9077_v52  ;;  %12175 = vst [vmem:[#allocation89_spill] sm:$0xff] %v9079_v55  ;;  %7061 = vpow2.f32 %v995_v46  ;;  %v9122_v52 = vpop.eup %7053  ;;  %v9125_v60 = vmax.f32 %v9112_v45, %v1958_v12  ;;  %v9127_v46 = vld [vmem:[#allocation2 + $0xd0] sm:$0xff]  ;;  %v1955_v12 = vpop.xlane.xlu0 %1954 }
 0x197   : > { %2715 = vst.msk [vmem:[#allocation2 + $0xa0] sm:$0xff] %vm303_vm0, %v9070_v3  ;;  %2718 = vst.msk [vmem:[#allocation2 + $0xb8] sm:$0xff] %vm303_vm0, %v9075_v48  ;;  %v9129_v27 = vpop.eup %7055  ;;  %1347 = vperm.xlu1 %6962, %v9122_v52   ;;  %7063 = vpow2.f32 %v999_v20  ;;  %v9144_v57 = vmax.f32 %v9127_v46, %v1955_v12  ;;  %v972_v12 = vsub.f32 %v8834_v58, %v8849_v53  ;;  %v6989_v53 = vld [vmem:[%s11826_s3 + $0xc8] sm:$0xff]  }
 0x198   : > { %12177 = vst [vmem:[#allocation91_spill] sm:$0xff] %v9098_v8  ;;  %12178 = vst [vmem:[#allocation92_spill] sm:$0xff] %v9101_v0  ;;  %1372 = vperm.xlu0 %6961, %v9129_v27  }
 0x199   : > { %12179 = vst [vmem:[#allocation93_spill] sm:$0xff] %v9103_v17  ;;  %12180 = vst [vmem:[#allocation94_spill] sm:$0xff] %v9105_v21 }
 0x19a   : > { %2717 = vst.msk [vmem:[#allocation2 + $0xb0] sm:$0xff] %vm303_vm0, %v9098_v8  ;;  %12181 = vst [vmem:[#allocation95_spill] sm:$0xff] %v9112_v45  ;;  %v9160_v45 = vld [vmem:[#allocation2 + $0xf8] sm:$0xff]  ;;  %v1961_v25 = vpop.xlane.xlu0 %1960 }
 0x19b   : > { %2720 = vst.msk [vmem:[#allocation2 + $0xc8] sm:$0xff] %vm303_vm0, %v9101_v0  ;;  %12182 = vst [vmem:[#allocation96_spill] sm:$0xff] %v9120_v36  ;;  %v9176_v58 = vmax.f32 %v9151_v23, %v1961_v25  ;;  %v6990_v25 = vld [vmem:[%s11826_s3 + $0x88] sm:$0xff]  }
 0x19c   : > { %12183 = vst [vmem:[#allocation97_spill] sm:$0xff] %v9125_v60  ;;  %12184 = vst [vmem:[#allocation98_spill] sm:$0xff] %v9127_v46  ;;  %v6988_v46 = vld [vmem:[%s11826_s3 + $0x80] sm:$0xff]  }
 0x19d   : > { %12185 = vst [vmem:[#allocation99_spill] sm:$0xff] %v9129_v27  ;;  %2719 = vst.msk [vmem:[#allocation2 + $0xc0] sm:$0xff] %vm303_vm0, %v9120_v36  ;;  %v1970_v27 = vpop.xlane.xlu1 %1969  ;;  %6726 = vmatpush3.bf16.msra.mxu1 %v6988_v46 }
 0x19e   : > { %12186 = vst [vmem:[#allocation100_spill] sm:$0xff] %v9136_v44  ;;  %2722 = vst.msk [vmem:[#allocation2 + $0xd8] sm:$0xff] %vm303_vm0, %v9125_v60  ;;  %v9146_v17 = vpop.eup %7057  ;;  %v9184_v44 = vmax.f32 %v9160_v45, %v1970_v27  ;;  %v1967_v50 = vpop.xlane.xlu0 %1966  ;;  %6727 = vmatprep.subr.bf16.mxu1 %v6989_v53  ;;  %v6992_v53 = vld [vmem:[%s11826_s3 + $0x90] sm:$0xff]  }
 0x19f   : > { %12187 = vst [vmem:[#allocation101_spill] sm:$0xff] %v9144_v57  ;;  %12188 = vst [vmem:[#allocation102_spill] sm:$0xff] %v9146_v17  ;;  %v9153_v20 = vpop.eup %7059  ;;  %1357 = vperm.xlu1 %6962, %v9146_v17   ;;  %v1003_v17 = vmul.f32 1.442695, %v972_v12  ;;  %v6991_v12 = vld [vmem:[%s11826_s3 + $0xd0] sm:$0xff]  }
 0x1a0   : > { %12189 = vst [vmem:[#allocation103_spill] sm:$0xff] %v9149_v5  ;;  %12190 = vst [vmem:[#allocation104_spill] sm:$0xff] %v9151_v23  ;;  %1382 = vperm.xlu0 %6961, %v9153_v20   ;;  %v9181_v32 = vpop.eup %7061  ;;  %v6999_v27 = vld [vmem:[%s11826_s3 + $0xf0] sm:$0xff]  }
 0x1a1   : > { %12191 = vst [vmem:[#allocation105_spill] sm:$0xff] %v9153_v20  ;;  %2721 = vst.msk [vmem:[#allocation2 + $0xd0] sm:$0xff] %vm303_vm0, %v9144_v57  ;;  %v9186_v20 = vld [vmem:[#allocation2 + $0xf0] sm:$0xff]  ;;  %v9204_v23 = vpop.eup %7063  ;;  %6728 = vmatpush3.bf16.msra.mxu1 %v6990_v25  ;;  %7065 = vpow2.f32 %v1003_v17  ;;  %v6993_v17 = vld [vmem:[%s11826_s3 + $0xd8] sm:$0xff]  }
 0x1a2   : > { %12192 = vst [vmem:[#allocation106_spill] sm:$0xff] %v9160_v45  ;;  %2724 = vst.msk [vmem:[#allocation2 + $0xe8] sm:$0xff] %vm303_vm0, %v9149_v5  ;;  %v9202_v21 = vmax.f32 %v9186_v20, %v1967_v50  ;;  %6729 = vmatprep.subr.bf16.mxu1 %v6991_v12  ;;  %v6994_v25 = vld [vmem:[%s11826_s3 + $0x98] sm:$0xff]   ;;  %v6995_v12 = vld [vmem:[%s11826_s3 + $0xe0] sm:$0xff]  }
 0x1a3   : > { %12193 = vst [vmem:[#allocation107_spill] sm:$0xff] %v9176_v58  ;;  %12194 = vst [vmem:[#allocation108_spill] sm:$0xff] %v9181_v32  ;;  %1367 = vperm.xlu1 %6962, %v9181_v32   ;;  %v12201_v45 = vld [vmem:[#allocation37_spill] sm:$0xff] }
 0x1a4   : > { %12195 = vst [vmem:[#allocation109_spill] sm:$0xff] %v9184_v44  ;;  %12196 = vst [vmem:[#allocation110_spill] sm:$0xff] %v9186_v20  ;;  %2037 = vperm.xlu0 %6961, %v8852_v31  }
 0x1a5   : > { %2723 = vst.msk [vmem:[#allocation2 + $0xe0] sm:$0xff] %vm303_vm0, %v9176_v58  ;;  %2726 = vst.msk [vmem:[#allocation2 + $0xf8] sm:$0xff] %vm303_vm0, %v9184_v44  ;;  %6730 = vmatpush3.bf16.msra.mxu1 %v6992_v53  ;;  %v6996_v53 = vld [vmem:[%s11826_s3 + $0xa0] sm:$0xff]  }
 0x1a6   : > { %12197 = vst [vmem:[#allocation111_spill] sm:$0xff] %v9202_v21  ;;  %12198 = vst [vmem:[#allocation112_spill] sm:$0xff] %v9204_v23  ;;  %6731 = vmatprep.subr.bf16.mxu1 %v6993_v17  ;;  %v6997_v17 = vld [vmem:[%s11826_s3 + $0xe8] sm:$0xff]  }
 0x1a7   : > { %2725 = vst.msk [vmem:[#allocation2 + $0xf0] sm:$0xff] %vm303_vm0, %v9202_v21  ;;  %1377 = vperm.xlu1 %6962, %v9204_v23  }
 0x1a8   : > { %2082 = vperm.xlu0 %6961, %v9101_v0  }
 0x1a9   : > { %6732 = vmatpush3.bf16.msra.mxu1 %v6994_v25  ;;  %v6998_v25 = vld [vmem:[%s11826_s3 + $0xa8] sm:$0xff]  }
 0x1aa   : > { %6733 = vmatprep.subr.bf16.mxu1 %v6995_v12  ;;  %v7000_v12 = vld [vmem:[%s11826_s3 + $0xb0] sm:$0xff]  }
 0x1ab   : > { %2042 = vperm.xlu1 %6962, %v8873_v28   ;;  %v9228_v50 = vpop.eup %7065 }
 0x1ac   : > { %2092 = vperm.xlu0 %6961, %v9125_v60   ;;  %12199 = vst [vmem:[#allocation113_spill] sm:$0xff] %v9228_v50 }
 0x1ad   : > { %6734 = vmatpush3.bf16.msra.mxu1 %v6996_v53  ;;  %v7001_v53 = vld [vmem:[%s11826_s3 + $0xf8] sm:$0xff]  }
 0x1ae   : > { %6735 = vmatprep.subr.bf16.mxu1 %v6997_v17  ;;  %v7002_v17 = vld [vmem:[%s11826_s3 + $0xb8] sm:$0xff]  }
 0x1af   : > { %2047 = vperm.xlu1 %6962, %v8907_v49   ;;  %v7673_v49 = vmov 2  }
 0x1b0   : > { %2102 = vperm.xlu0 %6961, %v9149_v5   ;;  %v12202_v5 = vld [vmem:[#allocation39_spill] sm:$0xff] }
 0x1b1   : > { %6736 = vmatpush3.bf16.msra.mxu1 %v6998_v25 }
 0x1b2   : > { %6737 = vmatprep.subr.bf16.mxu1 %v6999_v27 }
 0x1b3   : > { %1387 = vperm.xlu1 %6962, %v9228_v50  }
 0x1b4   : > { %2112 = vperm.xlu0 %6961, %v9184_v44  }
 0x1b5   : > { %6738 = vmatpush3.bf16.msra.mxu1 %v7000_v12  ;;  %v12200_v12 = vld [vmem:[#allocation55_spill] sm:$0xff] }
 0x1b6   : > { %6739 = vmatprep.subr.bf16.mxu1 %v7001_v53 }
 0x1b7   : > { %2052 = vperm.xlu1 %6962, %v8878_v19  }
 0x1b8   : > { %6964 = vset.pattern.permute.xlu0 %v7673_v49 }
 0x1b9   : > { %6740 = vmatpush3.bf16.msra.mxu1 %v7002_v17 }
 0x1bb   : > { %2057 = vperm.xlu1 %6962, %v9070_v3  }
 0x1bf   : > { %2062 = vperm.xlu1 %6962, %v9041_v56  }
 0x1c3   : > { %2067 = vperm.xlu1 %6962, %v9098_v8  }
 0x1c7   : > { %2072 = vperm.xlu1 %6962, %v9075_v48  }
 0x1cb   : > { %2077 = vperm.xlu1 %6962, %v9120_v36  }
 0x1cf   : > { %2087 = vperm.xlu1 %6962, %v9144_v57   ;;  %v1008_v27 = vpop.permute.xlu1 %1007  ;;  %v12203_v57 = vld [vmem:[#allocation60_spill] sm:$0xff] }
 0x1d0   : > { %v1085_v25 = vsub.f32 %v8177_v1, %v1008_v27  ;;  %v1086_v53 = vsub.f32 %v12200_v12, %v1008_v27  ;;  %v12205_v27 = vld [vmem:[#allocation47_spill] sm:$0xff]  ;;  %v12206_v12 = vld [vmem:[#allocation48_spill] sm:$0xff] }
 0x1d2   : > { %v1117_v46 = vmul.f32 1.442695, %v1085_v25  ;;  %v1119_v44 = vmul.f32 1.442695, %v1086_v53 }
 0x1d3   : > { %2097 = vperm.xlu1 %6962, %v9176_v58   ;;  %v12204_v58 = vld [vmem:[#allocation61_spill] sm:$0xff] }
 0x1d4   : > { %v1018_v17 = vpop.permute.xlu1 %1017  ;;  %7067 = vpow2.f32 %v1117_v46  ;;  %v1013_v0 = vpop.permute.xlu0 %1012 }
 0x1d5   : > { %v1089_v20 = vsub.f32 %v12201_v45, %v1018_v17  ;;  %v1090_v60 = vsub.f32 %v12202_v5, %v1018_v17  ;;  %7069 = vpow2.f32 %v1119_v44  ;;  %v1087_v36 = vsub.f32 %v12203_v57, %v1013_v0  ;;  %v12207_v45 = vld [vmem:[#allocation64_spill] sm:$0xff]  ;;  %v12208_v17 = vld [vmem:[#allocation65_spill] sm:$0xff] }
 0x1d6   : > { %v1088_v48 = vsub.f32 %v12204_v58, %v1013_v0 }
 0x1d7   : > { %2107 = vperm.xlu1 %6962, %v9202_v21   ;;  %v1125_v21 = vmul.f32 1.442695, %v1089_v20  ;;  %v1127_v8 = vmul.f32 1.442695, %v1090_v60  ;;  %v1121_v56 = vmul.f32 1.442695, %v1087_v36 }
 0x1d8   : > { %v1123_v1 = vmul.f32 1.442695, %v1088_v48  ;;  %v1028_v53 = vpop.permute.xlu0 %1027  ;;  %v12209_v48 = vld [vmem:[#allocation58_spill] sm:$0xff]  ;;  %v12210_v20 = vld [vmem:[#allocation59_spill] sm:$0xff] }
 0x1d9   : > { %7071 = vpow2.f32 %v1125_v21  ;;  %v1093_v5 = vsub.f32 %v12207_v45, %v1028_v53  ;;  %v1094_v44 = vsub.f32 %v12208_v17, %v1028_v53 }
 0x1da   : > { %v1023_v3 = vpop.permute.xlu1 %1022  ;;  %7073 = vpow2.f32 %v1127_v8 }
 0x1db   : > { %v1091_v25 = vsub.f32 %v12205_v27, %v1023_v3  ;;  %v1092_v46 = vsub.f32 %v12206_v12, %v1023_v3  ;;  %7075 = vpow2.f32 %v1121_v56  ;;  %v1133_v0 = vmul.f32 1.442695, %v1093_v5  ;;  %v12211_v3 = vld [vmem:[#allocation69_spill] sm:$0xff]  ;;  %v12212_v12 = vld [vmem:[#allocation70_spill] sm:$0xff]  ;;  %6963 = vset.pattern.permute.xlu1 %v7673_v49  ;;  %v12216_v49 = vld [vmem:[#allocation72_spill] sm:$0xff] }
 0x1dc   : > { %7077 = vpow2.f32 %v1123_v1  ;;  %v1135_v60 = vmul.f32 1.442695, %v1094_v44  ;;  %v12213_v44 = vld [vmem:[#allocation62_spill] sm:$0xff] }
 0x1dd   : > { %v1129_v57 = vmul.f32 1.442695, %v1091_v25  ;;  %v1131_v19 = vmul.f32 1.442695, %v1092_v46  ;;  %v1038_v27 = vpop.permute.xlu0 %1037 }
 0x1de   : > { %v1033_v36 = vpop.permute.xlu1 %1032  ;;  %v1097_v8 = vsub.f32 %v12211_v3, %v1038_v27  ;;  %v1098_v45 = vsub.f32 %v12212_v12, %v1038_v27  ;;  %v7068_v56 = vpop.eup %7067  ;;  %v12215_v27 = vld [vmem:[#allocation71_spill] sm:$0xff] }
 0x1df   : > { %7079 = vpow2.f32 %v1129_v57  ;;  %v1095_v21 = vsub.f32 %v12209_v48, %v1033_v36  ;;  %v1096_v58 = vsub.f32 %v12210_v20, %v1033_v36  ;;  %v7070_v46 = vpop.eup %7069 }
 0x1e0   : > { %7081 = vpow2.f32 %v1131_v19  ;;  %v1141_v53 = vmul.f32 1.442695, %v1097_v8  ;;  %v1143_v5 = vmul.f32 1.442695, %v1098_v45  ;;  %v12214_v19 = vld [vmem:[#allocation66_spill] sm:$0xff]  ;;  %v1213_v20 = vadd.f32 %v7070_v46, %v7068_v56 }
 0x1e1   : > { %7083 = vpow2.f32 %v1133_v0  ;;  %v1137_v1 = vmul.f32 1.442695, %v1095_v21  ;;  %v1139_v25 = vmul.f32 1.442695, %v1096_v58  ;;  %v1048_v48 = vpop.permute.xlu0 %1047 }
 0x1e2   : > { %7085 = vpow2.f32 %v1135_v60  ;;  %v1043_v17 = vpop.permute.xlu1 %1042  ;;  %v1101_v3 = vsub.f32 %v12215_v27, %v1048_v48  ;;  %v1102_v12 = vsub.f32 %v12216_v49, %v1048_v48  ;;  %1214 = vadd.xlane.f32.xlu0 %v1213_v20 }
 0x1e3   : > { %7087 = vpow2.f32 %v1137_v1  ;;  %v1099_v57 = vsub.f32 %v12213_v44, %v1043_v17  ;;  %v1100_v36 = vsub.f32 %v12214_v19, %v1043_v17  ;;  %v9283_v0 = vpop.eup %7071  ;;  %v12217_v17 = vld [vmem:[#allocation67_spill] sm:$0xff] }
 0x1e4   : > { %7089 = vpow2.f32 %v1139_v25  ;;  %v7074_v58 = vpop.eup %7073  ;;  %v1149_v8 = vmul.f32 1.442695, %v1101_v3  ;;  %v1151_v45 = vmul.f32 1.442695, %v1102_v12  ;;  %v12218_v25 = vld [vmem:[#allocation68_spill] sm:$0xff] }
 0x1e5   : > { %7091 = vpow2.f32 %v1141_v53  ;;  %v1145_v21 = vmul.f32 1.442695, %v1099_v57  ;;  %v1147_v60 = vmul.f32 1.442695, %v1100_v36  ;;  %v7076_v44 = vpop.eup %7075  ;;  %v1058_v27 = vpop.permute.xlu0 %1057  ;;  %v1219_v48 = vadd.f32 %v7074_v58, %v9283_v0  ;;  %v12219_v53 = vld [vmem:[#allocation75_spill] sm:$0xff]  ;;  %v12220_v36 = vld [vmem:[#allocation76_spill] sm:$0xff] }
 0x1e6   : > { %7093 = vpow2.f32 %v1143_v5  ;;  %v1053_v1 = vpop.permute.xlu1 %1052  ;;  %v7078_v49 = vpop.eup %7077  ;;  %v1105_v57 = vsub.f32 %v12219_v53, %v1058_v27  ;;  %v1106_v20 = vsub.f32 %v12220_v36, %v1058_v27  ;;  %v1406_v31 = vpack.c.bf16 %v7076_v44, %v7068_v56  ;;  %v12222_v56 = vld [vmem:[#allocation74_spill] sm:$0xff] }
 0x1e7   : > { %7095 = vpow2.f32 %v1145_v21  ;;  %v1103_v19 = vsub.f32 %v12217_v17, %v1053_v1  ;;  %v1104_v28 = vsub.f32 %v12218_v25, %v1053_v1  ;;  %1220 = vadd.xlane.f32.xlu0 %v1219_v48  ;;  %v1407_v21 = vpack.c.bf16 %v7078_v49, %v7070_v46  ;;  %v12223_v46 = vld [vmem:[#allocation77_spill] sm:$0xff] }
 0x1e8   : > { %7097 = vpow2.f32 %v1147_v60  ;;  %v1157_v1 = vmul.f32 1.442695, %v1105_v57  ;;  %v1159_v25 = vmul.f32 1.442695, %v1106_v20  ;;  %v1216_v50 = vadd.f32 %v7078_v49, %v7076_v44  ;;  %v12221_v60 = vld [vmem:[#allocation73_spill] sm:$0xff] }
 0x1e9   : > { %v9290_v5 = vpop.eup %7079  ;;  %7099 = vpow2.f32 %v1149_v8  ;;  %v1153_v3 = vmul.f32 1.442695, %v1103_v19  ;;  %v1155_v12 = vmul.f32 1.442695, %v1104_v28  ;;  %1582 = vmatprep.mubr.bf16.mxu0 %v1407_v21  ;;  %v1068_v36 = vpop.permute.xlu0 %1067  ;;  %v12224_v19 = vld [vmem:[#allocation78_spill] sm:$0xff] }
 0x1ea   : > { %v7082_v17 = vpop.eup %7081  ;;  %7101 = vpow2.f32 %v1151_v45  ;;  %v1063_v23 = vpop.permute.xlu1 %1062  ;;  %1583 = vmatmul.mubr.bf16.vlgmr.msra.gmra.mrb[0].mxu0 %v1406_v31  ;;  %v1109_v45 = vsub.f32 %v12223_v46, %v1068_v36  ;;  %v1110_v44 = vsub.f32 %v12224_v19, %v1068_v36 }
 0x1eb   : > { %v9292_v32 = vpop.eup %7083  ;;  %7103 = vpow2.f32 %v1153_v3  ;;  %v1107_v27 = vsub.f32 %v12221_v60, %v1063_v23  ;;  %v1108_v53 = vsub.f32 %v12222_v56, %v1063_v23  ;;  %v1222_v8 = vadd.f32 %v7082_v17, %v9290_v5 }
 0x1ec   : > { %v7086_v28 = vpop.eup %7085  ;;  %7105 = vpow2.f32 %v1155_v12  ;;  %v1409_v48 = vpack.c.bf16 %v7082_v17, %v7074_v58  ;;  %v1165_v21 = vmul.f32 1.442695, %v1109_v45  ;;  %v1167_v60 = vmul.f32 1.442695, %v1110_v44  ;;  %v12225_v12 = vld [vmem:[#allocation79_spill] sm:$0xff]  ;;  %v12226_v58 = vld [vmem:[#allocation80_spill] sm:$0xff] }
 0x1ed   : > { %v9299_v49 = vpop.eup %7087  ;;  %7107 = vpow2.f32 %v1157_v1  ;;  %v1161_v57 = vmul.f32 1.442695, %v1107_v27  ;;  %v1163_v20 = vmul.f32 1.442695, %v1108_v53  ;;  %1223 = vadd.xlane.f32.xlu0 %v1222_v8  ;;  %v1225_v23 = vadd.f32 %v7086_v28, %v9292_v32  ;;  %v1078_v36 = vpop.permute.xlu0 %1077  ;;  %v12227_v53 = vld [vmem:[#allocation81_spill] sm:$0xff] }
 0x1ee   : > { %v7090_v3 = vpop.eup %7089  ;;  %7109 = vpow2.f32 %v1159_v25  ;;  %1590 = vmatprep.mubr.bf16.mxu0 %v1409_v48  ;;  %v1113_v8 = vsub.f32 %v12227_v53, %v1078_v36  ;;  %v12228_v25 = vld [vmem:[#allocation82_spill] sm:$0xff]  ;;  %v1408_v45 = vpack.c.bf16 %v9290_v5, %v9283_v0  ;;  %v12230_v0 = vld [vmem:[#allocation83_spill] sm:$0xff] }
 0x1ef   : > { %v9302_v31 = vpop.eup %7091  ;;  %7111 = vpow2.f32 %v1161_v57  ;;  %v1228_v1 = vadd.f32 %v7090_v3, %v9299_v49  ;;  %v1114_v46 = vsub.f32 %v12228_v25, %v1078_v36  ;;  %v12229_v36 = vld [vmem:[#allocation26_spill] sm:$0xff] }
 0x1f0   : > { %v7094_v27 = vpop.eup %7093  ;;  %7113 = vpow2.f32 %v1163_v20 }
 0x1f1   : > { %v9311_v19 = vpop.eup %7095  ;;  %7115 = vpow2.f32 %v1165_v21  ;;  %1229 = vadd.xlane.f32.xlu0 %v1228_v1  ;;  %v1231_v57 = vadd.f32 %v7094_v27, %v9302_v31  ;;  %v1175_v20 = vmul.f32 1.442695, %v1114_v46  ;;  %v9318_v55 = vpop.permute.xlu0 %1317 }
 0x1f2   : > { %7117 = vpow2.f32 %v1167_v60  ;;  %12231 = vst [vmem:[#allocation55_spill] sm:$0xff] %v9318_v55  ;;  %1591 = vmatmul.mubr.bf16.gmra.mrb[4].mxu0 %v1408_v45 }
 0x1fb   : > { %1217 = vadd.xlane.f32.xlu1 %v1216_v50  ;;  %v1073_v50 = vpop.permute.xlu1 %1072 }
 0x1fc   : > { %v1111_v56 = vsub.f32 %v12225_v12, %v1073_v50  ;;  %v1112_v17 = vsub.f32 %v12226_v58, %v1073_v50  ;;  %v7098_v50 = vpop.eup %7097  ;;  %v1173_v12 = vmul.f32 1.442695, %v1113_v8  ;;  %v1411_v58 = vpack.c.bf16 %v7090_v3, %v7086_v28 }
 0x1fd   : > { %v9314_v53 = vpop.eup %7099  ;;  %v1234_v21 = vadd.f32 %v7098_v50, %v9311_v19 }
 0x1fe   : > { %v1169_v44 = vmul.f32 1.442695, %v1111_v56  ;;  %v1171_v48 = vmul.f32 1.442695, %v1112_v17  ;;  %v7102_v56 = vpop.eup %7101  ;;  %1598 = vmatprep.mubr.bf16.mxu0 %v1411_v58  ;;  %v1410_v58 = vpack.c.bf16 %v9299_v49, %v9292_v32 }
 0x1ff   : > { %1226 = vadd.xlane.f32.xlu1 %v1225_v23  ;;  %v1083_v23 = vpop.permute.xlu1 %1082  ;;  %v7104_v60 = vpop.eup %7103  ;;  %1235 = vadd.xlane.f32.xlu0 %v1234_v21  ;;  %v1237_v28 = vadd.f32 %v7102_v56, %v9314_v53 }
 0x200   : > { %7119 = vpow2.f32 %v1169_v44  ;;  %v1115_v25 = vsub.f32 %v12229_v36, %v1083_v23  ;;  %v1116_v5 = vsub.f32 %v12230_v0, %v1083_v23  ;;  %v7106_v3 = vpop.eup %7105  ;;  %v9324_v44 = vpop.permute.xlu0 %1332  ;;  %1599 = vmatmul.mubr.bf16.gmra.mrb[8].mxu0 %v1410_v58 }
 0x201   : > { %7121 = vpow2.f32 %v1171_v48  ;;  %v7108_v46 = vpop.eup %7107  ;;  %12233 = vst [vmem:[#allocation39_spill] sm:$0xff] %v9324_v44  ;;  %v1240_v23 = vadd.f32 %v7106_v3, %v7104_v60 }
 0x202   : > { %7123 = vpow2.f32 %v1173_v12  ;;  %v1177_v17 = vmul.f32 1.442695, %v1115_v25  ;;  %v1179_v1 = vmul.f32 1.442695, %v1116_v5  ;;  %v7110_v48 = vpop.eup %7109  ;;  %v1413_v25 = vpack.c.bf16 %v7098_v50, %v7094_v27 }
 0x203   : > { %1232 = vadd.xlane.f32.xlu1 %v1231_v57  ;;  %7125 = vpow2.f32 %v1175_v20  ;;  %v9322_v8 = vpop.permute.xlu1 %1312  ;;  %v7112_v45 = vpop.eup %7111  ;;  %1241 = vadd.xlane.f32.xlu0 %v1240_v23  ;;  %v1243_v57 = vadd.f32 %v7110_v48, %v7108_v46 }
 0x204   : > { %12232 = vst [vmem:[#allocation37_spill] sm:$0xff] %v9322_v8  ;;  %7127 = vpow2.f32 %v1177_v17  ;;  %v7114_v12 = vpop.eup %7113  ;;  %v9332_v0 = vpop.permute.xlu0 %1342  ;;  %1606 = vmatprep.mubr.bf16.mxu0 %v1413_v25  ;;  %v1412_v25 = vpack.c.bf16 %v9311_v19, %v9302_v31 }
 0x205   : > { %7129 = vpow2.f32 %v1179_v1  ;;  %v9330_v20 = vpop.eup %7115  ;;  %12235 = vst [vmem:[#allocation61_spill] sm:$0xff] %v9332_v0  ;;  %v1246_v5 = vadd.f32 %v7114_v12, %v7112_v45  ;;  %v1415_v0 = vpack.c.bf16 %v7106_v3, %v7102_v56  ;;  %v1417_v8 = vpack.c.bf16 %v7114_v12, %v7110_v48  ;;  %v12241_v48 = vld [vmem:[#allocation50_spill] sm:$0xff] }
 0x206   : > { %v7118_v21 = vpop.eup %7117  ;;  %v12242_v12 = vld [vmem:[#allocation38_spill] sm:$0xff] }
 0x207   : > { %1238 = vadd.xlane.f32.xlu1 %v1237_v28  ;;  %v9328_v36 = vpop.permute.xlu1 %1322  ;;  %1247 = vadd.xlane.f32.xlu0 %v1246_v5  ;;  %v1249_v1 = vadd.f32 %v7118_v21, %v9330_v20 }
 0x208   : > { %12234 = vst [vmem:[#allocation60_spill] sm:$0xff] %v9328_v36  ;;  %v9339_v49 = vpop.permute.xlu0 %1352  ;;  %1607 = vmatmul.mubr.bf16.gmra.mrb[12].mxu0 %v1412_v25  ;;  %v1416_v25 = vpack.c.bf16 %v7112_v45, %v7108_v46 }
 0x209   : > { %12237 = vst [vmem:[#allocation48_spill] sm:$0xff] %v9339_v49  ;;  %1614 = vmatprep.mubr.bf16.mxu0 %v1415_v0 }
 0x20a   : > { %v7120_v17 = vpop.eup %7119 }
 0x20b   : > { %1244 = vadd.xlane.f32.xlu1 %v1243_v57  ;;  %v7122_v28 = vpop.eup %7121  ;;  %v9335_v23 = vpop.permute.xlu1 %1327 }
 0x20c   : > { %12236 = vst [vmem:[#allocation47_spill] sm:$0xff] %v9335_v23  ;;  %v9337_v32 = vpop.eup %7123  ;;  %v1252_v44 = vadd.f32 %v7122_v28, %v7120_v17  ;;  %v9346_v36 = vpop.permute.xlu0 %1362 }
 0x20d   : > { %v7126_v27 = vpop.eup %7125 }
 0x20e   : > { %v7128_v50 = vpop.eup %7127  ;;  %1253 = vadd.xlane.f32.xlu0 %v1252_v44  ;;  %v1255_v57 = vadd.f32 %v7126_v27, %v9337_v32  ;;  %v1414_v44 = vpack.c.bf16 %v7104_v60, %v9314_v53  ;;  %v1419_v53 = vpack.c.bf16 %v7122_v28, %v7118_v21 }
 0x20f   : > { %1250 = vadd.xlane.f32.xlu1 %v1249_v1  ;;  %v7130_v58 = vpop.eup %7129  ;;  %v9344_v5 = vpop.permute.xlu1 %1337 }
 0x210   : > { %v1258_v23 = vadd.f32 %v7130_v58, %v7128_v50  ;;  %1615 = vmatmul.mubr.bf16.gmra.mrb[16].mxu0 %v1414_v44  ;;  %v1421_v21 = vpack.c.bf16 %v7130_v58, %v7126_v27 }
 0x211   : > { %1622 = vmatprep.mubr.bf16.mxu0 %v1417_v8 }
 0x212   : > { %1259 = vadd.xlane.f32.xlu0 %v1258_v23 }
 0x213   : > { %1256 = vadd.xlane.f32.xlu1 %v1255_v57 }
 0x216   : > { %v9348_v49 = vpop.permute.xlu1 %1347 }
 0x217   : > { %v9350_v1 = vpop.permute.xlu0 %1372 }
 0x218   : > { %12238 = vst [vmem:[#allocation64_spill] sm:$0xff] %v9350_v1  ;;  %1623 = vmatmul.mubr.bf16.gmra.mrb[20].mxu0 %v1416_v25 }
 0x219   : > { %1630 = vmatprep.mubr.bf16.mxu0 %v1419_v53 }
 0x21e   : > { %v9353_v55 = vpop.permute.xlu1 %1357 }
 0x21f   : > { %v9355_v31 = vpop.permute.xlu0 %1382 }
 0x220   : > { %12239 = vst [vmem:[#allocation65_spill] sm:$0xff] %v9355_v31 }
 0x222   : > { %v9357_v19 = vpop.permute.xlu1 %1367 }
 0x223   : > { %12240 = vst [vmem:[#allocation58_spill] sm:$0xff] %v9357_v19  ;;  %v2038_v56 = vpop.permute.xlu0 %2037 }
 0x224   : > { %v2115_v3 = vsub.f32 %v12147_v26, %v2038_v56  ;;  %v2116_v0 = vsub.f32 %v12148_v63, %v2038_v56  ;;  %v1418_v26 = vpack.c.bf16 %v7120_v17, %v9330_v20  ;;  %v1420_v20 = vpack.c.bf16 %v7128_v50, %v9337_v32 }
 0x226   : > { %v2147_v23 = vmul.f32 1.442695, %v2115_v3  ;;  %v2149_v57 = vmul.f32 1.442695, %v2116_v0  ;;  %v9361_v1 = vpop.permute.xlu1 %1377  ;;  %1631 = vmatmul.mubr.bf16.gmra.mrb[24].mxu0 %v1418_v26 }
 0x227   : > { %1638 = vmatprep.mubr.bf16.mxu0 %v1421_v21  ;;  %v2083_v26 = vpop.permute.xlu0 %2082 }
 0x228   : > { %7131 = vpow2.f32 %v2147_v23 }
 0x229   : > { %7133 = vpow2.f32 %v2149_v57 }
 0x22a   : > { %v2043_v60 = vpop.permute.xlu1 %2042 }
 0x22b   : > { %v2117_v8 = vsub.f32 %v12241_v48, %v2043_v60  ;;  %v2118_v44 = vsub.f32 %v12242_v12, %v2043_v60 }
 0x22d   : > { %v2151_v19 = vmul.f32 1.442695, %v2117_v8  ;;  %v2153_v31 = vmul.f32 1.442695, %v2118_v44 }
 0x22e   : > { %v2048_v63 = vpop.permute.xlu1 %2047  ;;  %1639 = vmatmul.mubr.bf16.gmra.mrb[28].mxu0 %v1420_v20 }
 0x22f   : > { %7135 = vpow2.f32 %v2151_v19  ;;  %v2119_v46 = vsub.f32 %v8406_v4, %v2048_v63  ;;  %v2120_v45 = vsub.f32 %v8409_v37, %v2048_v63  ;;  %v12243_v4 = vld [vmem:[#allocation57_spill] sm:$0xff]  ;;  %v12244_v37 = vld [vmem:[#allocation63_spill] sm:$0xff] }
 0x230   : > { %7137 = vpow2.f32 %v2153_v31 }
 0x231   : > { %v2155_v28 = vmul.f32 1.442695, %v2119_v46  ;;  %v2157_v56 = vmul.f32 1.442695, %v2120_v45 }
 0x232   : > { %v7132_v3 = vpop.eup %7131  ;;  %v9368_v0 = vpop.permute.xlu1 %1387 }
 0x233   : > { %v7134_v23 = vpop.eup %7133  ;;  %7139 = vpow2.f32 %v2155_v28 }
 0x234   : > { %7141 = vpow2.f32 %v2157_v56  ;;  %v2244_v57 = vadd.f32 %v7134_v23, %v7132_v3 }
 0x236   : > { %2245 = vadd.xlane.f32.xlu1 %v2244_v57  ;;  %v2053_v17 = vpop.permute.xlu1 %2052  ;;  %v2093_v57 = vpop.permute.xlu0 %2092 }
 0x237   : > { %v2121_v19 = vsub.f32 %v12243_v4, %v2053_v17  ;;  %v2122_v27 = vsub.f32 %v12244_v37, %v2053_v17 }
 0x239   : > { %v7136_v58 = vpop.eup %7135  ;;  %v2159_v31 = vmul.f32 1.442695, %v2121_v19  ;;  %v2161_v25 = vmul.f32 1.442695, %v2122_v27 }
 0x23a   : > { %v7138_v53 = vpop.eup %7137  ;;  %v2058_v60 = vpop.permute.xlu1 %2057  ;;  %v2437_v48 = vpack.c.bf16 %v7136_v58, %v7132_v3 }
 0x23b   : > { %7143 = vpow2.f32 %v2159_v31  ;;  %v2123_v8 = vsub.f32 %v8431_v10, %v2058_v60  ;;  %v2124_v12 = vsub.f32 %v8434_v16, %v2058_v60  ;;  %v2247_v44 = vadd.f32 %v7138_v53, %v7136_v58  ;;  %v12245_v60 = vld [vmem:[#allocation29_spill] sm:$0xff] }
 0x23c   : > { %7145 = vpow2.f32 %v2161_v25  ;;  %v2438_v32 = vpack.c.bf16 %v7138_v53, %v7134_v23  ;;  %v2133_v23 = vsub.f32 %v8470_v7, %v2083_v26  ;;  %v2137_v31 = vsub.f32 %v8490_v42, %v2093_v57 }
 0x23d   : > { %v7140_v50 = vpop.eup %7139  ;;  %v2163_v63 = vmul.f32 1.442695, %v2123_v8  ;;  %v2165_v46 = vmul.f32 1.442695, %v2124_v12  ;;  %2248 = vadd.xlane.f32.xlu0 %v2247_v44  ;;  %v2103_v8 = vpop.permute.xlu0 %2102  ;;  %v2138_v42 = vsub.f32 %v8493_v62, %v2093_v57 }
 0x23e   : > { %v7142_v45 = vpop.eup %7141  ;;  %2614 = vmatprep.mubr.bf16.mxu1 %v2438_v32  ;;  %v2063_v21 = vpop.permute.xlu1 %2062  ;;  %v2183_v58 = vmul.f32 1.442695, %v2133_v23 }
 0x23f   : > { %7147 = vpow2.f32 %v2163_v63  ;;  %2615 = vmatmul.mubr.bf16.vlgmr.msra.gmra.mrb[0].mxu1 %v2437_v48  ;;  %v2125_v28 = vsub.f32 %v8403_v2, %v2063_v21  ;;  %v2126_v56 = vsub.f32 %v8416_v15, %v2063_v21  ;;  %v2250_v10 = vadd.f32 %v7142_v45, %v7140_v50 }
 0x240   : > { %7149 = vpow2.f32 %v2165_v46  ;;  %v2134_v2 = vsub.f32 %v8473_v51, %v2083_v26  ;;  %v2191_v63 = vmul.f32 1.442695, %v2137_v31  ;;  %v2193_v62 = vmul.f32 1.442695, %v2138_v42 }
 0x241   : > { %v2167_v16 = vmul.f32 1.442695, %v2125_v28  ;;  %v2169_v3 = vmul.f32 1.442695, %v2126_v56  ;;  %2251 = vadd.xlane.f32.xlu0 %v2250_v10  ;;  %v2141_v28 = vsub.f32 %v8508_v61, %v2103_v8  ;;  %v2113_v23 = vpop.permute.xlu0 %2112 }
 0x242   : > { %v2068_v20 = vpop.permute.xlu1 %2067  ;;  %v2185_v44 = vmul.f32 1.442695, %v2134_v2  ;;  %v2145_v2 = vsub.f32 %v8524_v39, %v2113_v23 }
 0x243   : > { %7151 = vpow2.f32 %v2167_v16  ;;  %v2127_v17 = vsub.f32 %v8453_v38, %v2068_v20  ;;  %v2128_v4 = vsub.f32 %v8456_v18, %v2068_v20 }
 0x244   : > { %7153 = vpow2.f32 %v2169_v3  ;;  %v2142_v3 = vsub.f32 %v8511_v9, %v2103_v8 }
 0x245   : > { %v7144_v19 = vpop.eup %7143  ;;  %v2171_v37 = vmul.f32 1.442695, %v2127_v17  ;;  %v2173_v15 = vmul.f32 1.442695, %v2128_v4 }
 0x246   : > { %v7146_v27 = vpop.eup %7145  ;;  %v2073_v25 = vpop.permute.xlu1 %2072  ;;  %v2439_v53 = vpack.c.bf16 %v7144_v19, %v7140_v50  ;;  %v2201_v9 = vmul.f32 1.442695, %v2142_v3 }
 0x247   : > { %7155 = vpow2.f32 %v2171_v37  ;;  %v2129_v7 = vsub.f32 %v8444_v41, %v2073_v25  ;;  %v2130_v48 = vsub.f32 %v12245_v60, %v2073_v25  ;;  %v2440_v38 = vpack.c.bf16 %v7146_v27, %v7142_v45 }
 0x248   : > { %7157 = vpow2.f32 %v2173_v15  ;;  %v2253_v18 = vadd.f32 %v7146_v27, %v7144_v19  ;;  %v2199_v19 = vmul.f32 1.442695, %v2141_v28 }
 0x249   : > { %v7148_v12 = vpop.eup %7147  ;;  %v2175_v51 = vmul.f32 1.442695, %v2129_v7  ;;  %v2177_v26 = vmul.f32 1.442695, %v2130_v48  ;;  %2622 = vmatprep.mubr.bf16.mxu1 %v2440_v38  ;;  %7159 = vpow2.f32 %v2183_v58  ;;  %v2146_v58 = vsub.f32 %v8527_v43, %v2113_v23 }
 0x24a   : > { %v7150_v32 = vpop.eup %7149  ;;  %2254 = vadd.xlane.f32.xlu1 %v2253_v18  ;;  %2623 = vmatmul.mubr.bf16.gmra.mrb[4].mxu1 %v2439_v53  ;;  %v2078_v50 = vpop.permute.xlu1 %2077  ;;  %v2207_v7 = vmul.f32 1.442695, %v2145_v2 }
 0x24b   : > { %7161 = vpow2.f32 %v2175_v51  ;;  %v2131_v41 = vsub.f32 %v8480_v34, %v2078_v50  ;;  %v2132_v46 = vsub.f32 %v8483_v24, %v2078_v50  ;;  %v2256_v45 = vadd.f32 %v7150_v32, %v7148_v12 }
 0x24c   : > { %7163 = vpow2.f32 %v2177_v26  ;;  %v2209_v43 = vmul.f32 1.442695, %v2146_v58 }
 0x24d   : > { %v7152_v21 = vpop.eup %7151  ;;  %7165 = vpow2.f32 %v2185_v44  ;;  %v2179_v56 = vmul.f32 1.442695, %v2131_v41  ;;  %v2181_v10 = vmul.f32 1.442695, %v2132_v46  ;;  %2257 = vadd.xlane.f32.xlu0 %v2256_v45 }
 0x24e   : > { %v7154_v16 = vpop.eup %7153  ;;  %7167 = vpow2.f32 %v2191_v63  ;;  %v2088_v57 = vpop.permute.xlu1 %2087  ;;  %v2441_v20 = vpack.c.bf16 %v7152_v21, %v7148_v12 }
 0x24f   : > { %7169 = vpow2.f32 %v2179_v56  ;;  %v2135_v34 = vsub.f32 %v8500_v29, %v2088_v57  ;;  %v2136_v24 = vsub.f32 %v8503_v35, %v2088_v57  ;;  %v2442_v17 = vpack.c.bf16 %v7154_v16, %v7150_v32 }
 0x250   : > { %7171 = vpow2.f32 %v2181_v10  ;;  %v2259_v4 = vadd.f32 %v7154_v16, %v7152_v21 }
 0x251   : > { %v7156_v61 = vpop.eup %7155  ;;  %v2187_v37 = vmul.f32 1.442695, %v2135_v34  ;;  %v2189_v15 = vmul.f32 1.442695, %v2136_v24  ;;  %2630 = vmatprep.mubr.bf16.mxu1 %v2442_v17  ;;  %7173 = vpow2.f32 %v2193_v62 }
 0x252   : > { %v7158_v27 = vpop.eup %7157  ;;  %2260 = vadd.xlane.f32.xlu1 %v2259_v4  ;;  %2631 = vmatmul.mubr.bf16.gmra.mrb[8].mxu1 %v2441_v20  ;;  %v2098_v29 = vpop.permute.xlu1 %2097 }
 0x253   : > { %7175 = vpow2.f32 %v2187_v37  ;;  %v2139_v35 = vsub.f32 %v8516_v47, %v2098_v29  ;;  %v2140_v31 = vsub.f32 %v8519_v59, %v2098_v29  ;;  %v2262_v25 = vadd.f32 %v7158_v27, %v7156_v61  ;;  %v7160_v53 = vpop.eup %7159  ;;  %v7547_v29 = vld [vmem:[%s7741_s23] sm:$0xff] }
 0x254   : > { %7177 = vpow2.f32 %v2189_v15 }
 0x255   : > { %v7162_v39 = vpop.eup %7161  ;;  %7179 = vpow2.f32 %v2199_v19  ;;  %v2195_v60 = vmul.f32 1.442695, %v2139_v35  ;;  %v2197_v48 = vmul.f32 1.442695, %v2140_v31  ;;  %2263 = vadd.xlane.f32.xlu0 %v2262_v25  ;;  %v7548_v35 = vld [vmem:[%s7741_s23 + $0x10] sm:$0xff]  ;;  %v7549_v31 = vld [vmem:[%s7741_s23 + $0x8] sm:$0xff] }
 0x256   : > { %v7164_v38 = vpop.eup %7163  ;;  %7181 = vpow2.f32 %v2201_v9  ;;  %v2108_v8 = vpop.permute.xlu1 %2107  ;;  %v2443_v18 = vpack.c.bf16 %v7162_v39, %v7156_v61  ;;  %v1181_v25 = vld [vmem:[#allocation3] sm:$0xff] }
 0x257   : > { %v7166_v12 = vpop.eup %7165  ;;  %7183 = vpow2.f32 %v2195_v60  ;;  %v2143_v47 = vsub.f32 %v8532_v40, %v2108_v8  ;;  %v2144_v59 = vsub.f32 %v8535_v14, %v2108_v8  ;;  %v2444_v44 = vpack.c.bf16 %v7164_v38, %v7158_v27  ;;  %v7553_v8 = vld [vmem:[%s7741_s23 + $0x30] sm:$0xff] }
 0x258   : > { %v7168_v51 = vpop.eup %7167  ;;  %7185 = vpow2.f32 %v2197_v48  ;;  %v2265_v26 = vadd.f32 %v7164_v38, %v7162_v39  ;;  %v2271_v40 = vadd.f32 %v7166_v12, %v7160_v53  ;;  %v7551_v39 = vld [vmem:[%s7741_s23 + $0x20] sm:$0xff]  ;;  %v1183_v48 = vld [vmem:[#allocation3 + $0x10] sm:$0xff]  ;;  %v7552_v38 = vld [vmem:[%s7741_s23 + $0x28] sm:$0xff] }
 0x259   : > { %v7170_v32 = vpop.eup %7169  ;;  %7187 = vpow2.f32 %v2207_v7  ;;  %v2203_v42 = vmul.f32 1.442695, %v2143_v47  ;;  %v2205_v63 = vmul.f32 1.442695, %v2144_v59  ;;  %2638 = vmatprep.mubr.bf16.mxu1 %v2444_v44  ;;  %v1197_v7 = vmul.f32 %v8875_v22, %v1181_v25  ;;  %v1184_v59 = vld [vmem:[#allocation3 + $0x18] sm:$0xff]  ;;  %v12249_v25 = vld [vmem:[#allocation94_spill] sm:$0xff] }
 0x25a   : > { %v7172_v50 = vpop.eup %7171  ;;  %7189 = vpow2.f32 %v2209_v43  ;;  %2266 = vadd.xlane.f32.xlu1 %v2265_v26  ;;  %2639 = vmatmul.mubr.bf16.gmra.mrb[12].mxu1 %v2443_v18  ;;  %v2445_v62 = vpack.c.bf16 %v7160_v53, %v7170_v32  ;;  %v7550_v53 = vld [vmem:[%s7741_s23 + $0x18] sm:$0xff]  ;;  %v1182_v18 = vld [vmem:[#allocation3 + $0x8] sm:$0xff] }
 0x25b   : > { %7191 = vpow2.f32 %v2203_v42  ;;  %v2268_v41 = vadd.f32 %v7172_v50, %v7170_v32  ;;  %v2446_v46 = vpack.c.bf16 %v7166_v12, %v7172_v50  ;;  %v7174_v45 = vpop.eup %7173  ;;  %v1199_v12 = vmul.f32 %v9037_v11, %v1183_v48  ;;  %v7554_v44 = vld [vmem:[%s7741_s23 + $0x38] sm:$0xff]  ;;  %v1185_v42 = vld [vmem:[#allocation3 + $0x20] sm:$0xff]  ;;  %v1186_v11 = vld [vmem:[#allocation3 + $0x28] sm:$0xff] }
 0x25c   : > { %7193 = vpow2.f32 %v2205_v63  ;;  %v2277_v16 = vadd.f32 %v7174_v45, %v7168_v51  ;;  %v1198_v26 = vmul.f32 %v8856_v30, %v1182_v18  ;;  %v1200_v63 = vmul.f32 %v9072_v6, %v1184_v59 }
 0x25d   : > { %v7176_v14 = vpop.eup %7175  ;;  %2269 = vadd.xlane.f32.xlu0 %v2268_v41  ;;  %2646 = vmatprep.mubr.bf16.mxu1 %v2446_v46  ;;  %v7556_v46 = vld [vmem:[%s7741_s23 + $0x48] sm:$0xff]  ;;  %v1201_v30 = vmul.f32 %v8882_v54, %v1185_v42  ;;  %v1202_v6 = vmul.f32 %v9095_v33, %v1186_v11  ;;  %v1196_v42 = vld [vmem:[#allocation3 + $0x78] sm:$0xff] }
 0x25e   : > { %v7178_v21 = vpop.eup %7177  ;;  %2272 = vadd.xlane.f32.xlu1 %v2271_v40  ;;  %v2447_v37 = vpack.c.bf16 %v7168_v51, %v7176_v14  ;;  %v7555_v51 = vld [vmem:[%s7741_s23 + $0x40] sm:$0xff]  ;;  %v7557_v40 = vld [vmem:[%s7741_s23 + $0x50] sm:$0xff] }
 0x25f   : > { %v7180_v28 = vpop.eup %7179  ;;  %v2274_v56 = vadd.f32 %v7178_v21, %v7176_v14  ;;  %v2448_v23 = vpack.c.bf16 %v7174_v45, %v7178_v21  ;;  %v1187_v21 = vld [vmem:[#allocation3 + $0x30] sm:$0xff] }
 0x260   : > { %v7182_v10 = vpop.eup %7181  ;;  %v1203_v54 = vmul.f32 %v9045_v13, %v1187_v21  ;;  %v12255_v21 = vld [vmem:[#allocation51_spill] sm:$0xff] }
 0x261   : > { %v7184_v3 = vpop.eup %7183  ;;  %2275 = vadd.xlane.f32.xlu0 %v2274_v56  ;;  %v2283_v17 = vadd.f32 %v7182_v10, %v7180_v28 }
 0x262   : > { %v7186_v57 = vpop.eup %7185  ;;  %2278 = vadd.xlane.f32.xlu1 %v2277_v16  ;;  %2647 = vmatmul.mubr.bf16.gmra.mrb[16].mxu1 %v2445_v62  ;;  %v2449_v27 = vpack.c.bf16 %v7180_v28, %v7184_v3  ;;  %v7558_v16 = vld [vmem:[%s7741_s23 + $0x58] sm:$0xff] }
 0x263   : > { %v7188_v20 = vpop.eup %7187  ;;  %2654 = vmatprep.mubr.bf16.mxu1 %v2448_v23  ;;  %v2280_v34 = vadd.f32 %v7186_v57, %v7184_v3  ;;  %v2450_v15 = vpack.c.bf16 %v7182_v10, %v7186_v57  ;;  %v1188_v10 = vld [vmem:[#allocation3 + $0x38] sm:$0xff]  ;;  %v7559_v3 = vld [vmem:[%s7741_s23 + $0x60] sm:$0xff] }
 0x264   : > { %v7190_v24 = vpop.eup %7189  ;;  %v1189_v57 = vld [vmem:[#allocation3 + $0x40] sm:$0xff]  ;;  %v1204_v33 = vmul.f32 %v9122_v52, %v1188_v10 }
 0x265   : > { %v7192_v4 = vpop.eup %7191  ;;  %2281 = vadd.xlane.f32.xlu0 %v2280_v34  ;;  %v2289_v2 = vadd.f32 %v7190_v24, %v7188_v20  ;;  %v12258_v10 = vld [vmem:[#allocation45_spill] sm:$0xff] }
 0x266   : > { %v7194_v61 = vpop.eup %7193  ;;  %2284 = vadd.xlane.f32.xlu1 %v2283_v17  ;;  %v2451_v58 = vpack.c.bf16 %v7188_v20, %v7192_v4  ;;  %v7560_v17 = vld [vmem:[%s7741_s23 + $0x68] sm:$0xff] }
 0x267   : > { %v2286_v19 = vadd.f32 %v7194_v61, %v7192_v4  ;;  %v2452_v9 = vpack.c.bf16 %v7190_v24, %v7194_v61  ;;  %v1190_v24 = vld [vmem:[#allocation3 + $0x48] sm:$0xff]  ;;  %v7561_v61 = vld [vmem:[%s7741_s23 + $0x70] sm:$0xff] }
 0x269   : > { %2287 = vadd.xlane.f32.xlu0 %v2286_v19  ;;  %v12246_v19 = vld [vmem:[#allocation89_spill] sm:$0xff] }
 0x26a   : > { %2290 = vadd.xlane.f32.xlu1 %v2289_v2  ;;  %2655 = vmatmul.mubr.bf16.gmra.mrb[20].mxu1 %v2447_v37  ;;  %v1205_v2 = vmul.f32 %v12246_v19, %v1189_v57  ;;  %v1191_v37 = vld [vmem:[#allocation3 + $0x50] sm:$0xff]  ;;  %v12265_v19 = vld [vmem:[#allocation52_spill] sm:$0xff] }
 0x26b   : > { %2662 = vmatprep.mubr.bf16.mxu1 %v2450_v15  ;;  %v12247_v15 = vld [vmem:[#allocation102_spill] sm:$0xff] }
 0x26f   : > { %v1215_v60 = vpop.xlane.xlu0 %1214 }
 0x270   : > { %v1261_v43 = vadd.f32 %v1215_v60, %v1197_v7  ;;  %v1193_v7 = vld [vmem:[#allocation3 + $0x60] sm:$0xff]  ;;  %v12250_v60 = vld [vmem:[#allocation108_spill] sm:$0xff] }
 0x272   : > { %2663 = vmatmul.mubr.bf16.gmra.mrb[24].mxu1 %v2449_v27  ;;  %1278 = vst.msk [vmem:[#allocation3] sm:$0xff] %vm303_vm0, %v1261_v43  ;;  %v1206_v27 = vmul.f32 %v12247_v15, %v1190_v24  ;;  %v2213_v15 = vld [vmem:[#allocation3 + $0x88] sm:$0xff] }
 0x273   : > { %2670 = vmatprep.mubr.bf16.mxu1 %v2452_v9 }
 0x274   : > { %v1221_v47 = vpop.xlane.xlu0 %1220 }
 0x275   : > { %v1263_v22 = vadd.f32 %v1221_v47, %v1199_v12  ;;  %v12251_v12 = vld [vmem:[#allocation99_spill] sm:$0xff] }
 0x276   : > { %v1209_v47 = vmul.f32 %v12251_v12, %v1193_v7  ;;  %v12270_v7 = vld [vmem:[#allocation53_spill] sm:$0xff]  ;;  %v12273_v12 = vld [vmem:[#allocation88_spill] sm:$0xff] }
 0x277   : > { %1280 = vst.msk [vmem:[#allocation3 + $0x10] sm:$0xff] %vm303_vm0, %v1263_v22  ;;  %v12252_v22 = vld [vmem:[#allocation112_spill] sm:$0xff] }
 0x27a   : > { %2671 = vmatmul.mubr.bf16.gmra.mrb[28].mxu1 %v2451_v58  ;;  %v1224_v41 = vpop.xlane.xlu0 %1223  ;;  %v1192_v58 = vld [vmem:[#allocation3 + $0x58] sm:$0xff] }
 0x27b   : > { %2728 = vperm.xlu1 %6963, %v7547_v29   ;;  %v1264_v45 = vadd.f32 %v1224_v41, %v1200_v63  ;;  %v7562_v29 = vld [vmem:[%s7741_s23 + $0x78] sm:$0xff]  ;;  %v1208_v48 = vmul.f32 %v12250_v60, %v1192_v58 }
 0x27c   : > { %v12271_v60 = vld [vmem:[#allocation36_spill] sm:$0xff] }
 0x27d   : > { %1281 = vst.msk [vmem:[#allocation3 + $0x18] sm:$0xff] %vm303_vm0, %v1264_v45 }
 0x27e   : > { %v1230_v56 = vpop.xlane.xlu0 %1229 }
 0x27f   : > { %2736 = vperm.xlu1 %6963, %v7548_v35   ;;  %2732 = vperm.xlu0 %6964, %v7549_v31   ;;  %v1266_v62 = vadd.f32 %v1230_v56, %v1202_v6  ;;  %v12248_v31 = vmov 0   ;;  %v12256_v6 = vld [vmem:[#allocation40_spill] sm:$0xff] }
 0x281   : > { %1283 = vst.msk [vmem:[#allocation3 + $0x28] sm:$0xff] %vm303_vm0, %v1266_v62 }
 0x283   : > { %2740 = vperm.xlu1 %6963, %v7550_v53   ;;  %2744 = vperm.xlu0 %6964, %v7551_v39   ;;  %v1207_v53 = vmul.f32 %v12249_v25, %v1191_v37 }
 0x287   : > { %2748 = vperm.xlu1 %6963, %v7552_v38   ;;  %2752 = vperm.xlu0 %6964, %v7553_v8   ;;  %v1194_v8 = vld [vmem:[#allocation3 + $0x68] sm:$0xff] }
 0x288   : > { %v1218_v32 = vpop.xlane.xlu1 %1217 }
 0x289   : > { %v1262_v50 = vadd.f32 %v1218_v32, %v1198_v26 }
 0x28b   : > { %2756 = vperm.xlu1 %6963, %v7554_v44   ;;  %2760 = vperm.xlu0 %6964, %v7555_v51   ;;  %1279 = vst.msk [vmem:[#allocation3 + $0x8] sm:$0xff] %vm303_vm0, %v1262_v50  ;;  %v1195_v44 = vld [vmem:[#allocation3 + $0x70] sm:$0xff]  ;;  %v1210_v51 = vmul.f32 %v12252_v22, %v1194_v8  ;;  %v12253_v50 = vld [vmem:[#allocation105_spill] sm:$0xff] }
 0x28c   : > { %v1227_v14 = vpop.xlane.xlu1 %1226  ;;  %v1236_v34 = vpop.xlane.xlu0 %1235  ;;  %v1211_v41 = vmul.f32 %v12253_v50, %v1195_v44  ;;  %v1294_v22 = vld [vmem:[#allocation4] sm:$0xff] }
 0x28d   : > { %v1265_v28 = vadd.f32 %v1227_v14, %v1201_v30  ;;  %v1268_v4 = vadd.f32 %v1236_v34, %v1204_v33  ;;  %v2212_v34 = vld [vmem:[#allocation3 + $0x80] sm:$0xff] }
 0x28e   : > { %v12276_v50 = vld [vmem:[#allocation85_spill] sm:$0xff] }
 0x28f   : > { %2764 = vperm.xlu1 %6963, %v7556_v46   ;;  %2768 = vperm.xlu0 %6964, %v7557_v40   ;;  %1282 = vst.msk [vmem:[#allocation3 + $0x20] sm:$0xff] %vm303_vm0, %v1265_v28  ;;  %1285 = vst.msk [vmem:[#allocation3 + $0x38] sm:$0xff] %vm303_vm0, %v1268_v4  ;;  %v12254_v46 = vld [vmem:[#allocation113_spill] sm:$0xff]  ;;  %v12257_v28 = vsub.f32 %v12255_v21, %v12256_v6 }
 0x290   : > { %v1233_v23 = vpop.xlane.xlu1 %1232  ;;  %v1242_v9 = vpop.xlane.xlu0 %1241  ;;  %v1212_v45 = vmul.f32 %v12254_v46, %v1196_v42  ;;  %v1295_v42 = vld [vmem:[#allocation4 + $0x8] sm:$0xff] }
 0x291   : > { %v1267_v20 = vadd.f32 %v1233_v23, %v1203_v54  ;;  %v1270_v35 = vadd.f32 %v1242_v9, %v1206_v27  ;;  %v2003_v56 = vmul.f32 1.442695, %v12257_v28  ;;  %v12261_v54 = vld [vmem:[#allocation56_spill] sm:$0xff]  ;;  %v12262_v23 = vld [vmem:[#allocation31_spill] sm:$0xff] }
 0x292   : > { %v12263_v57 = vsub.f32 %v12261_v54, %v12262_v23  ;;  %v12267_v27 = vld [vmem:[#allocation84_spill] sm:$0xff]  ;;  %v12281_v23 = vld [vmem:[#allocation93_spill] sm:$0xff] }
 0x293   : > { %2772 = vperm.xlu1 %6963, %v7558_v16   ;;  %2776 = vperm.xlu0 %6964, %v7559_v3   ;;  %1284 = vst.msk [vmem:[#allocation3 + $0x30] sm:$0xff] %vm303_vm0, %v1267_v20  ;;  %1287 = vst.msk [vmem:[#allocation3 + $0x48] sm:$0xff] %vm303_vm0, %v1270_v35  ;;  %7195 = vpow2.f32 %v2003_v56  ;;  %v12259_v16 = vld [vmem:[#allocation54_spill] sm:$0xff]  ;;  %v2216_v56 = vld [vmem:[#allocation3 + $0xa0] sm:$0xff] }
 0x294   : > { %v1239_v13 = vpop.xlane.xlu1 %1238  ;;  %v1248_v43 = vpop.xlane.xlu0 %1247  ;;  %v12260_v62 = vsub.f32 %v12258_v10, %v12259_v16  ;;  %v2007_v33 = vmul.f32 1.442695, %v12263_v57  ;;  %v12280_v10 = vld [vmem:[#allocation55_spill] sm:$0xff]  ;;  %v12282_v57 = vld [vmem:[#allocation96_spill] sm:$0xff] }
 0x295   : > { %v1269_v52 = vadd.f32 %v1239_v13, %v1205_v2  ;;  %v1272_v18 = vadd.f32 %v1248_v43, %v1208_v48  ;;  %v12272_v48 = vsub.f32 %v12270_v7, %v12271_v60  ;;  %v1391_v16 = vmul.f32 %v12280_v10, %v1295_v42  ;;  %v1297_v60 = vld [vmem:[#allocation4 + $0x18] sm:$0xff]  ;;  %v2218_v42 = vld [vmem:[#allocation3 + $0xb0] sm:$0xff] }
 0x296   : > { %v2005_v3 = vmul.f32 1.442695, %v12260_v62 }
 0x297   : > { %2780 = vperm.xlu1 %6963, %v7560_v17   ;;  %2784 = vperm.xlu0 %6964, %v7561_v61   ;;  %1286 = vst.msk [vmem:[#allocation3 + $0x40] sm:$0xff] %vm303_vm0, %v1269_v52  ;;  %1289 = vst.msk [vmem:[#allocation3 + $0x58] sm:$0xff] %vm303_vm0, %v1272_v18  ;;  %v12264_v61 = vld [vmem:[#allocation46_spill] sm:$0xff] }
 0x298   : > { %v1245_v39 = vpop.xlane.xlu1 %1244  ;;  %7197 = vpow2.f32 %v2005_v3  ;;  %v12266_v2 = vsub.f32 %v12264_v61, %v12265_v19  ;;  %v12268_v52 = vld [vmem:[#allocation86_spill] sm:$0xff] }
 0x299   : > { %v1271_v38 = vadd.f32 %v1245_v39, %v1207_v53  ;;  %7199 = vpow2.f32 %v2007_v33  ;;  %v12269_v9 = vsub.f32 %v12267_v27, %v12268_v52  ;;  %v2214_v53 = vld [vmem:[#allocation3 + $0x90] sm:$0xff]  ;;  %v12283_v33 = vsub.f32 %v12281_v23, %v12282_v57 }
 0x29a   : > { %v2009_v13 = vmul.f32 1.442695, %v12266_v2 }
 0x29b   : > { %2788 = vperm.xlu1 %6963, %v7562_v29   ;;  %6966 = vset.pattern.permute.xlu0 %v12248_v31  ;;  %1288 = vst.msk [vmem:[#allocation3 + $0x50] sm:$0xff] %vm303_vm0, %v1271_v38  ;;  %v1254_v32 = vpop.xlane.xlu0 %1253  ;;  %v2011_v58 = vmul.f32 1.442695, %v12269_v9  ;;  %v2013_v38 = vmul.f32 1.442695, %v12272_v48 }
 0x29c   : > { %v1251_v59 = vpop.xlane.xlu1 %1250  ;;  %v1274_v63 = vadd.f32 %v1254_v32, %v1210_v51  ;;  %7201 = vpow2.f32 %v2009_v13  ;;  %v2215_v32 = vld [vmem:[#allocation3 + $0x98] sm:$0xff] }
 0x29d   : > { %v1273_v26 = vadd.f32 %v1251_v59, %v1209_v47  ;;  %v9456_v20 = vpop.eup %7195  ;;  %7203 = vpow2.f32 %v2011_v58  ;;  %v12274_v47 = vld [vmem:[#allocation91_spill] sm:$0xff] }
 0x29e   : > { %1291 = vst.msk [vmem:[#allocation3 + $0x68] sm:$0xff] %vm303_vm0, %v1274_v63  ;;  %v2228_v24 = vmul.f32 %v9456_v20, %v2212_v34  ;;  %v12275_v59 = vsub.f32 %v12273_v12, %v12274_v47  ;;  %7205 = vpow2.f32 %v2013_v38  ;;  %v2019_v34 = vmul.f32 1.442695, %v12283_v33  ;;  %v12290_v38 = vld [vmem:[#allocation95_spill] sm:$0xff]  ;;  %v12293_v12 = vld [vmem:[#allocation60_spill] sm:$0xff] }
 0x29f   : > { %6965 = vset.pattern.permute.xlu1 %v12248_v31  ;;  %1290 = vst.msk [vmem:[#allocation3 + $0x60] sm:$0xff] %vm303_vm0, %v1273_v26  ;;  %v1260_v30 = vpop.xlane.xlu0 %1259  ;;  %v12335_v31 = vld [vmem:[#allocation34_spill] sm:$0xff] }
 0x2a0   : > { %v1257_v11 = vpop.xlane.xlu1 %1256  ;;  %v1276_v14 = vadd.f32 %v1260_v30, %v1212_v45  ;;  %v2015_v44 = vmul.f32 1.442695, %v12275_v59  ;;  %v12279_v45 = vld [vmem:[#allocation37_spill] sm:$0xff] }
 0x2a1   : > { %v1275_v40 = vadd.f32 %v1257_v11, %v1211_v41  ;;  %v12277_v41 = vld [vmem:[#allocation87_spill] sm:$0xff] }
 0x2a2   : > { %1293 = vst.msk [vmem:[#allocation3 + $0x78] sm:$0xff] %vm303_vm0, %v1276_v14  ;;  %v9462_v37 = vpop.eup %7197  ;;  %7207 = vpow2.f32 %v2015_v44  ;;  %v12278_v11 = vsub.f32 %v12276_v50, %v12277_v41 }
 0x2a3   : > { %1292 = vst.msk [vmem:[#allocation3 + $0x70] sm:$0xff] %vm303_vm0, %v1275_v40  ;;  %v2229_v29 = vmul.f32 %v9462_v37, %v2213_v15  ;;  %v9469_v35 = vpop.eup %7199  ;;  %v1390_v40 = vmul.f32 %v12279_v45, %v1294_v22  ;;  %v1296_v15 = vld [vmem:[#allocation4 + $0x10] sm:$0xff]  ;;  %v12295_v45 = vld [vmem:[#allocation104_spill] sm:$0xff] }
 0x2a4   : > { %v2230_v43 = vmul.f32 %v9469_v35, %v2214_v53  ;;  %v2017_v46 = vmul.f32 1.442695, %v12278_v11  ;;  %v12288_v53 = vld [vmem:[#allocation101_spill] sm:$0xff]  ;;  %v1392_v47 = vmul.f32 %v12293_v12, %v1296_v15  ;;  %v12304_v15 = vld [vmem:[#allocation106_spill] sm:$0xff] }
 0x2a6   : > { %v9480_v51 = vpop.eup %7201  ;;  %7209 = vpow2.f32 %v2017_v46 }
 0x2a7   : > { %v9486_v21 = vpop.eup %7203  ;;  %v2231_v28 = vmul.f32 %v9480_v51, %v2215_v32  ;;  %7211 = vpow2.f32 %v2019_v34 }
 0x2a8   : > { %v2232_v13 = vmul.f32 %v9486_v21, %v2216_v56  ;;  %v9499_v52 = vpop.eup %7205  ;;  %v12299_v56 = vld [vmem:[#allocation103_spill] sm:$0xff] }
 0x2ac   : > { %v9510_v22 = vpop.eup %7207 }
 0x2b0   : > { %v9523_v57 = vpop.eup %7209 }
 0x2bd   : > { %v6677_v26 = vpop.f32.mrb[0].mxu0 }
 0x2be   : > { %v6678_v63 = vpop.f32.mrb[1].mxu0 }
 0x2bf   : > { %v6679_v30 = vadd.f32 %v6678_v63, %v6677_v26  ;;  %v6680_v14 = vpop.f32.mrb[2].mxu0  ;;  %v12294_v63 = vld [vmem:[#allocation47_spill] sm:$0xff] }
 0x2c0   : > { %v6681_v6 = vpop.f32.mrb[3].mxu0  ;;  %v1393_v50 = vmul.f32 %v12294_v63, %v1297_v60  ;;  %v1300_v63 = vld [vmem:[#allocation4 + $0x30] sm:$0xff] }
 0x2c1   : > { %v1647_v62 = vadd.f32 %v6679_v30, %v1390_v40  ;;  %v6682_v3 = vadd.f32 %v6681_v6, %v6680_v14  ;;  %v12296_v40 = vld [vmem:[#allocation107_spill] sm:$0xff] }
 0x2c2   : > { %v12297_v30 = vsub.f32 %v12295_v45, %v12296_v40 }
 0x2c3   : > { %v2246_v17 = vpop.xlane.xlu1 %2245  ;;  %1664 = vst.msk [vmem:[#allocation4] sm:$0xff] %vm432_vm1, %v1647_v62  ;;  %v1648_v2 = vadd.f32 %v6682_v3, %v1391_v16  ;;  %v2234_v3 = vmul.f32 %v9510_v22, %v2218_v42 }
 0x2c4   : > { %v2292_v4 = vadd.f32 %v2246_v17, %v2228_v24  ;;  %v12284_v17 = vld [vmem:[#allocation90_spill] sm:$0xff]  ;;  %v2027_v14 = vmul.f32 1.442695, %v12297_v30  ;;  %v2223_v30 = vld [vmem:[#allocation3 + $0xd8] sm:$0xff] }
 0x2c5   : > { %1665 = vst.msk [vmem:[#allocation4 + $0x8] sm:$0xff] %vm432_vm1, %v1648_v2  ;;  %v6683_v9 = vpop.f32.mrb[4].mxu0  ;;  %v1299_v2 = vld [vmem:[#allocation4 + $0x28] sm:$0xff] }
 0x2c6   : > { %2308 = vst.msk [vmem:[#allocation3 + $0x80] sm:$0xff] %vm303_vm0, %v2292_v4  ;;  %v12285_v4 = vld [vmem:[#allocation92_spill] sm:$0xff]  ;;  %v6684_v48 = vpop.f32.mrb[5].mxu0 }
 0x2c7   : > { %v12286_v61 = vsub.f32 %v12284_v17, %v12285_v4  ;;  %v6685_v59 = vadd.f32 %v6684_v48, %v6683_v9  ;;  %v6686_v44 = vpop.f32.mrb[6].mxu0  ;;  %v12301_v17 = vld [vmem:[#allocation110_spill] sm:$0xff]  ;;  %v12302_v4 = vld [vmem:[#allocation111_spill] sm:$0xff] }
 0x2c8   : > { %v6687_v26 = vpop.f32.mrb[7].mxu0 }
 0x2c9   : > { %v2021_v19 = vmul.f32 1.442695, %v12286_v61  ;;  %v1649_v41 = vadd.f32 %v6685_v59, %v1392_v47  ;;  %v6688_v11 = vadd.f32 %v6687_v26, %v6686_v44  ;;  %v12303_v61 = vsub.f32 %v12301_v17, %v12302_v4  ;;  %v2221_v59 = vld [vmem:[#allocation3 + $0xc8] sm:$0xff] }
 0x2ca   : > { %v2249_v25 = vpop.xlane.xlu0 %2248 }
 0x2cb   : > { %v2293_v39 = vadd.f32 %v2249_v25, %v2229_v29  ;;  %v2217_v29 = vld [vmem:[#allocation3 + $0xa8] sm:$0xff]  ;;  %7213 = vpow2.f32 %v2021_v19  ;;  %1666 = vst.msk [vmem:[#allocation4 + $0x10] sm:$0xff] %vm432_vm1, %v1649_v41  ;;  %v1650_v62 = vadd.f32 %v6688_v11, %v1393_v50  ;;  %v2031_v19 = vmul.f32 1.442695, %v12303_v61  ;;  %v2222_v41 = vld [vmem:[#allocation3 + $0xd0] sm:$0xff] }
 0x2cc   : > { %v12287_v25 = vld [vmem:[#allocation98_spill] sm:$0xff]  ;;  %v2233_v32 = vmul.f32 %v9499_v52, %v2217_v29  ;;  %v12307_v29 = vld [vmem:[#allocation39_spill] sm:$0xff] }
 0x2cd   : > { %2309 = vst.msk [vmem:[#allocation3 + $0x88] sm:$0xff] %vm303_vm0, %v2293_v39  ;;  %v12289_v39 = vsub.f32 %v12287_v25, %v12288_v53 }
 0x2ce   : > { %v2252_v8 = vpop.xlane.xlu0 %2251  ;;  %1667 = vst.msk [vmem:[#allocation4 + $0x18] sm:$0xff] %vm432_vm1, %v1650_v62 }
 0x2cf   : > { %v2294_v18 = vadd.f32 %v2252_v8, %v2230_v43  ;;  %v2023_v7 = vmul.f32 1.442695, %v12289_v39  ;;  %v12291_v43 = vld [vmem:[#allocation97_spill] sm:$0xff] }
 0x2d0   : > { %v12292_v8 = vsub.f32 %v12290_v38, %v12291_v43  ;;  %v2220_v38 = vld [vmem:[#allocation3 + $0xc0] sm:$0xff] }
 0x2d1   : > { %2310 = vst.msk [vmem:[#allocation3 + $0x90] sm:$0xff] %vm303_vm0, %v2294_v18  ;;  %7215 = vpow2.f32 %v2023_v7  ;;  %v9534_v7 = vpop.eup %7211 }
 0x2d2   : > { %v2025_v18 = vmul.f32 1.442695, %v12292_v8  ;;  %v1395_v8 = vmul.f32 %v9344_v5, %v1299_v2 }
 0x2d3   : > { %v6689_v33 = vpop.f32.mrb[8].mxu0 }
 0x2d4   : > { %7217 = vpow2.f32 %v2025_v18 }
 0x2d5   : > { %7219 = vpow2.f32 %v2027_v14  ;;  %v9537_v43 = vpop.eup %7213  ;;  %v1301_v14 = vld [vmem:[#allocation4 + $0x38] sm:$0xff] }
 0x2d6   : > { %v2237_v50 = vmul.f32 %v9537_v43, %v2221_v59  ;;  %v1397_v4 = vmul.f32 %v9348_v49, %v1301_v14  ;;  %v1302_v49 = vld [vmem:[#allocation4 + $0x40] sm:$0xff]  ;;  %v2227_v59 = vld [vmem:[#allocation3 + $0xf8] sm:$0xff] }
 0x2d7   : > { %v2255_v54 = vpop.xlane.xlu1 %2254 }
 0x2d8   : > { %v2295_v24 = vadd.f32 %v2255_v54, %v2231_v28  ;;  %v12298_v28 = vld [vmem:[#allocation100_spill] sm:$0xff]  ;;  %v1298_v54 = vld [vmem:[#allocation4 + $0x20] sm:$0xff] }
 0x2d9   : > { %v12300_v10 = vsub.f32 %v12298_v28, %v12299_v56  ;;  %v1394_v25 = vmul.f32 %v12307_v29, %v1298_v54  ;;  %v12308_v56 = vld [vmem:[#allocation61_spill] sm:$0xff] }
 0x2da   : > { %2311 = vst.msk [vmem:[#allocation3 + $0x98] sm:$0xff] %vm303_vm0, %v2295_v24  ;;  %v2258_v27 = vpop.xlane.xlu0 %2257  ;;  %v2219_v24 = vld [vmem:[#allocation3 + $0xb8] sm:$0xff] }
 0x2db   : > { %v2296_v58 = vadd.f32 %v2258_v27, %v2232_v13  ;;  %v2029_v16 = vmul.f32 1.442695, %v12300_v10  ;;  %v6690_v13 = vpop.f32.mrb[9].mxu0  ;;  %v12305_v27 = vld [vmem:[#allocation109_spill] sm:$0xff]  ;;  %v2235_v48 = vmul.f32 %v9523_v57, %v2219_v24  ;;  %v9542_v42 = vpop.eup %7215  ;;  %v1396_v10 = vmul.f32 %v12308_v56, %v1300_v63 }
 0x2dc   : > { %v12306_v9 = vsub.f32 %v12304_v15, %v12305_v27  ;;  %v6691_v53 = vadd.f32 %v6690_v13, %v6689_v33  ;;  %v6692_v39 = vpop.f32.mrb[10].mxu0  ;;  %v2224_v24 = vld [vmem:[#allocation3 + $0xe0] sm:$0xff]  ;;  %v2225_v15 = vld [vmem:[#allocation3 + $0xe8] sm:$0xff] }
 0x2dd   : > { %2312 = vst.msk [vmem:[#allocation3 + $0xa0] sm:$0xff] %vm303_vm0, %v2296_v58  ;;  %7221 = vpow2.f32 %v2029_v16  ;;  %v6693_v60 = vpop.f32.mrb[11].mxu0  ;;  %v7563_v63 = vld [vmem:[%s11824_s1] sm:$0xff] }
 0x2de   : > { %v2033_v58 = vmul.f32 1.442695, %v12306_v9  ;;  %v1651_v18 = vadd.f32 %v6691_v53, %v1394_v25  ;;  %v6694_v12 = vadd.f32 %v6693_v60, %v6692_v39  ;;  %7223 = vpow2.f32 %v2031_v19  ;;  %v9546_v11 = vpop.eup %7217  ;;  %v12309_v9 = vld [vmem:[#allocation5_spill] sm:$0xff] }
 0x2df   : > { %v2261_v46 = vpop.xlane.xlu1 %2260  ;;  %v9552_v54 = vpop.eup %7219  ;;  %v2239_v33 = vmul.f32 %v9546_v11, %v2223_v30  ;;  %v2797_v29 = vsub.s32 6, %v12309_v9 }
 0x2e0   : > { %v2297_v6 = vadd.f32 %v2261_v46, %v2233_v32  ;;  %7225 = vpow2.f32 %v2033_v58  ;;  %1668 = vst.msk [vmem:[#allocation4 + $0x20] sm:$0xff] %vm432_vm1, %v1651_v18  ;;  %v1652_v26 = vadd.f32 %v6694_v12, %v1395_v8  ;;  %v2236_v32 = vmul.f32 %v9534_v7, %v2220_v38  ;;  %v6695_v46 = vpop.f32.mrb[12].mxu0  ;;  %v2226_v38 = vld [vmem:[#allocation3 + $0xf0] sm:$0xff] }
 0x2e1   : > { %v2793_v58 = vsub.s32 2, %v12309_v9  ;;  %v2240_v53 = vmul.f32 %v9552_v54, %v2224_v24 }
 0x2e2   : > { %2313 = vst.msk [vmem:[#allocation3 + $0xa8] sm:$0xff] %vm303_vm0, %v2297_v6  ;;  %v2264_v23 = vpop.xlane.xlu0 %2263  ;;  %v6696_v6 = vpop.f32.mrb[13].mxu0 }
 0x2e3   : > { %v2298_v34 = vadd.f32 %v2264_v23, %v2234_v3  ;;  %1669 = vst.msk [vmem:[#allocation4 + $0x28] sm:$0xff] %vm432_vm1, %v1652_v26  ;;  %v6697_v16 = vadd.f32 %v6696_v6, %v6695_v46  ;;  %v6698_v62 = vpop.f32.mrb[14].mxu0  ;;  %v2238_v3 = vmul.f32 %v9542_v42, %v2222_v41  ;;  %v12310_v41 = vld [vmem:[#allocation48_spill] sm:$0xff] }
 0x2e4   : > { %v6699_v23 = vpop.f32.mrb[15].mxu0  ;;  %v1398_v46 = vmul.f32 %v12310_v41, %v1302_v49  ;;  %v1307_v49 = vld [vmem:[#allocation4 + $0x68] sm:$0xff] }
 0x2e5   : > { %2314 = vst.msk [vmem:[#allocation3 + $0xb0] sm:$0xff] %vm303_vm0, %v2298_v34  ;;  %v1653_v61 = vadd.f32 %v6697_v16, %v1396_v10  ;;  %v6700_v19 = vadd.f32 %v6699_v23, %v6698_v62  ;;  %v6701_v18 = vpop.f32.mrb[16].mxu0 }
 0x2e6   : > { %v6702_v26 = vpop.f32.mrb[17].mxu0 }
 0x2e7   : > { %v2267_v47 = vpop.xlane.xlu1 %2266  ;;  %v9556_v17 = vpop.eup %7221  ;;  %1670 = vst.msk [vmem:[#allocation4 + $0x30] sm:$0xff] %vm432_vm1, %v1653_v61  ;;  %v1654_v25 = vadd.f32 %v6700_v19, %v1397_v4  ;;  %v1304_v4 = vld [vmem:[#allocation4 + $0x50] sm:$0xff]  ;;  %v1306_v61 = vld [vmem:[#allocation4 + $0x60] sm:$0xff] }
 0x2e8   : > { %v2299_v44 = vadd.f32 %v2267_v47, %v2235_v48  ;;  %v9564_v39 = vpop.eup %7223  ;;  %v2241_v60 = vmul.f32 %v9556_v17, %v2225_v15  ;;  %v1308_v19 = vld [vmem:[#allocation4 + $0x70] sm:$0xff] }
 0x2e9   : > { %1671 = vst.msk [vmem:[#allocation4 + $0x38] sm:$0xff] %vm432_vm1, %v1654_v25  ;;  %v2242_v30 = vmul.f32 %v9564_v39, %v2226_v38  ;;  %v12311_v25 = vld [vmem:[#allocation64_spill] sm:$0xff]  ;;  %v12312_v38 = vld [vmem:[#allocation65_spill] sm:$0xff] }
 0x2ea   : > { %2315 = vst.msk [vmem:[#allocation3 + $0xb8] sm:$0xff] %vm303_vm0, %v2299_v44  ;;  %v2270_v5 = vpop.xlane.xlu0 %2269  ;;  %v9568_v8 = vpop.eup %7225  ;;  %v1303_v44 = vld [vmem:[#allocation4 + $0x48] sm:$0xff] }
 0x2eb   : > { %v2273_v45 = vpop.xlane.xlu1 %2272  ;;  %v2300_v40 = vadd.f32 %v2270_v5, %v2236_v32  ;;  %v2798_v5 = vrot.slane %v7563_v63, %v2797_v29  ;;  %v2243_v6 = vmul.f32 %v9568_v8, %v2227_v59  ;;  %v1399_v56 = vmul.f32 %v9353_v55, %v1303_v44  ;;  %v1305_v55 = vld [vmem:[#allocation4 + $0x58] sm:$0xff] }
 0x2ec   : > { %v2301_v28 = vadd.f32 %v2273_v45, %v2237_v50  ;;  %v2794_v50 = vrot.slane %v7563_v63, %v2793_v58  ;;  %v6703_v45 = vadd.f32 %v6702_v26, %v6701_v18  ;;  %v1400_v29 = vmul.f32 %v9346_v36, %v1304_v4  ;;  %v1309_v63 = vld [vmem:[#allocation4 + $0x78] sm:$0xff] }
 0x2ed   : > { %2316 = vst.msk [vmem:[#allocation3 + $0xc0] sm:$0xff] %vm303_vm0, %v2300_v40  ;;  %v6704_v40 = vpop.f32.mrb[18].mxu0  ;;  %v9593_v18 = vmul.f32 %v12312_v38, %v1308_v19  ;;  %v12315_v38 = vld [vmem:[#allocation7_spill] sm:$0xff] }
 0x2ee   : > { %2317 = vst.msk [vmem:[#allocation3 + $0xc8] sm:$0xff] %vm303_vm0, %v2301_v28  ;;  %v2276_v34 = vpop.xlane.xlu0 %2275  ;;  %v6705_v14 = vpop.f32.mrb[19].mxu0  ;;  %v1655_v10 = vadd.f32 %v6703_v45, %v1398_v46  ;;  %v1403_v45 = vmul.f32 %v9361_v1, %v1307_v49 }
 0x2ef   : > { %v2279_v2 = vpop.xlane.xlu1 %2278  ;;  %v2302_v13 = vadd.f32 %v2276_v34, %v2238_v3  ;;  %v6706_v16 = vadd.f32 %v6705_v14, %v6704_v40  ;;  %v9582_v34 = vrot.slane %v2798_v5, %v2793_v58 }
 0x2f0   : > { %v2303_v27 = vadd.f32 %v2279_v2, %v2239_v33  ;;  %v9580_v33 = vrot.slane %v2794_v50, %v2793_v58  ;;  %1672 = vst.msk [vmem:[#allocation4 + $0x40] sm:$0xff] %vm432_vm1, %v1655_v10  ;;  %v6707_v2 = vpop.f32.mrb[20].mxu0 }
 0x2f1   : > { %2318 = vst.msk [vmem:[#allocation3 + $0xd0] sm:$0xff] %vm303_vm0, %v2302_v13  ;;  %v1656_v24 = vadd.f32 %v6706_v16, %v1399_v56  ;;  %v6708_v15 = vpop.f32.mrb[21].mxu0  ;;  %v9603_v16 = vmul.f32 %v9368_v0, %v1309_v63 }
 0x2f2   : > { %2319 = vst.msk [vmem:[#allocation3 + $0xd8] sm:$0xff] %vm303_vm0, %v2303_v27  ;;  %v2282_v48 = vpop.xlane.xlu0 %2281 }
 0x2f3   : > { %v2285_v12 = vpop.xlane.xlu1 %2284  ;;  %v2304_v47 = vadd.f32 %v2282_v48, %v2240_v53  ;;  %1673 = vst.msk [vmem:[#allocation4 + $0x48] sm:$0xff] %vm432_vm1, %v1656_v24  ;;  %v1402_v53 = vmul.f32 %v12311_v25, %v1306_v61  ;;  %v6710_v48 = vpop.f32.mrb[22].mxu0  ;;  %v12314_v24 = vld [vmem:[#allocation6_spill] sm:$0xff] }
 0x2f4   : > { %v2305_v32 = vadd.f32 %v2285_v12, %v2241_v60  ;;  %v6709_v60 = vadd.f32 %v6708_v15, %v6707_v2  ;;  %v12313_v12 = vld [vmem:[#allocation58_spill] sm:$0xff]  ;;  %v6711_v26 = vpop.f32.mrb[23].mxu0 }
 0x2f5   : > { %2320 = vst.msk [vmem:[#allocation3 + $0xe0] sm:$0xff] %vm303_vm0, %v2304_v47  ;;  %v1401_v47 = vmul.f32 %v12313_v12, %v1305_v55  ;;  %v6712_v5 = vadd.f32 %v6711_v26, %v6710_v48 }
 0x2f6   : > { %2321 = vst.msk [vmem:[#allocation3 + $0xe8] sm:$0xff] %vm303_vm0, %v2305_v32  ;;  %v2288_v28 = vpop.xlane.xlu0 %2287  ;;  %v1657_v50 = vadd.f32 %v6709_v60, %v1400_v29 }
 0x2f7   : > { %v2291_v62 = vpop.xlane.xlu1 %2290  ;;  %v2306_v3 = vadd.f32 %v2288_v28, %v2242_v30  ;;  %v1658_v28 = vadd.f32 %v6712_v5, %v1401_v47 }
 0x2f8   : > { %v2307_v23 = vadd.f32 %v2291_v62, %v2243_v6  ;;  %1674 = vst.msk [vmem:[#allocation4 + $0x50] sm:$0xff] %vm432_vm1, %v1657_v50  ;;  %v12317_v50 = vld [vmem:[#allocation23_spill] sm:$0xff] }
 0x2f9   : > { %2322 = vst.msk [vmem:[#allocation3 + $0xf0] sm:$0xff] %vm303_vm0, %v2306_v3  ;;  %v6713_v19 = vpop.f32.mrb[24].mxu0 }
 0x2fa   : > { %2323 = vst.msk [vmem:[#allocation3 + $0xf8] sm:$0xff] %vm303_vm0, %v2307_v23 }
 0x2fb   : > { %v2729_v13 = vpop.permute.xlu1 %2728  ;;  %1675 = vst.msk [vmem:[#allocation4 + $0x58] sm:$0xff] %vm432_vm1, %v1658_v28 }
 0x2fc   : > { %v2809_v27 = vadd.f32 %v9580_v33, %v2729_v13  ;;  %v2810_v58 = vadd.f32 %v9582_v34, %v2729_v13 }
 0x2fe   : > { %v2841_v59 = vmul.f32 0.2, %v2809_v27  ;;  %v2842_v44 = vmul.f32 0.2, %v2810_v58  ;;  %v2733_v32 = vpop.permute.xlu0 %2732 }
 0x2ff   : > { %v2737_v41 = vpop.permute.xlu1 %2736  ;;  %v2811_v36 = vadd.f32 %v9580_v33, %v2733_v32  ;;  %v2812_v46 = vadd.f32 %v9582_v34, %v2733_v32  ;;  %v12316_v32 = vld [vmem:[#allocation21_spill] sm:$0xff] }
 0x300   : > { %v2873_v40 = vmax.f32 %v2809_v27, %v2841_v59  ;;  %v2813_v30 = vadd.f32 %v9580_v33, %v2737_v41  ;;  %v2814_v14 = vadd.f32 %v9582_v34, %v2737_v41  ;;  %v2874_v6 = vmax.f32 %v2810_v58, %v2842_v44  ;;  %v6714_v27 = vpop.f32.mrb[25].mxu0 }
 0x301   : > { %v2843_v56 = vmul.f32 0.2, %v2811_v36  ;;  %v2844_v10 = vmul.f32 0.2, %v2812_v46  ;;  %v6715_v25 = vadd.f32 %v6714_v27, %v6713_v19  ;;  %v6716_v48 = vpop.f32.mrb[26].mxu0 }
 0x302   : > { %v2845_v62 = vmul.f32 0.2, %v2813_v30  ;;  %v2846_v3 = vmul.f32 0.2, %v2814_v14  ;;  %v2745_v23 = vpop.permute.xlu0 %2744  ;;  %v9606_v4 = vadd.f32 %v2873_v40, %v12314_v24  ;;  %v9622_v12 = vadd.f32 %v2874_v6, %v12315_v38  ;;  %v6717_v44 = vpop.f32.mrb[27].mxu0 }
 0x303   : > { %v2875_v1 = vmax.f32 %v2811_v36, %v2843_v56  ;;  %v2876_v61 = vmax.f32 %v2812_v46, %v2844_v10  ;;  %v2741_v55 = vpop.permute.xlu1 %2740  ;;  %v9610_v2 = vadd.f32 %v9580_v33, %v2745_v23  ;;  %v9613_v13 = vadd.f32 %v9582_v34, %v2745_v23 }
 0x304   : > { %v2877_v0 = vmax.f32 %v2813_v30, %v2845_v62  ;;  %v2878_v15 = vmax.f32 %v2814_v14, %v2846_v3  ;;  %v2815_v58 = vadd.f32 %v9580_v33, %v2741_v55  ;;  %v2816_v29 = vadd.f32 %v9582_v34, %v2741_v55  ;;  %v12318_v55 = vld [vmem:[#allocation24_spill] sm:$0xff] }
 0x305   : > { %v2849_v49 = vmul.f32 0.2, %v9610_v2  ;;  %v9619_v60 = vmul.f32 0.2, %v9613_v13  ;;  %v1659_v41 = vadd.f32 %v6715_v25, %v1402_v53  ;;  %v6718_v40 = vadd.f32 %v6717_v44, %v6716_v48 }
 0x306   : > { %v2847_v47 = vmul.f32 0.2, %v2815_v58  ;;  %v2848_v59 = vmul.f32 0.2, %v2816_v29  ;;  %v2753_v26 = vpop.permute.xlu0 %2752  ;;  %v9625_v63 = vadd.f32 %v2877_v0, %v12316_v32  ;;  %v9628_v5 = vadd.f32 %v2878_v15, %v12317_v50 }
 0x307   : > { %v2881_v36 = vmax.f32 %v9610_v2, %v2849_v49  ;;  %v2882_v46 = vmax.f32 %v9613_v13, %v9619_v60  ;;  %v2749_v30 = vpop.permute.xlu1 %2748  ;;  %v2954_v28 = vmax.f32 %v9606_v4, %v9622_v12  ;;  %1676 = vst.msk [vmem:[#allocation4 + $0x60] sm:$0xff] %vm432_vm1, %v1659_v41  ;;  %v1660_v10 = vadd.f32 %v6718_v40, %v1403_v45  ;;  %v12319_v13 = vld [vmem:[#allocation25_spill] sm:$0xff]  ;;  %v6719_v60 = vpop.f32.mrb[28].mxu0 }
 0x308   : > { %v2879_v14 = vmax.f32 %v2815_v58, %v2847_v47  ;;  %v2880_v6 = vmax.f32 %v2816_v29, %v2848_v59  ;;  %v2819_v56 = vadd.f32 %v9580_v33, %v2749_v30  ;;  %v2820_v62 = vadd.f32 %v9582_v34, %v2749_v30 }
 0x309   : > { %v9639_v53 = vadd.f32 %v9580_v33, %v2753_v26  ;;  %v9642_v3 = vadd.f32 %v9582_v34, %v2753_v26  ;;  %2955 = vmax.xlane.f32.xlu0 %v2954_v28  ;;  %v2960_v19 = vmax.f32 %v9625_v63, %v9628_v5  ;;  %v9647_v2 = vadd.f32 %v2875_v1, %v12318_v55  ;;  %v6720_v26 = vpop.f32.mrb[29].mxu0 }
 0x30a   : > { %v2851_v23 = vmul.f32 0.2, %v2819_v56  ;;  %v9650_v0 = vadd.f32 %v2876_v61, %v12319_v13  ;;  %v2761_v45 = vpop.permute.xlu0 %2760  ;;  %1677 = vst.msk [vmem:[#allocation4 + $0x68] sm:$0xff] %vm432_vm1, %v1660_v10  ;;  %v2852_v15 = vmul.f32 0.2, %v2820_v62  ;;  %v6721_v40 = vadd.f32 %v6720_v26, %v6719_v60 }
 0x30b   : > { %v2853_v27 = vmul.f32 0.2, %v9639_v53  ;;  %v2854_v58 = vmul.f32 0.2, %v9642_v3  ;;  %v2757_v29 = vpop.permute.xlu1 %2756  ;;  %v9656_v25 = vadd.f32 %v9580_v33, %v2761_v45  ;;  %v9669_v41 = vadd.f32 %v9582_v34, %v2761_v45 }
 0x30c   : > { %v2883_v49 = vmax.f32 %v2819_v56, %v2851_v23  ;;  %v2957_v1 = vmax.f32 %v9647_v2, %v9650_v0  ;;  %v9661_v61 = vadd.f32 %v9580_v33, %v2757_v29  ;;  %v9664_v48 = vadd.f32 %v9582_v34, %v2757_v29  ;;  %v12320_v23 = vld [vmem:[#allocation8_spill] sm:$0xff] }
 0x30d   : > { %v2884_v47 = vmax.f32 %v2820_v62, %v2852_v15  ;;  %v2885_v59 = vmax.f32 %v9639_v53, %v2853_v27  ;;  %v2886_v44 = vmax.f32 %v9642_v3, %v2854_v58  ;;  %2961 = vmax.xlane.f32.xlu0 %v2960_v19  ;;  %v2857_v56 = vmul.f32 0.2, %v9656_v25  ;;  %v6722_v53 = vpop.f32.mrb[30].mxu0  ;;  %v12321_v15 = vld [vmem:[#allocation9_spill] sm:$0xff]  ;;  %v12322_v19 = vld [vmem:[#allocation27_spill] sm:$0xff] }
 0x30e   : > { %2958 = vmax.xlane.f32.xlu1 %v2957_v1  ;;  %v2855_v30 = vmul.f32 0.2, %v9661_v61  ;;  %v2856_v28 = vmul.f32 0.2, %v9664_v48  ;;  %v2769_v10 = vpop.permute.xlu0 %2768  ;;  %v9675_v62 = vmul.f32 0.2, %v9669_v41  ;;  %v9678_v3 = vadd.f32 %v2879_v14, %v12320_v23 }
 0x30f   : > { %v9681_v45 = vadd.f32 %v2880_v6, %v12321_v15  ;;  %v9684_v27 = vadd.f32 %v2881_v36, %v12322_v19  ;;  %v2765_v58 = vpop.permute.xlu1 %2764  ;;  %v1661_v29 = vadd.f32 %v6721_v40, %v9593_v18  ;;  %v2889_v26 = vmax.f32 %v9656_v25, %v2857_v56  ;;  %v6723_v13 = vpop.f32.mrb[31].mxu0  ;;  %v12323_v15 = vld [vmem:[#allocation28_spill] sm:$0xff]  ;;  %v12325_v56 = vld [vmem:[#allocation11_spill] sm:$0xff]  ;;  %v12326_v19 = vld [vmem:[#allocation30_spill] sm:$0xff] }
 0x310   : > { %v2887_v60 = vmax.f32 %v9661_v61, %v2855_v30  ;;  %v2888_v1 = vmax.f32 %v9664_v48, %v2856_v28  ;;  %v2890_v14 = vmax.f32 %v9669_v41, %v9675_v62  ;;  %v6724_v23 = vadd.f32 %v6723_v13, %v6722_v53  ;;  %v12324_v30 = vld [vmem:[#allocation10_spill] sm:$0xff] }
 0x311   : > { %v2963_v6 = vmax.f32 %v9678_v3, %v9681_v45  ;;  %v9695_v36 = vadd.f32 %v2882_v46, %v12323_v15  ;;  %1678 = vst.msk [vmem:[#allocation4 + $0x70] sm:$0xff] %vm432_vm1, %v1661_v29  ;;  %v2827_v18 = vadd.f32 %v9580_v33, %v2765_v58  ;;  %v2828_v61 = vadd.f32 %v9582_v34, %v2765_v58 }
 0x312   : > { %v9701_v48 = vadd.f32 %v9580_v33, %v2769_v10  ;;  %v9704_v25 = vadd.f32 %v9582_v34, %v2769_v10  ;;  %v6741_v41 = vpop.f32.mrb[0].mxu1  ;;  %v2777_v13 = vpop.permute.xlu0 %2776  ;;  %v1662_v40 = vadd.f32 %v6724_v23, %v9603_v16  ;;  %v9710_v28 = vadd.f32 %v2883_v49, %v12324_v30  ;;  %v12327_v23 = vld [vmem:[#allocation32_spill] sm:$0xff] }
 0x313   : > { %2964 = vmax.xlane.f32.xlu0 %v2963_v6  ;;  %v2966_v46 = vmax.f32 %v9684_v27, %v9695_v36  ;;  %v9713_v62 = vadd.f32 %v2884_v47, %v12325_v56  ;;  %v6742_v53 = vpop.f32.mrb[1].mxu1  ;;  %v2773_v58 = vpop.permute.xlu1 %2772  ;;  %v2859_v29 = vmul.f32 0.2, %v2827_v18  ;;  %v2860_v15 = vmul.f32 0.2, %v2828_v61 }
 0x314   : > { %v2861_v10 = vmul.f32 0.2, %v9701_v48  ;;  %v9717_v55 = vadd.f32 %v2885_v59, %v12326_v19  ;;  %1679 = vst.msk [vmem:[#allocation4 + $0x78] sm:$0xff] %vm432_vm1, %v1662_v40  ;;  %v2862_v16 = vmul.f32 0.2, %v9704_v25  ;;  %v9724_v47 = vadd.f32 %v2886_v44, %v12327_v23  ;;  %v6744_v56 = vpop.f32.mrb[2].mxu1 }
 0x315   : > { %2967 = vmax.xlane.f32.xlu1 %v2966_v46  ;;  %v2969_v49 = vmax.f32 %v9710_v28, %v9713_v62  ;;  %v9726_v6 = vadd.f32 %v6742_v53, %v6741_v41  ;;  %v2891_v30 = vmax.f32 %v2827_v18, %v2859_v29  ;;  %v2892_v50 = vmax.f32 %v2828_v61, %v2860_v15  ;;  %v6745_v19 = vpop.f32.mrb[3].mxu1  ;;  %v12329_v61 = vld [vmem:[#allocation12_spill] sm:$0xff] }
 0x316   : > { %12328 = vst [vmem:[#allocation59_spill] sm:$0xff] %v9724_v47  ;;  %v2893_v32 = vmax.f32 %v9701_v48, %v2861_v10  ;;  %v2831_v59 = vadd.f32 %v9580_v33, %v2773_v58  ;;  %v2894_v40 = vmax.f32 %v9704_v25, %v2862_v16  ;;  %v2972_v46 = vmax.f32 %v9717_v55, %v9724_v47  ;;  %v12331_v10 = vld [vmem:[#allocation13_spill] sm:$0xff] }
 0x317   : > { %2970 = vmax.xlane.f32.xlu0 %v2969_v49  ;;  %v2832_v38 = vadd.f32 %v9582_v34, %v2773_v58  ;;  %v2833_v44 = vadd.f32 %v9580_v33, %v2777_v13  ;;  %v2781_v41 = vpop.permute.xlu1 %2780  ;;  %v2834_v18 = vadd.f32 %v9582_v34, %v2777_v13  ;;  %v9736_v15 = vadd.f32 %v6745_v19, %v6744_v56  ;;  %v12333_v49 = vld [vmem:[#allocation33_spill] sm:$0xff]  ;;  %v2785_v58 = vpop.permute.xlu0 %2784 }
 0x318   : > { %v2863_v53 = vmul.f32 0.2, %v2831_v59  ;;  %v9739_v48 = vadd.f32 %v2887_v60, %v12329_v61  ;;  %v9742_v16 = vadd.f32 %v2888_v1, %v12331_v10  ;;  %v9745_v23 = vadd.f32 %v2889_v26, %v12333_v49  ;;  %v12337_v10 = vld [vmem:[#allocation14_spill] sm:$0xff] }
 0x319   : > { %2973 = vmax.xlane.f32.xlu1 %v2972_v46  ;;  %v2864_v29 = vmul.f32 0.2, %v2832_v38  ;;  %v2865_v25 = vmul.f32 0.2, %v2833_v44  ;;  %v2866_v9 = vmul.f32 0.2, %v2834_v18  ;;  %v9748_v47 = vadd.f32 %v2890_v14, %v12335_v31 }
 0x31a   : > { %12330 = vst [vmem:[#allocation69_spill] sm:$0xff] %v9739_v48  ;;  %12332 = vst [vmem:[#allocation70_spill] sm:$0xff] %v9742_v16  ;;  %v2895_v24 = vmax.f32 %v2831_v59, %v2863_v53  ;;  %v2835_v19 = vadd.f32 %v9580_v33, %v2781_v41  ;;  %v2975_v56 = vmax.f32 %v9739_v48, %v9742_v16 }
 0x31b   : > { %12334 = vst [vmem:[#allocation62_spill] sm:$0xff] %v9745_v23  ;;  %12336 = vst [vmem:[#allocation66_spill] sm:$0xff] %v9748_v47  ;;  %v2896_v13 = vmax.f32 %v2832_v38, %v2864_v29  ;;  %v2897_v60 = vmax.f32 %v2833_v44, %v2865_v25  ;;  %v2836_v46 = vadd.f32 %v9582_v34, %v2781_v41  ;;  %v2789_v53 = vpop.permute.xlu1 %2788  ;;  %v12338_v44 = vld [vmem:[#allocation15_spill] sm:$0xff] }
 0x31c   : > { %v2898_v1 = vmax.f32 %v2834_v18, %v2866_v9  ;;  %v2978_v26 = vmax.f32 %v9745_v23, %v9748_v47  ;;  %v2867_v49 = vmul.f32 0.2, %v2835_v19  ;;  %v2837_v59 = vadd.f32 %v9580_v33, %v2785_v58  ;;  %2976 = vmax.xlane.f32.xlu0 %v2975_v56  ;;  %v12340_v18 = vld [vmem:[#allocation35_spill] sm:$0xff]  ;;  %v12341_v47 = vld [vmem:[#allocation41_spill] sm:$0xff] }
 0x31d   : > { %v2868_v14 = vmul.f32 0.2, %v2836_v46  ;;  %v2838_v31 = vadd.f32 %v9582_v34, %v2785_v58  ;;  %v9759_v38 = vadd.f32 %v2891_v30, %v12337_v10  ;;  %v9762_v29 = vadd.f32 %v2892_v50, %v12338_v44  ;;  %v6747_v25 = vpop.f32.mrb[4].mxu1  ;;  %v12345_v10 = vld [vmem:[#allocation42_spill] sm:$0xff] }
 0x31e   : > { %2979 = vmax.xlane.f32.xlu1 %v2978_v26  ;;  %v2899_v9 = vmax.f32 %v2835_v19, %v2867_v49  ;;  %v2869_v41 = vmul.f32 0.2, %v2837_v59  ;;  %v9765_v61 = vadd.f32 %v2893_v32, %v12340_v18  ;;  %v9768_v23 = vadd.f32 %v2894_v40, %v12341_v47  ;;  %v6748_v56 = vpop.f32.mrb[5].mxu1  ;;  %v12343_v32 = vld [vmem:[#allocation16_spill] sm:$0xff] }
 0x31f   : > { %12339 = vst [vmem:[#allocation71_spill] sm:$0xff] %v9762_v29  ;;  %v2900_v16 = vmax.f32 %v2836_v46, %v2868_v14  ;;  %v2870_v48 = vmul.f32 0.2, %v2838_v31  ;;  %v2981_v30 = vmax.f32 %v9759_v38, %v9762_v29  ;;  %v2839_v58 = vadd.f32 %v9580_v33, %v2789_v53  ;;  %v6750_v50 = vpop.f32.mrb[6].mxu1  ;;  %v12344_v14 = vld [vmem:[#allocation17_spill] sm:$0xff] }
 0x320   : > { %12342 = vst [vmem:[#allocation72_spill] sm:$0xff] %v9768_v23  ;;  %v2901_v44 = vmax.f32 %v2837_v59, %v2869_v41  ;;  %v2984_v49 = vmax.f32 %v9765_v61, %v9768_v23  ;;  %v2840_v19 = vadd.f32 %v9582_v34, %v2789_v53  ;;  %v9777_v26 = vadd.f32 %v2895_v24, %v12343_v32  ;;  %v6751_v40 = vpop.f32.mrb[7].mxu1  ;;  %v12346_v59 = vld [vmem:[#allocation43_spill] sm:$0xff] }
 0x321   : > { %v2902_v47 = vmax.f32 %v2838_v31, %v2870_v48  ;;  %2982 = vmax.xlane.f32.xlu0 %v2981_v30  ;;  %v2871_v46 = vmul.f32 0.2, %v2839_v58  ;;  %v9780_v18 = vadd.f32 %v2896_v13, %v12344_v14  ;;  %v9783_v29 = vadd.f32 %v2897_v60, %v12345_v10  ;;  %v12347_v48 = vld [vmem:[#allocation18_spill] sm:$0xff]  ;;  %v12348_v13 = vld [vmem:[#allocation19_spill] sm:$0xff] }
 0x322   : > { %2985 = vmax.xlane.f32.xlu1 %v2984_v49  ;;  %v2872_v33 = vmul.f32 0.2, %v2840_v19  ;;  %v9786_v41 = vadd.f32 %v2898_v1, %v12346_v59  ;;  %v9788_v23 = vadd.f32 %v6748_v56, %v6747_v25  ;;  %v9790_v34 = vadd.f32 %v6751_v40, %v6750_v50  ;;  %v12349_v1 = vld [vmem:[#allocation44_spill] sm:$0xff]  ;;  %v12350_v25 = vld [vmem:[#allocation49_spill] sm:$0xff] }
 0x323   : > { %v2903_v24 = vmax.f32 %v2839_v58, %v2871_v46  ;;  %v2987_v31 = vmax.f32 %v9777_v26, %v9780_v18  ;;  %v9795_v53 = vadd.f32 %v2899_v9, %v12347_v48  ;;  %v9798_v30 = vadd.f32 %v2900_v16, %v12348_v13  ;;  %v12351_v9 = vld [vmem:[#allocation20_spill] sm:$0xff] }
 0x324   : > { %v2904_v60 = vmax.f32 %v2840_v19, %v2872_v33  ;;  %v2990_v49 = vmax.f32 %v9783_v29, %v9786_v41  ;;  %v9803_v59 = vadd.f32 %v2901_v44, %v12349_v1  ;;  %v9806_v56 = vadd.f32 %v2902_v47, %v12350_v25  ;;  %v12352_v19 = vld [vmem:[#allocation22_spill] sm:$0xff] }
 0x325   : > { %2988 = vmax.xlane.f32.xlu0 %v2987_v31  ;;  %v2993_v58 = vmax.f32 %v9795_v53, %v9798_v30  ;;  %v6753_v50 = vpop.f32.mrb[8].mxu1  ;;  %v9811_v40 = vadd.f32 %v2903_v24, %v12351_v9 }
 0x326   : > { %2991 = vmax.xlane.f32.xlu1 %v2990_v49  ;;  %v2996_v16 = vmax.f32 %v9803_v59, %v9806_v56  ;;  %v9816_v46 = vadd.f32 %v2904_v60, %v12352_v19  ;;  %v6754_v44 = vpop.f32.mrb[9].mxu1 }
 0x327   : > { %v9818_v33 = vadd.f32 %v6754_v44, %v6753_v50  ;;  %v6756_v47 = vpop.f32.mrb[10].mxu1 }
 0x328   : > { %v6757_v25 = vpop.f32.mrb[11].mxu1  ;;  %v2999_v31 = vmax.f32 %v9811_v40, %v9816_v46 }
 0x329   : > { %2994 = vmax.xlane.f32.xlu0 %v2993_v58  ;;  %v9822_v1 = vadd.f32 %v6757_v25, %v6756_v47 }
 0x32a   : > { %2997 = vmax.xlane.f32.xlu1 %v2996_v16 }
 0x32d   : > { %3000 = vmax.xlane.f32.xlu0 %v2999_v31  ;;  %v6759_v24 = vpop.f32.mrb[12].mxu1 }
 0x32e   : > { %v6760_v49 = vpop.f32.mrb[13].mxu1 }
 0x32f   : > { %v9824_v9 = vadd.f32 %v6760_v49, %v6759_v24  ;;  %v6762_v13 = vpop.f32.mrb[14].mxu1 }
 0x330   : > { %v6763_v60 = vpop.f32.mrb[15].mxu1 }
 0x331   : > { %v9826_v19 = vadd.f32 %v6763_v60, %v6762_v13 }
 0x335   : > { %v6765_v50 = vpop.f32.mrb[16].mxu1 }
 0x336   : > { %v6766_v44 = vpop.f32.mrb[17].mxu1 }
 0x337   : > { %v9828_v48 = vadd.f32 %v6766_v44, %v6765_v50  ;;  %v6768_v58 = vpop.f32.mrb[18].mxu1 }
 0x338   : > { %v6769_v10 = vpop.f32.mrb[19].mxu1 }
 0x339   : > { %v9830_v14 = vadd.f32 %v6769_v10, %v6768_v58 }
 0x33b   : > { %2348 = vperm.xlu1 %6965, %v9462_v37  }
 0x33d   : > { %v6771_v25 = vpop.f32.mrb[20].mxu1 }
 0x33e   : > { %v6772_v16 = vpop.f32.mrb[21].mxu1 }
 0x33f   : > { %2353 = vperm.xlu1 %6965, %v9469_v35   ;;  %v9834_v47 = vadd.f32 %v6772_v16, %v6771_v25  ;;  %v6774_v31 = vpop.f32.mrb[22].mxu1  ;;  %v9885_v25 = vld [vmem:[#allocation2 + $0x110] sm:$0xff] }
 0x340   : > { %v6775_v24 = vpop.f32.mrb[23].mxu1 }
 0x341   : > { %v9836_v13 = vadd.f32 %v6775_v24, %v6774_v31 }
 0x343   : > { %2363 = vperm.xlu1 %6965, %v9486_v21   ;;  %2343 = vperm.xlu0 %6966, %v9456_v20  }
 0x345   : > { %v6777_v49 = vpop.f32.mrb[24].mxu1 }
 0x346   : > { %v6778_v60 = vpop.f32.mrb[25].mxu1 }
 0x347   : > { %2373 = vperm.xlu1 %6965, %v9510_v22   ;;  %2358 = vperm.xlu0 %6966, %v9480_v51   ;;  %v9842_v37 = vadd.f32 %v6778_v60, %v6777_v49  ;;  %v6780_v10 = vpop.f32.mrb[26].mxu1 }
 0x348   : > { %v6781_v35 = vpop.f32.mrb[27].mxu1 }
 0x349   : > { %v9844_v50 = vadd.f32 %v6781_v35, %v6780_v10  ;;  %v9966_v10 = vld [vmem:[#allocation2 + $0x140] sm:$0xff] }
 0x34a   : > { %12360 = vst [vmem:[#allocation78_spill] sm:$0xff] %v9966_v10 }
 0x34b   : > { %2383 = vperm.xlu1 %6965, %v9534_v7   ;;  %2368 = vperm.xlu0 %6966, %v9499_v52   ;;  %v7003_v52 = vld [vmem:[%s11826_s3 + $0x140] sm:$0xff]   ;;  %v7005_v7 = vld [vmem:[%s11826_s3 + $0x148] sm:$0xff]  }
 0x34c   : > { %6789 = vmatprep.subr.bf16.mxu0 %v7003_v52 }
 0x34d   : > { %v6783_v44 = vpop.f32.mrb[28].mxu1 }
 0x34e   : > { %v6784_v21 = vpop.f32.mrb[29].mxu1 }
 0x34f   : > { %2393 = vperm.xlu1 %6965, %v9542_v42   ;;  %2378 = vperm.xlu0 %6966, %v9523_v57   ;;  %v9850_v20 = vadd.f32 %v6784_v21, %v6783_v44  ;;  %v6786_v22 = vpop.f32.mrb[30].mxu1  ;;  %v7004_v57 = vld [vmem:[%s11826_s3 + $0x100] sm:$0xff]   ;;  %v7007_v42 = vld [vmem:[%s11826_s3 + $0x150] sm:$0xff]   ;;  %v9908_v44 = vld [vmem:[#allocation2 + $0x118] sm:$0xff] }
 0x350   : > { %v6787_v51 = vpop.f32.mrb[31].mxu1  ;;  %6790 = vmatpush3.bf16.msra.mxu0 %v7004_v57  ;;  %v7009_v21 = vld [vmem:[%s11826_s3 + $0x158] sm:$0xff]  }
 0x351   : > { %v9852_v58 = vadd.f32 %v6787_v51, %v6786_v22  ;;  %6791 = vmatprep.subr.bf16.mxu0 %v7005_v7  ;;  %v7010_v22 = vld [vmem:[%s11826_s3 + $0x118] sm:$0xff]   ;;  %v9916_v51 = vld [vmem:[#allocation2 + $0x120] sm:$0xff] }
 0x352   : > { %12353 = vst [vmem:[#allocation67_spill] sm:$0xff] %v9916_v51 }
 0x353   : > { %2403 = vperm.xlu1 %6965, %v9552_v54   ;;  %2388 = vperm.xlu0 %6966, %v9537_v43   ;;  %v7006_v43 = vld [vmem:[%s11826_s3 + $0x108] sm:$0xff]   ;;  %v9878_v54 = vld [vmem:[#allocation2 + $0x100] sm:$0xff] }
 0x354   : > { %6792 = vmatpush3.bf16.msra.mxu0 %v7006_v43  ;;  %v9921_v43 = vld [vmem:[#allocation2 + $0x128] sm:$0xff] }
 0x355   : > { %6793 = vmatprep.subr.bf16.mxu0 %v7007_v42  ;;  %12354 = vst [vmem:[#allocation68_spill] sm:$0xff] %v9921_v43 }
 0x357   : > { %2413 = vperm.xlu1 %6965, %v9564_v39   ;;  %2398 = vperm.xlu0 %6966, %v9546_v11   ;;  %v7008_v11 = vld [vmem:[%s11826_s3 + $0x110] sm:$0xff]  }
 0x358   : > { %6794 = vmatpush3.bf16.msra.mxu0 %v7008_v11  ;;  %v7013_v11 = vld [vmem:[%s11826_s3 + $0x168] sm:$0xff]  }
 0x359   : > { %6795 = vmatprep.subr.bf16.mxu0 %v7009_v21 }
 0x35b   : > { %2408 = vperm.xlu0 %6966, %v9556_v17  }
 0x35c   : > { %6796 = vmatpush3.bf16.msra.mxu0 %v7010_v22  ;;  %v7011_v22 = vld [vmem:[%s11826_s3 + $0x160] sm:$0xff]  }
 0x35d   : > { %6797 = vmatprep.subr.bf16.mxu0 %v7011_v22 }
 0x35f   : > { %2418 = vperm.xlu0 %6966, %v9568_v8   ;;  %v9883_v8 = vld [vmem:[#allocation2 + $0x108] sm:$0xff] }
 0x396   : > { %v2956_v17 = vpop.xlane.xlu0 %2955 }
 0x397   : > { %v9881_v39 = vmax.f32 %v9878_v54, %v2956_v17  ;;  %v9931_v17 = vld [vmem:[#allocation2 + $0x130] sm:$0xff] }
 0x398   : > { %12356 = vst [vmem:[#allocation76_spill] sm:$0xff] %v9931_v17 }
 0x399   : > { %3742 = vst.msk [vmem:[#allocation2 + $0x100] sm:$0xff] %vm303_vm0, %v9881_v39  ;;  %3068 = vperm.xlu1 %6965, %v9881_v39  }
 0x39a   : > { %v2962_v24 = vpop.xlane.xlu0 %2961 }
 0x39b   : > { %v2959_v31 = vpop.xlane.xlu1 %2958  ;;  %v9896_v60 = vmax.f32 %v9885_v25, %v2962_v24  ;;  %v7015_v24 = vld [vmem:[%s11826_s3 + $0x170] sm:$0xff]  }
 0x39c   : > { %v9893_v49 = vmax.f32 %v9883_v8, %v2959_v31 }
 0x39d   : > { %3744 = vst.msk [vmem:[#allocation2 + $0x110] sm:$0xff] %vm303_vm0, %v9896_v60  ;;  %3078 = vperm.xlu1 %6965, %v9896_v60  }
 0x39e   : > { %3743 = vst.msk [vmem:[#allocation2 + $0x108] sm:$0xff] %vm303_vm0, %v9893_v49  ;;  %3073 = vperm.xlu0 %6966, %v9893_v49  }
 0x3a0   : > { %v2965_v52 = vpop.xlane.xlu0 %2964 }
 0x3a1   : > { %v9919_v57 = vmax.f32 %v9908_v44, %v2965_v52  ;;  %v7012_v52 = vld [vmem:[%s11826_s3 + $0x120] sm:$0xff]  }
 0x3a2   : > { %v2968_v7 = vpop.xlane.xlu1 %2967  ;;  %6798 = vmatpush3.bf16.msra.mxu0 %v7012_v52 }
 0x3a3   : > { %v9924_v42 = vmax.f32 %v9916_v51, %v2968_v7  ;;  %3745 = vst.msk [vmem:[#allocation2 + $0x118] sm:$0xff] %vm303_vm0, %v9919_v57  ;;  %3083 = vperm.xlu1 %6965, %v9919_v57   ;;  %6799 = vmatprep.subr.bf16.mxu0 %v7013_v11  ;;  %v7016_v11 = vld [vmem:[%s11826_s3 + $0x130] sm:$0xff]  }
 0x3a4   : > { %v2971_v31 = vpop.xlane.xlu0 %2970 }
 0x3a5   : > { %12355 = vst [vmem:[#allocation75_spill] sm:$0xff] %v9924_v42  ;;  %3746 = vst.msk [vmem:[#allocation2 + $0x120] sm:$0xff] %vm303_vm0, %v9924_v42  ;;  %v9938_v21 = vmax.f32 %v9921_v43, %v2971_v31  ;;  %v9954_v31 = vld [vmem:[#allocation2 + $0x138] sm:$0xff]  ;;  %v9975_v43 = vld [vmem:[#allocation2 + $0x148] sm:$0xff] }
 0x3a6   : > { %v2974_v7 = vpop.xlane.xlu1 %2973  ;;  %12359 = vst [vmem:[#allocation77_spill] sm:$0xff] %v9954_v31  ;;  %12363 = vst [vmem:[#allocation81_spill] sm:$0xff] %v9975_v43 }
 0x3a7   : > { %12357 = vst [vmem:[#allocation73_spill] sm:$0xff] %v9938_v21  ;;  %v9947_v35 = vmax.f32 %v9931_v17, %v2974_v7  ;;  %3747 = vst.msk [vmem:[#allocation2 + $0x128] sm:$0xff] %vm303_vm0, %v9938_v21  ;;  %3088 = vperm.xlu1 %6965, %v9924_v42   ;;  %v7014_v7 = vld [vmem:[%s11826_s3 + $0x128] sm:$0xff]   ;;  %v9987_v17 = vld [vmem:[#allocation2 + $0x150] sm:$0xff] }
 0x3a8   : > { %6800 = vmatpush3.bf16.msra.mxu0 %v7014_v7  ;;  %12364 = vst [vmem:[#allocation82_spill] sm:$0xff] %v9987_v17 }
 0x3a9   : > { %12358 = vst [vmem:[#allocation74_spill] sm:$0xff] %v9947_v35  ;;  %3748 = vst.msk [vmem:[#allocation2 + $0x130] sm:$0xff] %vm303_vm0, %v9947_v35  ;;  %v2977_v22 = vpop.xlane.xlu0 %2976  ;;  %6801 = vmatprep.subr.bf16.mxu0 %v7015_v24  ;;  %v7018_v24 = vld [vmem:[%s11826_s3 + $0x138] sm:$0xff]  }
 0x3aa   : > { %v9969_v52 = vmax.f32 %v9954_v31, %v2977_v22  ;;  %v10000_v31 = vld [vmem:[#allocation2 + $0x158] sm:$0xff] }
 0x3ab   : > { %v2980_v16 = vpop.xlane.xlu1 %2979  ;;  %3093 = vperm.xlu1 %6965, %v9938_v21   ;;  %12367 = vst [vmem:[#allocation50_spill] sm:$0xff] %v10000_v31 }
 0x3ac   : > { %12361 = vst [vmem:[#allocation79_spill] sm:$0xff] %v9969_v52  ;;  %v9973_v32 = vmax.f32 %v9966_v10, %v2980_v16  ;;  %3749 = vst.msk [vmem:[#allocation2 + $0x138] sm:$0xff] %vm303_vm0, %v9969_v52  ;;  %6802 = vmatpush3.bf16.msra.mxu0 %v7016_v11  ;;  %v7017_v16 = vld [vmem:[%s11826_s3 + $0x178] sm:$0xff]  }
 0x3ad   : > { %6803 = vmatprep.subr.bf16.mxu0 %v7017_v16  ;;  %v10033_v16 = vld [vmem:[#allocation2 + $0x170] sm:$0xff] }
 0x3ae   : > { %12362 = vst [vmem:[#allocation80_spill] sm:$0xff] %v9973_v32  ;;  %3750 = vst.msk [vmem:[#allocation2 + $0x140] sm:$0xff] %vm303_vm0, %v9973_v32  ;;  %v2983_v7 = vpop.xlane.xlu0 %2982 }
 0x3af   : > { %v2986_v21 = vpop.xlane.xlu1 %2985  ;;  %v9994_v42 = vmax.f32 %v9975_v43, %v2983_v7  ;;  %3098 = vperm.xlu1 %6965, %v9947_v35   ;;  %12372 = vst [vmem:[#allocation89_spill] sm:$0xff] %v10033_v16 }
 0x3b0   : > { %v9998_v22 = vmax.f32 %v9987_v17, %v2986_v21  ;;  %v10013_v21 = vld [vmem:[#allocation2 + $0x160] sm:$0xff]  ;;  %6804 = vmatpush3.bf16.msra.mxu0 %v7018_v24 }
 0x3b1   : > { %12365 = vst [vmem:[#allocation26_spill] sm:$0xff] %v9994_v42  ;;  %3751 = vst.msk [vmem:[#allocation2 + $0x148] sm:$0xff] %vm303_vm0, %v9994_v42  ;;  %3113 = vperm.xlu0 %6966, %v9994_v42   ;;  %v10026_v42 = vld [vmem:[#allocation2 + $0x168] sm:$0xff] }
 0x3b2   : > { %12366 = vst [vmem:[#allocation83_spill] sm:$0xff] %v9998_v22  ;;  %12368 = vst [vmem:[#allocation38_spill] sm:$0xff] %v10013_v21  ;;  %v2989_v10 = vpop.xlane.xlu0 %2988 }
 0x3b3   : > { %3752 = vst.msk [vmem:[#allocation2 + $0x150] sm:$0xff] %vm303_vm0, %v9998_v22  ;;  %v2992_v35 = vpop.xlane.xlu1 %2991  ;;  %v10020_v51 = vmax.f32 %v10000_v31, %v2989_v10  ;;  %3103 = vperm.xlu1 %6965, %v9969_v52   ;;  %12371 = vst [vmem:[#allocation29_spill] sm:$0xff] %v10026_v42  ;;  %v10046_v31 = vld [vmem:[#allocation2 + $0x178] sm:$0xff]  ;;  %v2326_v10 = vld [vmem:[#allocation4 + $0x88] sm:$0xff] }
 0x3b4   : > { %v10024_v7 = vmax.f32 %v10013_v21, %v2992_v35  ;;  %12374 = vst [vmem:[#allocation94_spill] sm:$0xff] %v10046_v31  ;;  %v2328_v52 = vld [vmem:[#allocation4 + $0x98] sm:$0xff] }
 0x3b5   : > { %12369 = vst [vmem:[#allocation57_spill] sm:$0xff] %v10020_v51  ;;  %3753 = vst.msk [vmem:[#allocation2 + $0x158] sm:$0xff] %vm303_vm0, %v10020_v51  ;;  %3123 = vperm.xlu0 %6966, %v10020_v51  }
 0x3b6   : > { %12370 = vst [vmem:[#allocation63_spill] sm:$0xff] %v10024_v7  ;;  %3754 = vst.msk [vmem:[#allocation2 + $0x160] sm:$0xff] %vm303_vm0, %v10024_v7  ;;  %v2995_v35 = vpop.xlane.xlu0 %2994 }
 0x3b7   : > { %v2998_v17 = vpop.xlane.xlu1 %2997  ;;  %v10040_v24 = vmax.f32 %v10026_v42, %v2995_v35  ;;  %3108 = vperm.xlu1 %6965, %v9973_v32   ;;  %v2327_v35 = vld [vmem:[#allocation4 + $0x90] sm:$0xff]  ;;  %v2325_v32 = vld [vmem:[#allocation4 + $0x80] sm:$0xff] }
 0x3b8   : > { %v10044_v11 = vmax.f32 %v10033_v16, %v2998_v17 }
 0x3b9   : > { %12373 = vst [vmem:[#allocation102_spill] sm:$0xff] %v10040_v24  ;;  %3755 = vst.msk [vmem:[#allocation2 + $0x168] sm:$0xff] %vm303_vm0, %v10040_v24  ;;  %3133 = vperm.xlu0 %6966, %v10040_v24  }
 0x3ba   : > { %3756 = vst.msk [vmem:[#allocation2 + $0x170] sm:$0xff] %vm303_vm0, %v10044_v11  ;;  %v3001_v21 = vpop.xlane.xlu0 %3000 }
 0x3bb   : > { %v2349_v17 = vpop.permute.xlu1 %2348  ;;  %v10058_v43 = vmax.f32 %v10046_v31, %v3001_v21  ;;  %3118 = vperm.xlu1 %6965, %v9998_v22   ;;  %v2329_v22 = vld [vmem:[#allocation4 + $0xa0] sm:$0xff] }
 0x3bc   : > { %v2422_v51 = vmul.f32 %v2349_v17, %v2326_v10 }
 0x3bd   : > { %12375 = vst [vmem:[#allocation108_spill] sm:$0xff] %v10058_v43  ;;  %3757 = vst.msk [vmem:[#allocation2 + $0x178] sm:$0xff] %vm303_vm0, %v10058_v43  ;;  %3143 = vperm.xlu0 %6966, %v10058_v43  }
 0x3be   : > { %v2680_v16 = vadd.f32 %v9736_v15, %v2422_v51  ;;  %v2331_v51 = vld [vmem:[#allocation4 + $0xb0] sm:$0xff] }
 0x3bf   : > { %v2354_v24 = vpop.permute.xlu1 %2353  ;;  %3128 = vperm.xlu1 %6965, %v10024_v7  }
 0x3c0   : > { %2696 = vst.msk [vmem:[#allocation4 + $0x88] sm:$0xff] %vm432_vm1, %v2680_v16  ;;  %v2423_v21 = vmul.f32 %v2354_v24, %v2327_v35 }
 0x3c2   : > { %v2681_v10 = vadd.f32 %v9788_v23, %v2423_v21  ;;  %v2344_v17 = vpop.permute.xlu0 %2343 }
 0x3c3   : > { %v2364_v42 = vpop.permute.xlu1 %2363  ;;  %v2421_v31 = vmul.f32 %v2344_v17, %v2325_v32  ;;  %3138 = vperm.xlu1 %6965, %v10044_v11   ;;  %v2330_v32 = vld [vmem:[#allocation4 + $0xa8] sm:$0xff]  ;;  %v2333_v17 = vld [vmem:[#allocation4 + $0xc0] sm:$0xff] }
 0x3c4   : > { %2697 = vst.msk [vmem:[#allocation4 + $0x90] sm:$0xff] %vm432_vm1, %v2681_v10  ;;  %v2425_v43 = vmul.f32 %v2364_v42, %v2329_v22  ;;  %v2335_v10 = vld [vmem:[#allocation4 + $0xd0] sm:$0xff] }
 0x3c5   : > { %v2679_v15 = vadd.f32 %v9726_v6, %v2421_v31 }
 0x3c6   : > { %v2683_v7 = vadd.f32 %v9818_v33, %v2425_v43  ;;  %v2359_v16 = vpop.permute.xlu0 %2358  ;;  %v2332_v43 = vld [vmem:[#allocation4 + $0xb8] sm:$0xff] }
 0x3c7   : > { %2695 = vst.msk [vmem:[#allocation4 + $0x80] sm:$0xff] %vm432_vm1, %v2679_v15  ;;  %v2374_v24 = vpop.permute.xlu1 %2373  ;;  %v2424_v35 = vmul.f32 %v2359_v16, %v2328_v52  ;;  %v2334_v16 = vld [vmem:[#allocation4 + $0xc8] sm:$0xff] }
 0x3c8   : > { %2699 = vst.msk [vmem:[#allocation4 + $0xa0] sm:$0xff] %vm432_vm1, %v2683_v7  ;;  %v2427_v23 = vmul.f32 %v2374_v24, %v2331_v51 }
 0x3c9   : > { %v2682_v21 = vadd.f32 %v9790_v34, %v2424_v35  ;;  %v2337_v35 = vld [vmem:[#allocation4 + $0xe0] sm:$0xff] }
 0x3ca   : > { %v2685_v42 = vadd.f32 %v9824_v9, %v2427_v23  ;;  %v2369_v22 = vpop.permute.xlu0 %2368 }
 0x3cb   : > { %2698 = vst.msk [vmem:[#allocation4 + $0x98] sm:$0xff] %vm432_vm1, %v2682_v21  ;;  %v2384_v6 = vpop.permute.xlu1 %2383  ;;  %v2426_v31 = vmul.f32 %v2369_v22, %v2330_v32  ;;  %v2339_v22 = vld [vmem:[#allocation4 + $0xf0] sm:$0xff] }
 0x3cc   : > { %2701 = vst.msk [vmem:[#allocation4 + $0xb0] sm:$0xff] %vm432_vm1, %v2685_v42  ;;  %v2429_v33 = vmul.f32 %v2384_v6, %v2333_v17  ;;  %v2336_v17 = vld [vmem:[#allocation4 + $0xd8] sm:$0xff] }
 0x3cd   : > { %v2684_v52 = vadd.f32 %v9822_v1, %v2426_v31 }
 0x3ce   : > { %v2687_v7 = vadd.f32 %v9828_v48, %v2429_v33  ;;  %v2379_v15 = vpop.permute.xlu0 %2378 }
 0x3cf   : > { %2700 = vst.msk [vmem:[#allocation4 + $0xa8] sm:$0xff] %vm432_vm1, %v2684_v52  ;;  %v2394_v34 = vpop.permute.xlu1 %2393  ;;  %v2428_v51 = vmul.f32 %v2379_v15, %v2332_v43  ;;  %v2338_v43 = vld [vmem:[#allocation4 + $0xe8] sm:$0xff] }
 0x3d0   : > { %2703 = vst.msk [vmem:[#allocation4 + $0xc0] sm:$0xff] %vm432_vm1, %v2687_v7  ;;  %v2431_v9 = vmul.f32 %v2394_v34, %v2335_v10 }
 0x3d1   : > { %v2686_v24 = vadd.f32 %v9826_v19, %v2428_v51 }
 0x3d2   : > { %v2689_v23 = vadd.f32 %v9834_v47, %v2431_v9  ;;  %v2389_v32 = vpop.permute.xlu0 %2388 }
 0x3d3   : > { %2702 = vst.msk [vmem:[#allocation4 + $0xb8] sm:$0xff] %vm432_vm1, %v2686_v24  ;;  %v2404_v1 = vpop.permute.xlu1 %2403  ;;  %v2430_v21 = vmul.f32 %v2389_v32, %v2334_v16 }
 0x3d4   : > { %2705 = vst.msk [vmem:[#allocation4 + $0xd0] sm:$0xff] %vm432_vm1, %v2689_v23  ;;  %v2433_v48 = vmul.f32 %v2404_v1, %v2337_v35 }
 0x3d5   : > { %v2688_v42 = vadd.f32 %v9830_v14, %v2430_v21 }
 0x3d6   : > { %v2691_v6 = vadd.f32 %v9842_v37, %v2433_v48  ;;  %v2399_v31 = vpop.permute.xlu0 %2398  ;;  %v2340_v37 = vld [vmem:[#allocation4 + $0xf8] sm:$0xff] }
 0x3d7   : > { %2704 = vst.msk [vmem:[#allocation4 + $0xc8] sm:$0xff] %vm432_vm1, %v2688_v42  ;;  %v2414_v19 = vpop.permute.xlu1 %2413  ;;  %v2432_v33 = vmul.f32 %v2399_v31, %v2336_v17 }
 0x3d8   : > { %2707 = vst.msk [vmem:[#allocation4 + $0xe0] sm:$0xff] %vm432_vm1, %v2691_v6  ;;  %v2435_v47 = vmul.f32 %v2414_v19, %v2339_v22 }
 0x3d9   : > { %v2690_v52 = vadd.f32 %v9836_v13, %v2432_v33  ;;  %v7674_v13 = vmov 3  }
 0x3da   : > { %v2693_v10 = vadd.f32 %v9850_v20, %v2435_v47  ;;  %v2409_v7 = vpop.permute.xlu0 %2408  ;;  %6967 = vset.pattern.permute.xlu1 %v7674_v13  ;;  %6968 = vset.pattern.permute.xlu0 %v7674_v13 }
 0x3db   : > { %2706 = vst.msk [vmem:[#allocation4 + $0xd8] sm:$0xff] %vm432_vm1, %v2690_v52  ;;  %v2434_v14 = vmul.f32 %v2409_v7, %v2338_v43 }
 0x3dc   : > { %2709 = vst.msk [vmem:[#allocation4 + $0xf0] sm:$0xff] %vm432_vm1, %v2693_v10 }
 0x3dd   : > { %v2692_v15 = vadd.f32 %v9844_v50, %v2434_v14 }
 0x3de   : > { %v2419_v34 = vpop.permute.xlu0 %2418 }
 0x3df   : > { %2708 = vst.msk [vmem:[#allocation4 + $0xe8] sm:$0xff] %vm432_vm1, %v2692_v15  ;;  %v2436_v51 = vmul.f32 %v2419_v34, %v2340_v37 }
 0x3e1   : > { %v2694_v9 = vadd.f32 %v9852_v58, %v2436_v51 }
 0x3e3   : > { %2710 = vst.msk [vmem:[#allocation4 + $0xf8] sm:$0xff] %vm432_vm1, %v2694_v9  ;;  %v12376_v9 = vld [vmem:[#allocation59_spill] sm:$0xff] }
 0x418   : > { %v3069_v20 = vpop.permute.xlu1 %3068 }
 0x419   : > { %v3146_v16 = vsub.f32 %v9606_v4, %v3069_v20  ;;  %v3147_v24 = vsub.f32 %v9622_v12, %v3069_v20 }
 0x41b   : > { %v3178_v35 = vmul.f32 1.442695, %v3146_v16  ;;  %v3180_v23 = vmul.f32 1.442695, %v3147_v24 }
 0x41c   : > { %v3079_v32 = vpop.permute.xlu1 %3078 }
 0x41d   : > { %v3074_v50 = vpop.permute.xlu0 %3073  ;;  %7227 = vpow2.f32 %v3178_v35  ;;  %v3150_v1 = vsub.f32 %v9625_v63, %v3079_v32  ;;  %v3151_v21 = vsub.f32 %v9628_v5, %v3079_v32 }
 0x41e   : > { %v3148_v58 = vsub.f32 %v9647_v2, %v3074_v50  ;;  %7229 = vpow2.f32 %v3180_v23  ;;  %v3149_v48 = vsub.f32 %v9650_v0, %v3074_v50 }
 0x41f   : > { %v3186_v17 = vmul.f32 1.442695, %v3150_v1  ;;  %v3188_v4 = vmul.f32 1.442695, %v3151_v21  ;;  %v12377_v21 = vld [vmem:[#allocation71_spill] sm:$0xff] }
 0x420   : > { %v3182_v42 = vmul.f32 1.442695, %v3148_v58  ;;  %v3184_v22 = vmul.f32 1.442695, %v3149_v48 }
 0x421   : > { %7231 = vpow2.f32 %v3186_v17 }
 0x422   : > { %v3084_v6 = vpop.permute.xlu1 %3083  ;;  %7233 = vpow2.f32 %v3182_v42  ;;  %v12379_v42 = vld [vmem:[#allocation70_spill] sm:$0xff] }
 0x423   : > { %v3152_v12 = vsub.f32 %v9678_v3, %v3084_v6  ;;  %v3153_v31 = vsub.f32 %v9681_v45, %v3084_v6  ;;  %7235 = vpow2.f32 %v3184_v22 }
 0x424   : > { %7237 = vpow2.f32 %v3188_v4 }
 0x425   : > { %v3190_v63 = vmul.f32 1.442695, %v3152_v12  ;;  %v3192_v19 = vmul.f32 1.442695, %v3153_v31 }
 0x426   : > { %v3089_v5 = vpop.permute.xlu1 %3088 }
 0x427   : > { %7239 = vpow2.f32 %v3190_v63  ;;  %v3154_v2 = vsub.f32 %v9684_v27, %v3089_v5  ;;  %v3155_v0 = vsub.f32 %v9695_v36, %v3089_v5  ;;  %v7228_v33 = vpop.eup %7227 }
 0x428   : > { %7241 = vpow2.f32 %v3192_v19  ;;  %v7230_v47 = vpop.eup %7229 }
 0x429   : > { %v3194_v43 = vmul.f32 1.442695, %v3154_v2  ;;  %v3196_v52 = vmul.f32 1.442695, %v3155_v0  ;;  %v3275_v3 = vadd.f32 %v7230_v47, %v7228_v33 }
 0x42a   : > { %v3094_v10 = vpop.permute.xlu1 %3093 }
 0x42b   : > { %7243 = vpow2.f32 %v3194_v43  ;;  %v3156_v45 = vsub.f32 %v9710_v28, %v3094_v10  ;;  %v3157_v7 = vsub.f32 %v9713_v62, %v3094_v10  ;;  %3276 = vadd.xlane.f32.xlu1 %v3275_v3  ;;  %v10112_v14 = vpop.eup %7231  ;;  %v12381_v3 = vld [vmem:[#allocation66_spill] sm:$0xff] }
 0x42c   : > { %7245 = vpow2.f32 %v3196_v52  ;;  %v7234_v15 = vpop.eup %7233  ;;  %v12380_v52 = vld [vmem:[#allocation62_spill] sm:$0xff] }
 0x42d   : > { %v3198_v37 = vmul.f32 1.442695, %v3156_v45  ;;  %v3200_v27 = vmul.f32 1.442695, %v3157_v7  ;;  %v7236_v34 = vpop.eup %7235  ;;  %v3468_v20 = vpack.c.bf16 %v7234_v15, %v7228_v33 }
 0x42e   : > { %v3099_v36 = vpop.permute.xlu1 %3098  ;;  %v7238_v16 = vpop.eup %7237  ;;  %v3469_v24 = vpack.c.bf16 %v7236_v34, %v7230_v47  ;;  %v3278_v62 = vadd.f32 %v7236_v34, %v7234_v15 }
 0x42f   : > { %7247 = vpow2.f32 %v3198_v37  ;;  %v3158_v51 = vsub.f32 %v9717_v55, %v3099_v36  ;;  %v3159_v13 = vsub.f32 %v12376_v9, %v3099_v36  ;;  %v12378_v55 = vld [vmem:[#allocation69_spill] sm:$0xff]  ;;  %v3281_v5 = vadd.f32 %v7238_v16, %v10112_v14 }
 0x430   : > { %7249 = vpow2.f32 %v3200_v27  ;;  %v3114_v28 = vpop.permute.xlu0 %3113  ;;  %3645 = vmatprep.mubr.bf16.mxu0 %v3469_v24  ;;  %3279 = vadd.xlane.f32.xlu0 %v3278_v62 }
 0x431   : > { %v7240_v35 = vpop.eup %7239  ;;  %v3202_v23 = vmul.f32 1.442695, %v3158_v51  ;;  %v3204_v32 = vmul.f32 1.442695, %v3159_v13  ;;  %v3164_v50 = vsub.f32 %v9759_v38, %v3114_v28  ;;  %v3165_v58 = vsub.f32 %v12377_v21, %v3114_v28  ;;  %3646 = vmatmul.mubr.bf16.vlgmr.msra.gmra.mrb[32].mxu0 %v3468_v20 }
 0x432   : > { %v7242_v1 = vpop.eup %7241  ;;  %v3104_v48 = vpop.permute.xlu1 %3103  ;;  %v3470_v37 = vpack.c.bf16 %v7240_v35, %v10112_v14  ;;  %v12382_v14 = vld [vmem:[#allocation72_spill] sm:$0xff] }
 0x433   : > { %7251 = vpow2.f32 %v3202_v23  ;;  %v3160_v17 = vsub.f32 %v12378_v55, %v3104_v48  ;;  %v3161_v22 = vsub.f32 %v12379_v42, %v3104_v48  ;;  %v3284_v6 = vadd.f32 %v7242_v1, %v7240_v35 }
 0x434   : > { %7253 = vpow2.f32 %v3204_v32  ;;  %v3124_v4 = vpop.permute.xlu0 %3123  ;;  %v3471_v12 = vpack.c.bf16 %v7242_v1, %v7238_v16  ;;  %v3214_v63 = vmul.f32 1.442695, %v3164_v50  ;;  %v3216_v0 = vmul.f32 1.442695, %v3165_v58  ;;  %3282 = vadd.xlane.f32.xlu0 %v3281_v5 }
 0x435   : > { %v10120_v31 = vpop.eup %7243  ;;  %v3206_v38 = vmul.f32 1.442695, %v3160_v17  ;;  %v3168_v19 = vsub.f32 %v9777_v26, %v3124_v4  ;;  %v3208_v33 = vmul.f32 1.442695, %v3161_v22  ;;  %v3169_v47 = vsub.f32 %v9780_v18, %v3124_v4  ;;  %3285 = vadd.xlane.f32.xlu1 %v3284_v6 }
 0x436   : > { %v7246_v2 = vpop.eup %7245  ;;  %3653 = vmatprep.mubr.bf16.mxu0 %v3471_v12  ;;  %v3109_v43 = vpop.permute.xlu1 %3108 }
 0x437   : > { %7255 = vpow2.f32 %v3206_v38  ;;  %v3162_v10 = vsub.f32 %v12380_v52, %v3109_v43  ;;  %v3163_v45 = vsub.f32 %v12381_v3, %v3109_v43  ;;  %v3287_v26 = vadd.f32 %v7246_v2, %v10120_v31 }
 0x438   : > { %7257 = vpow2.f32 %v3208_v33  ;;  %v3134_v7 = vpop.permute.xlu0 %3133  ;;  %v3222_v15 = vmul.f32 1.442695, %v3168_v19  ;;  %v3224_v51 = vmul.f32 1.442695, %v3169_v47 }
 0x439   : > { %v7248_v27 = vpop.eup %7247  ;;  %7259 = vpow2.f32 %v3214_v63  ;;  %v3210_v36 = vmul.f32 1.442695, %v3162_v10  ;;  %v3172_v18 = vsub.f32 %v9795_v53, %v3134_v7  ;;  %v3212_v9 = vmul.f32 1.442695, %v3163_v45  ;;  %3288 = vadd.xlane.f32.xlu0 %v3287_v26  ;;  %3654 = vmatmul.mubr.bf16.gmra.mrb[36].mxu0 %v3470_v37 }
 0x43a   : > { %v7250_v34 = vpop.eup %7249  ;;  %7261 = vpow2.f32 %v3216_v0  ;;  %v3173_v13 = vsub.f32 %v9798_v30, %v3134_v7  ;;  %v3119_v20 = vpop.permute.xlu1 %3118  ;;  %v3472_v4 = vpack.c.bf16 %v7248_v27, %v10120_v31 }
 0x43b   : > { %7263 = vpow2.f32 %v3210_v36  ;;  %v3166_v16 = vsub.f32 %v9765_v61, %v3119_v20  ;;  %v3167_v28 = vsub.f32 %v12382_v14, %v3119_v20  ;;  %v3290_v62 = vadd.f32 %v7250_v34, %v7248_v27 }
 0x43c   : > { %7265 = vpow2.f32 %v3212_v9  ;;  %v3144_v24 = vpop.permute.xlu0 %3143  ;;  %v3473_v35 = vpack.c.bf16 %v7250_v34, %v7246_v2  ;;  %v3230_v53 = vmul.f32 1.442695, %v3172_v18  ;;  %v3232_v30 = vmul.f32 1.442695, %v3173_v13 }
 0x43d   : > { %v7252_v23 = vpop.eup %7251  ;;  %7267 = vpow2.f32 %v3222_v15  ;;  %v3218_v32 = vmul.f32 1.442695, %v3166_v16  ;;  %v3176_v50 = vsub.f32 %v9811_v40, %v3144_v24  ;;  %v3220_v21 = vmul.f32 1.442695, %v3167_v28  ;;  %3291 = vadd.xlane.f32.xlu1 %v3290_v62 }
 0x43e   : > { %v7254_v1 = vpop.eup %7253  ;;  %7269 = vpow2.f32 %v3224_v51  ;;  %v3177_v58 = vsub.f32 %v9816_v46, %v3144_v24  ;;  %3661 = vmatprep.mubr.bf16.mxu0 %v3473_v35  ;;  %v3129_v61 = vpop.permute.xlu1 %3128 }
 0x43f   : > { %7271 = vpow2.f32 %v3218_v32  ;;  %v3170_v48 = vsub.f32 %v9783_v29, %v3129_v61  ;;  %v3171_v55 = vsub.f32 %v9786_v41, %v3129_v61  ;;  %v3293_v17 = vadd.f32 %v7254_v1, %v7252_v23  ;;  %v7568_v61 = vld [vmem:[%s7741_s23 + $0x20] sm:$0xff] }
 0x440   : > { %7273 = vpow2.f32 %v3220_v21  ;;  %v3238_v22 = vmul.f32 1.442695, %v3176_v50  ;;  %v3240_v12 = vmul.f32 1.442695, %v3177_v58  ;;  %v7564_v50 = vld [vmem:[%s7741_s23] sm:$0xff]  ;;  %v7566_v21 = vld [vmem:[%s7741_s23 + $0x8] sm:$0xff] }
 0x441   : > { %v7256_v42 = vpop.eup %7255  ;;  %7275 = vpow2.f32 %v3230_v53  ;;  %v3226_v40 = vmul.f32 1.442695, %v3170_v48  ;;  %v3228_v46 = vmul.f32 1.442695, %v3171_v55  ;;  %3294 = vadd.xlane.f32.xlu0 %v3293_v17  ;;  %3662 = vmatmul.mubr.bf16.gmra.mrb[40].mxu0 %v3472_v4  ;;  %v7567_v58 = vld [vmem:[%s7741_s23 + $0x18] sm:$0xff]  ;;  %v7569_v48 = vld [vmem:[%s7741_s23 + $0x28] sm:$0xff] }
 0x442   : > { %v7258_v6 = vpop.eup %7257  ;;  %7277 = vpow2.f32 %v3232_v30  ;;  %v3139_v63 = vpop.permute.xlu1 %3138  ;;  %v7565_v30 = vld [vmem:[%s7741_s23 + $0x10] sm:$0xff]  ;;  %v7571_v17 = vld [vmem:[%s7741_s23 + $0x38] sm:$0xff] }
 0x443   : > { %v7260_v38 = vpop.eup %7259  ;;  %7279 = vpow2.f32 %v3226_v40  ;;  %v3174_v29 = vsub.f32 %v9803_v59, %v3139_v63  ;;  %v3175_v41 = vsub.f32 %v9806_v56, %v3139_v63  ;;  %v3296_v19 = vadd.f32 %v7258_v6, %v7256_v42  ;;  %v7570_v55 = vld [vmem:[%s7741_s23 + $0x30] sm:$0xff]  ;;  %v7575_v4 = vld [vmem:[%s7741_s23 + $0x58] sm:$0xff] }
 0x444   : > { %v7262_v5 = vpop.eup %7261  ;;  %7281 = vpow2.f32 %v3228_v46  ;;  %v3475_v2 = vpack.c.bf16 %v7258_v6, %v7254_v1  ;;  %v3474_v56 = vpack.c.bf16 %v7256_v42, %v7252_v23  ;;  %v7572_v42 = vld [vmem:[%s7741_s23 + $0x40] sm:$0xff]  ;;  %v7574_v40 = vld [vmem:[%s7741_s23 + $0x50] sm:$0xff]  ;;  %v7579_v63 = vld [vmem:[%s7741_s23 + $0x78] sm:$0xff] }
 0x445   : > { %v7264_v0 = vpop.eup %7263  ;;  %7283 = vpow2.f32 %v3238_v22  ;;  %v3234_v31 = vmul.f32 1.442695, %v3174_v29  ;;  %v3236_v33 = vmul.f32 1.442695, %v3175_v41  ;;  %3297 = vadd.xlane.f32.xlu1 %v3296_v19  ;;  %v3302_v10 = vadd.f32 %v7262_v5, %v7260_v38  ;;  %v7573_v22 = vld [vmem:[%s7741_s23 + $0x48] sm:$0xff]  ;;  %v7576_v6 = vld [vmem:[%s7741_s23 + $0x60] sm:$0xff] }
 0x446   : > { %v7266_v47 = vpop.eup %7265  ;;  %7285 = vpow2.f32 %v3240_v12  ;;  %3669 = vmatprep.mubr.bf16.mxu0 %v3475_v2  ;;  %v3476_v16 = vpack.c.bf16 %v7260_v38, %v7264_v0  ;;  %v7577_v12 = vld [vmem:[%s7741_s23 + $0x68] sm:$0xff]  ;;  %v7578_v46 = vld [vmem:[%s7741_s23 + $0x70] sm:$0xff]  ;;  %v12383_v38 = vmov 0   ;;  %v12384_v29 = vsub.f32 %v9878_v54, %v9881_v39  ;;  %s7683_s23 = smov 37  }
 0x447   : > { %v7268_v43 = vpop.eup %7267  ;;  %7287 = vpow2.f32 %v3234_v31  ;;  %v3299_v52 = vadd.f32 %v7266_v47, %v7264_v0  ;;  %v3477_v7 = vpack.c.bf16 %v7262_v5, %v7266_v47  ;;  %v12385_v19 = vsub.f32 %v9883_v8, %v9893_v49  ;;  %v12388_v54 = vld [vmem:[#allocation67_spill] sm:$0xff]  ;;  %v12391_v49 = vld [vmem:[#allocation68_spill] sm:$0xff] }
 0x448   : > { %v7270_v3 = vpop.eup %7269  ;;  %7289 = vpow2.f32 %v3236_v33  ;;  %v3034_v41 = vmul.f32 1.442695, %v12384_v29  ;;  %v12386_v2 = vsub.f32 %v9908_v44, %v9919_v57  ;;  %v12387_v31 = vsub.f32 %v9885_v25, %v9896_v60  ;;  %v12389_v39 = vld [vmem:[#allocation75_spill] sm:$0xff]  ;;  %v3244_v60 = vld [vmem:[#allocation3 + $0x108] sm:$0xff] }
 0x449   : > { %v7272_v59 = vpop.eup %7271  ;;  %3300 = vadd.xlane.f32.xlu0 %v3299_v52  ;;  %3303 = vadd.xlane.f32.xlu1 %v3302_v10  ;;  %v3308_v27 = vadd.f32 %v7270_v3, %v7268_v43  ;;  %v3036_v5 = vmul.f32 1.442695, %v12385_v19  ;;  %v12390_v52 = vsub.f32 %v12388_v54, %v12389_v39 }
 0x44a   : > { %v7274_v45 = vpop.eup %7273  ;;  %3670 = vmatmul.mubr.bf16.gmra.mrb[44].mxu0 %v3474_v56  ;;  %v3478_v35 = vpack.c.bf16 %v7268_v43, %v7272_v59  ;;  %7291 = vpow2.f32 %v3034_v41  ;;  %v3040_v0 = vmul.f32 1.442695, %v12386_v2  ;;  %v3038_v33 = vmul.f32 1.442695, %v12387_v31  ;;  %v3243_v43 = vld [vmem:[#allocation3 + $0x100] sm:$0xff]  ;;  %v12412_v31 = vld [vmem:[#allocation38_spill] sm:$0xff] }
 0x44b   : > { %v7276_v26 = vpop.eup %7275  ;;  %v3305_v37 = vadd.f32 %v7274_v45, %v7272_v59  ;;  %3677 = vmatprep.mubr.bf16.mxu0 %v3477_v7  ;;  %v3479_v28 = vpack.c.bf16 %v7270_v3, %v7274_v45  ;;  %7293 = vpow2.f32 %v3036_v5  ;;  %v3042_v10 = vmul.f32 1.442695, %v12390_v52  ;;  %v12392_v3 = vld [vmem:[#allocation73_spill] sm:$0xff]  ;;  %v12394_v45 = vld [vmem:[#allocation76_spill] sm:$0xff]  ;;  %v12395_v7 = vld [vmem:[#allocation74_spill] sm:$0xff] }
 0x44c   : > { %v7278_v15 = vpop.eup %7277  ;;  %7295 = vpow2.f32 %v3040_v0  ;;  %v12393_v59 = vsub.f32 %v12391_v49, %v12392_v3  ;;  %v3249_v52 = vld [vmem:[#allocation3 + $0x130] sm:$0xff] }
 0x44d   : > { %v7280_v36 = vpop.eup %7279  ;;  %3306 = vadd.xlane.f32.xlu0 %v3305_v37  ;;  %3309 = vadd.xlane.f32.xlu1 %v3308_v27  ;;  %v3314_v9 = vadd.f32 %v7278_v15, %v7276_v26  ;;  %7297 = vpow2.f32 %v3038_v33  ;;  %v12413_v33 = vld [vmem:[#allocation63_spill] sm:$0xff] }
 0x44e   : > { %v7282_v18 = vpop.eup %7281  ;;  %v3480_v53 = vpack.c.bf16 %v7276_v26, %v7280_v36  ;;  %v3044_v44 = vmul.f32 1.442695, %v12393_v59  ;;  %7299 = vpow2.f32 %v3042_v10  ;;  %v12396_v26 = vsub.f32 %v12394_v45, %v12395_v7  ;;  %v12415_v10 = vld [vmem:[#allocation29_spill] sm:$0xff] }
 0x44f   : > { %v7284_v34 = vpop.eup %7283  ;;  %v3311_v51 = vadd.f32 %v7282_v18, %v7280_v36  ;;  %v3481_v23 = vpack.c.bf16 %v7278_v15, %v7282_v18  ;;  %v3246_v18 = vld [vmem:[#allocation3 + $0x118] sm:$0xff] }
 0x450   : > { %v7286_v13 = vpop.eup %7285  ;;  %v3046_v37 = vmul.f32 1.442695, %v12396_v26  ;;  %7301 = vpow2.f32 %v3044_v44 }
 0x451   : > { %v7288_v20 = vpop.eup %7287  ;;  %3312 = vadd.xlane.f32.xlu0 %v3311_v51  ;;  %3315 = vadd.xlane.f32.xlu1 %v3314_v9  ;;  %v3320_v62 = vadd.f32 %v7286_v13, %v7284_v34  ;;  %v12397_v51 = vld [vmem:[#allocation77_spill] sm:$0xff]  ;;  %v12398_v9 = vld [vmem:[#allocation79_spill] sm:$0xff] }
 0x452   : > { %v7290_v14 = vpop.eup %7289  ;;  %3678 = vmatmul.mubr.bf16.gmra.mrb[48].mxu0 %v3476_v16  ;;  %v3482_v1 = vpack.c.bf16 %v7284_v34, %v7288_v20  ;;  %7303 = vpow2.f32 %v3046_v37  ;;  %v12420_v37 = vld [vmem:[#allocation94_spill] sm:$0xff] }
 0x453   : > { %v3317_v24 = vadd.f32 %v7290_v14, %v7288_v20  ;;  %3685 = vmatprep.mubr.bf16.mxu0 %v3479_v28  ;;  %v3483_v32 = vpack.c.bf16 %v7286_v13, %v7290_v14  ;;  %v12399_v13 = vsub.f32 %v12397_v51, %v12398_v9  ;;  %v3245_v14 = vld [vmem:[#allocation3 + $0x110] sm:$0xff] }
 0x454   : > { %v10170_v47 = vpop.eup %7291 }
 0x455   : > { %3318 = vadd.xlane.f32.xlu0 %v3317_v24  ;;  %3321 = vadd.xlane.f32.xlu1 %v3320_v62  ;;  %v3259_v8 = vmul.f32 %v10170_v47, %v3243_v43  ;;  %v10179_v25 = vpop.eup %7293  ;;  %v3048_v20 = vmul.f32 1.442695, %v12399_v13  ;;  %v12400_v24 = vld [vmem:[#allocation78_spill] sm:$0xff]  ;;  %v12401_v62 = vld [vmem:[#allocation80_spill] sm:$0xff]  ;;  %v12414_v43 = vsub.f32 %v12412_v31, %v12413_v33 }
 0x456   : > { %v3260_v27 = vmul.f32 %v10179_v25, %v3244_v60  ;;  %v10186_v15 = vpop.eup %7295  ;;  %v12418_v60 = vld [vmem:[#allocation89_spill] sm:$0xff] }
 0x457   : > { %v10188_v34 = vpop.eup %7297  ;;  %v3262_v28 = vmul.f32 %v10186_v15, %v3246_v18  ;;  %7305 = vpow2.f32 %v3048_v20  ;;  %v3058_v54 = vmul.f32 1.442695, %v12414_v43  ;;  %v12419_v45 = vsub.f32 %v12418_v60, %v10044_v11  ;;  %v3258_v43 = vld [vmem:[#allocation3 + $0x178] sm:$0xff] }
 0x459   : > { %v3062_v7 = vmul.f32 1.442695, %v12419_v45 }
 0x45a   : > { %3686 = vmatmul.mubr.bf16.gmra.mrb[52].mxu0 %v3478_v35  ;;  %v12402_v35 = vsub.f32 %v12400_v24, %v12401_v62 }
 0x45b   : > { %3693 = vmatprep.mubr.bf16.mxu0 %v3481_v23 }
 0x45c   : > { %v3050_v23 = vmul.f32 1.442695, %v12402_v35 }
 0x45e   : > { %7307 = vpow2.f32 %v3050_v23 }
 0x462   : > { %3694 = vmatmul.mubr.bf16.gmra.mrb[56].mxu0 %v3480_v53 }
 0x463   : > { %3701 = vmatprep.mubr.bf16.mxu0 %v3483_v32  ;;  %v3261_v32 = vmul.f32 %v10188_v34, %v3245_v14  ;;  %v3252_v14 = vld [vmem:[#allocation3 + $0x148] sm:$0xff] }
 0x466   : > { %3759 = vperm.xlu1 %6967, %v7564_v50   ;;  %v10199_v50 = vpop.eup %7299 }
 0x46a   : > { %3767 = vperm.xlu1 %6967, %v7565_v30   ;;  %3702 = vmatmul.mubr.bf16.gmra.mrb[60].mxu0 %v3482_v1  ;;  %v12403_v1 = vld [vmem:[#allocation81_spill] sm:$0xff]  ;;  %v12404_v30 = vld [vmem:[#allocation26_spill] sm:$0xff] }
 0x46b   : > { %3763 = vperm.xlu0 %6968, %v7566_v21   ;;  %v12405_v21 = vsub.f32 %v12403_v1, %v12404_v30  ;;  %v3254_v1 = vld [vmem:[#allocation3 + $0x158] sm:$0xff]  ;;  %v3253_v30 = vld [vmem:[#allocation3 + $0x150] sm:$0xff] }
 0x46e   : > { %3771 = vperm.xlu1 %6967, %v7567_v58   ;;  %v3052_v58 = vmul.f32 1.442695, %v12405_v21 }
 0x46f   : > { %3775 = vperm.xlu0 %6968, %v7568_v61  }
 0x470   : > { %7309 = vpow2.f32 %v3052_v58 }
 0x472   : > { %3779 = vperm.xlu1 %6967, %v7569_v48  }
 0x473   : > { %3783 = vperm.xlu0 %6968, %v7570_v55   ;;  %v3247_v55 = vld [vmem:[#allocation3 + $0x120] sm:$0xff] }
 0x476   : > { %3787 = vperm.xlu1 %6967, %v7571_v17  }
 0x477   : > { %3791 = vperm.xlu0 %6968, %v7572_v42   ;;  %v10205_v42 = vpop.eup %7301 }
 0x478   : > { %v10216_v0 = vpop.eup %7303 }
 0x479   : > { %v10225_v44 = vpop.eup %7305 }
 0x47a   : > { %3795 = vperm.xlu1 %6967, %v7573_v22   ;;  %v12406_v22 = vld [vmem:[#allocation82_spill] sm:$0xff]  ;;  %v10235_v9 = vpop.eup %7307 }
 0x47b   : > { %3799 = vperm.xlu0 %6968, %v7574_v40   ;;  %v12407_v40 = vld [vmem:[#allocation83_spill] sm:$0xff]  ;;  %v10238_v20 = vpop.eup %7309 }
 0x47c   : > { %v3268_v62 = vmul.f32 %v10238_v20, %v3252_v14 }
 0x47e   : > { %3803 = vperm.xlu1 %6967, %v7575_v4   ;;  %v12408_v4 = vsub.f32 %v12406_v22, %v12407_v40 }
 0x47f   : > { %3807 = vperm.xlu0 %6968, %v7576_v6  }
 0x480   : > { %v3054_v6 = vmul.f32 1.442695, %v12408_v4  ;;  %v3256_v4 = vld [vmem:[#allocation3 + $0x168] sm:$0xff] }
 0x482   : > { %3811 = vperm.xlu1 %6967, %v7577_v12   ;;  %v3263_v12 = vmul.f32 %v10199_v50, %v3247_v55  ;;  %7311 = vpow2.f32 %v3054_v6  ;;  %v3255_v6 = vld [vmem:[#allocation3 + $0x160] sm:$0xff] }
 0x483   : > { %3815 = vperm.xlu0 %6968, %v7578_v46   ;;  %v3248_v46 = vld [vmem:[#allocation3 + $0x128] sm:$0xff] }
 0x484   : > { %v3264_v2 = vmul.f32 %v10205_v42, %v3248_v46 }
 0x486   : > { %3819 = vperm.xlu1 %6967, %v7579_v63   ;;  %v12409_v63 = vld [vmem:[#allocation50_spill] sm:$0xff] }
 0x487   : > { %6970 = vset.pattern.permute.xlu0 %v12383_v38 }
 0x48a   : > { %6969 = vset.pattern.permute.xlu1 %v12383_v38  ;;  %v12410_v38 = vld [vmem:[#allocation57_spill] sm:$0xff] }
 0x48b   : > { %v12411_v29 = vsub.f32 %v12409_v63, %v12410_v38  ;;  %v12423_v63 = vld [vmem:[#allocation5_spill] sm:$0xff] }
 0x48c   : > { %v10241_v24 = vpop.eup %7311  ;;  %v3824_v38 = vsub.s32 3, %v12423_v63 }
 0x48d   : > { %v3056_v41 = vmul.f32 1.442695, %v12411_v29  ;;  %v3269_v55 = vmul.f32 %v10241_v24, %v3253_v30  ;;  %v3828_v29 = vsub.s32 7, %v12423_v63  ;;  %v12424_v30 = vld [vmem:[#allocation6_spill] sm:$0xff] }
 0x48f   : > { %7313 = vpow2.f32 %v3056_v41 }
 0x490   : > { %7315 = vpow2.f32 %v3058_v54  ;;  %v3257_v54 = vld [vmem:[#allocation3 + $0x170] sm:$0xff] }
 0x499   : > { %v10246_v23 = vpop.eup %7313 }
 0x4b8   : > { %v3277_v57 = vpop.xlane.xlu1 %3276 }
 0x4b9   : > { %v3323_v56 = vadd.f32 %v3277_v57, %v3259_v8  ;;  %v12416_v8 = vld [vmem:[#allocation102_spill] sm:$0xff]  ;;  %v3265_v57 = vmul.f32 %v10216_v0, %v3249_v52 }
 0x4ba   : > { %v12417_v49 = vsub.f32 %v12415_v10, %v12416_v8  ;;  %v7580_v10 = vld [vmem:[%s11824_s1] sm:$0xff] }
 0x4bb   : > { %3339 = vst.msk [vmem:[#allocation3 + $0x100] sm:$0xff] %vm303_vm0, %v3323_v56  ;;  %v3250_v56 = vld [vmem:[#allocation3 + $0x138] sm:$0xff]  ;;  %v3825_v8 = vrot.slane %v7580_v10, %v3824_v38 }
 0x4bc   : > { %v3060_v3 = vmul.f32 1.442695, %v12417_v49  ;;  %v3266_v13 = vmul.f32 %v10225_v44, %v3250_v56  ;;  %v3829_v49 = vrot.slane %v7580_v10, %v3828_v29 }
 0x4bd   : > { %v3280_v36 = vpop.xlane.xlu0 %3279 }
 0x4be   : > { %v3324_v16 = vadd.f32 %v3280_v36, %v3260_v27  ;;  %7317 = vpow2.f32 %v3060_v3  ;;  %v12421_v27 = vld [vmem:[#allocation108_spill] sm:$0xff] }
 0x4bf   : > { %v12422_v36 = vsub.f32 %v12420_v37, %v12421_v27  ;;  %7319 = vpow2.f32 %v3062_v7  ;;  %v10273_v7 = vrot.slane %v3825_v8, %v3824_v38 }
 0x4c0   : > { %3340 = vst.msk [vmem:[#allocation3 + $0x108] sm:$0xff] %vm303_vm0, %v3324_v16 }
 0x4c1   : > { %v3283_v48 = vpop.xlane.xlu0 %3282  ;;  %v3064_v18 = vmul.f32 1.442695, %v12422_v36 }
 0x4c2   : > { %v3286_v53 = vpop.xlane.xlu1 %3285  ;;  %v3325_v17 = vadd.f32 %v3283_v48, %v3261_v32  ;;  %v3270_v48 = vmul.f32 %v10246_v23, %v3254_v1 }
 0x4c3   : > { %v3326_v61 = vadd.f32 %v3286_v53, %v3262_v28  ;;  %v3251_v28 = vld [vmem:[#allocation3 + $0x140] sm:$0xff]  ;;  %7321 = vpow2.f32 %v3064_v18 }
 0x4c4   : > { %3341 = vst.msk [vmem:[#allocation3 + $0x110] sm:$0xff] %vm303_vm0, %v3325_v17  ;;  %v3267_v35 = vmul.f32 %v10235_v9, %v3251_v28 }
 0x4c5   : > { %3342 = vst.msk [vmem:[#allocation3 + $0x118] sm:$0xff] %vm303_vm0, %v3326_v61  ;;  %v10248_v61 = vpop.eup %7315 }
 0x4c6   : > { %v3289_v19 = vpop.xlane.xlu0 %3288 }
 0x4c7   : > { %v3327_v5 = vadd.f32 %v3289_v19, %v3263_v12 }
 0x4c8   : > { %v10254_v17 = vpop.eup %7317 }
 0x4c9   : > { %3343 = vst.msk [vmem:[#allocation3 + $0x120] sm:$0xff] %vm303_vm0, %v3327_v5  ;;  %v10258_v41 = vpop.eup %7319  ;;  %v3272_v19 = vmul.f32 %v10254_v17, %v3256_v4  ;;  %v3271_v5 = vmul.f32 %v10248_v61, %v3255_v6 }
 0x4ca   : > { %v3292_v39 = vpop.xlane.xlu1 %3291 }
 0x4cb   : > { %v3328_v59 = vadd.f32 %v3292_v39, %v3264_v2 }
 0x4cd   : > { %3344 = vst.msk [vmem:[#allocation3 + $0x128] sm:$0xff] %vm303_vm0, %v3328_v59  ;;  %v10264_v2 = vpop.eup %7321  ;;  %v3273_v59 = vmul.f32 %v10258_v41, %v3257_v54  ;;  %v12426_v54 = vld [vmem:[#allocation21_spill] sm:$0xff] }
 0x4ce   : > { %v3295_v26 = vpop.xlane.xlu0 %3294  ;;  %v3274_v3 = vmul.f32 %v10264_v2, %v3258_v43 }
 0x4cf   : > { %v3329_v51 = vadd.f32 %v3295_v26, %v3265_v57  ;;  %v10275_v26 = vrot.slane %v3829_v49, %v3824_v38 }
 0x4d1   : > { %3345 = vst.msk [vmem:[#allocation3 + $0x130] sm:$0xff] %vm303_vm0, %v3329_v51 }
 0x4d2   : > { %v3298_v16 = vpop.xlane.xlu1 %3297 }
 0x4d3   : > { %v3330_v11 = vadd.f32 %v3298_v16, %v3266_v13 }
 0x4d5   : > { %3346 = vst.msk [vmem:[#allocation3 + $0x138] sm:$0xff] %vm303_vm0, %v3330_v11 }
 0x4d6   : > { %v3304_v53 = vpop.xlane.xlu1 %3303  ;;  %v3301_v32 = vpop.xlane.xlu0 %3300 }
 0x4d7   : > { %v3332_v21 = vadd.f32 %v3304_v53, %v3268_v62  ;;  %v3331_v58 = vadd.f32 %v3301_v32, %v3267_v35 }
 0x4d9   : > { %3348 = vst.msk [vmem:[#allocation3 + $0x148] sm:$0xff] %vm303_vm0, %v3332_v21  ;;  %3347 = vst.msk [vmem:[#allocation3 + $0x140] sm:$0xff] %vm303_vm0, %v3331_v58 }
 0x4da   : > { %v3310_v22 = vpop.xlane.xlu1 %3309  ;;  %v3307_v40 = vpop.xlane.xlu0 %3306 }
 0x4db   : > { %v3334_v12 = vadd.f32 %v3310_v22, %v3270_v48  ;;  %v3333_v46 = vadd.f32 %v3307_v40, %v3269_v55  ;;  %v12425_v40 = vld [vmem:[#allocation7_spill] sm:$0xff] }
 0x4dd   : > { %3350 = vst.msk [vmem:[#allocation3 + $0x158] sm:$0xff] %vm303_vm0, %v3334_v12  ;;  %3349 = vst.msk [vmem:[#allocation3 + $0x150] sm:$0xff] %vm303_vm0, %v3333_v46 }
 0x4de   : > { %v3316_v31 = vpop.xlane.xlu1 %3315  ;;  %v3313_v33 = vpop.xlane.xlu0 %3312 }
 0x4df   : > { %v3336_v39 = vadd.f32 %v3316_v31, %v3272_v19  ;;  %v3335_v52 = vadd.f32 %v3313_v33, %v3271_v5 }
 0x4e1   : > { %3352 = vst.msk [vmem:[#allocation3 + $0x168] sm:$0xff] %vm303_vm0, %v3336_v39  ;;  %3351 = vst.msk [vmem:[#allocation3 + $0x160] sm:$0xff] %vm303_vm0, %v3335_v52 }
 0x4e2   : > { %v3322_v57 = vpop.xlane.xlu1 %3321  ;;  %v3319_v56 = vpop.xlane.xlu0 %3318 }
 0x4e3   : > { %v3338_v60 = vadd.f32 %v3322_v57, %v3274_v3  ;;  %v3337_v45 = vadd.f32 %v3319_v56, %v3273_v59  ;;  %v12427_v3 = vld [vmem:[#allocation23_spill] sm:$0xff]  ;;  %v12428_v57 = vld [vmem:[#allocation24_spill] sm:$0xff] }
 0x4e5   : > { %3354 = vst.msk [vmem:[#allocation3 + $0x178] sm:$0xff] %vm303_vm0, %v3338_v60  ;;  %3353 = vst.msk [vmem:[#allocation3 + $0x170] sm:$0xff] %vm303_vm0, %v3337_v45 }
 0x4e6   : > { %v3760_v37 = vpop.permute.xlu1 %3759 }
 0x4e7   : > { %v3840_v27 = vadd.f32 %v10273_v7, %v3760_v37  ;;  %v3841_v36 = vadd.f32 %v10275_v26, %v3760_v37 }
 0x4e9   : > { %v3872_v18 = vmul.f32 0.2, %v3840_v27  ;;  %v3873_v51 = vmul.f32 0.2, %v3841_v36 }
 0x4ea   : > { %v3768_v13 = vpop.permute.xlu1 %3767  ;;  %v3764_v16 = vpop.permute.xlu0 %3763 }
 0x4eb   : > { %v3904_v14 = vmax.f32 %v3840_v27, %v3872_v18  ;;  %v3905_v28 = vmax.f32 %v3841_v36, %v3873_v51  ;;  %v3844_v11 = vadd.f32 %v10273_v7, %v3768_v13  ;;  %v3845_v62 = vadd.f32 %v10275_v26, %v3768_v13 }
 0x4ec   : > { %v3842_v35 = vadd.f32 %v10273_v7, %v3764_v16  ;;  %v3843_v53 = vadd.f32 %v10275_v26, %v3764_v16 }
 0x4ed   : > { %v3876_v32 = vmul.f32 0.2, %v3844_v11  ;;  %v3877_v1 = vmul.f32 0.2, %v3845_v62  ;;  %v10286_v21 = vadd.f32 %v3904_v14, %v12424_v30  ;;  %v10289_v4 = vadd.f32 %v3905_v28, %v12425_v40  ;;  %v12430_v30 = vld [vmem:[#allocation8_spill] sm:$0xff] }
 0x4ee   : > { %v3874_v58 = vmul.f32 0.2, %v3842_v35  ;;  %v3875_v48 = vmul.f32 0.2, %v3843_v53  ;;  %v3772_v55 = vpop.permute.xlu1 %3771  ;;  %v3776_v22 = vpop.permute.xlu0 %3775 }
 0x4ef   : > { %v3908_v6 = vmax.f32 %v3844_v11, %v3876_v32  ;;  %v3909_v12 = vmax.f32 %v3845_v62, %v3877_v1  ;;  %v3846_v46 = vadd.f32 %v10273_v7, %v3772_v55  ;;  %v3847_v63 = vadd.f32 %v10275_v26, %v3772_v55  ;;  %v12429_v11 = vld [vmem:[#allocation25_spill] sm:$0xff] }
 0x4f0   : > { %v3906_v38 = vmax.f32 %v3842_v35, %v3874_v58  ;;  %v3907_v29 = vmax.f32 %v3843_v53, %v3875_v48  ;;  %v3848_v19 = vadd.f32 %v10273_v7, %v3776_v22  ;;  %v3849_v5 = vadd.f32 %v10275_v26, %v3776_v22  ;;  %v12431_v48 = vld [vmem:[#allocation9_spill] sm:$0xff] }
 0x4f1   : > { %v3878_v31 = vmul.f32 0.2, %v3846_v46  ;;  %v3879_v33 = vmul.f32 0.2, %v3847_v63  ;;  %v3985_v43 = vmax.f32 %v10286_v21, %v10289_v4  ;;  %v10298_v39 = vadd.f32 %v3908_v6, %v12426_v54 }
 0x4f2   : > { %v3880_v52 = vmul.f32 0.2, %v3848_v19  ;;  %v3881_v10 = vmul.f32 0.2, %v3849_v5  ;;  %v3780_v8 = vpop.permute.xlu1 %3779  ;;  %v3784_v49 = vpop.permute.xlu0 %3783  ;;  %v10301_v59 = vadd.f32 %v3909_v12, %v12427_v3  ;;  %v10304_v56 = vadd.f32 %v3906_v38, %v12428_v57  ;;  %v12434_v57 = vld [vmem:[#allocation10_spill] sm:$0xff] }
 0x4f3   : > { %v3910_v60 = vmax.f32 %v3846_v46, %v3878_v31  ;;  %v3911_v45 = vmax.f32 %v3847_v63, %v3879_v33  ;;  %3986 = vmax.xlane.f32.xlu0 %v3985_v43  ;;  %v3850_v37 = vadd.f32 %v10273_v7, %v3780_v8  ;;  %v3851_v27 = vadd.f32 %v10275_v26, %v3780_v8  ;;  %v12432_v33 = vld [vmem:[#allocation27_spill] sm:$0xff] }
 0x4f4   : > { %v3912_v36 = vmax.f32 %v3848_v19, %v3880_v52  ;;  %v3913_v18 = vmax.f32 %v3849_v5, %v3881_v10  ;;  %v3852_v51 = vadd.f32 %v10273_v7, %v3784_v49  ;;  %v3853_v13 = vadd.f32 %v10275_v26, %v3784_v49  ;;  %v12433_v10 = vld [vmem:[#allocation28_spill] sm:$0xff] }
 0x4f5   : > { %v3882_v16 = vmul.f32 0.2, %v3850_v37  ;;  %v3883_v14 = vmul.f32 0.2, %v3851_v27  ;;  %v3991_v28 = vmax.f32 %v10298_v39, %v10301_v59  ;;  %v10313_v62 = vadd.f32 %v3907_v29, %v12429_v11 }
 0x4f6   : > { %v3884_v35 = vmul.f32 0.2, %v3852_v51  ;;  %v3885_v53 = vmul.f32 0.2, %v3853_v13  ;;  %v3788_v32 = vpop.permute.xlu1 %3787  ;;  %v3792_v1 = vpop.permute.xlu0 %3791  ;;  %v10316_v58 = vadd.f32 %v3910_v60, %v12430_v30  ;;  %v10319_v55 = vadd.f32 %v3911_v45, %v12431_v48  ;;  %v12436_v30 = vld [vmem:[#allocation30_spill] sm:$0xff] }
 0x4f7   : > { %v3914_v22 = vmax.f32 %v3850_v37, %v3882_v16  ;;  %v3915_v40 = vmax.f32 %v3851_v27, %v3883_v14  ;;  %3992 = vmax.xlane.f32.xlu0 %v3991_v28  ;;  %v3988_v6 = vmax.f32 %v10304_v56, %v10313_v62  ;;  %v3854_v12 = vadd.f32 %v10273_v7, %v3788_v32 }
 0x4f8   : > { %v3916_v46 = vmax.f32 %v3852_v51, %v3884_v35  ;;  %v3917_v63 = vmax.f32 %v3853_v13, %v3885_v53  ;;  %v3855_v38 = vadd.f32 %v10275_v26, %v3788_v32  ;;  %v3856_v29 = vadd.f32 %v10273_v7, %v3792_v1  ;;  %v12435_v32 = vld [vmem:[#allocation11_spill] sm:$0xff] }
 0x4f9   : > { %3989 = vmax.xlane.f32.xlu1 %v3988_v6  ;;  %v3886_v19 = vmul.f32 0.2, %v3854_v12  ;;  %v3857_v5 = vadd.f32 %v10275_v26, %v3792_v1  ;;  %v3994_v31 = vmax.f32 %v10316_v58, %v10319_v55  ;;  %v10330_v43 = vadd.f32 %v3912_v36, %v12432_v33 }
 0x4fa   : > { %v3887_v54 = vmul.f32 0.2, %v3855_v38  ;;  %v3888_v52 = vmul.f32 0.2, %v3856_v29  ;;  %v10333_v8 = vadd.f32 %v3913_v18, %v12433_v10  ;;  %v3796_v49 = vpop.permute.xlu1 %3795  ;;  %v3800_v3 = vpop.permute.xlu0 %3799  ;;  %v10336_v60 = vadd.f32 %v3914_v22, %v12434_v57  ;;  %v12437_v22 = vld [vmem:[#allocation32_spill] sm:$0xff] }
 0x4fb   : > { %v3918_v45 = vmax.f32 %v3854_v12, %v3886_v19  ;;  %v3889_v37 = vmul.f32 0.2, %v3857_v5  ;;  %3995 = vmax.xlane.f32.xlu0 %v3994_v31  ;;  %v3858_v27 = vadd.f32 %v10273_v7, %v3796_v49  ;;  %v3859_v51 = vadd.f32 %v10275_v26, %v3796_v49  ;;  %v12438_v57 = vld [vmem:[#allocation12_spill] sm:$0xff] }
 0x4fc   : > { %v3919_v13 = vmax.f32 %v3855_v38, %v3887_v54  ;;  %v3920_v36 = vmax.f32 %v3856_v29, %v3888_v52  ;;  %v3997_v16 = vmax.f32 %v10330_v43, %v10333_v8  ;;  %v3860_v18 = vadd.f32 %v10273_v7, %v3800_v3 }
 0x4fd   : > { %v3921_v14 = vmax.f32 %v3857_v5, %v3889_v37  ;;  %v3890_v28 = vmul.f32 0.2, %v3858_v27  ;;  %v3891_v11 = vmul.f32 0.2, %v3859_v51  ;;  %v3861_v35 = vadd.f32 %v10275_v26, %v3800_v3 }
 0x4fe   : > { %3998 = vmax.xlane.f32.xlu1 %v3997_v16  ;;  %v3892_v53 = vmul.f32 0.2, %v3860_v18  ;;  %v10345_v1 = vadd.f32 %v3915_v40, %v12435_v32  ;;  %v10348_v48 = vadd.f32 %v3916_v46, %v12436_v30  ;;  %v10351_v6 = vadd.f32 %v3917_v63, %v12437_v22  ;;  %v3804_v12 = vpop.permute.xlu1 %3803  ;;  %v3808_v38 = vpop.permute.xlu0 %3807  ;;  %v12441_v16 = vld [vmem:[#allocation33_spill] sm:$0xff]  ;;  %v12443_v30 = vld [vmem:[#allocation34_spill] sm:$0xff] }
 0x4ff   : > { %v3922_v29 = vmax.f32 %v3858_v27, %v3890_v28  ;;  %v3923_v19 = vmax.f32 %v3859_v51, %v3891_v11  ;;  %v3893_v5 = vmul.f32 0.2, %v3861_v35  ;;  %v3862_v31 = vadd.f32 %v10273_v7, %v3804_v12  ;;  %v12439_v27 = vld [vmem:[#allocation13_spill] sm:$0xff] }
 0x500   : > { %v3924_v33 = vmax.f32 %v3860_v18, %v3892_v53  ;;  %v4000_v54 = vmax.f32 %v10336_v60, %v10345_v1  ;;  %v4003_v40 = vmax.f32 %v10348_v48, %v10351_v6  ;;  %v3863_v46 = vadd.f32 %v10275_v26, %v3804_v12 }
 0x501   : > { %v3925_v52 = vmax.f32 %v3861_v35, %v3893_v5  ;;  %v3894_v10 = vmul.f32 0.2, %v3862_v31  ;;  %v3864_v63 = vadd.f32 %v10273_v7, %v3808_v38  ;;  %v3865_v49 = vadd.f32 %v10275_v26, %v3808_v38 }
 0x502   : > { %4001 = vmax.xlane.f32.xlu0 %v4000_v54  ;;  %4004 = vmax.xlane.f32.xlu1 %v4003_v40  ;;  %v3895_v3 = vmul.f32 0.2, %v3863_v46  ;;  %v10362_v37 = vadd.f32 %v3918_v45, %v12438_v57  ;;  %v10365_v51 = vadd.f32 %v3919_v13, %v12439_v27  ;;  %v10368_v18 = vadd.f32 %v3920_v36, %v12441_v16  ;;  %v3812_v28 = vpop.permute.xlu1 %3811  ;;  %v3816_v11 = vpop.permute.xlu0 %3815 }
 0x503   : > { %v3926_v35 = vmax.f32 %v3862_v31, %v3894_v10  ;;  %v3896_v53 = vmul.f32 0.2, %v3864_v63  ;;  %v3897_v32 = vmul.f32 0.2, %v3865_v49  ;;  %v10371_v22 = vadd.f32 %v3921_v14, %v12443_v30 }
 0x504   : > { %12440 = vst [vmem:[#allocation99_spill] sm:$0xff] %v10365_v51  ;;  %12442 = vst [vmem:[#allocation112_spill] sm:$0xff] %v10368_v18  ;;  %v3927_v12 = vmax.f32 %v3863_v46, %v3895_v3  ;;  %v4006_v38 = vmax.f32 %v10362_v37, %v10365_v51  ;;  %v3866_v45 = vadd.f32 %v10273_v7, %v3812_v28  ;;  %v6805_v46 = vpop.f32.mrb[32].mxu0  ;;  %v12445_v3 = vld [vmem:[#allocation14_spill] sm:$0xff] }
 0x505   : > { %12444 = vst [vmem:[#allocation105_spill] sm:$0xff] %v10371_v22  ;;  %v3867_v13 = vadd.f32 %v10275_v26, %v3812_v28  ;;  %v3928_v5 = vmax.f32 %v3864_v63, %v3896_v53  ;;  %v3929_v54 = vmax.f32 %v3865_v49, %v3897_v32  ;;  %v4009_v36 = vmax.f32 %v10368_v18, %v10371_v22  ;;  %v12446_v28 = vld [vmem:[#allocation15_spill] sm:$0xff]  ;;  %v12448_v32 = vld [vmem:[#allocation41_spill] sm:$0xff] }
 0x506   : > { %v3868_v31 = vadd.f32 %v10273_v7, %v3816_v11  ;;  %4007 = vmax.xlane.f32.xlu0 %v4006_v38  ;;  %v3898_v40 = vmul.f32 0.2, %v3866_v45  ;;  %v3869_v14 = vadd.f32 %v10275_v26, %v3816_v11  ;;  %v10382_v57 = vadd.f32 %v3922_v29, %v12445_v3  ;;  %v3820_v27 = vpop.permute.xlu1 %3819  ;;  %v12447_v49 = vld [vmem:[#allocation35_spill] sm:$0xff]  ;;  %v6806_v38 = vpop.f32.mrb[33].mxu0 }
 0x507   : > { %v3899_v10 = vmul.f32 0.2, %v3867_v13  ;;  %4010 = vmax.xlane.f32.xlu1 %v4009_v36  ;;  %v10385_v63 = vadd.f32 %v3923_v19, %v12446_v28  ;;  %v10388_v53 = vadd.f32 %v3924_v33, %v12447_v49  ;;  %v10391_v30 = vadd.f32 %v3925_v52, %v12448_v32  ;;  %v6808_v29 = vpop.f32.mrb[34].mxu0 }
 0x508   : > { %v3900_v16 = vmul.f32 0.2, %v3868_v31  ;;  %v3930_v22 = vmax.f32 %v3866_v45, %v3898_v40  ;;  %v3901_v11 = vmul.f32 0.2, %v3869_v14  ;;  %v10393_v51 = vadd.f32 %v6806_v38, %v6805_v46  ;;  %v6809_v28 = vpop.f32.mrb[35].mxu0  ;;  %v12449_v45 = vld [vmem:[#allocation16_spill] sm:$0xff] }
 0x509   : > { %v3931_v18 = vmax.f32 %v3867_v13, %v3899_v10  ;;  %v4012_v36 = vmax.f32 %v10382_v57, %v10385_v63  ;;  %v4015_v19 = vmax.f32 %v10388_v53, %v10391_v30  ;;  %v3870_v33 = vadd.f32 %v10273_v7, %v3820_v27  ;;  %v12450_v40 = vld [vmem:[#allocation17_spill] sm:$0xff]  ;;  %v12451_v46 = vld [vmem:[#allocation42_spill] sm:$0xff]  ;;  %v12452_v38 = vld [vmem:[#allocation43_spill] sm:$0xff] }
 0x50a   : > { %v3932_v3 = vmax.f32 %v3868_v31, %v3900_v16  ;;  %v3933_v49 = vmax.f32 %v3869_v14, %v3901_v11  ;;  %v3871_v52 = vadd.f32 %v10275_v26, %v3820_v27  ;;  %v10401_v32 = vadd.f32 %v6809_v28, %v6808_v29  ;;  %v12453_v11 = vld [vmem:[#allocation18_spill] sm:$0xff]  ;;  %v12454_v27 = vld [vmem:[#allocation19_spill] sm:$0xff]  ;;  %v12456_v28 = vld [vmem:[#allocation49_spill] sm:$0xff] }
 0x50b   : > { %v10404_v13 = vadd.f32 %v3926_v35, %v12449_v45  ;;  %4013 = vmax.xlane.f32.xlu0 %v4012_v36  ;;  %4016 = vmax.xlane.f32.xlu1 %v4015_v19  ;;  %v3902_v31 = vmul.f32 0.2, %v3870_v33  ;;  %v10407_v10 = vadd.f32 %v3927_v12, %v12450_v40  ;;  %v10410_v16 = vadd.f32 %v3928_v5, %v12451_v46  ;;  %v12455_v35 = vld [vmem:[#allocation44_spill] sm:$0xff] }
 0x50c   : > { %v10413_v7 = vadd.f32 %v3929_v54, %v12452_v38  ;;  %v3903_v14 = vmul.f32 0.2, %v3871_v52  ;;  %v10416_v26 = vadd.f32 %v3930_v22, %v12453_v11  ;;  %v10419_v29 = vadd.f32 %v3931_v18, %v12454_v27  ;;  %v6811_v40 = vpop.f32.mrb[36].mxu0  ;;  %v12459_v11 = vld [vmem:[#allocation22_spill] sm:$0xff] }
 0x50d   : > { %v10422_v36 = vadd.f32 %v3932_v3, %v12455_v35  ;;  %v3934_v19 = vmax.f32 %v3870_v33, %v3902_v31  ;;  %v4018_v12 = vmax.f32 %v10404_v13, %v10407_v10  ;;  %v10429_v54 = vadd.f32 %v3933_v49, %v12456_v28  ;;  %v6812_v3 = vpop.f32.mrb[37].mxu0  ;;  %v12457_v33 = vld [vmem:[#allocation20_spill] sm:$0xff] }
 0x50e   : > { %v4021_v5 = vmax.f32 %v10410_v16, %v10413_v7  ;;  %v3935_v45 = vmax.f32 %v3871_v52, %v3903_v14  ;;  %v4024_v18 = vmax.f32 %v10416_v26, %v10419_v29  ;;  %v10438_v46 = vadd.f32 %v6812_v3, %v6811_v40  ;;  %v6814_v38 = vpop.f32.mrb[38].mxu0 }
 0x50f   : > { %4019 = vmax.xlane.f32.xlu0 %v4018_v12  ;;  %v4027_v22 = vmax.f32 %v10422_v36, %v10429_v54  ;;  %v10436_v31 = vadd.f32 %v3934_v19, %v12457_v33  ;;  %v6815_v52 = vpop.f32.mrb[39].mxu0 }
 0x510   : > { %4022 = vmax.xlane.f32.xlu1 %v4021_v5  ;;  %v10441_v49 = vadd.f32 %v3935_v45, %v12459_v11  ;;  %v10443_v14 = vadd.f32 %v6815_v52, %v6814_v38 }
 0x511   : > { %12458 = vst [vmem:[#allocation113_spill] sm:$0xff] %v10436_v31 }
 0x512   : > { %12460 = vst [vmem:[#allocation51_spill] sm:$0xff] %v10441_v49  ;;  %v4030_v27 = vmax.f32 %v10436_v31, %v10441_v49  ;;  %v10580_v49 = vld [vmem:[#allocation2 + $0x1b8] sm:$0xff]  ;;  %v7030_v31 = vld [vmem:[%s11826_s3 + $0x1a8] sm:$0xff]  }
 0x513   : > { %4025 = vmax.xlane.f32.xlu0 %v4024_v18  ;;  %12469 = vst [vmem:[#allocation86_spill] sm:$0xff] %v10580_v49 }
 0x514   : > { %4028 = vmax.xlane.f32.xlu1 %v4027_v22  ;;  %v6817_v35 = vpop.f32.mrb[40].mxu0 }
 0x515   : > { %v6818_v12 = vpop.f32.mrb[41].mxu0 }
 0x516   : > { %v10447_v5 = vadd.f32 %v6818_v12, %v6817_v35  ;;  %v6820_v19 = vpop.f32.mrb[42].mxu0 }
 0x517   : > { %4031 = vmax.xlane.f32.xlu0 %v4030_v27  ;;  %v6821_v28 = vpop.f32.mrb[43].mxu0 }
 0x518   : > { %v10449_v40 = vadd.f32 %v6821_v28, %v6820_v19 }
 0x51d   : > { %v6823_v3 = vpop.f32.mrb[44].mxu0 }
 0x51e   : > { %v6824_v45 = vpop.f32.mrb[45].mxu0 }
 0x51f   : > { %v10451_v33 = vadd.f32 %v6824_v45, %v6823_v3  ;;  %v6826_v38 = vpop.f32.mrb[46].mxu0 }
 0x520   : > { %v6827_v11 = vpop.f32.mrb[47].mxu0 }
 0x521   : > { %v10453_v18 = vadd.f32 %v6827_v11, %v6826_v38 }
 0x525   : > { %3379 = vperm.xlu1 %6969, %v10179_v25   ;;  %v6829_v22 = vpop.f32.mrb[48].mxu0 }
 0x526   : > { %v6830_v52 = vpop.f32.mrb[49].mxu0 }
 0x527   : > { %v10457_v27 = vadd.f32 %v6830_v52, %v6829_v22  ;;  %v6832_v35 = vpop.f32.mrb[50].mxu0 }
 0x528   : > { %v6833_v12 = vpop.f32.mrb[51].mxu0 }
 0x529   : > { %3384 = vperm.xlu1 %6969, %v10188_v34   ;;  %v10459_v19 = vadd.f32 %v6833_v12, %v6832_v35 }
 0x52d   : > { %3394 = vperm.xlu1 %6969, %v10199_v50   ;;  %3374 = vperm.xlu0 %6970, %v10170_v47   ;;  %v6835_v28 = vpop.f32.mrb[52].mxu0 }
 0x52e   : > { %v6836_v3 = vpop.f32.mrb[53].mxu0 }
 0x52f   : > { %v10464_v45 = vadd.f32 %v6836_v3, %v6835_v28  ;;  %v6838_v25 = vpop.f32.mrb[54].mxu0 }
 0x530   : > { %v6839_v34 = vpop.f32.mrb[55].mxu0 }
 0x531   : > { %3404 = vperm.xlu1 %6969, %v10216_v0   ;;  %3389 = vperm.xlu0 %6970, %v10186_v15   ;;  %v10467_v38 = vadd.f32 %v6839_v34, %v6838_v25  ;;  %v10510_v25 = vld [vmem:[#allocation2 + $0x190] sm:$0xff]  ;;  %v7029_v34 = vld [vmem:[%s11826_s3 + $0x1e8] sm:$0xff]  }
 0x535   : > { %3414 = vperm.xlu1 %6969, %v10235_v9   ;;  %3399 = vperm.xlu0 %6970, %v10205_v42   ;;  %v6841_v11 = vpop.f32.mrb[56].mxu0 }
 0x536   : > { %v6842_v50 = vpop.f32.mrb[57].mxu0 }
 0x537   : > { %v10472_v47 = vadd.f32 %v6842_v50, %v6841_v11  ;;  %v6844_v22 = vpop.f32.mrb[58].mxu0  ;;  %v10517_v11 = vld [vmem:[#allocation2 + $0x188] sm:$0xff] }
 0x538   : > { %v6845_v0 = vpop.f32.mrb[59].mxu0  ;;  %12461 = vst [vmem:[#allocation40_spill] sm:$0xff] %v10517_v11 }
 0x539   : > { %3424 = vperm.xlu1 %6969, %v10241_v24   ;;  %3409 = vperm.xlu0 %6970, %v10225_v44   ;;  %v10475_v52 = vadd.f32 %v6845_v0, %v6844_v22  ;;  %v7019_v44 = vld [vmem:[%s11826_s3 + $0x1c0] sm:$0xff]  }
 0x53a   : > { %6853 = vmatprep.subr.bf16.mxu1 %v7019_v44  ;;  %v7025_v44 = vld [vmem:[%s11826_s3 + $0x1d8] sm:$0xff]  }
 0x53d   : > { %3434 = vperm.xlu1 %6969, %v10248_v61   ;;  %3419 = vperm.xlu0 %6970, %v10238_v20   ;;  %v6847_v15 = vpop.f32.mrb[60].mxu0  ;;  %v7020_v20 = vld [vmem:[%s11826_s3 + $0x180] sm:$0xff]   ;;  %v7021_v61 = vld [vmem:[%s11826_s3 + $0x1c8] sm:$0xff]  }
 0x53e   : > { %v6848_v9 = vpop.f32.mrb[61].mxu0  ;;  %6854 = vmatpush3.bf16.msra.mxu1 %v7020_v20  ;;  %v7026_v20 = vld [vmem:[%s11826_s3 + $0x198] sm:$0xff]  }
 0x53f   : > { %v10480_v42 = vadd.f32 %v6848_v9, %v6847_v15  ;;  %v6850_v35 = vpop.f32.mrb[62].mxu0  ;;  %6855 = vmatprep.subr.bf16.mxu1 %v7021_v61  ;;  %v10522_v15 = vld [vmem:[#allocation2 + $0x198] sm:$0xff]  ;;  %v10558_v61 = vld [vmem:[#allocation2 + $0x1a8] sm:$0xff] }
 0x540   : > { %v6851_v24 = vpop.f32.mrb[63].mxu0  ;;  %12466 = vst [vmem:[#allocation46_spill] sm:$0xff] %v10558_v61 }
 0x541   : > { %3444 = vperm.xlu1 %6969, %v10258_v41   ;;  %3429 = vperm.xlu0 %6970, %v10246_v23   ;;  %v10483_v12 = vadd.f32 %v6851_v24, %v6850_v35  ;;  %v7022_v23 = vld [vmem:[%s11826_s3 + $0x188] sm:$0xff]   ;;  %v7024_v41 = vld [vmem:[%s11826_s3 + $0x190] sm:$0xff]  }
 0x542   : > { %6856 = vmatpush3.bf16.msra.mxu1 %v7022_v23  ;;  %v10543_v23 = vld [vmem:[#allocation2 + $0x1a0] sm:$0xff] }
 0x543   : > { %12463 = vst [vmem:[#allocation54_spill] sm:$0xff] %v10543_v23 }
 0x545   : > { %3439 = vperm.xlu0 %6970, %v10254_v17   ;;  %v7023_v17 = vld [vmem:[%s11826_s3 + $0x1d0] sm:$0xff]  }
 0x546   : > { %6857 = vmatprep.subr.bf16.mxu1 %v7023_v17 }
 0x547   : > { %6858 = vmatpush3.bf16.msra.mxu1 %v7024_v41 }
 0x548   : > { %6859 = vmatprep.subr.bf16.mxu1 %v7025_v44  ;;  %v7027_v44 = vld [vmem:[%s11826_s3 + $0x1e0] sm:$0xff]  }
 0x549   : > { %3449 = vperm.xlu0 %6970, %v10264_v2   ;;  %v10505_v2 = vld [vmem:[#allocation2 + $0x180] sm:$0xff] }
 0x54b   : > { %6860 = vmatpush3.bf16.msra.mxu1 %v7026_v20  ;;  %v7028_v20 = vld [vmem:[%s11826_s3 + $0x1a0] sm:$0xff]  }
 0x54c   : > { %6861 = vmatprep.subr.bf16.mxu1 %v7027_v44  ;;  %v10593_v44 = vld [vmem:[#allocation2 + $0x1c0] sm:$0xff] }
 0x54d   : > { %12470 = vst [vmem:[#allocation53_spill] sm:$0xff] %v10593_v44 }
 0x54f   : > { %6862 = vmatpush3.bf16.msra.mxu1 %v7028_v20 }
 0x550   : > { %6863 = vmatprep.subr.bf16.mxu1 %v7029_v34  ;;  %v7033_v34 = vld [vmem:[%s11826_s3 + $0x1f8] sm:$0xff]  }
 0x553   : > { %6864 = vmatpush3.bf16.msra.mxu1 %v7030_v31 }
 0x580   : > { %v3987_v28 = vpop.xlane.xlu0 %3986 }
 0x581   : > { %v10508_v3 = vmax.f32 %v10505_v2, %v3987_v28 }
 0x583   : > { %4773 = vst.msk [vmem:[#allocation2 + $0x180] sm:$0xff] %vm303_vm0, %v10508_v3  ;;  %4099 = vperm.xlu1 %6969, %v10508_v3  }
 0x584   : > { %v3993_v50 = vpop.xlane.xlu0 %3992 }
 0x585   : > { %v10520_v22 = vmax.f32 %v10510_v25, %v3993_v50 }
 0x586   : > { %v3990_v0 = vpop.xlane.xlu1 %3989 }
 0x587   : > { %v10525_v9 = vmax.f32 %v10517_v11, %v3990_v0  ;;  %4775 = vst.msk [vmem:[#allocation2 + $0x190] sm:$0xff] %vm303_vm0, %v10520_v22  ;;  %4109 = vperm.xlu1 %6969, %v10520_v22   ;;  %v10556_v0 = vld [vmem:[#allocation2 + $0x1b0] sm:$0xff] }
 0x588   : > { %v3996_v24 = vpop.xlane.xlu0 %3995  ;;  %12465 = vst [vmem:[#allocation31_spill] sm:$0xff] %v10556_v0 }
 0x589   : > { %12462 = vst [vmem:[#allocation45_spill] sm:$0xff] %v10525_v9  ;;  %4774 = vst.msk [vmem:[#allocation2 + $0x188] sm:$0xff] %vm303_vm0, %v10525_v9  ;;  %4104 = vperm.xlu0 %6970, %v10525_v9   ;;  %v10546_v17 = vmax.f32 %v10522_v15, %v3996_v24  ;;  %v10614_v9 = vld [vmem:[#allocation2 + $0x1c8] sm:$0xff] }
 0x58a   : > { %12474 = vst [vmem:[#allocation85_spill] sm:$0xff] %v10614_v9 }
 0x58b   : > { %v3999_v41 = vpop.xlane.xlu1 %3998  ;;  %4776 = vst.msk [vmem:[#allocation2 + $0x198] sm:$0xff] %vm303_vm0, %v10546_v17  ;;  %4114 = vperm.xlu1 %6969, %v10546_v17  }
 0x58c   : > { %v10554_v50 = vmax.f32 %v10543_v23, %v3999_v41 }
 0x58e   : > { %12464 = vst [vmem:[#allocation56_spill] sm:$0xff] %v10554_v50  ;;  %4777 = vst.msk [vmem:[#allocation2 + $0x1a0] sm:$0xff] %vm303_vm0, %v10554_v50 }
 0x58f   : > { %v4005_v41 = vpop.xlane.xlu1 %4004  ;;  %v4002_v28 = vpop.xlane.xlu0 %4001  ;;  %4119 = vperm.xlu1 %6969, %v10554_v50   ;;  %v7031_v50 = vld [vmem:[%s11826_s3 + $0x1f0] sm:$0xff]  }
 0x590   : > { %v10572_v35 = vmax.f32 %v10556_v0, %v4005_v41  ;;  %v10575_v24 = vmax.f32 %v10558_v61, %v4002_v28  ;;  %v7032_v28 = vld [vmem:[%s11826_s3 + $0x1b0] sm:$0xff]   ;;  %6865 = vmatprep.subr.bf16.mxu1 %v7031_v50  ;;  %v7034_v50 = vld [vmem:[%s11826_s3 + $0x1b8] sm:$0xff]   ;;  %v10655_v61 = vld [vmem:[#allocation2 + $0x1e8] sm:$0xff] }
 0x591   : > { %6866 = vmatpush3.bf16.msra.mxu1 %v7032_v28  ;;  %12482 = vst [vmem:[#allocation98_spill] sm:$0xff] %v10655_v61 }
 0x592   : > { %12467 = vst [vmem:[#allocation52_spill] sm:$0xff] %v10572_v35  ;;  %12468 = vst [vmem:[#allocation84_spill] sm:$0xff] %v10575_v24  ;;  %6867 = vmatprep.subr.bf16.mxu1 %v7033_v34 }
 0x593   : > { %4779 = vst.msk [vmem:[#allocation2 + $0x1b0] sm:$0xff] %vm303_vm0, %v10572_v35  ;;  %4778 = vst.msk [vmem:[#allocation2 + $0x1a8] sm:$0xff] %vm303_vm0, %v10575_v24  ;;  %v4008_v20 = vpop.xlane.xlu0 %4007  ;;  %4124 = vperm.xlu1 %6969, %v10575_v24  }
 0x594   : > { %v4011_v41 = vpop.xlane.xlu1 %4010  ;;  %v10597_v23 = vmax.f32 %v10580_v49, %v4008_v20  ;;  %v10612_v20 = vld [vmem:[#allocation2 + $0x1d0] sm:$0xff] }
 0x595   : > { %v10603_v0 = vmax.f32 %v10593_v44, %v4011_v41  ;;  %12473 = vst [vmem:[#allocation91_spill] sm:$0xff] %v10612_v20  ;;  %v10633_v41 = vld [vmem:[#allocation2 + $0x1e0] sm:$0xff]  ;;  %v10635_v44 = vld [vmem:[#allocation2 + $0x1d8] sm:$0xff]  ;;  %6868 = vmatpush3.bf16.msra.mxu1 %v7034_v50 }
 0x596   : > { %12471 = vst [vmem:[#allocation36_spill] sm:$0xff] %v10597_v23  ;;  %4780 = vst.msk [vmem:[#allocation2 + $0x1b8] sm:$0xff] %vm303_vm0, %v10597_v23 }
 0x597   : > { %12472 = vst [vmem:[#allocation88_spill] sm:$0xff] %v10603_v0  ;;  %4781 = vst.msk [vmem:[#allocation2 + $0x1c0] sm:$0xff] %vm303_vm0, %v10603_v0  ;;  %4129 = vperm.xlu1 %6969, %v10572_v35  }
 0x598   : > { %v4017_v31 = vpop.xlane.xlu1 %4016  ;;  %v4014_v11 = vpop.xlane.xlu0 %4013  ;;  %12477 = vst [vmem:[#allocation55_spill] sm:$0xff] %v10633_v41  ;;  %12478 = vst [vmem:[#allocation93_spill] sm:$0xff] %v10635_v44 }
 0x599   : > { %v10625_v49 = vmax.f32 %v10612_v20, %v4017_v31  ;;  %v10628_v24 = vmax.f32 %v10614_v9, %v4014_v11  ;;  %v10653_v20 = vld [vmem:[#allocation2 + $0x1f0] sm:$0xff]  ;;  %v10673_v9 = vld [vmem:[#allocation2 + $0x1f8] sm:$0xff] }
 0x59a   : > { %12481 = vst [vmem:[#allocation92_spill] sm:$0xff] %v10653_v20  ;;  %12485 = vst [vmem:[#allocation97_spill] sm:$0xff] %v10673_v9 }
 0x59b   : > { %12475 = vst [vmem:[#allocation87_spill] sm:$0xff] %v10625_v49  ;;  %12476 = vst [vmem:[#allocation37_spill] sm:$0xff] %v10628_v24  ;;  %4149 = vperm.xlu0 %6970, %v10625_v49   ;;  %4134 = vperm.xlu1 %6969, %v10597_v23  }
 0x59c   : > { %4783 = vst.msk [vmem:[#allocation2 + $0x1d0] sm:$0xff] %vm303_vm0, %v10625_v49  ;;  %4782 = vst.msk [vmem:[#allocation2 + $0x1c8] sm:$0xff] %vm303_vm0, %v10628_v24  ;;  %v4020_v31 = vpop.xlane.xlu0 %4019  ;;  %v3358_v49 = vld [vmem:[#allocation4 + $0x110] sm:$0xff] }
 0x59d   : > { %v4023_v28 = vpop.xlane.xlu1 %4022  ;;  %v10651_v35 = vmax.f32 %v10635_v44, %v4020_v31 }
 0x59e   : > { %v10648_v34 = vmax.f32 %v10633_v41, %v4023_v28  ;;  %v3357_v41 = vld [vmem:[#allocation4 + $0x108] sm:$0xff] }
 0x59f   : > { %12480 = vst [vmem:[#allocation90_spill] sm:$0xff] %v10651_v35  ;;  %4784 = vst.msk [vmem:[#allocation2 + $0x1d8] sm:$0xff] %vm303_vm0, %v10651_v35  ;;  %4139 = vperm.xlu1 %6969, %v10603_v0  }
 0x5a0   : > { %12479 = vst [vmem:[#allocation96_spill] sm:$0xff] %v10648_v34  ;;  %4785 = vst.msk [vmem:[#allocation2 + $0x1e0] sm:$0xff] %vm303_vm0, %v10648_v34  ;;  %4159 = vperm.xlu0 %6970, %v10648_v34   ;;  %v4026_v28 = vpop.xlane.xlu0 %4025 }
 0x5a1   : > { %v4029_v50 = vpop.xlane.xlu1 %4028  ;;  %v10671_v11 = vmax.f32 %v10655_v61, %v4026_v28  ;;  %v3360_v61 = vld [vmem:[#allocation4 + $0x120] sm:$0xff] }
 0x5a2   : > { %v10668_v31 = vmax.f32 %v10653_v20, %v4029_v50 }
 0x5a3   : > { %12484 = vst [vmem:[#allocation95_spill] sm:$0xff] %v10671_v11  ;;  %4786 = vst.msk [vmem:[#allocation2 + $0x1e8] sm:$0xff] %vm303_vm0, %v10671_v11  ;;  %4144 = vperm.xlu1 %6969, %v10628_v24   ;;  %v3356_v24 = vld [vmem:[#allocation4 + $0x100] sm:$0xff] }
 0x5a4   : > { %12483 = vst [vmem:[#allocation101_spill] sm:$0xff] %v10668_v31  ;;  %4787 = vst.msk [vmem:[#allocation2 + $0x1f0] sm:$0xff] %vm303_vm0, %v10668_v31  ;;  %4169 = vperm.xlu0 %6970, %v10668_v31   ;;  %v4032_v28 = vpop.xlane.xlu0 %4031 }
 0x5a5   : > { %v3380_v50 = vpop.permute.xlu1 %3379  ;;  %v10686_v44 = vmax.f32 %v10673_v9, %v4032_v28  ;;  %v3362_v28 = vld [vmem:[#allocation4 + $0x130] sm:$0xff]  ;;  %v3359_v9 = vld [vmem:[#allocation4 + $0x118] sm:$0xff] }
 0x5a6   : > { %v3453_v0 = vmul.f32 %v3380_v50, %v3357_v41 }
 0x5a7   : > { %12486 = vst [vmem:[#allocation60_spill] sm:$0xff] %v10686_v44  ;;  %4788 = vst.msk [vmem:[#allocation2 + $0x1f8] sm:$0xff] %vm303_vm0, %v10686_v44  ;;  %4154 = vperm.xlu1 %6969, %v10651_v35  }
 0x5a8   : > { %v3711_v20 = vadd.f32 %v10401_v32, %v3453_v0 }
 0x5a9   : > { %v3385_v34 = vpop.permute.xlu1 %3384 }
 0x5aa   : > { %3727 = vst.msk [vmem:[#allocation4 + $0x108] sm:$0xff] %vm432_vm1, %v3711_v20  ;;  %v3454_v31 = vmul.f32 %v3385_v34, %v3358_v49 }
 0x5ab   : > { %4164 = vperm.xlu1 %6969, %v10671_v11   ;;  %v3361_v11 = vld [vmem:[#allocation4 + $0x128] sm:$0xff] }
 0x5ac   : > { %v3712_v23 = vadd.f32 %v10438_v46, %v3454_v31  ;;  %v3375_v50 = vpop.permute.xlu0 %3374  ;;  %v3364_v31 = vld [vmem:[#allocation4 + $0x140] sm:$0xff] }
 0x5ad   : > { %v3395_v41 = vpop.permute.xlu1 %3394  ;;  %v3452_v0 = vmul.f32 %v3375_v50, %v3356_v24  ;;  %v3366_v50 = vld [vmem:[#allocation4 + $0x150] sm:$0xff] }
 0x5ae   : > { %3728 = vst.msk [vmem:[#allocation4 + $0x110] sm:$0xff] %vm432_vm1, %v3712_v23  ;;  %v3456_v32 = vmul.f32 %v3395_v41, %v3360_v61 }
 0x5af   : > { %v3710_v44 = vadd.f32 %v10393_v51, %v3452_v0 }
 0x5b0   : > { %v3714_v35 = vadd.f32 %v10447_v5, %v3456_v32  ;;  %v3390_v49 = vpop.permute.xlu0 %3389 }
 0x5b1   : > { %v3405_v20 = vpop.permute.xlu1 %3404  ;;  %3726 = vst.msk [vmem:[#allocation4 + $0x100] sm:$0xff] %vm432_vm1, %v3710_v44  ;;  %v3455_v34 = vmul.f32 %v3390_v49, %v3359_v9 }
 0x5b2   : > { %3730 = vst.msk [vmem:[#allocation4 + $0x120] sm:$0xff] %vm432_vm1, %v3714_v35  ;;  %v3458_v46 = vmul.f32 %v3405_v20, %v3362_v28  ;;  %v3363_v35 = vld [vmem:[#allocation4 + $0x138] sm:$0xff]  ;;  %v3368_v28 = vld [vmem:[#allocation4 + $0x160] sm:$0xff]  ;;  %v3365_v20 = vld [vmem:[#allocation4 + $0x148] sm:$0xff] }
 0x5b3   : > { %v3713_v61 = vadd.f32 %v10443_v14, %v3455_v34 }
 0x5b4   : > { %v3716_v23 = vadd.f32 %v10451_v33, %v3458_v46  ;;  %v3400_v41 = vpop.permute.xlu0 %3399 }
 0x5b5   : > { %v3415_v24 = vpop.permute.xlu1 %3414  ;;  %3729 = vst.msk [vmem:[#allocation4 + $0x118] sm:$0xff] %vm432_vm1, %v3713_v61  ;;  %v3457_v5 = vmul.f32 %v3400_v41, %v3361_v11 }
 0x5b6   : > { %3732 = vst.msk [vmem:[#allocation4 + $0x130] sm:$0xff] %vm432_vm1, %v3716_v23  ;;  %v3460_v51 = vmul.f32 %v3415_v24, %v3364_v31  ;;  %v3370_v31 = vld [vmem:[#allocation4 + $0x170] sm:$0xff]  ;;  %v3367_v23 = vld [vmem:[#allocation4 + $0x158] sm:$0xff] }
 0x5b7   : > { %v3715_v9 = vadd.f32 %v10449_v40, %v3457_v5  ;;  %v3369_v5 = vld [vmem:[#allocation4 + $0x168] sm:$0xff] }
 0x5b8   : > { %v3718_v44 = vadd.f32 %v10457_v27, %v3460_v51  ;;  %v3410_v0 = vpop.permute.xlu0 %3409 }
 0x5b9   : > { %v3425_v32 = vpop.permute.xlu1 %3424  ;;  %3731 = vst.msk [vmem:[#allocation4 + $0x128] sm:$0xff] %vm432_vm1, %v3715_v9  ;;  %v3459_v33 = vmul.f32 %v3410_v0, %v3363_v35 }
 0x5ba   : > { %3734 = vst.msk [vmem:[#allocation4 + $0x140] sm:$0xff] %vm432_vm1, %v3718_v44  ;;  %v3462_v14 = vmul.f32 %v3425_v32, %v3366_v50 }
 0x5bb   : > { %v3717_v11 = vadd.f32 %v10453_v18, %v3459_v33 }
 0x5bc   : > { %v3720_v49 = vadd.f32 %v10464_v45, %v3462_v14  ;;  %v3420_v34 = vpop.permute.xlu0 %3419 }
 0x5bd   : > { %v3435_v46 = vpop.permute.xlu1 %3434  ;;  %3733 = vst.msk [vmem:[#allocation4 + $0x138] sm:$0xff] %vm432_vm1, %v3717_v11  ;;  %v3461_v27 = vmul.f32 %v3420_v34, %v3365_v20 }
 0x5be   : > { %3736 = vst.msk [vmem:[#allocation4 + $0x150] sm:$0xff] %vm432_vm1, %v3720_v49  ;;  %v3464_v40 = vmul.f32 %v3435_v46, %v3368_v28 }
 0x5bf   : > { %v3719_v24 = vadd.f32 %v10459_v19, %v3461_v27  ;;  %v3371_v19 = vld [vmem:[#allocation4 + $0x178] sm:$0xff] }
 0x5c0   : > { %v3722_v61 = vadd.f32 %v10472_v47, %v3464_v40  ;;  %v3430_v51 = vpop.permute.xlu0 %3429 }
 0x5c1   : > { %v3445_v41 = vpop.permute.xlu1 %3444  ;;  %3735 = vst.msk [vmem:[#allocation4 + $0x148] sm:$0xff] %vm432_vm1, %v3719_v24  ;;  %v3463_v45 = vmul.f32 %v3430_v51, %v3367_v23 }
 0x5c2   : > { %3738 = vst.msk [vmem:[#allocation4 + $0x160] sm:$0xff] %vm432_vm1, %v3722_v61  ;;  %v3466_v18 = vmul.f32 %v3445_v41, %v3370_v31 }
 0x5c3   : > { %v3721_v35 = vadd.f32 %v10467_v38, %v3463_v45 }
 0x5c4   : > { %v3724_v50 = vadd.f32 %v10480_v42, %v3466_v18  ;;  %v3440_v44 = vpop.permute.xlu0 %3439 }
 0x5c5   : > { %3737 = vst.msk [vmem:[#allocation4 + $0x158] sm:$0xff] %vm432_vm1, %v3721_v35  ;;  %v3465_v47 = vmul.f32 %v3440_v44, %v3369_v5 }
 0x5c6   : > { %3740 = vst.msk [vmem:[#allocation4 + $0x170] sm:$0xff] %vm432_vm1, %v3724_v50 }
 0x5c7   : > { %v3723_v9 = vadd.f32 %v10475_v52, %v3465_v47 }
 0x5c8   : > { %v3450_v32 = vpop.permute.xlu0 %3449 }
 0x5c9   : > { %3739 = vst.msk [vmem:[#allocation4 + $0x168] sm:$0xff] %vm432_vm1, %v3723_v9  ;;  %v3467_v0 = vmul.f32 %v3450_v32, %v3371_v19 }
 0x5cb   : > { %v3725_v14 = vadd.f32 %v10483_v12, %v3467_v0 }
 0x5cd   : > { %3741 = vst.msk [vmem:[#allocation4 + $0x178] sm:$0xff] %vm432_vm1, %v3725_v14 }
 0x602   : > { %v4100_v42 = vpop.permute.xlu1 %4099 }
 0x603   : > { %v4177_v38 = vsub.f32 %v10286_v21, %v4100_v42  ;;  %v4178_v33 = vsub.f32 %v10289_v4, %v4100_v42 }
 0x605   : > { %v4209_v28 = vmul.f32 1.442695, %v4177_v38  ;;  %v4211_v20 = vmul.f32 1.442695, %v4178_v33 }
 0x606   : > { %v4110_v49 = vpop.permute.xlu1 %4109 }
 0x607   : > { %7323 = vpow2.f32 %v4209_v28  ;;  %v4181_v11 = vsub.f32 %v10298_v39, %v4110_v49  ;;  %v4182_v52 = vsub.f32 %v10301_v59, %v4110_v49 }
 0x608   : > { %7325 = vpow2.f32 %v4211_v20  ;;  %v4105_v46 = vpop.permute.xlu0 %4104 }
 0x609   : > { %v4217_v34 = vmul.f32 1.442695, %v4181_v11  ;;  %v4219_v40 = vmul.f32 1.442695, %v4182_v52  ;;  %v4179_v12 = vsub.f32 %v10304_v56, %v4105_v46  ;;  %v4180_v27 = vsub.f32 %v10313_v62, %v4105_v46  ;;  %v12487_v46 = vld [vmem:[#allocation99_spill] sm:$0xff] }
 0x60a   : > { %v4115_v31 = vpop.permute.xlu1 %4114 }
 0x60b   : > { %7327 = vpow2.f32 %v4217_v34  ;;  %v4213_v21 = vmul.f32 1.442695, %v4179_v12  ;;  %v4215_v4 = vmul.f32 1.442695, %v4180_v27  ;;  %v4183_v23 = vsub.f32 %v10316_v58, %v4115_v31 }
 0x60c   : > { %7329 = vpow2.f32 %v4219_v40  ;;  %v4184_v61 = vsub.f32 %v10319_v55, %v4115_v31 }
 0x60d   : > { %7331 = vpow2.f32 %v4213_v21  ;;  %v4221_v39 = vmul.f32 1.442695, %v4183_v23 }
 0x60e   : > { %7333 = vpow2.f32 %v4215_v4  ;;  %v4223_v59 = vmul.f32 1.442695, %v4184_v61  ;;  %v4120_v24 = vpop.permute.xlu1 %4119 }
 0x60f   : > { %7335 = vpow2.f32 %v4221_v39  ;;  %v4185_v41 = vsub.f32 %v10330_v43, %v4120_v24  ;;  %v4186_v56 = vsub.f32 %v10333_v8, %v4120_v24 }
 0x610   : > { %7337 = vpow2.f32 %v4223_v59 }
 0x611   : > { %v7324_v62 = vpop.eup %7323  ;;  %v4225_v51 = vmul.f32 1.442695, %v4185_v41  ;;  %v4227_v18 = vmul.f32 1.442695, %v4186_v56  ;;  %v12489_v41 = vld [vmem:[#allocation105_spill] sm:$0xff] }
 0x612   : > { %v7326_v45 = vpop.eup %7325  ;;  %v4125_v5 = vpop.permute.xlu1 %4124 }
 0x613   : > { %7339 = vpow2.f32 %v4225_v51  ;;  %v4187_v58 = vsub.f32 %v10336_v60, %v4125_v5  ;;  %v4188_v55 = vsub.f32 %v10345_v1, %v4125_v5  ;;  %v4306_v50 = vadd.f32 %v7326_v45, %v7324_v62 }
 0x614   : > { %7341 = vpow2.f32 %v4227_v18 }
 0x615   : > { %v10736_v35 = vpop.eup %7327  ;;  %v4229_v44 = vmul.f32 1.442695, %v4187_v58  ;;  %v4231_v47 = vmul.f32 1.442695, %v4188_v55  ;;  %4307 = vadd.xlane.f32.xlu0 %v4306_v50 }
 0x616   : > { %v7330_v43 = vpop.eup %7329  ;;  %v4130_v8 = vpop.permute.xlu1 %4129 }
 0x617   : > { %v7332_v19 = vpop.eup %7331  ;;  %7343 = vpow2.f32 %v4229_v44  ;;  %v4189_v9 = vsub.f32 %v10348_v48, %v4130_v8  ;;  %v4190_v32 = vsub.f32 %v10351_v6, %v4130_v8  ;;  %v4312_v0 = vadd.f32 %v7330_v43, %v10736_v35 }
 0x618   : > { %v7334_v60 = vpop.eup %7333  ;;  %7345 = vpow2.f32 %v4231_v47  ;;  %v4499_v1 = vpack.c.bf16 %v7332_v19, %v7324_v62 }
 0x619   : > { %v7336_v14 = vpop.eup %7335  ;;  %v4233_v42 = vmul.f32 1.442695, %v4189_v9  ;;  %v4235_v38 = vmul.f32 1.442695, %v4190_v32  ;;  %4313 = vadd.xlane.f32.xlu0 %v4312_v0  ;;  %v4500_v33 = vpack.c.bf16 %v7334_v60, %v7326_v45  ;;  %v4309_v28 = vadd.f32 %v7334_v60, %v7332_v19 }
 0x61a   : > { %v7338_v20 = vpop.eup %7337  ;;  %v4150_v49 = vpop.permute.xlu0 %4149  ;;  %v4501_v58 = vpack.c.bf16 %v7336_v14, %v10736_v35 }
 0x61b   : > { %v4135_v11 = vpop.permute.xlu1 %4134  ;;  %7347 = vpow2.f32 %v4233_v42  ;;  %v4197_v52 = vsub.f32 %v10388_v53, %v4150_v49  ;;  %v4198_v48 = vsub.f32 %v10391_v30, %v4150_v49  ;;  %4676 = vmatprep.mubr.bf16.mxu1 %v4500_v33  ;;  %4310 = vadd.xlane.f32.xlu1 %v4309_v28  ;;  %v4315_v40 = vadd.f32 %v7338_v20, %v7336_v14 }
 0x61c   : > { %v4191_v6 = vsub.f32 %v10362_v37, %v4135_v11  ;;  %7349 = vpow2.f32 %v4235_v38  ;;  %4677 = vmatmul.mubr.bf16.vlgmr.msra.gmra.mrb[32].mxu1 %v4499_v1  ;;  %v4192_v34 = vsub.f32 %v12487_v46, %v4135_v11  ;;  %v4502_v12 = vpack.c.bf16 %v7338_v20, %v7330_v43  ;;  %v12488_v37 = vld [vmem:[#allocation112_spill] sm:$0xff] }
 0x61d   : > { %v10745_v27 = vpop.eup %7339  ;;  %v4249_v31 = vmul.f32 1.442695, %v4197_v52  ;;  %4316 = vadd.xlane.f32.xlu0 %v4315_v40  ;;  %v4251_v30 = vmul.f32 1.442695, %v4198_v48 }
 0x61e   : > { %v4237_v21 = vmul.f32 1.442695, %v4191_v6  ;;  %v7342_v4 = vpop.eup %7341  ;;  %v4239_v23 = vmul.f32 1.442695, %v4192_v34  ;;  %4684 = vmatprep.mubr.bf16.mxu1 %v4502_v12 }
 0x61f   : > { %v4160_v61 = vpop.permute.xlu0 %4159  ;;  %v4140_v53 = vpop.permute.xlu1 %4139  ;;  %7351 = vpow2.f32 %v4249_v31  ;;  %v4318_v62 = vadd.f32 %v7342_v4, %v10745_v27 }
 0x620   : > { %v4201_v39 = vsub.f32 %v10410_v16, %v4160_v61  ;;  %v4193_v59 = vsub.f32 %v12488_v37, %v4140_v53  ;;  %v4202_v24 = vsub.f32 %v10413_v7, %v4160_v61  ;;  %v4194_v56 = vsub.f32 %v12489_v41, %v4140_v53 }
 0x621   : > { %v7344_v51 = vpop.eup %7343  ;;  %7353 = vpow2.f32 %v4237_v21  ;;  %4319 = vadd.xlane.f32.xlu1 %v4318_v62 }
 0x622   : > { %v4241_v18 = vmul.f32 1.442695, %v4193_v59  ;;  %v7346_v45 = vpop.eup %7345  ;;  %7355 = vpow2.f32 %v4239_v23  ;;  %v4243_v5 = vmul.f32 1.442695, %v4194_v56  ;;  %v4257_v16 = vmul.f32 1.442695, %v4201_v39 }
 0x623   : > { %v4145_v55 = vpop.permute.xlu1 %4144  ;;  %7357 = vpow2.f32 %v4251_v30  ;;  %v4170_v50 = vpop.permute.xlu0 %4169  ;;  %v4259_v7 = vmul.f32 1.442695, %v4202_v24  ;;  %v4321_v43 = vadd.f32 %v7346_v45, %v7344_v51  ;;  %v4504_v8 = vpack.c.bf16 %v7346_v45, %v7342_v4 }
 0x624   : > { %v4195_v44 = vsub.f32 %v10382_v57, %v4145_v55  ;;  %4685 = vmatmul.mubr.bf16.gmra.mrb[36].mxu1 %v4501_v58  ;;  %v4196_v47 = vsub.f32 %v10385_v63, %v4145_v55  ;;  %7359 = vpow2.f32 %v4241_v18  ;;  %v4205_v0 = vsub.f32 %v10422_v36, %v4170_v50 }
 0x625   : > { %v7348_v19 = vpop.eup %7347  ;;  %7361 = vpow2.f32 %v4243_v5  ;;  %4322 = vadd.xlane.f32.xlu0 %v4321_v43  ;;  %4692 = vmatprep.mubr.bf16.mxu1 %v4504_v8  ;;  %v4206_v63 = vsub.f32 %v10429_v54, %v4170_v50  ;;  %v4503_v36 = vpack.c.bf16 %v7344_v51, %v10745_v27  ;;  %v12492_v43 = vsub.f32 %v10522_v15, %v10546_v17  ;;  %v12500_v15 = vld [vmem:[#allocation85_spill] sm:$0xff] }
 0x626   : > { %v4245_v9 = vmul.f32 1.442695, %v4195_v44  ;;  %v7350_v32 = vpop.eup %7349  ;;  %v4247_v35 = vmul.f32 1.442695, %v4196_v47  ;;  %7363 = vpow2.f32 %v4257_v16  ;;  %v4265_v28 = vmul.f32 1.442695, %v4205_v0 }
 0x627   : > { %v4155_v60 = vpop.permute.xlu1 %4154  ;;  %v4324_v14 = vadd.f32 %v7350_v32, %v7348_v19  ;;  %7365 = vpow2.f32 %v4259_v7  ;;  %v4267_v52 = vmul.f32 1.442695, %v4206_v63  ;;  %v12490_v16 = vsub.f32 %v10505_v2, %v10508_v3  ;;  %v12501_v17 = vld [vmem:[#allocation37_spill] sm:$0xff] }
 0x628   : > { %v4199_v57 = vsub.f32 %v10404_v13, %v4155_v60  ;;  %v4200_v1 = vsub.f32 %v10407_v10, %v4155_v60  ;;  %7367 = vpow2.f32 %v4245_v9  ;;  %v12491_v44 = vsub.f32 %v10510_v25, %v10520_v22  ;;  %v12494_v9 = vld [vmem:[#allocation46_spill] sm:$0xff]  ;;  %v12498_v22 = vld [vmem:[#allocation36_spill] sm:$0xff] }
 0x629   : > { %4325 = vadd.xlane.f32.xlu1 %v4324_v14  ;;  %v7352_v33 = vpop.eup %7351  ;;  %7369 = vpow2.f32 %v4247_v35  ;;  %v4065_v50 = vmul.f32 1.442695, %v12490_v16  ;;  %v4071_v8 = vmul.f32 1.442695, %v12492_v43  ;;  %v12497_v25 = vld [vmem:[#allocation86_spill] sm:$0xff] }
 0x62a   : > { %v4253_v42 = vmul.f32 1.442695, %v4199_v57  ;;  %v4255_v38 = vmul.f32 1.442695, %v4200_v1  ;;  %v4069_v7 = vmul.f32 1.442695, %v12491_v44  ;;  %v12499_v35 = vsub.f32 %v12497_v25, %v12498_v22 }
 0x62b   : > { %v4165_v20 = vpop.permute.xlu1 %4164  ;;  %v7354_v49 = vpop.eup %7353  ;;  %v12502_v1 = vsub.f32 %v12500_v15, %v12501_v17  ;;  %v12513_v43 = vld [vmem:[#allocation54_spill] sm:$0xff] }
 0x62c   : > { %7371 = vpow2.f32 %v4253_v42  ;;  %v4203_v13 = vsub.f32 %v10416_v26, %v4165_v20  ;;  %v4204_v10 = vsub.f32 %v10419_v29, %v4165_v20  ;;  %v7356_v11 = vpop.eup %7355  ;;  %4693 = vmatmul.mubr.bf16.gmra.mrb[40].mxu1 %v4503_v36  ;;  %v4505_v31 = vpack.c.bf16 %v7354_v49, %v7348_v19  ;;  %v12493_v19 = vld [vmem:[#allocation60_spill] sm:$0xff]  ;;  %v12503_v42 = vld [vmem:[#allocation93_spill] sm:$0xff]  ;;  %v12506_v20 = vld [vmem:[#allocation98_spill] sm:$0xff] }
 0x62d   : > { %7373 = vpow2.f32 %v4255_v38  ;;  %v7358_v54 = vpop.eup %7357  ;;  %v4327_v46 = vadd.f32 %v7356_v11, %v7354_v49  ;;  %v4506_v34 = vpack.c.bf16 %v7356_v11, %v7350_v32  ;;  %v12495_v32 = vld [vmem:[#allocation84_spill] sm:$0xff]  ;;  %v4079_v60 = vmul.f32 1.442695, %v12499_v35  ;;  %v12504_v38 = vld [vmem:[#allocation90_spill] sm:$0xff]  ;;  %v12507_v49 = vld [vmem:[#allocation95_spill] sm:$0xff] }
 0x62e   : > { %v4261_v48 = vmul.f32 1.442695, %v4203_v13  ;;  %v4263_v6 = vmul.f32 1.442695, %v4204_v10  ;;  %7375 = vpow2.f32 %v4265_v28  ;;  %v7360_v40 = vpop.eup %7359  ;;  %v4336_v39 = vadd.f32 %v7358_v54, %v7352_v33  ;;  %v12509_v11 = vld [vmem:[#allocation97_spill] sm:$0xff]  ;;  %v4276_v35 = vld [vmem:[#allocation3 + $0x190] sm:$0xff] }
 0x62f   : > { %4328 = vadd.xlane.f32.xlu0 %v4327_v46  ;;  %4700 = vmatprep.mubr.bf16.mxu1 %v4506_v34  ;;  %v7362_v12 = vpop.eup %7361  ;;  %v12496_v0 = vsub.f32 %v12494_v9, %v12495_v32  ;;  %v4083_v14 = vmul.f32 1.442695, %v12502_v1  ;;  %v12508_v13 = vsub.f32 %v12506_v20, %v12507_v49  ;;  %v4809_v46 = vld [vmem:[#allocation3 + $0x8] sm:$0xff]  ;;  %v4274_v32 = vld [vmem:[#allocation3 + $0x180] sm:$0xff]  ;;  %v4967_v49 = vld [vmem:[#allocation3 + $0xf8] sm:$0xff] }
 0x630   : > { %7377 = vpow2.f32 %v4261_v48  ;;  %v7364_v27 = vpop.eup %7363  ;;  %v4330_v26 = vadd.f32 %v7362_v12, %v7360_v40  ;;  %v4965_v15 = vld [vmem:[#allocation3 + $0xe8] sm:$0xff] }
 0x631   : > { %7379 = vpow2.f32 %v4263_v6  ;;  %v7366_v29 = vpop.eup %7365  ;;  %v4075_v2 = vmul.f32 1.442695, %v12496_v0  ;;  %v4091_v10 = vmul.f32 1.442695, %v12508_v13  ;;  %v4963_v0 = vld [vmem:[#allocation3 + $0xd8] sm:$0xff] }
 0x632   : > { %7381 = vpow2.f32 %v4267_v52  ;;  %v7368_v21 = vpop.eup %7367  ;;  %4331 = vadd.xlane.f32.xlu1 %v4330_v26  ;;  %v4342_v56 = vadd.f32 %v7366_v29, %v7364_v27  ;;  %v4064_v52 = vsub.f32 %v12509_v11, %v12493_v19  ;;  %v4277_v11 = vld [vmem:[#allocation3 + $0x198] sm:$0xff] }
 0x633   : > { %v7370_v4 = vpop.eup %7369  ;;  %v4507_v62 = vpack.c.bf16 %v7368_v21, %v7360_v40  ;;  %7383 = vpow2.f32 %v4065_v50  ;;  %v4811_v40 = vld [vmem:[#allocation3 + $0x18] sm:$0xff] }
 0x634   : > { %4701 = vmatmul.mubr.bf16.gmra.mrb[44].mxu1 %v4505_v31  ;;  %v4333_v61 = vadd.f32 %v7370_v4, %v7368_v21  ;;  %v4508_v53 = vpack.c.bf16 %v7370_v4, %v7362_v12  ;;  %7385 = vpow2.f32 %v4069_v7  ;;  %v4095_v48 = vmul.f32 1.442695, %v4064_v52  ;;  %v4817_v21 = vld [vmem:[#allocation3 + $0x48] sm:$0xff] }
 0x635   : > { %7387 = vpow2.f32 %v4071_v8  ;;  %v4961_v7 = vld [vmem:[#allocation3 + $0xc8] sm:$0xff]  ;;  %v12514_v8 = vld [vmem:[#allocation56_spill] sm:$0xff] }
 0x636   : > { %v7372_v23 = vpop.eup %7371  ;;  %4334 = vadd.xlane.f32.xlu0 %v4333_v61  ;;  %4708 = vmatprep.mubr.bf16.mxu1 %v4508_v53  ;;  %7389 = vpow2.f32 %v4075_v2  ;;  %v4821_v53 = vld [vmem:[#allocation3 + $0x68] sm:$0xff] }
 0x637   : > { %v7374_v30 = vpop.eup %7373  ;;  %4337 = vadd.xlane.f32.xlu1 %v4336_v39  ;;  %v4509_v58 = vpack.c.bf16 %v7372_v23, %v7352_v33  ;;  %7391 = vpow2.f32 %v4079_v60  ;;  %v12505_v33 = vsub.f32 %v12503_v42, %v12504_v38  ;;  %v4823_v39 = vld [vmem:[#allocation3 + $0x78] sm:$0xff] }
 0x638   : > { %v4339_v37 = vadd.f32 %v7374_v30, %v7372_v23  ;;  %v10762_v59 = vpop.eup %7375  ;;  %v4510_v18 = vpack.c.bf16 %v7374_v30, %v7358_v54  ;;  %7393 = vpow2.f32 %v4083_v14  ;;  %v4819_v23 = vld [vmem:[#allocation3 + $0x58] sm:$0xff]  ;;  %v12516_v14 = vld [vmem:[#allocation31_spill] sm:$0xff] }
 0x639   : > { %v4087_v28 = vmul.f32 1.442695, %v12505_v33  ;;  %v12517_v42 = vld [vmem:[#allocation52_spill] sm:$0xff] }
 0x63a   : > { %v7378_v24 = vpop.eup %7377  ;;  %4340 = vadd.xlane.f32.xlu0 %v4339_v37  ;;  %v12518_v38 = vsub.f32 %v12516_v14, %v12517_v42 }
 0x63b   : > { %v7380_v41 = vpop.eup %7379  ;;  %4343 = vadd.xlane.f32.xlu1 %v4342_v56  ;;  %v4511_v47 = vpack.c.bf16 %v7378_v24, %v7364_v27  ;;  %7395 = vpow2.f32 %v4087_v28  ;;  %v4813_v27 = vld [vmem:[#allocation3 + $0x28] sm:$0xff]  ;;  %v4955_v56 = vld [vmem:[#allocation3 + $0x98] sm:$0xff] }
 0x63c   : > { %v10764_v51 = vpop.eup %7381  ;;  %v4345_v45 = vadd.f32 %v7380_v41, %v7378_v24  ;;  %4709 = vmatmul.mubr.bf16.gmra.mrb[48].mxu1 %v4507_v62  ;;  %v4512_v55 = vpack.c.bf16 %v7380_v41, %v7366_v29  ;;  %7397 = vpow2.f32 %v4091_v10  ;;  %v4815_v29 = vld [vmem:[#allocation3 + $0x38] sm:$0xff]  ;;  %v4953_v24 = vld [vmem:[#allocation3 + $0x88] sm:$0xff]  ;;  %v4077_v33 = vmul.f32 1.442695, %v12518_v38 }
 0x63d   : > { %4716 = vmatprep.mubr.bf16.mxu1 %v4510_v18  ;;  %v4348_v5 = vadd.f32 %v10764_v51, %v10762_v59  ;;  %v10781_v3 = vpop.eup %7383  ;;  %7399 = vpow2.f32 %v4095_v48  ;;  %v4957_v18 = vld [vmem:[#allocation3 + $0xa8] sm:$0xff] }
 0x63e   : > { %4346 = vadd.xlane.f32.xlu0 %v4345_v45  ;;  %v10787_v57 = vpop.eup %7385  ;;  %7401 = vrcp.f32 %v4809_v46  ;;  %v4290_v25 = vmul.f32 %v10781_v3, %v4274_v32  ;;  %v4275_v28 = vld [vmem:[#allocation3 + $0x188] sm:$0xff] }
 0x63f   : > { %4349 = vadd.xlane.f32.xlu1 %v4348_v5  ;;  %v10793_v63 = vpop.eup %7387  ;;  %7403 = vrcp.f32 %v4811_v40  ;;  %v4959_v5 = vld [vmem:[#allocation3 + $0xb8] sm:$0xff]  ;;  %v4292_v20 = vmul.f32 %v10787_v57, %v4276_v35 }
 0x640   : > { %v10799_v36 = vpop.eup %7389  ;;  %7405 = vrcp.f32 %v4813_v27  ;;  %v4293_v40 = vmul.f32 %v10793_v63, %v4277_v11 }
 0x641   : > { %v10807_v54 = vpop.eup %7391  ;;  %7407 = vrcp.f32 %v4815_v29 }
 0x642   : > { %v10810_v6 = vpop.eup %7393  ;;  %7409 = vrcp.f32 %v4817_v21 }
 0x643   : > { %7411 = vrcp.f32 %v4819_v23  ;;  %v5099_v23 = vld [vmem:[#allocation3 + $0x118] sm:$0xff] }
 0x644   : > { %4717 = vmatmul.mubr.bf16.gmra.mrb[52].mxu1 %v4509_v58  ;;  %7413 = vrcp.f32 %v4821_v53  ;;  %v12510_v58 = vld [vmem:[#allocation40_spill] sm:$0xff] }
 0x645   : > { %4724 = vmatprep.mubr.bf16.mxu1 %v4512_v55  ;;  %v10813_v34 = vpop.eup %7395  ;;  %7415 = vrcp.f32 %v4823_v39  ;;  %v12511_v55 = vld [vmem:[#allocation45_spill] sm:$0xff]  ;;  %v12520_v53 = vld [vmem:[#allocation88_spill] sm:$0xff] }
 0x646   : > { %v10816_v12 = vpop.eup %7397  ;;  %7417 = vrcp.f32 %v4953_v24  ;;  %v12512_v16 = vsub.f32 %v12510_v58, %v12511_v55  ;;  %v4279_v24 = vld [vmem:[#allocation3 + $0x1a8] sm:$0xff]  ;;  %v12522_v58 = vld [vmem:[#allocation91_spill] sm:$0xff] }
 0x647   : > { %v10819_v26 = vpop.eup %7399  ;;  %7419 = vrcp.f32 %v4955_v56  ;;  %v12523_v55 = vld [vmem:[#allocation87_spill] sm:$0xff] }
 0x648   : > { %v7402_v31 = vpop.eup %7401  ;;  %7421 = vrcp.f32 %v4957_v18  ;;  %v4067_v50 = vmul.f32 1.442695, %v12512_v16  ;;  %v4295_v18 = vmul.f32 %v10799_v36, %v4279_v24  ;;  %v12524_v16 = vsub.f32 %v12522_v58, %v12523_v55  ;;  %v4288_v58 = vld [vmem:[#allocation3 + $0x1f0] sm:$0xff] }
 0x649   : > { %v7404_v4 = vpop.eup %7403  ;;  %7423 = vrcp.f32 %v4959_v5  ;;  %v5101_v5 = vld [vmem:[#allocation3 + $0x128] sm:$0xff] }
 0x64a   : > { %v7406_v61 = vpop.eup %7405  ;;  %7425 = vpow2.f32 %v4067_v50  ;;  %v4085_v50 = vmul.f32 1.442695, %v12524_v16 }
 0x64b   : > { %v7408_v30 = vpop.eup %7407  ;;  %7427 = vrcp.f32 %v4961_v7 }
 0x64c   : > { %4725 = vmatmul.mubr.bf16.gmra.mrb[56].mxu1 %v4511_v47  ;;  %v7410_v37 = vpop.eup %7409 }
 0x64d   : > { %v7412_v41 = vpop.eup %7411 }
 0x64e   : > { %v7414_v62 = vpop.eup %7413 }
 0x64f   : > { %v7416_v45 = vpop.eup %7415 }
 0x650   : > { %4174 = vperm.xlu1 %6969, %v12493_v19   ;;  %v7418_v44 = vpop.eup %7417  ;;  %v12515_v19 = vsub.f32 %v12513_v43, %v12514_v8 }
 0x651   : > { %v7420_v47 = vpop.eup %7419 }
 0x652   : > { %v4073_v9 = vmul.f32 1.442695, %v12515_v19  ;;  %v7422_v2 = vpop.eup %7421  ;;  %v5103_v19 = vld [vmem:[#allocation3 + $0x138] sm:$0xff] }
 0x653   : > { %v7424_v60 = vpop.eup %7423 }
 0x654   : > { %4405 = vperm.xlu1 %6969, %v10781_v3   ;;  %7429 = vpow2.f32 %v4073_v9  ;;  %v10829_v1 = vpop.eup %7425  ;;  %v12525_v9 = vld [vmem:[#allocation55_spill] sm:$0xff] }
 0x655   : > { %7431 = vrcp.f32 %v4963_v0  ;;  %v4291_v13 = vmul.f32 %v10829_v1, %v4275_v28  ;;  %v7428_v52 = vpop.eup %7427 }
 0x656   : > { %7433 = vrcp.f32 %v4965_v15  ;;  %v12528_v15 = vld [vmem:[#allocation92_spill] sm:$0xff] }
 0x657   : > { %7435 = vpow2.f32 %v4077_v33 }
 0x658   : > { %4415 = vperm.xlu1 %6969, %v10787_v57   ;;  %7437 = vrcp.f32 %v4967_v49  ;;  %v5097_v57 = vld [vmem:[#allocation3 + $0x108] sm:$0xff]  ;;  %v5107_v49 = vld [vmem:[#allocation3 + $0x158] sm:$0xff] }
 0x659   : > { %7439 = vrcp.f32 %v5097_v57 }
 0x65a   : > { %7441 = vrcp.f32 %v5099_v23 }
 0x65c   : > { %4420 = vperm.xlu1 %6969, %v10793_v63  }
 0x65e   : > { %v10839_v27 = vpop.eup %7429 }
 0x65f   : > { %v7432_v21 = vpop.eup %7431 }
 0x660   : > { %4430 = vperm.xlu1 %6969, %v10799_v36   ;;  %v12526_v36 = vld [vmem:[#allocation96_spill] sm:$0xff] }
 0x661   : > { %v12527_v32 = vsub.f32 %v12525_v9, %v12526_v36 }
 0x663   : > { %v4089_v0 = vmul.f32 1.442695, %v12527_v32  ;;  %v12531_v32 = vld [vmem:[#allocation113_spill] sm:$0xff] }
 0x664   : > { %4440 = vperm.xlu1 %6969, %v10807_v54  }
 0x668   : > { %4450 = vperm.xlu1 %6969, %v10810_v6  }
 0x66c   : > { %4460 = vperm.xlu1 %6969, %v10813_v34  }
 0x670   : > { %4470 = vperm.xlu1 %6969, %v10816_v12  }
 0x674   : > { %4480 = vperm.xlu1 %6969, %v10819_v26  }
 0x678   : > { %4847 = vperm.xlu1 %6969, %v7402_v31   ;;  %v4278_v31 = vld [vmem:[#allocation3 + $0x1a0] sm:$0xff] }
 0x679   : > { %v4294_v63 = vmul.f32 %v10839_v27, %v4278_v31 }
 0x67c   : > { %4857 = vperm.xlu1 %6969, %v7404_v4  }
 0x680   : > { %4867 = vperm.xlu1 %6969, %v7406_v61   ;;  %v12519_v61 = vld [vmem:[#allocation53_spill] sm:$0xff] }
 0x684   : > { %4877 = vperm.xlu1 %6969, %v7408_v30   ;;  %v12521_v30 = vsub.f32 %v12519_v61, %v12520_v53 }
 0x686   : > { %v4081_v39 = vmul.f32 1.442695, %v12521_v30  ;;  %v4286_v30 = vld [vmem:[#allocation3 + $0x1e0] sm:$0xff] }
 0x688   : > { %4887 = vperm.xlu1 %6969, %v7410_v37   ;;  %7443 = vpow2.f32 %v4081_v39 }
 0x689   : > { %7445 = vrcp.f32 %v5101_v5 }
 0x68a   : > { %7447 = vpow2.f32 %v4085_v50 }
 0x68b   : > { %7449 = vrcp.f32 %v5103_v19 }
 0x68c   : > { %4897 = vperm.xlu1 %6969, %v7412_v41   ;;  %v7434_v41 = vpop.eup %7433  ;;  %7451 = vpow2.f32 %v4089_v0 }
 0x690   : > { %4907 = vperm.xlu1 %6969, %v7414_v62   ;;  %v10847_v62 = vpop.eup %7435 }
 0x691   : > { %v7438_v7 = vpop.eup %7437 }
 0x694   : > { %4917 = vperm.xlu1 %6969, %v7416_v45   ;;  %v4280_v45 = vld [vmem:[#allocation3 + $0x1b0] sm:$0xff] }
 0x695   : > { %v4296_v43 = vmul.f32 %v10847_v62, %v4280_v45 }
 0x698   : > { %4991 = vperm.xlu1 %6969, %v7418_v44  }
 0x69c   : > { %5001 = vperm.xlu1 %6969, %v7420_v47  }
 0x6a0   : > { %5011 = vperm.xlu1 %6969, %v7422_v2  }
 0x6a2   : > { %v4308_v22 = vpop.xlane.xlu0 %4307 }
 0x6a3   : > { %v4354_v17 = vadd.f32 %v4308_v22, %v4290_v25  ;;  %v7440_v25 = vpop.eup %7439  ;;  %v4281_v22 = vld [vmem:[#allocation3 + $0x1b8] sm:$0xff] }
 0x6a4   : > { %5021 = vperm.xlu1 %6969, %v7424_v60   ;;  %v7442_v35 = vpop.eup %7441  ;;  %v5105_v60 = vld [vmem:[#allocation3 + $0x148] sm:$0xff]  ;;  %v4297_v38 = vmul.f32 %v10807_v54, %v4281_v22  ;;  %v4284_v54 = vld [vmem:[#allocation3 + $0x1d0] sm:$0xff] }
 0x6a5   : > { %4370 = vst.msk [vmem:[#allocation3 + $0x180] sm:$0xff] %vm303_vm0, %v4354_v17  ;;  %v12529_v17 = vld [vmem:[#allocation101_spill] sm:$0xff]  ;;  %v10864_v33 = vpop.eup %7443  ;;  %7453 = vrcp.f32 %v5105_v60 }
 0x6a6   : > { %v4314_v3 = vpop.xlane.xlu0 %4313  ;;  %v12530_v14 = vsub.f32 %v12528_v15, %v12529_v17 }
 0x6a7   : > { %v4356_v10 = vadd.f32 %v4314_v3, %v4292_v20  ;;  %v4282_v20 = vld [vmem:[#allocation3 + $0x1c0] sm:$0xff] }
 0x6a8   : > { %v4311_v48 = vpop.xlane.xlu1 %4310  ;;  %5031 = vperm.xlu1 %6969, %v7428_v52   ;;  %v4093_v42 = vmul.f32 1.442695, %v12530_v14  ;;  %v4283_v52 = vld [vmem:[#allocation3 + $0x1c8] sm:$0xff] }
 0x6a9   : > { %v4355_v46 = vadd.f32 %v4311_v48, %v4291_v13  ;;  %4372 = vst.msk [vmem:[#allocation3 + $0x190] sm:$0xff] %vm303_vm0, %v4356_v10  ;;  %v4298_v13 = vmul.f32 %v10864_v33, %v4282_v20  ;;  %v7446_v10 = vpop.eup %7445  ;;  %v4299_v57 = vmul.f32 %v10810_v6, %v4283_v52 }
 0x6aa   : > { %v4317_v29 = vpop.xlane.xlu0 %4316  ;;  %7455 = vpow2.f32 %v4093_v42  ;;  %v10868_v48 = vpop.eup %7447 }
 0x6ab   : > { %4371 = vst.msk [vmem:[#allocation3 + $0x188] sm:$0xff] %vm303_vm0, %v4355_v46  ;;  %v4357_v4 = vadd.f32 %v4317_v29, %v4293_v40  ;;  %7457 = vrcp.f32 %v5107_v49  ;;  %v5109_v40 = vld [vmem:[#allocation3 + $0x168] sm:$0xff]  ;;  %v7450_v29 = vpop.eup %7449  ;;  %v4300_v31 = vmul.f32 %v10868_v48, %v4284_v54 }
 0x6ac   : > { %5041 = vperm.xlu1 %6969, %v7432_v21   ;;  %v10873_v23 = vpop.eup %7451  ;;  %7459 = vrcp.f32 %v5109_v40 }
 0x6ad   : > { %4373 = vst.msk [vmem:[#allocation3 + $0x198] sm:$0xff] %vm303_vm0, %v4357_v4  ;;  %v4285_v4 = vld [vmem:[#allocation3 + $0x1d8] sm:$0xff]  ;;  %v4302_v6 = vmul.f32 %v10873_v23, %v4286_v30 }
 0x6ae   : > { %v4320_v37 = vpop.xlane.xlu1 %4319 }
 0x6af   : > { %v4358_v56 = vadd.f32 %v4320_v37, %v4294_v63  ;;  %v5111_v63 = vld [vmem:[#allocation3 + $0x178] sm:$0xff]  ;;  %v4301_v37 = vmul.f32 %v10813_v34, %v4285_v4  ;;  %v7454_v24 = vpop.eup %7453 }
 0x6b0   : > { %5051 = vperm.xlu1 %6969, %v7434_v41   ;;  %7461 = vrcp.f32 %v5111_v63  ;;  %v4389_v63 = vld [vmem:[#allocation4 + $0x190] sm:$0xff] }
 0x6b1   : > { %4374 = vst.msk [vmem:[#allocation3 + $0x1a0] sm:$0xff] %vm303_vm0, %v4358_v56  ;;  %v4287_v56 = vld [vmem:[#allocation3 + $0x1e8] sm:$0xff] }
 0x6b2   : > { %v4323_v44 = vpop.xlane.xlu0 %4322  ;;  %v5241_v16 = vld [vmem:[#allocation3 + $0x188] sm:$0xff]  ;;  %v4303_v34 = vmul.f32 %v10816_v12, %v4287_v56 }
 0x6b3   : > { %v4359_v47 = vadd.f32 %v4323_v44, %v4295_v18  ;;  %7463 = vrcp.f32 %v5241_v16 }
 0x6b4   : > { %5061 = vperm.xlu1 %6969, %v7438_v7   ;;  %v10879_v18 = vpop.eup %7455  ;;  %v5243_v19 = vld [vmem:[#allocation3 + $0x198] sm:$0xff] }
 0x6b5   : > { %4375 = vst.msk [vmem:[#allocation3 + $0x1a8] sm:$0xff] %vm303_vm0, %v4359_v47  ;;  %v7458_v50 = vpop.eup %7457  ;;  %v4304_v44 = vmul.f32 %v10879_v18, %v4288_v58  ;;  %7465 = vrcp.f32 %v5243_v19 }
 0x6b6   : > { %v4326_v8 = vpop.xlane.xlu1 %4325  ;;  %v7460_v9 = vpop.eup %7459 }
 0x6b7   : > { %v4360_v2 = vadd.f32 %v4326_v8, %v4296_v43 }
 0x6b8   : > { %5135 = vperm.xlu1 %6969, %v7440_v25  }
 0x6b9   : > { %4376 = vst.msk [vmem:[#allocation3 + $0x1b0] sm:$0xff] %vm303_vm0, %v4360_v2  ;;  %v12532_v2 = vld [vmem:[#allocation51_spill] sm:$0xff] }
 0x6ba   : > { %v7462_v22 = vpop.eup %7461 }
 0x6bc   : > { %v4329_v28 = vpop.xlane.xlu0 %4328  ;;  %5145 = vperm.xlu1 %6969, %v7442_v35   ;;  %v5245_v12 = vld [vmem:[#allocation3 + $0x1a8] sm:$0xff] }
 0x6bd   : > { %v4361_v3 = vadd.f32 %v4329_v28, %v4297_v38  ;;  %7467 = vrcp.f32 %v5245_v12  ;;  %v7464_v17 = vpop.eup %7463 }
 0x6bf   : > { %4377 = vst.msk [vmem:[#allocation3 + $0x1b8] sm:$0xff] %vm303_vm0, %v4361_v3  ;;  %v4332_v11 = vpop.xlane.xlu1 %4331  ;;  %v7466_v42 = vpop.eup %7465 }
 0x6c0   : > { %v4362_v46 = vadd.f32 %v4332_v11, %v4298_v13  ;;  %5155 = vperm.xlu1 %6969, %v7446_v10  }
 0x6c2   : > { %4378 = vst.msk [vmem:[#allocation3 + $0x1c0] sm:$0xff] %vm303_vm0, %v4362_v46 }
 0x6c3   : > { %v4335_v21 = vpop.xlane.xlu0 %4334 }
 0x6c4   : > { %v4338_v61 = vpop.xlane.xlu1 %4337  ;;  %5165 = vperm.xlu1 %6969, %v7450_v29   ;;  %v4363_v53 = vadd.f32 %v4335_v21, %v4299_v57  ;;  %v4387_v57 = vld [vmem:[#allocation4 + $0x180] sm:$0xff] }
 0x6c5   : > { %v4364_v39 = vadd.f32 %v4338_v61, %v4300_v31 }
 0x6c6   : > { %4379 = vst.msk [vmem:[#allocation3 + $0x1c8] sm:$0xff] %vm303_vm0, %v4363_v53  ;;  %v5247_v15 = vld [vmem:[#allocation3 + $0x1b8] sm:$0xff] }
 0x6c7   : > { %4380 = vst.msk [vmem:[#allocation3 + $0x1d0] sm:$0xff] %vm303_vm0, %v4364_v39  ;;  %v4341_v41 = vpop.xlane.xlu0 %4340  ;;  %v7468_v38 = vpop.eup %7467 }
 0x6c8   : > { %v4344_v45 = vpop.xlane.xlu1 %4343  ;;  %5175 = vperm.xlu1 %6969, %v7454_v24   ;;  %v4365_v5 = vadd.f32 %v4341_v41, %v4301_v37  ;;  %v4390_v24 = vld [vmem:[#allocation4 + $0x198] sm:$0xff] }
 0x6c9   : > { %v4366_v55 = vadd.f32 %v4344_v45, %v4302_v6 }
 0x6ca   : > { %4381 = vst.msk [vmem:[#allocation3 + $0x1d8] sm:$0xff] %vm303_vm0, %v4365_v5 }
 0x6cb   : > { %4382 = vst.msk [vmem:[#allocation3 + $0x1e0] sm:$0xff] %vm303_vm0, %v4366_v55  ;;  %v4347_v7 = vpop.xlane.xlu0 %4346 }
 0x6cc   : > { %5185 = vperm.xlu1 %6969, %v7458_v50   ;;  %v4350_v47 = vpop.xlane.xlu1 %4349  ;;  %v4367_v43 = vadd.f32 %v4347_v7, %v4303_v34  ;;  %v4392_v7 = vld [vmem:[#allocation4 + $0x1a8] sm:$0xff] }
 0x6cd   : > { %v4368_v8 = vadd.f32 %v4350_v47, %v4304_v44  ;;  %v5249_v14 = vld [vmem:[#allocation3 + $0x1c8] sm:$0xff] }
 0x6ce   : > { %4383 = vst.msk [vmem:[#allocation3 + $0x1e8] sm:$0xff] %vm303_vm0, %v4367_v43 }
 0x6cf   : > { %4384 = vst.msk [vmem:[#allocation3 + $0x1f0] sm:$0xff] %vm303_vm0, %v4368_v8 }
 0x6d0   : > { %5195 = vperm.xlu1 %6969, %v7460_v9   ;;  %v4175_v36 = vpop.permute.xlu1 %4174 }
 0x6d1   : > { %v4207_v0 = vsub.f32 %v12531_v32, %v4175_v36  ;;  %v4208_v25 = vsub.f32 %v12532_v2, %v4175_v36  ;;  %v5251_v28 = vld [vmem:[#allocation3 + $0x1d8] sm:$0xff] }
 0x6d3   : > { %v4269_v35 = vmul.f32 1.442695, %v4207_v0  ;;  %v4271_v60 = vmul.f32 1.442695, %v4208_v25  ;;  %v4394_v0 = vld [vmem:[#allocation4 + $0x1b8] sm:$0xff] }
 0x6d4   : > { %5205 = vperm.xlu1 %6969, %v7462_v22   ;;  %v4406_v40 = vpop.permute.xlu1 %4405 }
 0x6d5   : > { %7469 = vpow2.f32 %v4269_v35  ;;  %v5253_v49 = vld [vmem:[#allocation3 + $0x1e8] sm:$0xff]  ;;  %v4483_v4 = vmul.f32 %v4406_v40, %v4387_v57  ;;  %v4808_v35 = vld [vmem:[#allocation3] sm:$0xff]  ;;  %v4398_v40 = vld [vmem:[#allocation4 + $0x1d8] sm:$0xff] }
 0x6d6   : > { %7471 = vpow2.f32 %v4271_v60 }
 0x6d7   : > { %7473 = vrcp.f32 %v5247_v15 }
 0x6d8   : > { %5279 = vperm.xlu1 %6969, %v7464_v17   ;;  %7475 = vrcp.f32 %v5249_v14  ;;  %v4810_v14 = vld [vmem:[#allocation3 + $0x10] sm:$0xff] }
 0x6d9   : > { %7477 = vrcp.f32 %v5251_v28 }
 0x6da   : > { %7479 = vrcp.f32 %v5253_v49  ;;  %v4812_v49 = vld [vmem:[#allocation3 + $0x20] sm:$0xff] }
 0x6db   : > { %7481 = vrcp.f32 %v4808_v35 }
 0x6dc   : > { %5289 = vperm.xlu1 %6969, %v7466_v42   ;;  %7483 = vrcp.f32 %v4810_v14 }
 0x6dd   : > { %7485 = vrcp.f32 %v4812_v49 }
 0x6df   : > { %v7470_v20 = vpop.eup %7469 }
 0x6e0   : > { %5299 = vperm.xlu1 %6969, %v7468_v38   ;;  %v7472_v3 = vpop.eup %7471  ;;  %v4513_v13 = vpack.c.bf16 %v7470_v20, %v10762_v59  ;;  %v4396_v38 = vld [vmem:[#allocation4 + $0x1c8] sm:$0xff] }
 0x6e1   : > { %v7474_v10 = vpop.eup %7473  ;;  %v4514_v11 = vpack.c.bf16 %v7472_v3, %v10764_v51  ;;  %v4351_v52 = vadd.f32 %v7472_v3, %v7470_v20  ;;  %v4416_v51 = vpop.permute.xlu1 %4415 }
 0x6e2   : > { %v7476_v46 = vpop.eup %7475  ;;  %v4485_v56 = vmul.f32 %v4416_v51, %v4389_v63 }
 0x6e3   : > { %4732 = vmatprep.mubr.bf16.mxu1 %v4514_v11  ;;  %4352 = vadd.xlane.f32.xlu0 %v4351_v52  ;;  %v7478_v54 = vpop.eup %7477  ;;  %v4814_v52 = vld [vmem:[#allocation3 + $0x30] sm:$0xff] }
 0x6e4   : > { %5309 = vperm.xlu1 %6969, %v7474_v10   ;;  %4733 = vmatmul.mubr.bf16.gmra.mrb[60].mxu1 %v4513_v13  ;;  %v7480_v31 = vpop.eup %7479  ;;  %7487 = vrcp.f32 %v4814_v52 }
 0x6e5   : > { %v4421_v6 = vpop.permute.xlu1 %4420 }
 0x6e6   : > { %v4486_v55 = vmul.f32 %v4421_v6, %v4390_v24 }
 0x6e8   : > { %5319 = vperm.xlu1 %6969, %v7476_v46   ;;  %v7482_v46 = vpop.eup %7481 }
 0x6e9   : > { %v4431_v47 = vpop.permute.xlu1 %4430 }
 0x6ea   : > { %v4488_v36 = vmul.f32 %v4431_v47, %v4392_v7  ;;  %v4952_v47 = vld [vmem:[#allocation3 + $0x80] sm:$0xff] }
 0x6ec   : > { %5329 = vperm.xlu1 %6969, %v7478_v54  }
 0x6ed   : > { %v4441_v2 = vpop.permute.xlu1 %4440 }
 0x6ee   : > { %v4490_v15 = vmul.f32 %v4441_v2, %v4394_v0  ;;  %v4958_v0 = vld [vmem:[#allocation3 + $0xb0] sm:$0xff] }
 0x6ef   : > { %v6869_v29 = vpop.f32.mrb[32].mxu1 }
 0x6f0   : > { %v6870_v21 = vpop.f32.mrb[33].mxu1  ;;  %5339 = vperm.xlu1 %6969, %v7480_v31  }
 0x6f1   : > { %v6871_v59 = vadd.f32 %v6870_v21, %v6869_v29  ;;  %v6872_v61 = vpop.f32.mrb[34].mxu1  ;;  %v4451_v28 = vpop.permute.xlu1 %4450  ;;  %v4816_v21 = vld [vmem:[#allocation3 + $0x40] sm:$0xff] }
 0x6f2   : > { %v6873_v53 = vpop.f32.mrb[35].mxu1  ;;  %v4492_v10 = vmul.f32 %v4451_v28, %v4396_v38  ;;  %7489 = vrcp.f32 %v4816_v21  ;;  %v4966_v38 = vld [vmem:[#allocation3 + $0xf0] sm:$0xff] }
 0x6f3   : > { %v4741_v30 = vadd.f32 %v6871_v59, %v4483_v4  ;;  %v10891_v39 = vadd.f32 %v6873_v53, %v6872_v61  ;;  %v7484_v59 = vpop.eup %7483  ;;  %v4818_v53 = vld [vmem:[#allocation3 + $0x50] sm:$0xff] }
 0x6f4   : > { %7491 = vrcp.f32 %v4818_v53  ;;  %v5106_v21 = vld [vmem:[#allocation3 + $0x150] sm:$0xff] }
 0x6f5   : > { %4757 = vst.msk [vmem:[#allocation4 + $0x180] sm:$0xff] %vm432_vm1, %v4741_v30  ;;  %v7486_v30 = vpop.eup %7485 }
 0x6f7   : > { %v6875_v37 = vpop.f32.mrb[36].mxu1 }
 0x6f8   : > { %v6876_v41 = vpop.f32.mrb[37].mxu1 }
 0x6f9   : > { %v6877_v45 = vadd.f32 %v6876_v41, %v6875_v37  ;;  %v6878_v5 = vpop.f32.mrb[38].mxu1  ;;  %4410 = vperm.xlu0 %6970, %v10829_v1   ;;  %v4400_v37 = vld [vmem:[#allocation4 + $0x1e8] sm:$0xff] }
 0x6fa   : > { %v6879_v58 = vpop.f32.mrb[39].mxu1 }
 0x6fb   : > { %v4743_v16 = vadd.f32 %v6877_v45, %v4485_v56  ;;  %v6880_v34 = vadd.f32 %v6879_v58, %v6878_v5  ;;  %v4820_v45 = vld [vmem:[#allocation3 + $0x60] sm:$0xff]  ;;  %v7488_v58 = vpop.eup %7487 }
 0x6fc   : > { %7493 = vrcp.f32 %v4820_v45  ;;  %v7490_v7 = vpop.eup %7489  ;;  %v4289_v45 = vld [vmem:[#allocation3 + $0x1f8] sm:$0xff] }
 0x6fd   : > { %4759 = vst.msk [vmem:[#allocation4 + $0x190] sm:$0xff] %vm432_vm1, %v4743_v16  ;;  %v4744_v50 = vadd.f32 %v6880_v34, %v4486_v55  ;;  %4425 = vperm.xlu0 %6970, %v10839_v27  }
 0x6ff   : > { %4760 = vst.msk [vmem:[#allocation4 + $0x198] sm:$0xff] %vm432_vm1, %v4744_v50  ;;  %v6881_v44 = vpop.f32.mrb[40].mxu1  ;;  %v4822_v50 = vld [vmem:[#allocation3 + $0x70] sm:$0xff] }
 0x700   : > { %v6882_v43 = vpop.f32.mrb[41].mxu1  ;;  %7495 = vrcp.f32 %v4822_v50 }
 0x701   : > { %v10898_v8 = vadd.f32 %v6882_v43, %v6881_v44  ;;  %v6884_v19 = vpop.f32.mrb[42].mxu1  ;;  %4435 = vperm.xlu0 %6970, %v10847_v62   ;;  %v7492_v43 = vpop.eup %7491  ;;  %7497 = vrcp.f32 %v4952_v47 }
 0x702   : > { %v6885_v9 = vpop.f32.mrb[43].mxu1 }
 0x703   : > { %v6886_v12 = vadd.f32 %v6885_v9, %v6884_v19  ;;  %v4954_v9 = vld [vmem:[#allocation3 + $0x90] sm:$0xff] }
 0x704   : > { %7499 = vrcp.f32 %v4954_v9  ;;  %v5248_v9 = vld [vmem:[#allocation3 + $0x1c0] sm:$0xff] }
 0x705   : > { %v4746_v1 = vadd.f32 %v6886_v12, %v4488_v36  ;;  %4445 = vperm.xlu0 %6970, %v10864_v33   ;;  %v4956_v12 = vld [vmem:[#allocation3 + $0xa0] sm:$0xff] }
 0x706   : > { %v7494_v36 = vpop.eup %7493  ;;  %7501 = vrcp.f32 %v4956_v12 }
 0x707   : > { %4762 = vst.msk [vmem:[#allocation4 + $0x1a8] sm:$0xff] %vm432_vm1, %v4746_v1  ;;  %v6887_v32 = vpop.f32.mrb[44].mxu1  ;;  %7503 = vrcp.f32 %v4958_v0 }
 0x708   : > { %v6888_v25 = vpop.f32.mrb[45].mxu1 }
 0x709   : > { %v10903_v22 = vadd.f32 %v6888_v25, %v6887_v32  ;;  %v6890_v27 = vpop.f32.mrb[46].mxu1  ;;  %4455 = vperm.xlu0 %6970, %v10868_v48  }
 0x70a   : > { %v6891_v60 = vpop.f32.mrb[47].mxu1  ;;  %v7496_v32 = vpop.eup %7495 }
 0x70b   : > { %v6892_v17 = vadd.f32 %v6891_v60, %v6890_v27  ;;  %v7498_v2 = vpop.eup %7497  ;;  %v4960_v27 = vld [vmem:[#allocation3 + $0xc0] sm:$0xff]  ;;  %v4962_v60 = vld [vmem:[#allocation3 + $0xd0] sm:$0xff] }
 0x70c   : > { %7505 = vrcp.f32 %v4960_v27  ;;  %v5250_v27 = vld [vmem:[#allocation3 + $0x1d0] sm:$0xff] }
 0x70d   : > { %v4748_v62 = vadd.f32 %v6892_v17, %v4490_v15  ;;  %4465 = vperm.xlu0 %6970, %v10873_v23   ;;  %v4461_v23 = vpop.permute.xlu1 %4460  ;;  %7507 = vrcp.f32 %v4962_v60 }
 0x70e   : > { %v4494_v61 = vmul.f32 %v4461_v23, %v4398_v40  ;;  %v7500_v35 = vpop.eup %7499  ;;  %v5104_v23 = vld [vmem:[#allocation3 + $0x140] sm:$0xff] }
 0x70f   : > { %4764 = vst.msk [vmem:[#allocation4 + $0x1b8] sm:$0xff] %vm432_vm1, %v4748_v62  ;;  %v6893_v42 = vpop.f32.mrb[48].mxu1  ;;  %v4964_v62 = vld [vmem:[#allocation3 + $0xe0] sm:$0xff] }
 0x710   : > { %v6894_v33 = vpop.f32.mrb[49].mxu1  ;;  %v7502_v17 = vpop.eup %7501  ;;  %7509 = vrcp.f32 %v4964_v62 }
 0x711   : > { %v10908_v20 = vadd.f32 %v6894_v33, %v6893_v42  ;;  %v6896_v3 = vpop.f32.mrb[50].mxu1  ;;  %4475 = vperm.xlu0 %6970, %v10879_v18   ;;  %v4471_v24 = vpop.permute.xlu1 %4470  ;;  %7511 = vrcp.f32 %v4966_v38  ;;  %v5096_v33 = vld [vmem:[#allocation3 + $0x100] sm:$0xff]  ;;  %v4393_v38 = vld [vmem:[#allocation4 + $0x1b0] sm:$0xff] }
 0x712   : > { %v6897_v13 = vpop.f32.mrb[51].mxu1  ;;  %v4496_v55 = vmul.f32 %v4471_v24, %v4400_v37  ;;  %v7504_v14 = vpop.eup %7503  ;;  %7513 = vrcp.f32 %v5096_v33  ;;  %v5242_v24 = vld [vmem:[#allocation3 + $0x190] sm:$0xff] }
 0x713   : > { %v6898_v11 = vadd.f32 %v6897_v13, %v6896_v3  ;;  %v5098_v13 = vld [vmem:[#allocation3 + $0x110] sm:$0xff] }
 0x714   : > { %7515 = vrcp.f32 %v5098_v13 }
 0x715   : > { %v4750_v48 = vadd.f32 %v6898_v11, %v4492_v10  ;;  %4842 = vperm.xlu0 %6970, %v7482_v46   ;;  %v10917_v44 = vpop.permute.xlu1 %4480  ;;  %v5102_v46 = vld [vmem:[#allocation3 + $0x130] sm:$0xff] }
 0x716   : > { %v7506_v28 = vpop.eup %7505 }
 0x717   : > { %4766 = vst.msk [vmem:[#allocation4 + $0x1c8] sm:$0xff] %vm432_vm1, %v4750_v48  ;;  %v6899_v54 = vpop.f32.mrb[52].mxu1  ;;  %v7508_v49 = vpop.eup %7507  ;;  %v5100_v48 = vld [vmem:[#allocation3 + $0x120] sm:$0xff] }
 0x718   : > { %v6900_v57 = vpop.f32.mrb[53].mxu1  ;;  %7517 = vrcp.f32 %v5100_v48  ;;  %v5254_v48 = vld [vmem:[#allocation3 + $0x1f0] sm:$0xff] }
 0x719   : > { %v10912_v29 = vadd.f32 %v6900_v57, %v6899_v54  ;;  %v6902_v31 = vpop.f32.mrb[54].mxu1  ;;  %4852 = vperm.xlu0 %6970, %v7484_v59   ;;  %v10920_v19 = vpop.permute.xlu1 %4847  ;;  %7519 = vrcp.f32 %v5102_v46  ;;  %v5108_v59 = vld [vmem:[#allocation3 + $0x160] sm:$0xff] }
 0x71a   : > { %v6903_v4 = vpop.f32.mrb[55].mxu1  ;;  %v7510_v10 = vpop.eup %7509  ;;  %7521 = vrcp.f32 %v5104_v23 }
 0x71b   : > { %v6904_v18 = vadd.f32 %v6903_v4, %v6902_v31  ;;  %v7512_v52 = vpop.eup %7511  ;;  %7523 = vrcp.f32 %v5106_v21 }
 0x71c   : > { %v7514_v40 = vpop.eup %7513  ;;  %7525 = vrcp.f32 %v5108_v59 }
 0x71d   : > { %v4752_v51 = vadd.f32 %v6904_v18, %v4494_v61  ;;  %4862 = vperm.xlu0 %6970, %v7486_v30   ;;  %v10922_v1 = vpop.permute.xlu1 %4857 }
 0x71e   : > { %v7516_v57 = vpop.eup %7515 }
 0x71f   : > { %4768 = vst.msk [vmem:[#allocation4 + $0x1d8] sm:$0xff] %vm432_vm1, %v4752_v51  ;;  %v6905_v63 = vpop.f32.mrb[56].mxu1  ;;  %v5110_v51 = vld [vmem:[#allocation3 + $0x170] sm:$0xff] }
 0x720   : > { %v6906_v6 = vpop.f32.mrb[57].mxu1  ;;  %7527 = vrcp.f32 %v5110_v51 }
 0x721   : > { %v10915_v41 = vadd.f32 %v6906_v6, %v6905_v63  ;;  %v6908_v56 = vpop.f32.mrb[58].mxu1  ;;  %4872 = vperm.xlu0 %6970, %v7488_v58   ;;  %v10924_v25 = vpop.permute.xlu1 %4867  ;;  %v5240_v63 = vld [vmem:[#allocation3 + $0x180] sm:$0xff]  ;;  %v4305_v58 = vmul.f32 %v10819_v26, %v4289_v45 }
 0x722   : > { %v6909_v5 = vpop.f32.mrb[59].mxu1  ;;  %v7518_v4 = vpop.eup %7517  ;;  %7529 = vrcp.f32 %v5240_v63 }
 0x723   : > { %v6910_v16 = vadd.f32 %v6909_v5, %v6908_v56  ;;  %v7520_v18 = vpop.eup %7519  ;;  %7531 = vrcp.f32 %v5242_v24  ;;  %v5244_v5 = vld [vmem:[#allocation3 + $0x1a0] sm:$0xff]  ;;  %v4939_v24 = vld [vmem:[#allocation4 + $0x98] sm:$0xff] }
 0x724   : > { %v7522_v53 = vpop.eup %7521  ;;  %7533 = vrcp.f32 %v5244_v5 }
 0x725   : > { %v4754_v34 = vadd.f32 %v6910_v16, %v4496_v55  ;;  %4882 = vperm.xlu0 %6970, %v7490_v7   ;;  %v10926_v15 = vpop.permute.xlu1 %4877  ;;  %v7524_v37 = vpop.eup %7523  ;;  %v5246_v7 = vld [vmem:[#allocation3 + $0x1b0] sm:$0xff] }
 0x726   : > { %v7526_v56 = vpop.eup %7525  ;;  %7535 = vrcp.f32 %v5246_v7 }
 0x727   : > { %4770 = vst.msk [vmem:[#allocation4 + $0x1e8] sm:$0xff] %vm432_vm1, %v4754_v34  ;;  %7537 = vrcp.f32 %v5248_v9 }
 0x729   : > { %4892 = vperm.xlu0 %6970, %v7492_v43   ;;  %v10928_v42 = vpop.permute.xlu1 %4887  ;;  %v4388_v43 = vld [vmem:[#allocation4 + $0x188] sm:$0xff] }
 0x72a   : > { %v7528_v55 = vpop.eup %7527 }
 0x72c   : > { %v7530_v47 = vpop.eup %7529 }
 0x72d   : > { %4902 = vperm.xlu0 %6970, %v7494_v36   ;;  %v10930_v3 = vpop.permute.xlu1 %4897  ;;  %v7532_v12 = vpop.eup %7531 }
 0x72e   : > { %12533 = vst [vmem:[#allocation47_spill] sm:$0xff] %v10930_v3  ;;  %v7534_v60 = vpop.eup %7533  ;;  %v4807_v3 = vld [vmem:[#allocation4 + $0x78] sm:$0xff] }
 0x731   : > { %4912 = vperm.xlu0 %6970, %v7496_v32   ;;  %v10932_v11 = vpop.permute.xlu1 %4907 }
 0x732   : > { %12534 = vst [vmem:[#allocation104_spill] sm:$0xff] %v10932_v11 }
 0x735   : > { %4986 = vperm.xlu0 %6970, %v7498_v2   ;;  %v10934_v54 = vpop.permute.xlu1 %4917  ;;  %v4391_v2 = vld [vmem:[#allocation4 + $0x1a0] sm:$0xff] }
 0x739   : > { %4996 = vperm.xlu0 %6970, %v7500_v35   ;;  %v10936_v31 = vpop.permute.xlu1 %4991 }
 0x73d   : > { %5006 = vperm.xlu0 %6970, %v7502_v17   ;;  %v10938_v61 = vpop.permute.xlu1 %5001 }
 0x73e   : > { %v5067_v5 = vmul.f32 %v10938_v61, %v4939_v24 }
 0x741   : > { %5016 = vperm.xlu0 %6970, %v7504_v14   ;;  %v10940_v30 = vpop.permute.xlu1 %5011 }
 0x745   : > { %5026 = vperm.xlu0 %6970, %v7506_v28   ;;  %v10942_v6 = vpop.permute.xlu1 %5021  ;;  %v5252_v28 = vld [vmem:[#allocation3 + $0x1e0] sm:$0xff] }
 0x749   : > { %5036 = vperm.xlu0 %6970, %v7508_v49   ;;  %v10945_v34 = vpop.permute.xlu1 %5031  ;;  %v7536_v49 = vpop.eup %7535 }
 0x74d   : > { %5046 = vperm.xlu0 %6970, %v7510_v10   ;;  %v10948_v36 = vpop.permute.xlu1 %5041 }
 0x751   : > { %5056 = vperm.xlu0 %6970, %v7512_v52   ;;  %v10951_v62 = vpop.permute.xlu1 %5051 }
 0x755   : > { %5130 = vperm.xlu0 %6970, %v7514_v40   ;;  %v5062_v52 = vpop.permute.xlu1 %5061  ;;  %v7538_v40 = vpop.eup %7537 }
 0x759   : > { %5140 = vperm.xlu0 %6970, %v7516_v57   ;;  %v5136_v63 = vpop.permute.xlu1 %5135 }
 0x75d   : > { %5150 = vperm.xlu0 %6970, %v7518_v4   ;;  %v4937_v4 = vld [vmem:[#allocation4 + $0x88] sm:$0xff] }
 0x75e   : > { %v5065_v51 = vmul.f32 %v10936_v31, %v4937_v4  ;;  %v4401_v4 = vld [vmem:[#allocation4 + $0x1f0] sm:$0xff] }
 0x761   : > { %5160 = vperm.xlu0 %6970, %v7520_v18  }
 0x765   : > { %5170 = vperm.xlu0 %6970, %v7522_v53  }
 0x769   : > { %5180 = vperm.xlu0 %6970, %v7524_v37   ;;  %v4399_v37 = vld [vmem:[#allocation4 + $0x1e0] sm:$0xff] }
 0x76d   : > { %5190 = vperm.xlu0 %6970, %v7526_v56  }
 0x770   : > { %v4353_v16 = vpop.xlane.xlu0 %4352 }
 0x771   : > { %v4369_v50 = vadd.f32 %v4353_v16, %v4305_v58  ;;  %5200 = vperm.xlu0 %6970, %v7528_v55   ;;  %v4941_v58 = vld [vmem:[#allocation4 + $0xa8] sm:$0xff]  ;;  %v5146_v55 = vpop.permute.xlu1 %5145 }
 0x772   : > { %v5069_v7 = vmul.f32 %v10940_v30, %v4941_v58  ;;  %v4947_v30 = vld [vmem:[#allocation4 + $0xd8] sm:$0xff] }
 0x773   : > { %4385 = vst.msk [vmem:[#allocation3 + $0x1f8] sm:$0xff] %vm303_vm0, %v4369_v50 }
 0x775   : > { %5274 = vperm.xlu0 %6970, %v7530_v47   ;;  %v5156_v9 = vpop.permute.xlu1 %5155 }
 0x778   : > { %v4411_v32 = vpop.permute.xlu0 %4410 }
 0x779   : > { %v4484_v26 = vmul.f32 %v4411_v32, %v4388_v43  ;;  %5284 = vperm.xlu0 %6970, %v7532_v12   ;;  %v4945_v12 = vld [vmem:[#allocation4 + $0xc8] sm:$0xff] }
 0x77a   : > { %v5255_v0 = vld [vmem:[#allocation3 + $0x1f8] sm:$0xff] }
 0x77b   : > { %7539 = vrcp.f32 %v5255_v0  ;;  %v4742_v35 = vadd.f32 %v10891_v39, %v4484_v26  ;;  %v4395_v39 = vld [vmem:[#allocation4 + $0x1c0] sm:$0xff]  ;;  %v5166_v26 = vpop.permute.xlu1 %5165  ;;  %v5075_v0 = vmul.f32 %v10948_v36, %v4947_v30  ;;  %v4942_v30 = vld [vmem:[#allocation4 + $0xb0] sm:$0xff] }
 0x77c   : > { %v4426_v17 = vpop.permute.xlu0 %4425  ;;  %7541 = vrcp.f32 %v5250_v27 }
 0x77d   : > { %4758 = vst.msk [vmem:[#allocation4 + $0x188] sm:$0xff] %vm432_vm1, %v4742_v35  ;;  %v4487_v14 = vmul.f32 %v4426_v17, %v4391_v2  ;;  %5294 = vperm.xlu0 %6970, %v7534_v60   ;;  %7543 = vrcp.f32 %v5252_v28 }
 0x77e   : > { %7545 = vrcp.f32 %v5254_v48 }
 0x77f   : > { %v4745_v33 = vadd.f32 %v10898_v8, %v4487_v14  ;;  %v4397_v8 = vld [vmem:[#allocation4 + $0x1d0] sm:$0xff]  ;;  %v5176_v60 = vpop.permute.xlu1 %5175 }
 0x780   : > { %v4436_v13 = vpop.permute.xlu0 %4435 }
 0x781   : > { %4761 = vst.msk [vmem:[#allocation4 + $0x1a0] sm:$0xff] %vm432_vm1, %v4745_v33  ;;  %v4489_v10 = vmul.f32 %v4436_v13, %v4393_v38  ;;  %5304 = vperm.xlu0 %6970, %v7536_v49   ;;  %v5081_v38 = vld [vmem:[#allocation4 + $0x108] sm:$0xff] }
 0x782   : > { %v5209_v28 = vmul.f32 %v5136_v63, %v5081_v38 }
 0x783   : > { %v4747_v46 = vadd.f32 %v10903_v22, %v4489_v10  ;;  %v5186_v36 = vpop.permute.xlu1 %5185 }
 0x784   : > { %v4446_v23 = vpop.permute.xlu0 %4445 }
 0x785   : > { %v7540_v57 = vpop.eup %7539  ;;  %4763 = vst.msk [vmem:[#allocation4 + $0x1b0] sm:$0xff] %vm432_vm1, %v4747_v46  ;;  %v4491_v21 = vmul.f32 %v4446_v23, %v4395_v39  ;;  %5314 = vperm.xlu0 %6970, %v7538_v40   ;;  %v5085_v39 = vld [vmem:[#allocation4 + $0x128] sm:$0xff]  ;;  %v5087_v46 = vld [vmem:[#allocation4 + $0x138] sm:$0xff] }
 0x786   : > { %5349 = vperm.xlu1 %6969, %v7540_v57   ;;  %v7542_v18 = vpop.eup %7541  ;;  %v5213_v48 = vmul.f32 %v5156_v9, %v5085_v39  ;;  %v5215_v23 = vmul.f32 %v5166_v26, %v5087_v46  ;;  %v4936_v57 = vld [vmem:[#allocation4 + $0x80] sm:$0xff]  ;;  %v5227_v39 = vld [vmem:[#allocation4 + $0x198] sm:$0xff] }
 0x787   : > { %v4749_v59 = vadd.f32 %v10908_v20, %v4491_v21  ;;  %v7544_v45 = vpop.eup %7543  ;;  %v5196_v10 = vpop.permute.xlu1 %5195 }
 0x788   : > { %v4456_v53 = vpop.permute.xlu0 %4455  ;;  %v7546_v50 = vpop.eup %7545 }
 0x789   : > { %4765 = vst.msk [vmem:[#allocation4 + $0x1c0] sm:$0xff] %vm432_vm1, %v4749_v59  ;;  %v4493_v22 = vmul.f32 %v4456_v53, %v4397_v8  ;;  %5324 = vperm.xlu0 %6970, %v7542_v18   ;;  %v5089_v59 = vld [vmem:[#allocation4 + $0x148] sm:$0xff] }
 0x78a   : > { %5450 = vrot.lane.b32.xlu1 %v5065_v51, %s7675_s15  ;;  %v4402_v51 = vld [vmem:[#allocation4 + $0x1f8] sm:$0xff]  ;;  %v5217_v53 = vmul.f32 %v5176_v60, %v5089_v59  ;;  %v4944_v60 = vld [vmem:[#allocation4 + $0xc0] sm:$0xff] }
 0x78b   : > { %v4751_v56 = vadd.f32 %v10912_v29, %v4493_v22  ;;  %v4943_v29 = vld [vmem:[#allocation4 + $0xb8] sm:$0xff]  ;;  %v5206_v40 = vpop.permute.xlu1 %5205  ;;  %v4938_v22 = vld [vmem:[#allocation4 + $0x90] sm:$0xff]  ;;  %v4498_v58 = vmul.f32 %v10917_v44, %v4402_v51 }
 0x78c   : > { %v4466_v20 = vpop.permute.xlu0 %4465  ;;  %v5071_v61 = vmul.f32 %v10942_v6, %v4943_v29  ;;  %v4949_v6 = vld [vmem:[#allocation4 + $0xe8] sm:$0xff]  ;;  %v4940_v29 = vld [vmem:[#allocation4 + $0xa0] sm:$0xff] }
 0x78d   : > { %4767 = vst.msk [vmem:[#allocation4 + $0x1d0] sm:$0xff] %vm432_vm1, %v4751_v56  ;;  %v4495_v31 = vmul.f32 %v4466_v20, %v4399_v37  ;;  %5334 = vperm.xlu0 %6970, %v7544_v45   ;;  %v5077_v27 = vmul.f32 %v10951_v62, %v4949_v6  ;;  %v5083_v62 = vld [vmem:[#allocation4 + $0x118] sm:$0xff] }
 0x78e   : > { %5454 = vrot.lane.b32.xlu1 %v5067_v5, %s7675_s15  ;;  %v5211_v49 = vmul.f32 %v5146_v55, %v5083_v62  ;;  %v5091_v55 = vld [vmem:[#allocation4 + $0x158] sm:$0xff] }
 0x78f   : > { %v4753_v16 = vadd.f32 %v10915_v41, %v4495_v31  ;;  %v5073_v41 = vmul.f32 %v10945_v34, %v4945_v12  ;;  %v4951_v34 = vld [vmem:[#allocation4 + $0xf8] sm:$0xff]  ;;  %v5280_v24 = vpop.permute.xlu1 %5279  ;;  %v5093_v12 = vld [vmem:[#allocation4 + $0x168] sm:$0xff] }
 0x790   : > { %v4476_v47 = vpop.permute.xlu0 %4475  ;;  %v5079_v17 = vmul.f32 %v5062_v52, %v4951_v34  ;;  %v5221_v44 = vmul.f32 %v5196_v10, %v5093_v12  ;;  %v5095_v6 = vld [vmem:[#allocation4 + $0x178] sm:$0xff]  ;;  %v5086_v12 = vld [vmem:[#allocation4 + $0x130] sm:$0xff] }
 0x791   : > { %4769 = vst.msk [vmem:[#allocation4 + $0x1e0] sm:$0xff] %vm432_vm1, %v4753_v16  ;;  %5344 = vperm.xlu0 %6970, %v7546_v50   ;;  %v4497_v56 = vmul.f32 %v4476_v47, %v4401_v4  ;;  %v4950_v4 = vld [vmem:[#allocation4 + $0xf0] sm:$0xff] }
 0x792   : > { %5458 = vrot.lane.b32.xlu1 %v5069_v7, %s7675_s15  ;;  %v5219_v7 = vmul.f32 %v5186_v36, %v5091_v55  ;;  %v5225_v36 = vld [vmem:[#allocation4 + $0x188] sm:$0xff]  ;;  %v5235_v55 = vld [vmem:[#allocation4 + $0x1d8] sm:$0xff] }
 0x794   : > { %v10971_v43 = vpop.permute.xlu0 %4842 }
 0x796   : > { %5462 = vrot.lane.b32.xlu1 %v5071_v61, %s7675_s15 }
 0x798   : > { %v10975_v32 = vpop.permute.xlu0 %4852 }
 0x79a   : > { %5466 = vrot.lane.b32.xlu1 %v5073_v41, %s7675_s15  ;;  %v5290_v41 = vpop.permute.xlu1 %5289 }
 0x79b   : > { %v5355_v46 = vmul.f32 %v5290_v41, %v5227_v39 }
 0x79c   : > { %v10979_v2 = vpop.permute.xlu0 %4862 }
 0x79e   : > { %5470 = vrot.lane.b32.xlu1 %v5075_v0, %s7675_s15 }
 0x7a0   : > { %v10983_v35 = vpop.permute.xlu0 %4872 }
 0x7a1   : > { %12535 = vst [vmem:[#allocation107_spill] sm:$0xff] %v10983_v35 }
 0x7a2   : > { %5474 = vrot.lane.b32.xlu1 %v5077_v27, %s7675_s15  ;;  %v5223_v27 = vmul.f32 %v5206_v40, %v5095_v6  ;;  %v4948_v40 = vld [vmem:[#allocation4 + $0xe0] sm:$0xff]  ;;  %v5090_v6 = vld [vmem:[#allocation4 + $0x150] sm:$0xff] }
 0x7a4   : > { %v10986_v14 = vpop.permute.xlu0 %4882 }
 0x7a5   : > { %12536 = vst [vmem:[#allocation100_spill] sm:$0xff] %v10986_v14  ;;  %v7590_v14 = vld [vmem:[#allocation3 + $0x30] sm:$0xff] }
 0x7a6   : > { %5478 = vrot.lane.b32.xlu1 %v5079_v17, %s7675_s15  ;;  %v5300_v17 = vpop.permute.xlu1 %5299 }
 0x7a8   : > { %v10989_v33 = vpop.permute.xlu0 %4892 }
 0x7a9   : > { %12537 = vst [vmem:[#allocation103_spill] sm:$0xff] %v10989_v33  ;;  %v5424_v33 = vld [vmem:[#allocation2 + $0x1c0] sm:$0xff] }
 0x7aa   : > { %5514 = vrot.lane.b32.xlu1 %v5209_v28, %s7676_s21  ;;  %v4946_v28 = vld [vmem:[#allocation4 + $0xd0] sm:$0xff] }
 0x7ac   : > { %v10992_v13 = vpop.permute.xlu0 %4902 }
 0x7ad   : > { %12538 = vst [vmem:[#allocation110_spill] sm:$0xff] %v10992_v13 }
 0x7ae   : > { %5518 = vrot.lane.b32.xlu1 %v5211_v49, %s7676_s21  ;;  %v5353_v49 = vmul.f32 %v5280_v24, %v5225_v36  ;;  %v5094_v36 = vld [vmem:[#allocation4 + $0x170] sm:$0xff] }
 0x7b0   : > { %v10995_v52 = vpop.permute.xlu0 %4912 }
 0x7b2   : > { %5522 = vrot.lane.b32.xlu1 %v5213_v48, %s7676_s21  ;;  %v5310_v48 = vpop.permute.xlu1 %5309 }
 0x7b4   : > { %v4987_v21 = vpop.permute.xlu0 %4986 }
 0x7b5   : > { %v5064_v8 = vmul.f32 %v4987_v21, %v4936_v57  ;;  %v5229_v21 = vld [vmem:[#allocation4 + $0x1a8] sm:$0xff] }
 0x7b6   : > { %5526 = vrot.lane.b32.xlu1 %v5215_v23, %s7676_s21 }
 0x7b7   : > { %v6911_v18 = vpop.f32.mrb[60].mxu1  ;;  %5448 = vrot.lane.b32.xlu0 %v5064_v8, %s7675_s15  ;;  %v5357_v8 = vmul.f32 %v5300_v17, %v5229_v21 }
 0x7b8   : > { %v6912_v63 = vpop.f32.mrb[61].mxu1  ;;  %v4997_v37 = vpop.permute.xlu0 %4996 }
 0x7b9   : > { %v6913_v45 = vadd.f32 %v6912_v63, %v6911_v18  ;;  %v5066_v5 = vmul.f32 %v4997_v37, %v4938_v22  ;;  %v6914_v20 = vpop.f32.mrb[62].mxu1  ;;  %v5320_v18 = vpop.permute.xlu1 %5319  ;;  %v5080_v22 = vld [vmem:[#allocation4 + $0x100] sm:$0xff] }
 0x7ba   : > { %v6915_v31 = vpop.f32.mrb[63].mxu1  ;;  %5530 = vrot.lane.b32.xlu1 %v5217_v53, %s7676_s21  ;;  %v5231_v53 = vld [vmem:[#allocation4 + $0x1b8] sm:$0xff] }
 0x7bb   : > { %v4755_v16 = vadd.f32 %v6913_v45, %v4497_v56  ;;  %v6916_v50 = vadd.f32 %v6915_v31, %v6914_v20  ;;  %5452 = vrot.lane.b32.xlu0 %v5066_v5, %s7675_s15  ;;  %v5359_v63 = vmul.f32 %v5310_v48, %v5231_v53  ;;  %v5233_v56 = vld [vmem:[#allocation4 + $0x1c8] sm:$0xff]  ;;  %v5082_v20 = vld [vmem:[#allocation4 + $0x110] sm:$0xff] }
 0x7bc   : > { %v5007_v61 = vpop.permute.xlu0 %5006  ;;  %v5361_v5 = vmul.f32 %v5320_v18, %v5233_v56  ;;  %v5226_v48 = vld [vmem:[#allocation4 + $0x190] sm:$0xff]  ;;  %v5232_v18 = vld [vmem:[#allocation4 + $0x1c0] sm:$0xff] }
 0x7bd   : > { %4771 = vst.msk [vmem:[#allocation4 + $0x1f0] sm:$0xff] %vm432_vm1, %v4755_v16  ;;  %v4756_v9 = vadd.f32 %v6916_v50, %v4498_v58  ;;  %v5068_v47 = vmul.f32 %v5007_v61, %v4940_v29  ;;  %v5330_v45 = vpop.permute.xlu1 %5329  ;;  %v5084_v50 = vld [vmem:[#allocation4 + $0x120] sm:$0xff] }
 0x7be   : > { %5534 = vrot.lane.b32.xlu1 %v5219_v7, %s7676_s21  ;;  %v5363_v16 = vmul.f32 %v5330_v45, %v5235_v55 }
 0x7bf   : > { %4772 = vst.msk [vmem:[#allocation4 + $0x1f8] sm:$0xff] %vm432_vm1, %v4756_v9  ;;  %5456 = vrot.lane.b32.xlu0 %v5068_v47, %s7675_s15  ;;  %v5237_v9 = vld [vmem:[#allocation4 + $0x1e8] sm:$0xff] }
 0x7c0   : > { %v5017_v26 = vpop.permute.xlu0 %5016 }
 0x7c1   : > { %v5070_v0 = vmul.f32 %v5017_v26, %v4942_v30  ;;  %v5340_v29 = vpop.permute.xlu1 %5339  ;;  %v5088_v30 = vld [vmem:[#allocation4 + $0x140] sm:$0xff] }
 0x7c2   : > { %5538 = vrot.lane.b32.xlu1 %v5221_v44, %s7676_s21  ;;  %v5365_v47 = vmul.f32 %v5340_v29, %v5237_v9 }
 0x7c3   : > { %5460 = vrot.lane.b32.xlu0 %v5070_v0, %s7675_s15 }
 0x7c4   : > { %v5027_v34 = vpop.permute.xlu0 %5026 }
 0x7c5   : > { %v5072_v38 = vmul.f32 %v5027_v34, %v4944_v60  ;;  %v5092_v34 = vld [vmem:[#allocation4 + $0x160] sm:$0xff] }
 0x7c6   : > { %5542 = vrot.lane.b32.xlu1 %v5223_v27, %s7676_s21 }
 0x7c7   : > { %5464 = vrot.lane.b32.xlu0 %v5072_v38, %s7675_s15 }
 0x7c8   : > { %v5037_v62 = vpop.permute.xlu0 %5036 }
 0x7c9   : > { %v5074_v10 = vmul.f32 %v5037_v62, %v4946_v28 }
 0x7ca   : > { %5578 = vrot.lane.b32.xlu1 %v5353_v49, %s7677_s22  ;;  %v5224_v49 = vld [vmem:[#allocation4 + $0x180] sm:$0xff] }
 0x7cb   : > { %5468 = vrot.lane.b32.xlu0 %v5074_v10, %s7675_s15 }
 0x7cc   : > { %v5047_v23 = vpop.permute.xlu0 %5046 }
 0x7cd   : > { %v5076_v57 = vmul.f32 %v5047_v23, %v4948_v40  ;;  %v5228_v23 = vld [vmem:[#allocation4 + $0x1a0] sm:$0xff] }
 0x7ce   : > { %5582 = vrot.lane.b32.xlu1 %v5355_v46, %s7677_s22 }
 0x7cf   : > { %5472 = vrot.lane.b32.xlu0 %v5076_v57, %s7675_s15 }
 0x7d0   : > { %v5057_v59 = vpop.permute.xlu0 %5056 }
 0x7d1   : > { %v5078_v51 = vmul.f32 %v5057_v59, %v4950_v4 }
 0x7d2   : > { %5586 = vrot.lane.b32.xlu1 %v5357_v8, %s7677_s22  ;;  %v5230_v8 = vld [vmem:[#allocation4 + $0x1b0] sm:$0xff] }
 0x7d3   : > { %5476 = vrot.lane.b32.xlu0 %v5078_v51, %s7675_s15 }
 0x7d4   : > { %v5131_v37 = vpop.permute.xlu0 %5130 }
 0x7d5   : > { %v5208_v24 = vmul.f32 %v5131_v37, %v5080_v22 }
 0x7d6   : > { %5590 = vrot.lane.b32.xlu1 %v5359_v63, %s7677_s22  ;;  %v5239_v63 = vld [vmem:[#allocation4 + $0x1f8] sm:$0xff] }
 0x7d7   : > { %5512 = vrot.lane.b32.xlu0 %v5208_v24, %s7676_s21  ;;  %v5234_v24 = vld [vmem:[#allocation4 + $0x1d0] sm:$0xff] }
 0x7d8   : > { %v5141_v31 = vpop.permute.xlu0 %5140 }
 0x7d9   : > { %v5210_v58 = vmul.f32 %v5141_v31, %v5082_v20  ;;  %v5369_v20 = vld [vmem:[#allocation2 + $0x8] sm:$0xff]  ;;  %v5236_v31 = vld [vmem:[#allocation4 + $0x1e0] sm:$0xff] }
 0x7da   : > { %5594 = vrot.lane.b32.xlu1 %v5361_v5, %s7677_s22 }
 0x7db   : > { %5516 = vrot.lane.b32.xlu0 %v5210_v58, %s7676_s21 }
 0x7dc   : > { %v5151_v7 = vpop.permute.xlu0 %5150 }
 0x7dd   : > { %v5212_v61 = vmul.f32 %v5151_v7, %v5084_v50  ;;  %v5371_v50 = vld [vmem:[#allocation2 + $0x18] sm:$0xff]  ;;  %v5238_v7 = vld [vmem:[#allocation4 + $0x1f0] sm:$0xff] }
 0x7de   : > { %5598 = vrot.lane.b32.xlu1 %v5363_v16, %s7677_s22 }
 0x7df   : > { %5520 = vrot.lane.b32.xlu0 %v5212_v61, %s7676_s21 }
 0x7e0   : > { %v5161_v41 = vpop.permute.xlu0 %5160 }
 0x7e1   : > { %v5214_v44 = vmul.f32 %v5161_v41, %v5086_v12  ;;  %v5368_v41 = vld [vmem:[#allocation2] sm:$0xff] }
 0x7e2   : > { %5602 = vrot.lane.b32.xlu1 %v5365_v47, %s7677_s22  ;;  %v5373_v47 = vld [vmem:[#allocation2 + $0x28] sm:$0xff] }
 0x7e3   : > { %5524 = vrot.lane.b32.xlu0 %v5214_v44, %s7676_s21  ;;  %v5375_v44 = vld [vmem:[#allocation2 + $0x38] sm:$0xff] }
 0x7e4   : > { %v5171_v26 = vpop.permute.xlu0 %5170 }
 0x7e5   : > { %v5216_v0 = vmul.f32 %v5171_v26, %v5088_v30  ;;  %v5370_v26 = vld [vmem:[#allocation2 + $0x10] sm:$0xff] }
 0x7e7   : > { %5528 = vrot.lane.b32.xlu0 %v5216_v0, %s7676_s21  ;;  %v5377_v0 = vld [vmem:[#allocation2 + $0x48] sm:$0xff] }
 0x7e8   : > { %v5181_v27 = vpop.permute.xlu0 %5180 }
 0x7e9   : > { %v5218_v60 = vmul.f32 %v5181_v27, %v5090_v6  ;;  %v5372_v27 = vld [vmem:[#allocation2 + $0x20] sm:$0xff] }
 0x7eb   : > { %5532 = vrot.lane.b32.xlu0 %v5218_v60, %s7676_s21  ;;  %v5379_v60 = vld [vmem:[#allocation2 + $0x58] sm:$0xff] }
 0x7ec   : > { %v5191_v17 = vpop.permute.xlu0 %5190 }
 0x7ed   : > { %v5220_v38 = vmul.f32 %v5191_v17, %v5092_v34  ;;  %v5374_v17 = vld [vmem:[#allocation2 + $0x30] sm:$0xff] }
 0x7ef   : > { %5536 = vrot.lane.b32.xlu0 %v5220_v38, %s7676_s21  ;;  %v5381_v38 = vld [vmem:[#allocation2 + $0x68] sm:$0xff] }
 0x7f0   : > { %v5201_v28 = vpop.permute.xlu0 %5200 }
 0x7f1   : > { %v5222_v62 = vmul.f32 %v5201_v28, %v5094_v36  ;;  %v5376_v28 = vld [vmem:[#allocation2 + $0x40] sm:$0xff] }
 0x7f3   : > { %5540 = vrot.lane.b32.xlu0 %v5222_v62, %s7676_s21  ;;  %v5383_v62 = vld [vmem:[#allocation2 + $0x78] sm:$0xff] }
 0x7f4   : > { %v5275_v10 = vpop.permute.xlu0 %5274 }
 0x7f5   : > { %v5352_v39 = vmul.f32 %v5275_v10, %v5224_v49 }
 0x7f7   : > { %5576 = vrot.lane.b32.xlu0 %v5352_v39, %s7677_s22  ;;  %v5378_v39 = vld [vmem:[#allocation2 + $0x50] sm:$0xff] }
 0x7f8   : > { %v5285_v46 = vpop.permute.xlu0 %5284 }
 0x7f9   : > { %v5354_v40 = vmul.f32 %v5285_v46, %v5226_v48  ;;  %v5385_v48 = vld [vmem:[#allocation2 + $0x88] sm:$0xff] }
 0x7fb   : > { %5580 = vrot.lane.b32.xlu0 %v5354_v40, %s7677_s22 }
 0x7fc   : > { %v5295_v57 = vpop.permute.xlu0 %5294 }
 0x7fd   : > { %v5356_v21 = vmul.f32 %v5295_v57, %v5228_v23  ;;  %v5380_v23 = vld [vmem:[#allocation2 + $0x60] sm:$0xff]  ;;  %v5387_v57 = vld [vmem:[#allocation2 + $0x98] sm:$0xff] }
 0x7ff   : > { %5584 = vrot.lane.b32.xlu0 %v5356_v21, %s7677_s22 }
 0x800   : > { %v5305_v4 = vpop.permute.xlu0 %5304 }
 0x801   : > { %v5358_v59 = vmul.f32 %v5305_v4, %v5230_v8  ;;  %v5382_v4 = vld [vmem:[#allocation2 + $0x70] sm:$0xff] }
 0x803   : > { %5588 = vrot.lane.b32.xlu0 %v5358_v59, %s7677_s22  ;;  %v5389_v59 = vld [vmem:[#allocation2 + $0xa8] sm:$0xff] }
 0x804   : > { %v5315_v51 = vpop.permute.xlu0 %5314 }
 0x805   : > { %v5360_v53 = vmul.f32 %v5315_v51, %v5232_v18  ;;  %v5350_v22 = vpop.permute.xlu1 %5349 }
 0x806   : > { %v5367_v37 = vmul.f32 %v5350_v22, %v5239_v63  ;;  %v5391_v63 = vld [vmem:[#allocation2 + $0xb8] sm:$0xff] }
 0x807   : > { %5592 = vrot.lane.b32.xlu0 %v5360_v53, %s7677_s22  ;;  %v5384_v53 = vld [vmem:[#allocation2 + $0x80] sm:$0xff] }
 0x808   : > { %5606 = vrot.lane.b32.xlu1 %v5367_v37, %s7677_s22  ;;  %v5325_v56 = vpop.permute.xlu0 %5324 }
 0x809   : > { %v5362_v45 = vmul.f32 %v5325_v56, %v5234_v24  ;;  %v11035_v5 = vpop.permute.xlu1 %5450  ;;  %v5386_v24 = vld [vmem:[#allocation2 + $0x90] sm:$0xff]  ;;  %v5393_v56 = vld [vmem:[#allocation2 + $0xc8] sm:$0xff] }
 0x80b   : > { %5596 = vrot.lane.b32.xlu0 %v5362_v45, %s7677_s22 }
 0x80c   : > { %5642 = vrot.lane.b32.xlu1 %v5369_v20, %s7678_s24  ;;  %v5335_v58 = vpop.permute.xlu0 %5334  ;;  %v5388_v20 = vld [vmem:[#allocation2 + $0xa0] sm:$0xff] }
 0x80d   : > { %v5364_v55 = vmul.f32 %v5335_v58, %v5236_v31  ;;  %v11039_v16 = vpop.permute.xlu1 %5454  ;;  %v5395_v31 = vld [vmem:[#allocation2 + $0xd8] sm:$0xff] }
 0x80f   : > { %5600 = vrot.lane.b32.xlu0 %v5364_v55, %s7677_s22 }
 0x810   : > { %5646 = vrot.lane.b32.xlu1 %v5371_v50, %s7678_s24  ;;  %v5345_v29 = vpop.permute.xlu0 %5344  ;;  %v5390_v50 = vld [vmem:[#allocation2 + $0xb0] sm:$0xff] }
 0x811   : > { %v5366_v61 = vmul.f32 %v5345_v29, %v5238_v7  ;;  %v11043_v9 = vpop.permute.xlu1 %5458  ;;  %v5397_v7 = vld [vmem:[#allocation2 + $0xe8] sm:$0xff] }
 0x813   : > { %5604 = vrot.lane.b32.xlu0 %v5366_v61, %s7677_s22 }
 0x814   : > { %5650 = vrot.lane.b32.xlu1 %v5373_v47, %s7678_s24  ;;  %v5392_v47 = vld [vmem:[#allocation2 + $0xc0] sm:$0xff] }
 0x815   : > { %v11047_v12 = vpop.permute.xlu1 %5462 }
 0x817   : > { %5640 = vrot.lane.b32.xlu0 %v5368_v41, %s7678_s24  ;;  %v5399_v41 = vld [vmem:[#allocation2 + $0xf8] sm:$0xff] }
 0x818   : > { %5654 = vrot.lane.b32.xlu1 %v5375_v44, %s7678_s24 }
 0x819   : > { %v11051_v30 = vpop.permute.xlu1 %5466 }
 0x81b   : > { %5644 = vrot.lane.b32.xlu0 %v5370_v26, %s7678_s24  ;;  %v5394_v26 = vld [vmem:[#allocation2 + $0xd0] sm:$0xff] }
 0x81c   : > { %5658 = vrot.lane.b32.xlu1 %v5377_v0, %s7678_s24  ;;  %v5401_v0 = vld [vmem:[#allocation2 + $0x108] sm:$0xff] }
 0x81d   : > { %v11055_v6 = vpop.permute.xlu1 %5470 }
 0x81e   : > { %12539 = vst [vmem:[#allocation111_spill] sm:$0xff] %v11055_v6 }
 0x81f   : > { %5648 = vrot.lane.b32.xlu0 %v5372_v27, %s7678_s24 }
 0x820   : > { %5662 = vrot.lane.b32.xlu1 %v5379_v60, %s7678_s24 }
 0x821   : > { %v11059_v34 = vpop.permute.xlu1 %5474 }
 0x822   : > { %12540 = vst [vmem:[#allocation106_spill] sm:$0xff] %v11059_v34  ;;  %v7584_v34 = vld [vmem:[#allocation3] sm:$0xff] }
 0x823   : > { %5652 = vrot.lane.b32.xlu0 %v5374_v17, %s7678_s24  ;;  %v5396_v17 = vld [vmem:[#allocation2 + $0xe0] sm:$0xff] }
 0x824   : > { %5666 = vrot.lane.b32.xlu1 %v5381_v38, %s7678_s24  ;;  %v5403_v38 = vld [vmem:[#allocation2 + $0x118] sm:$0xff] }
 0x825   : > { %v11063_v36 = vpop.permute.xlu1 %5478 }
 0x827   : > { %5656 = vrot.lane.b32.xlu0 %v5376_v28, %s7678_s24 }
 0x828   : > { %5670 = vrot.lane.b32.xlu1 %v5383_v62, %s7678_s24 }
 0x829   : > { %v11067_v49 = vpop.permute.xlu1 %5514  ;;  %v11069_v10 = vpop.permute.xlu0 %5448 }
 0x82b   : > { %5660 = vrot.lane.b32.xlu0 %v5378_v39, %s7678_s24  ;;  %v5398_v39 = vld [vmem:[#allocation2 + $0xf0] sm:$0xff] }
 0x82c   : > { %5706 = vrot.lane.b32.xlu1 %v5385_v48, %s7679_s25  ;;  %v5405_v48 = vld [vmem:[#allocation2 + $0x128] sm:$0xff] }
 0x82d   : > { %v11073_v46 = vpop.permute.xlu1 %5518  ;;  %v11075_v40 = vpop.permute.xlu0 %5452 }
 0x82f   : > { %5664 = vrot.lane.b32.xlu0 %v5380_v23, %s7678_s24 }
 0x830   : > { %5710 = vrot.lane.b32.xlu1 %v5387_v57, %s7679_s25  ;;  %v5400_v57 = vld [vmem:[#allocation2 + $0x100] sm:$0xff] }
 0x831   : > { %v11079_v21 = vpop.permute.xlu1 %5522  ;;  %v11081_v8 = vpop.permute.xlu0 %5456 }
 0x832   : > { %12541 = vst [vmem:[#allocation109_spill] sm:$0xff] %v11081_v8  ;;  %v7610_v8 = vld [vmem:[#allocation3 + $0xd0] sm:$0xff] }
 0x833   : > { %5668 = vrot.lane.b32.xlu0 %v5382_v4, %s7678_s24  ;;  %v5407_v4 = vld [vmem:[#allocation2 + $0x138] sm:$0xff] }
 0x834   : > { %5714 = vrot.lane.b32.xlu1 %v5389_v59, %s7679_s25 }
 0x835   : > { %v11085_v18 = vpop.permute.xlu1 %5526  ;;  %v11087_v51 = vpop.permute.xlu0 %5460 }
 0x836   : > { %12542 = vst [vmem:[#allocation39_spill] sm:$0xff] %v11087_v51 }
 0x837   : > { %5704 = vrot.lane.b32.xlu0 %v5384_v53, %s7679_s25 }
 0x838   : > { %5718 = vrot.lane.b32.xlu1 %v5391_v63, %s7679_s25  ;;  %v5402_v63 = vld [vmem:[#allocation2 + $0x110] sm:$0xff] }
 0x839   : > { %v11091_v22 = vpop.permute.xlu0 %5464  ;;  %v11093_v37 = vpop.permute.xlu1 %5530 }
 0x83a   : > { %12543 = vst [vmem:[#allocation61_spill] sm:$0xff] %v11091_v22 }
 0x83b   : > { %5708 = vrot.lane.b32.xlu0 %v5386_v24, %s7679_s25  ;;  %v5409_v24 = vld [vmem:[#allocation2 + $0x148] sm:$0xff] }
 0x83c   : > { %5722 = vrot.lane.b32.xlu1 %v5393_v56, %s7679_s25 }
 0x83d   : > { %v11097_v45 = vpop.permute.xlu0 %5468  ;;  %v11100_v58 = vpop.permute.xlu1 %5534 }
 0x83e   : > { %12544 = vst [vmem:[#allocation48_spill] sm:$0xff] %v11097_v45  ;;  %12545 = vst [vmem:[#allocation64_spill] sm:$0xff] %v11100_v58 }
 0x83f   : > { %5712 = vrot.lane.b32.xlu0 %v5388_v20, %s7679_s25 }
 0x840   : > { %5726 = vrot.lane.b32.xlu1 %v5395_v31, %s7679_s25  ;;  %v5404_v31 = vld [vmem:[#allocation2 + $0x120] sm:$0xff] }
 0x841   : > { %v11103_v55 = vpop.permute.xlu0 %5472  ;;  %v11109_v61 = vpop.permute.xlu1 %5538 }
 0x842   : > { %12546 = vst [vmem:[#allocation65_spill] sm:$0xff] %v11103_v55  ;;  %12547 = vst [vmem:[#allocation58_spill] sm:$0xff] %v11109_v61  ;;  %v5418_v55 = vld [vmem:[#allocation2 + $0x190] sm:$0xff] }
 0x843   : > { %5716 = vrot.lane.b32.xlu0 %v5390_v50, %s7679_s25  ;;  %v5411_v50 = vld [vmem:[#allocation2 + $0x158] sm:$0xff]  ;;  %v5430_v61 = vld [vmem:[#allocation2 + $0x1f0] sm:$0xff] }
 0x844   : > { %5730 = vrot.lane.b32.xlu1 %v5397_v7, %s7679_s25 }
 0x845   : > { %v11107_v29 = vpop.permute.xlu0 %5476  ;;  %v11116_v27 = vpop.permute.xlu1 %5542 }
 0x847   : > { %5720 = vrot.lane.b32.xlu0 %v5392_v47, %s7679_s25  ;;  %v5406_v47 = vld [vmem:[#allocation2 + $0x130] sm:$0xff] }
 0x848   : > { %5734 = vrot.lane.b32.xlu1 %v5399_v41, %s7679_s25  ;;  %v5413_v41 = vld [vmem:[#allocation2 + $0x168] sm:$0xff] }
 0x849   : > { %v11113_v44 = vpop.permute.xlu0 %5512  ;;  %v11125_v62 = vpop.permute.xlu1 %5578 }
 0x84b   : > { %5724 = vrot.lane.b32.xlu0 %v5394_v26, %s7679_s25 }
 0x84c   : > { %5770 = vrot.lane.b32.xlu1 %v5401_v0, %s7680_s26 }
 0x84d   : > { %v11119_v60 = vpop.permute.xlu0 %5516  ;;  %v11132_v59 = vpop.permute.xlu1 %5582 }
 0x84f   : > { %5728 = vrot.lane.b32.xlu0 %v5396_v17, %s7679_s25  ;;  %v5408_v17 = vld [vmem:[#allocation2 + $0x140] sm:$0xff] }
 0x850   : > { %5774 = vrot.lane.b32.xlu1 %v5403_v38, %s7680_s26  ;;  %v5415_v38 = vld [vmem:[#allocation2 + $0x178] sm:$0xff] }
 0x851   : > { %v11123_v28 = vpop.permute.xlu0 %5520  ;;  %v11141_v20 = vpop.permute.xlu1 %5586 }
 0x852   : > { %12548 = vst [vmem:[#allocation59_spill] sm:$0xff] %v11123_v28  ;;  %v7598_v28 = vld [vmem:[#allocation3 + $0x70] sm:$0xff] }
 0x853   : > { %5732 = vrot.lane.b32.xlu0 %v5398_v39, %s7679_s25 }
 0x854   : > { %5778 = vrot.lane.b32.xlu1 %v5405_v48, %s7680_s26 }
 0x855   : > { %v11129_v23 = vpop.permute.xlu0 %5524  ;;  %v11148_v26 = vpop.permute.xlu1 %5590 }
 0x856   : > { %12549 = vst [vmem:[#allocation71_spill] sm:$0xff] %v11129_v23 }
 0x857   : > { %5768 = vrot.lane.b32.xlu0 %v5400_v57, %s7680_s26  ;;  %v5410_v57 = vld [vmem:[#allocation2 + $0x150] sm:$0xff] }
 0x858   : > { %5782 = vrot.lane.b32.xlu1 %v5407_v4, %s7680_s26  ;;  %v5417_v4 = vld [vmem:[#allocation2 + $0x188] sm:$0xff] }
 0x859   : > { %v11135_v53 = vpop.permute.xlu0 %5528  ;;  %v11157_v48 = vpop.permute.xlu1 %5594 }
 0x85a   : > { %12550 = vst [vmem:[#allocation69_spill] sm:$0xff] %v11135_v53  ;;  %12553 = vst [vmem:[#allocation66_spill] sm:$0xff] %v11157_v48  ;;  %v5426_v53 = vld [vmem:[#allocation2 + $0x1d0] sm:$0xff] }
 0x85b   : > { %5772 = vrot.lane.b32.xlu0 %v5402_v63, %s7680_s26 }
 0x85c   : > { %5786 = vrot.lane.b32.xlu1 %v5409_v24, %s7680_s26  ;;  %v5412_v24 = vld [vmem:[#allocation2 + $0x160] sm:$0xff] }
 0x85d   : > { %v11139_v56 = vpop.permute.xlu0 %5532 }
 0x85e   : > { %12551 = vst [vmem:[#allocation70_spill] sm:$0xff] %v11139_v56  ;;  %v5420_v56 = vld [vmem:[#allocation2 + $0x1a0] sm:$0xff] }
 0x85f   : > { %5776 = vrot.lane.b32.xlu0 %v5404_v31, %s7680_s26  ;;  %v5419_v31 = vld [vmem:[#allocation2 + $0x198] sm:$0xff] }
 0x860   : > { %5790 = vrot.lane.b32.xlu1 %v5411_v50, %s7680_s26  ;;  %v11164_v50 = vpop.permute.xlu1 %5598 }
 0x861   : > { %v11145_v7 = vpop.permute.xlu0 %5536  ;;  %12554 = vst [vmem:[#allocation72_spill] sm:$0xff] %v11164_v50  ;;  %v7594_v50 = vld [vmem:[#allocation3 + $0x50] sm:$0xff] }
 0x862   : > { %12552 = vst [vmem:[#allocation62_spill] sm:$0xff] %v11145_v7 }
 0x863   : > { %5780 = vrot.lane.b32.xlu0 %v5406_v47, %s7680_s26 }
 0x864   : > { %5794 = vrot.lane.b32.xlu1 %v5413_v41, %s7680_s26  ;;  %v5414_v41 = vld [vmem:[#allocation2 + $0x170] sm:$0xff] }
 0x865   : > { %v11151_v0 = vpop.permute.xlu0 %5540 }
 0x867   : > { %5784 = vrot.lane.b32.xlu0 %v5408_v17, %s7680_s26  ;;  %v5421_v17 = vld [vmem:[#allocation2 + $0x1a8] sm:$0xff] }
 0x868   : > { %5798 = vrot.lane.b32.xlu1 %v5415_v38, %s7680_s26 }
 0x869   : > { %v11155_v39 = vpop.permute.xlu0 %5576 }
 0x86b   : > { %5788 = vrot.lane.b32.xlu0 %v5410_v57, %s7680_s26  ;;  %v11173_v57 = vpop.permute.xlu1 %5602 }
 0x86c   : > { %5834 = vrot.lane.b32.xlu1 %v5417_v4, %s7681_s27  ;;  %12557 = vst [vmem:[#allocation68_spill] sm:$0xff] %v11173_v57  ;;  %v5416_v4 = vld [vmem:[#allocation2 + $0x180] sm:$0xff] }
 0x86d   : > { %v11161_v63 = vpop.permute.xlu0 %5580  ;;  %v5428_v57 = vld [vmem:[#allocation2 + $0x1e0] sm:$0xff] }
 0x86f   : > { %5792 = vrot.lane.b32.xlu0 %v5412_v24, %s7680_s26  ;;  %v5423_v24 = vld [vmem:[#allocation2 + $0x1b8] sm:$0xff] }
 0x870   : > { %5838 = vrot.lane.b32.xlu1 %v5419_v31, %s7681_s27 }
 0x871   : > { %v11167_v47 = vpop.permute.xlu0 %5584 }
 0x872   : > { %12555 = vst [vmem:[#allocation67_spill] sm:$0xff] %v11167_v47  ;;  %v7596_v47 = vld [vmem:[#allocation3 + $0x60] sm:$0xff] }
 0x873   : > { %5796 = vrot.lane.b32.xlu0 %v5414_v41, %s7680_s26  ;;  %v5425_v41 = vld [vmem:[#allocation2 + $0x1c8] sm:$0xff] }
 0x874   : > { %5842 = vrot.lane.b32.xlu1 %v5421_v17, %s7681_s27 }
 0x875   : > { %v11171_v38 = vpop.permute.xlu0 %5588 }
 0x876   : > { %12556 = vst [vmem:[#allocation75_spill] sm:$0xff] %v11171_v38 }
 0x877   : > { %5832 = vrot.lane.b32.xlu0 %v5416_v4, %s7681_s27  ;;  %v5427_v4 = vld [vmem:[#allocation2 + $0x1d8] sm:$0xff] }
 0x878   : > { %5846 = vrot.lane.b32.xlu1 %v5423_v24, %s7681_s27 }
 0x879   : > { %v11177_v7 = vpop.permute.xlu0 %5592 }
 0x87a   : > { %12558 = vst [vmem:[#allocation73_spill] sm:$0xff] %v11177_v7  ;;  %v11179_v31 = vpop.permute.xlu1 %5606  ;;  %v5422_v7 = vld [vmem:[#allocation2 + $0x1b0] sm:$0xff] }
 0x87b   : > { %5836 = vrot.lane.b32.xlu0 %v5418_v55, %s7681_s27  ;;  %v5429_v55 = vld [vmem:[#allocation2 + $0x1e8] sm:$0xff] }
 0x87c   : > { %5850 = vrot.lane.b32.xlu1 %v5425_v41, %s7681_s27 }
 0x87d   : > { %v11183_v17 = vpop.permute.xlu0 %5596 }
 0x87e   : > { %12559 = vst [vmem:[#allocation76_spill] sm:$0xff] %v11183_v17  ;;  %v11185_v13 = vpop.permute.xlu1 %5642 }
 0x87f   : > { %5840 = vrot.lane.b32.xlu0 %v5420_v56, %s7681_s27  ;;  %v5431_v56 = vld [vmem:[#allocation2 + $0x1f8] sm:$0xff] }
 0x880   : > { %5854 = vrot.lane.b32.xlu1 %v5427_v4, %s7681_s27 }
 0x881   : > { %v11189_v24 = vpop.permute.xlu0 %5600 }
 0x882   : > { %12560 = vst [vmem:[#allocation74_spill] sm:$0xff] %v11189_v24  ;;  %v11191_v45 = vpop.permute.xlu1 %5646 }
 0x883   : > { %5844 = vrot.lane.b32.xlu0 %v5422_v7, %s7681_s27  ;;  %v7581_v7 = vld [vmem:[#allocation3 + $0x8] sm:$0xff] }
 0x884   : > { %5858 = vrot.lane.b32.xlu1 %v5429_v55, %s7681_s27 }
 0x885   : > { %v11195_v41 = vpop.permute.xlu0 %5604 }
 0x886   : > { %v11197_v17 = vpop.permute.xlu1 %5650 }
 0x887   : > { %5848 = vrot.lane.b32.xlu0 %v5424_v33, %s7681_s27  ;;  %v7582_v33 = vld [vmem:[#allocation3 + $0x18] sm:$0xff] }
 0x888   : > { %5862 = vrot.lane.b32.xlu1 %v5431_v56, %s7681_s27 }
 0x889   : > { %v11201_v4 = vpop.permute.xlu0 %5640 }
 0x88a   : > { %v11203_v24 = vpop.permute.xlu1 %5654 }
 0x88b   : > { %5852 = vrot.lane.b32.xlu0 %v5426_v53, %s7681_s27  ;;  %v7583_v53 = vld [vmem:[#allocation3 + $0x28] sm:$0xff] }
 0x88c   : > { %5898 = vrot.lane.b32.xlu1 %v7581_v7, %s7682_s28 }
 0x88d   : > { %v11207_v55 = vpop.permute.xlu0 %5644 }
 0x88e   : > { %12561 = vst [vmem:[#allocation77_spill] sm:$0xff] %v11207_v55  ;;  %v11209_v22 = vpop.permute.xlu1 %5658  ;;  %v7612_v55 = vld [vmem:[#allocation3 + $0xe0] sm:$0xff] }
 0x88f   : > { %12562 = vst [vmem:[#allocation79_spill] sm:$0xff] %v11209_v22  ;;  %5856 = vrot.lane.b32.xlu0 %v5428_v57, %s7681_s27  ;;  %v7585_v57 = vld [vmem:[#allocation3 + $0x38] sm:$0xff]  ;;  %v7608_v22 = vld [vmem:[#allocation3 + $0xc0] sm:$0xff] }
 0x890   : > { %5902 = vrot.lane.b32.xlu1 %v7582_v33, %s7682_s28 }
 0x891   : > { %v11213_v56 = vpop.permute.xlu0 %5648 }
 0x892   : > { %12563 = vst [vmem:[#allocation78_spill] sm:$0xff] %v11213_v56  ;;  %v11215_v38 = vpop.permute.xlu1 %5662  ;;  %v7592_v56 = vld [vmem:[#allocation3 + $0x40] sm:$0xff] }
 0x893   : > { %12564 = vst [vmem:[#allocation80_spill] sm:$0xff] %v11215_v38  ;;  %5860 = vrot.lane.b32.xlu0 %v5430_v61, %s7681_s27  ;;  %v7586_v38 = vld [vmem:[#allocation3 + $0x10] sm:$0xff]  ;;  %v7587_v61 = vld [vmem:[#allocation3 + $0x48] sm:$0xff] }
 0x894   : > { %5906 = vrot.lane.b32.xlu1 %v7583_v53, %s7682_s28 }
 0x895   : > { %v11219_v7 = vpop.permute.xlu0 %5652 }
 0x896   : > { %12565 = vst [vmem:[#allocation81_spill] sm:$0xff] %v11219_v7  ;;  %v11221_v23 = vpop.permute.xlu1 %5666 }
 0x897   : > { %12566 = vst [vmem:[#allocation26_spill] sm:$0xff] %v11221_v23  ;;  %5896 = vrot.lane.b32.xlu0 %v7584_v34, %s7682_s28  ;;  %v7588_v23 = vld [vmem:[#allocation3 + $0x20] sm:$0xff]  ;;  %v7589_v34 = vld [vmem:[#allocation3 + $0x58] sm:$0xff] }
 0x898   : > { %5910 = vrot.lane.b32.xlu1 %v7585_v57, %s7682_s28 }
 0x899   : > { %v11225_v33 = vpop.permute.xlu0 %5656 }
 0x89a   : > { %12567 = vst [vmem:[#allocation82_spill] sm:$0xff] %v11225_v33  ;;  %v11227_v51 = vpop.permute.xlu1 %5670 }
 0x89b   : > { %5900 = vrot.lane.b32.xlu0 %v7586_v38, %s7682_s28  ;;  %v7591_v38 = vld [vmem:[#allocation3 + $0x68] sm:$0xff] }
 0x89c   : > { %5914 = vrot.lane.b32.xlu1 %v7587_v61, %s7682_s28 }
 0x89d   : > { %v11231_v53 = vpop.permute.xlu0 %5660 }
 0x89e   : > { %12568 = vst [vmem:[#allocation83_spill] sm:$0xff] %v11231_v53  ;;  %v11233_v7 = vpop.permute.xlu1 %5706 }
 0x89f   : > { %5904 = vrot.lane.b32.xlu0 %v7588_v23, %s7682_s28  ;;  %v7593_v23 = vld [vmem:[#allocation3 + $0x78] sm:$0xff] }
 0x8a0   : > { %5918 = vrot.lane.b32.xlu1 %v7589_v34, %s7682_s28 }
 0x8a1   : > { %v11237_v57 = vpop.permute.xlu0 %5664 }
 0x8a2   : > { %12569 = vst [vmem:[#allocation50_spill] sm:$0xff] %v11237_v57  ;;  %v11239_v33 = vpop.permute.xlu1 %5710 }
 0x8a3   : > { %5908 = vrot.lane.b32.xlu0 %v7590_v14, %s7682_s28  ;;  %v7595_v14 = vld [vmem:[#allocation3 + $0x88] sm:$0xff] }
 0x8a4   : > { %5922 = vrot.lane.b32.xlu1 %v7591_v38, %s7682_s28 }
 0x8a5   : > { %v11243_v61 = vpop.permute.xlu0 %5668 }
 0x8a6   : > { %v11245_v53 = vpop.permute.xlu1 %5714 }
 0x8a7   : > { %5912 = vrot.lane.b32.xlu0 %v7592_v56, %s7682_s28  ;;  %v7597_v56 = vld [vmem:[#allocation3 + $0x98] sm:$0xff] }
 0x8a8   : > { %5926 = vrot.lane.b32.xlu1 %v7593_v23, %s7682_s28 }
 0x8a9   : > { %v11249_v34 = vpop.permute.xlu0 %5704 }
 0x8aa   : > { %v11251_v57 = vpop.permute.xlu1 %5718 }
 0x8ab   : > { %5916 = vrot.lane.b32.xlu0 %v7594_v50, %s7682_s28  ;;  %v7599_v50 = vld [vmem:[#allocation3 + $0xa8] sm:$0xff] }
 0x8ac   : > { %5962 = vrot.lane.b32.xlu1 %v7595_v14, %s7683_s23 }
 0x8ad   : > { %v11255_v38 = vpop.permute.xlu0 %5708 }
 0x8ae   : > { %12570 = vst [vmem:[#allocation57_spill] sm:$0xff] %v11255_v38  ;;  %v11257_v11 = vpop.permute.xlu1 %5722  ;;  %v7606_v38 = vld [vmem:[#allocation3 + $0xb0] sm:$0xff] }
 0x8af   : > { %12571 = vst [vmem:[#allocation38_spill] sm:$0xff] %v11257_v11  ;;  %5920 = vrot.lane.b32.xlu0 %v7596_v47, %s7682_s28  ;;  %v7600_v11 = vld [vmem:[#allocation3 + $0x80] sm:$0xff]  ;;  %v7601_v47 = vld [vmem:[#allocation3 + $0xb8] sm:$0xff] }
 0x8b0   : > { %5966 = vrot.lane.b32.xlu1 %v7597_v56, %s7683_s23 }
 0x8b1   : > { %v11261_v23 = vpop.permute.xlu0 %5712 }
 0x8b2   : > { %12572 = vst [vmem:[#allocation63_spill] sm:$0xff] %v11261_v23  ;;  %v11263_v58 = vpop.permute.xlu1 %5726 }
 0x8b3   : > { %12573 = vst [vmem:[#allocation29_spill] sm:$0xff] %v11263_v58  ;;  %5924 = vrot.lane.b32.xlu0 %v7598_v28, %s7682_s28  ;;  %v7602_v58 = vld [vmem:[#allocation3 + $0x90] sm:$0xff]  ;;  %v7603_v28 = vld [vmem:[#allocation3 + $0xc8] sm:$0xff] }
 0x8b4   : > { %5970 = vrot.lane.b32.xlu1 %v7599_v50, %s7683_s23 }
 0x8b5   : > { %v11267_v14 = vpop.permute.xlu0 %5716 }
 0x8b6   : > { %12574 = vst [vmem:[#allocation102_spill] sm:$0xff] %v11267_v14  ;;  %v11269_v6 = vpop.permute.xlu1 %5730 }
 0x8b7   : > { %12575 = vst [vmem:[#allocation89_spill] sm:$0xff] %v11269_v6  ;;  %5960 = vrot.lane.b32.xlu0 %v7600_v11, %s7683_s23  ;;  %v7604_v6 = vld [vmem:[#allocation3 + $0xa0] sm:$0xff]  ;;  %v7605_v11 = vld [vmem:[#allocation3 + $0xd8] sm:$0xff] }
 0x8b8   : > { %5974 = vrot.lane.b32.xlu1 %v7601_v47, %s7683_s23 }
 0x8b9   : > { %v11273_v56 = vpop.permute.xlu0 %5720 }
 0x8ba   : > { %12576 = vst [vmem:[#allocation94_spill] sm:$0xff] %v11273_v56  ;;  %v11275_v23 = vpop.permute.xlu1 %5734 }
 0x8bb   : > { %5964 = vrot.lane.b32.xlu0 %v7602_v58, %s7683_s23  ;;  %v7607_v58 = vld [vmem:[#allocation3 + $0xe8] sm:$0xff] }
 0x8bc   : > { %5978 = vrot.lane.b32.xlu1 %v7603_v28, %s7683_s23 }
 0x8bd   : > { %v11279_v50 = vpop.permute.xlu0 %5724 }
 0x8be   : > { %12577 = vst [vmem:[#allocation108_spill] sm:$0xff] %v11279_v50  ;;  %v11281_v14 = vpop.permute.xlu1 %5770 }
 0x8bf   : > { %5968 = vrot.lane.b32.xlu0 %v7604_v6, %s7683_s23  ;;  %v7609_v6 = vld [vmem:[#allocation3 + $0xf8] sm:$0xff] }
 0x8c0   : > { %5982 = vrot.lane.b32.xlu1 %v7605_v11, %s7683_s23 }
 0x8c1   : > { %v11285_v47 = vpop.permute.xlu0 %5728 }
 0x8c2   : > { %12578 = vst [vmem:[#allocation5_spill] sm:$0xff] %v11285_v47  ;;  %v11287_v56 = vpop.permute.xlu1 %5774 }
 0x8c3   : > { %5972 = vrot.lane.b32.xlu0 %v7606_v38, %s7683_s23  ;;  %v7611_v38 = vld [vmem:[#allocation3 + $0x108] sm:$0xff] }
 0x8c4   : > { %5986 = vrot.lane.b32.xlu1 %v7607_v58, %s7683_s23 }
 0x8c5   : > { %v11291_v28 = vpop.permute.xlu0 %5732 }
 0x8c6   : > { %v11293_v50 = vpop.permute.xlu1 %5778 }
 0x8c7   : > { %5976 = vrot.lane.b32.xlu0 %v7608_v22, %s7683_s23  ;;  %v7613_v22 = vld [vmem:[#allocation3 + $0x118] sm:$0xff] }
 0x8c8   : > { %5990 = vrot.lane.b32.xlu1 %v7609_v6, %s7683_s23 }
 0x8c9   : > { %v11297_v11 = vpop.permute.xlu0 %5768 }
 0x8ca   : > { %v11299_v47 = vpop.permute.xlu1 %5782 }
 0x8cb   : > { %12579 = vst [vmem:[#allocation6_spill] sm:$0xff] %v11299_v47  ;;  %5980 = vrot.lane.b32.xlu0 %v7610_v8, %s7683_s23  ;;  %v7614_v8 = vld [vmem:[#allocation3 + $0xf0] sm:$0xff]  ;;  %v7615_v47 = vld [vmem:[#allocation3 + $0x128] sm:$0xff] }
 0x8cc   : > { %6026 = vrot.lane.b32.xlu1 %v7611_v38, %s7684_s29  ;;  %v4935_v38 = vmul.f32 %v10934_v54, %v4807_v3  ;;  %v7617_v54 = vld [vmem:[#allocation3 + $0x138] sm:$0xff] }
 0x8cd   : > { %v11303_v58 = vpop.permute.xlu0 %5772 }
 0x8ce   : > { %12580 = vst [vmem:[#allocation7_spill] sm:$0xff] %v11303_v58  ;;  %v11305_v35 = vpop.permute.xlu1 %5786  ;;  %v4793_v58 = vld [vmem:[#allocation4 + $0x8] sm:$0xff] }
 0x8cf   : > { %12581 = vst [vmem:[#allocation21_spill] sm:$0xff] %v11305_v35  ;;  %5984 = vrot.lane.b32.xlu0 %v7612_v55, %s7683_s23  ;;  %v6151_v55 = vsel %vm432_vm1, %v4935_v38, %v11063_v36 }
 0x8d0   : > { %6030 = vrot.lane.b32.xlu1 %v7613_v22, %s7684_s29 }
 0x8d1   : > { %v11309_v6 = vpop.permute.xlu0 %5776 }
 0x8d2   : > { %12582 = vst [vmem:[#allocation23_spill] sm:$0xff] %v11309_v6  ;;  %v11311_v48 = vpop.permute.xlu1 %5790  ;;  %v6168_v6 = vsel %vm6152_vm2, %v6151_v55, %v11116_v27  ;;  %v4795_v27 = vld [vmem:[#allocation4 + $0x18] sm:$0xff] }
 0x8d3   : > { %12583 = vst [vmem:[#allocation24_spill] sm:$0xff] %v11311_v48  ;;  %5988 = vrot.lane.b32.xlu0 %v7614_v8, %s7683_s23  ;;  %v4921_v48 = vmul.f32 %v10920_v19, %v4793_v58  ;;  %v7616_v8 = vld [vmem:[#allocation3 + $0x100] sm:$0xff]  ;;  %v6185_v3 = vsel %vm6169_vm3, %v6168_v6, %v11179_v31  ;;  %v4923_v38 = vmul.f32 %v10922_v1, %v4795_v27 }
 0x8d4   : > { %6034 = vrot.lane.b32.xlu1 %v7615_v47, %s7684_s29  ;;  %v6202_v19 = vsel %vm6186_vm4, %v6185_v3, %v11227_v51  ;;  %v7618_v51 = vld [vmem:[#allocation3 + $0x110] sm:$0xff] }
 0x8d5   : > { %v11316_v35 = vpop.permute.xlu0 %5780  ;;  %v6137_v36 = vsel %vm432_vm1, %v4921_v48, %v11035_v5  ;;  %v6219_v31 = vsel %vm6203_vm5, %v6202_v19, %v11275_v23  ;;  %v6139_v23 = vsel %vm432_vm1, %v4923_v38, %v11039_v16  ;;  %v4806_v3 = vld [vmem:[#allocation4 + $0x70] sm:$0xff]  ;;  %v4799_v38 = vld [vmem:[#allocation4 + $0x38] sm:$0xff] }
 0x8d6   : > { %v11320_v22 = vpop.permute.xlu1 %5794  ;;  %v6154_v58 = vsel %vm6152_vm2, %v6137_v36, %v11067_v49  ;;  %v7619_v49 = vld [vmem:[#allocation3 + $0x148] sm:$0xff]  ;;  %v4934_v27 = vmul.f32 %v10995_v52, %v4806_v3 }
 0x8d7   : > { %6024 = vrot.lane.b32.xlu0 %v7616_v8, %s7684_s29  ;;  %v6171_v5 = vsel %vm6169_vm3, %v6154_v58, %v11125_v62  ;;  %v4797_v8 = vld [vmem:[#allocation4 + $0x28] sm:$0xff]  ;;  %v7620_v58 = vld [vmem:[#allocation3 + $0x120] sm:$0xff] }
 0x8d8   : > { %6038 = vrot.lane.b32.xlu1 %v7617_v54, %s7684_s29  ;;  %v6188_v55 = vsel %vm6186_vm4, %v6171_v5, %v11185_v13  ;;  %v6156_v54 = vsel %vm6152_vm2, %v6139_v23, %v11073_v46  ;;  %v4925_v19 = vmul.f32 %v10924_v25, %v4797_v8  ;;  %v6150_v52 = vsel %vm432_vm1, %v4934_v27, %v11107_v29 }
 0x8d9   : > { %v11333_v47 = vpop.permute.xlu0 %5784  ;;  %v6205_v1 = vsel %vm6203_vm5, %v6188_v55, %v11233_v7  ;;  %v6173_v16 = vsel %vm6169_vm3, %v6156_v54, %v11132_v59  ;;  %v4927_v29 = vmul.f32 %v10926_v15, %v4799_v38  ;;  %v12586_v38 = vld [vmem:[#allocation66_spill] sm:$0xff] }
 0x8da   : > { %v5799_v6 = vpop.permute.xlu1 %5798  ;;  %v6222_v13 = vsel %vm6220_vm6, %v6205_v1, %v11281_v14  ;;  %v6190_v46 = vsel %vm6186_vm4, %v6173_v16, %v11191_v45  ;;  %v4792_v14 = vld [vmem:[#allocation4] sm:$0xff]  ;;  %v6141_v25 = vsel %vm432_vm1, %v4925_v19, %v11043_v9  ;;  %v7623_v1 = vld [vmem:[#allocation3 + $0x168] sm:$0xff]  ;;  %v7625_v16 = vld [vmem:[#allocation3 + $0x178] sm:$0xff] }
 0x8db   : > { %v11343_v48 = vsel %vm6220_vm6, %v6219_v31, %v5799_v6  ;;  %6028 = vrot.lane.b32.xlu0 %v7618_v51, %s7684_s29  ;;  %v7621_v31 = vld [vmem:[#allocation3 + $0x158] sm:$0xff]  ;;  %v6207_v59 = vsel %vm6203_vm5, %v6190_v46, %v11239_v33  ;;  %v4920_v5 = vmul.f32 %v10971_v43, %v4792_v14  ;;  %v6158_v45 = vsel %vm6152_vm2, %v6141_v25, %v11079_v21  ;;  %v7622_v21 = vld [vmem:[#allocation3 + $0x130] sm:$0xff]  ;;  %v12584_v14 = vld [vmem:[#allocation6_spill] sm:$0xff] }
 0x8dc   : > { %6042 = vrot.lane.b32.xlu1 %v7619_v49, %s7684_s29  ;;  %v6167_v51 = vsel %vm6152_vm2, %v6150_v52, %v11151_v0  ;;  %v6224_v9 = vsel %vm6220_vm6, %v6207_v59, %v11287_v56  ;;  %v4794_v49 = vld [vmem:[#allocation4 + $0x10] sm:$0xff]  ;;  %v6175_v33 = vsel %vm6169_vm3, %v6158_v45, %v11141_v20 }
 0x8dd   : > { %v11353_v62 = vpop.permute.xlu0 %5788  ;;  %v6184_v23 = vsel %vm6169_vm3, %v6167_v51, %v11195_v41  ;;  %v4922_v0 = vmul.f32 %v10975_v32, %v4794_v49  ;;  %v6136_v56 = vsel %vm432_vm1, %v4920_v5, %v11069_v10  ;;  %v6192_v15 = vsel %vm6186_vm4, %v6175_v33, %v11197_v17  ;;  %v4801_v17 = vld [vmem:[#allocation4 + $0x48] sm:$0xff]  ;;  %v12585_v52 = vld [vmem:[#allocation47_spill] sm:$0xff]  ;;  %v12587_v5 = vld [vmem:[#allocation77_spill] sm:$0xff] }
 0x8de   : > { %v5835_v36 = vpop.permute.xlu1 %5834  ;;  %v6201_v20 = vsel %vm6186_vm4, %v6184_v23, %v11243_v61  ;;  %v6143_v41 = vsel %vm432_vm1, %v4927_v29, %v11047_v12  ;;  %v6153_v8 = vsel %vm6152_vm2, %v6136_v56, %v11113_v44  ;;  %v6209_v32 = vsel %vm6203_vm5, %v6192_v15, %v11245_v53  ;;  %v4798_v59 = vld [vmem:[#allocation4 + $0x30] sm:$0xff]  ;;  %v12591_v23 = vld [vmem:[#allocation57_spill] sm:$0xff] }
 0x8df   : > { %v11364_v7 = vsel %vm6237_vm7, %v6222_v13, %v5835_v36  ;;  %6032 = vrot.lane.b32.xlu0 %v7620_v58, %s7684_s29  ;;  %v6218_v10 = vsel %vm6203_vm5, %v6201_v20, %v11291_v28  ;;  %v6160_v61 = vsel %vm6152_vm2, %v6143_v41, %v11085_v18  ;;  %v6170_v54 = vsel %vm6169_vm3, %v6153_v8, %v11155_v39  ;;  %v4796_v36 = vld [vmem:[#allocation4 + $0x20] sm:$0xff]  ;;  %v12588_v51 = vld [vmem:[#allocation107_spill] sm:$0xff]  ;;  %v12594_v41 = vld [vmem:[#allocation38_spill] sm:$0xff] }
 0x8e0   : > { %6046 = vrot.lane.b32.xlu1 %v7621_v31, %s7684_s29  ;;  %v6226_v12 = vsel %vm6220_vm6, %v6209_v32, %v11293_v50  ;;  %v4929_v53 = vmul.f32 %v10928_v42, %v4801_v17  ;;  %v6177_v28 = vsel %vm6169_vm3, %v6160_v61, %v11148_v26  ;;  %v6187_v19 = vsel %vm6186_vm4, %v6170_v54, %v11201_v4  ;;  %v7624_v39 = vld [vmem:[#allocation3 + $0x140] sm:$0xff]  ;;  %v12590_v49 = vld [vmem:[#allocation79_spill] sm:$0xff]  ;;  %v4805_v17 = vld [vmem:[#allocation4 + $0x68] sm:$0xff] }
 0x8e1   : > { %v11376_v6 = vpop.permute.xlu0 %5792  ;;  %v4924_v50 = vmul.f32 %v10979_v2, %v4796_v36  ;;  %v6138_v27 = vsel %vm432_vm1, %v4922_v0, %v11075_v40  ;;  %v6194_v42 = vsel %vm6186_vm4, %v6177_v28, %v11203_v24  ;;  %v6204_v26 = vsel %vm6203_vm5, %v6187_v19, %v11249_v34  ;;  %v4803_v24 = vld [vmem:[#allocation4 + $0x58] sm:$0xff]  ;;  %v7627_v0 = vld [vmem:[#allocation3 + $0x188] sm:$0xff]  ;;  %v12592_v56 = vld [vmem:[#allocation111_spill] sm:$0xff] }
 0x8e2   : > { %v5839_v55 = vpop.permute.xlu1 %5838  ;;  %v6145_v4 = vsel %vm432_vm1, %v4929_v53, %v11051_v30  ;;  %v6155_v58 = vsel %vm6152_vm2, %v6138_v27, %v11119_v60  ;;  %v6211_v2 = vsel %vm6203_vm5, %v6194_v42, %v11251_v57  ;;  %v6221_v40 = vsel %vm6220_vm6, %v6204_v26, %v11297_v11  ;;  %v12593_v20 = vld [vmem:[#allocation59_spill] sm:$0xff]  ;;  %v12596_v61 = vld [vmem:[#allocation64_spill] sm:$0xff]  ;;  %v12598_v53 = vld [vmem:[#allocation21_spill] sm:$0xff] }
 0x8e3   : > { %v11391_v43 = vsel %vm6237_vm7, %v6224_v9, %v5839_v55  ;;  %6036 = vrot.lane.b32.xlu0 %v7622_v21, %s7684_s29  ;;  %v6162_v34 = vsel %vm6152_vm2, %v6145_v4, %v11093_v37  ;;  %v6172_v31 = vsel %vm6169_vm3, %v6155_v58, %v11161_v63  ;;  %v6228_v30 = vsel %vm6220_vm6, %v6211_v2, %v12584_v14  ;;  %v7626_v63 = vld [vmem:[#allocation3 + $0x150] sm:$0xff]  ;;  %v12589_v55 = vld [vmem:[#allocation109_spill] sm:$0xff]  ;;  %v12600_v42 = vld [vmem:[#allocation72_spill] sm:$0xff] }
 0x8e4   : > { %6050 = vrot.lane.b32.xlu1 %v7623_v1, %s7684_s29  ;;  %v4931_v57 = vmul.f32 %v12585_v52, %v4803_v24  ;;  %v6179_v11 = vsel %vm6169_vm3, %v6162_v34, %v12586_v38  ;;  %v6189_v45 = vsel %vm6186_vm4, %v6172_v31, %v12587_v5  ;;  %v4926_v9 = vmul.f32 %v12588_v51, %v4798_v59  ;;  %v12595_v32 = vld [vmem:[#allocation7_spill] sm:$0xff]  ;;  %v4800_v27 = vld [vmem:[#allocation4 + $0x40] sm:$0xff]  ;;  %v12604_v31 = vld [vmem:[#allocation80_spill] sm:$0xff] }
 0x8e5   : > { %v5797_v3 = vpop.permute.xlu0 %5796  ;;  %v6140_v29 = vsel %vm432_vm1, %v4924_v50, %v12589_v55  ;;  %v6196_v33 = vsel %vm6186_vm4, %v6179_v11, %v12590_v49  ;;  %v6206_v21 = vsel %vm6203_vm5, %v6189_v45, %v12591_v23  ;;  %v7628_v2 = vld [vmem:[#allocation3 + $0x160] sm:$0xff]  ;;  %v12603_v24 = vld [vmem:[#allocation39_spill] sm:$0xff]  ;;  %v7629_v52 = vld [vmem:[#allocation3 + $0x198] sm:$0xff] }
 0x8e6   : > { %v11417_v13 = vsel %vm6220_vm6, %v6218_v10, %v5797_v3  ;;  %v5843_v44 = vpop.permute.xlu1 %5842  ;;  %v6147_v15 = vsel %vm432_vm1, %v4931_v57, %v12592_v56  ;;  %v6157_v1 = vsel %vm6152_vm2, %v6140_v29, %v12593_v20  ;;  %v6213_v8 = vsel %vm6203_vm5, %v6196_v33, %v12594_v41  ;;  %v12606_v57 = vld [vmem:[#allocation106_spill] sm:$0xff]  ;;  %v12607_v38 = vld [vmem:[#allocation71_spill] sm:$0xff]  ;;  %v12608_v5 = vld [vmem:[#allocation29_spill] sm:$0xff] }
 0x8e7   : > { %v11425_v18 = vsel %vm6237_vm7, %v6226_v12, %v5843_v44  ;;  %6040 = vrot.lane.b32.xlu0 %v7624_v39, %s7684_s29  ;;  %v6223_v10 = vsel %vm6220_vm6, %v6206_v21, %v12595_v32  ;;  %v6164_v54 = vsel %vm6152_vm2, %v6147_v15, %v12596_v61  ;;  %v12597_v12 = vld [vmem:[#allocation67_spill] sm:$0xff]  ;;  %v6230_v36 = vsel %vm6220_vm6, %v6213_v8, %v12598_v53  ;;  %v12599_v39 = vld [vmem:[#allocation104_spill] sm:$0xff]  ;;  %v12610_v55 = vld [vmem:[#allocation58_spill] sm:$0xff] }
 0x8e8   : > { %6054 = vrot.lane.b32.xlu1 %v7625_v16, %s7684_s29  ;;  %v6174_v44 = vsel %vm6169_vm3, %v6157_v1, %v12597_v12  ;;  %v4933_v50 = vmul.f32 %v12599_v39, %v4805_v17  ;;  %v6181_v26 = vsel %vm6169_vm3, %v6164_v54, %v12600_v42  ;;  %v12601_v16 = vld [vmem:[#allocation78_spill] sm:$0xff]  ;;  %v6142_v34 = vsel %vm432_vm1, %v4926_v9, %v12603_v24  ;;  %v12611_v49 = vld [vmem:[#allocation75_spill] sm:$0xff]  ;;  %v12612_v23 = vld [vmem:[#allocation24_spill] sm:$0xff] }
 0x8e9   : > { %v5833_v46 = vpop.permute.xlu0 %5832  ;;  %v6191_v4 = vsel %vm6186_vm4, %v6174_v44, %v12601_v16  ;;  %v6198_v14 = vsel %vm6186_vm4, %v6181_v26, %v12604_v31  ;;  %v6159_v11 = vsel %vm6152_vm2, %v6142_v34, %v12607_v38  ;;  %v12613_v15 = vld [vmem:[#allocation68_spill] sm:$0xff]  ;;  %v12614_v1 = vld [vmem:[#allocation81_spill] sm:$0xff]  ;;  %v7630_v32 = vld [vmem:[#allocation3 + $0x170] sm:$0xff] }
 0x8ea   : > { %v11451_v25 = vsel %vm6237_vm7, %v6221_v40, %v5833_v46  ;;  %v5847_v60 = vpop.permute.xlu1 %5846  ;;  %v12602_v40 = vld [vmem:[#allocation100_spill] sm:$0xff]  ;;  %v6149_v59 = vsel %vm432_vm1, %v4933_v50, %v12606_v57  ;;  %v6215_v45 = vsel %vm6203_vm5, %v6198_v14, %v12608_v5  ;;  %v6176_v33 = vsel %vm6169_vm3, %v6159_v11, %v12611_v49  ;;  %v12616_v17 = vld [vmem:[#allocation26_spill] sm:$0xff]  ;;  %v4802_v53 = vld [vmem:[#allocation4 + $0x50] sm:$0xff] }
 0x8eb   : > { %v11459_v37 = vsel %vm6237_vm7, %v6228_v30, %v5847_v60  ;;  %6044 = vrot.lane.b32.xlu0 %v7626_v63, %s7684_s29  ;;  %v4928_v46 = vmul.f32 %v12602_v40, %v4800_v27  ;;  %v12605_v30 = vld [vmem:[#allocation63_spill] sm:$0xff]  ;;  %v6166_v29 = vsel %vm6152_vm2, %v6149_v59, %v12610_v55  ;;  %v6232_v21 = vsel %vm6220_vm6, %v6215_v45, %v12612_v23  ;;  %v12617_v54 = vld [vmem:[#allocation102_spill] sm:$0xff]  ;;  %v12619_v39 = vld [vmem:[#allocation89_spill] sm:$0xff] }
 0x8ec   : > { %6090 = vrot.lane.b32.xlu1 %v7627_v0, %s7685_s30  ;;  %v6208_v60 = vsel %vm6203_vm5, %v6191_v4, %v12605_v30  ;;  %v12609_v63 = vld [vmem:[#allocation23_spill] sm:$0xff]  ;;  %v6183_v20 = vsel %vm6169_vm3, %v6166_v29, %v12613_v15  ;;  %v6193_v41 = vsel %vm6186_vm4, %v6176_v33, %v12614_v1  ;;  %v7631_v44 = vld [vmem:[#allocation3 + $0x1a8] sm:$0xff]  ;;  %v12621_v4 = vld [vmem:[#allocation73_spill] sm:$0xff] }
 0x8ed   : > { %v5837_v3 = vpop.permute.xlu0 %5836  ;;  %v6225_v51 = vsel %vm6220_vm6, %v6208_v60, %v12609_v63  ;;  %v6200_v61 = vsel %vm6186_vm4, %v6183_v20, %v12616_v17  ;;  %v6210_v12 = vsel %vm6203_vm5, %v6193_v41, %v12617_v54  ;;  %v12620_v26 = vld [vmem:[#allocation103_spill] sm:$0xff]  ;;  %v12622_v34 = vld [vmem:[#allocation82_spill] sm:$0xff]  ;;  %v12623_v30 = vld [vmem:[#allocation48_spill] sm:$0xff] }
 0x8ee   : > { %v11485_v28 = vsel %vm6237_vm7, %v6223_v10, %v5837_v3  ;;  %v5851_v19 = vpop.permute.xlu1 %5850  ;;  %v12615_v10 = vld [vmem:[#allocation61_spill] sm:$0xff]  ;;  %v6217_v50 = vsel %vm6203_vm5, %v6200_v61, %v12619_v39  ;;  %v6227_v27 = vsel %vm6220_vm6, %v6210_v12, %v11316_v35  ;;  %v4930_v16 = vmul.f32 %v12620_v26, %v4802_v53  ;;  %v12625_v38 = vld [vmem:[#allocation70_spill] sm:$0xff]  ;;  %v12628_v33 = vld [vmem:[#allocation83_spill] sm:$0xff] }
 0x8ef   : > { %v11493_v58 = vsel %vm6237_vm7, %v6230_v36, %v5851_v19  ;;  %6048 = vrot.lane.b32.xlu0 %v7628_v2, %s7684_s29  ;;  %v6144_v3 = vsel %vm432_vm1, %v4928_v46, %v12615_v10  ;;  %v12618_v36 = vld [vmem:[#allocation69_spill] sm:$0xff]  ;;  %v6234_v40 = vsel %vm6220_vm6, %v6217_v50, %v11320_v22  ;;  %v7633_v22 = vld [vmem:[#allocation3 + $0x1b8] sm:$0xff]  ;;  %v12626_v63 = vld [vmem:[#allocation110_spill] sm:$0xff] }
 0x8f0   : > { %6094 = vrot.lane.b32.xlu1 %v7629_v52, %s7685_s30  ;;  %v6161_v19 = vsel %vm6152_vm2, %v6144_v3, %v12618_v36  ;;  %v7632_v35 = vld [vmem:[#allocation3 + $0x180] sm:$0xff]  ;;  %v6146_v60 = vsel %vm432_vm1, %v4930_v16, %v12623_v30  ;;  %v12624_v52 = vld [vmem:[#allocation94_spill] sm:$0xff]  ;;  %v12630_v20 = vld [vmem:[#allocation108_spill] sm:$0xff] }
 0x8f1   : > { %v5841_v9 = vpop.permute.xlu0 %5840  ;;  %v6178_v2 = vsel %vm6169_vm3, %v6161_v19, %v12621_v4  ;;  %v4804_v59 = vld [vmem:[#allocation4 + $0x60] sm:$0xff]  ;;  %v6163_v11 = vsel %vm6152_vm2, %v6146_v60, %v12625_v38  ;;  %v7635_v41 = vld [vmem:[#allocation3 + $0x1c8] sm:$0xff]  ;;  %v7637_v50 = vld [vmem:[#allocation3 + $0x1d8] sm:$0xff] }
 0x8f2   : > { %v11519_v0 = vsel %vm6237_vm7, %v6225_v51, %v5841_v9  ;;  %v5855_v56 = vpop.permute.xlu1 %5854  ;;  %v6195_v31 = vsel %vm6186_vm4, %v6178_v2, %v12622_v34  ;;  %v4932_v51 = vmul.f32 %v12626_v63, %v4804_v59  ;;  %v12627_v9 = vld [vmem:[#allocation76_spill] sm:$0xff]  ;;  %v12632_v17 = vld [vmem:[#allocation74_spill] sm:$0xff]  ;;  %v7636_v19 = vld [vmem:[#allocation3 + $0x1a0] sm:$0xff] }
 0x8f3   : > { %v11526_v8 = vsel %vm6237_vm7, %v6232_v21, %v5855_v56  ;;  %6052 = vrot.lane.b32.xlu0 %v7630_v32, %s7684_s29  ;;  %v6212_v57 = vsel %vm6203_vm5, %v6195_v31, %v12624_v52  ;;  %v6180_v55 = vsel %vm6169_vm3, %v6163_v11, %v12627_v9  ;;  %v7634_v56 = vld [vmem:[#allocation3 + $0x190] sm:$0xff]  ;;  %v12631_v32 = vld [vmem:[#allocation62_spill] sm:$0xff]  ;;  %v12634_v39 = vld [vmem:[#allocation5_spill] sm:$0xff] }
 0x8f4   : > { %6098 = vrot.lane.b32.xlu1 %v7631_v44, %s7685_s30  ;;  %v6229_v5 = vsel %vm6220_vm6, %v6212_v57, %v11333_v47  ;;  %v6197_v23 = vsel %vm6186_vm4, %v6180_v55, %v12628_v33  ;;  %v12629_v47 = vld [vmem:[#allocation65_spill] sm:$0xff]  ;;  %v12633_v44 = vld [vmem:[#allocation50_spill] sm:$0xff]  ;;  %v7638_v4 = vld [vmem:[#allocation3 + $0x1b0] sm:$0xff] }
 0x8f5   : > { %v5845_v42 = vpop.permute.xlu0 %5844  ;;  %v6148_v15 = vsel %vm432_vm1, %v4932_v51, %v12629_v47  ;;  %v6214_v1 = vsel %vm6203_vm5, %v6197_v23, %v12630_v20  ;;  %v7639_v2 = vld [vmem:[#allocation3 + $0x1e8] sm:$0xff]  ;;  %v7640_v31 = vld [vmem:[#allocation3 + $0x1c0] sm:$0xff]  ;;  %v7642_v52 = vld [vmem:[#allocation3 + $0x1d0] sm:$0xff] }
 0x8f6   : > { %v11548_v46 = vsel %vm6237_vm7, %v6227_v27, %v5845_v42  ;;  %v5859_v24 = vpop.permute.xlu1 %5858  ;;  %v6165_v10 = vsel %vm6152_vm2, %v6148_v15, %v12631_v32 }
 0x8f7   : > { %v11553_v14 = vsel %vm6237_vm7, %v6234_v40, %v5859_v24  ;;  %6088 = vrot.lane.b32.xlu0 %v7632_v35, %s7685_s30  ;;  %v6182_v61 = vsel %vm6169_vm3, %v6165_v10, %v12632_v17 }
 0x8f8   : > { %6102 = vrot.lane.b32.xlu1 %v7633_v22, %s7685_s30  ;;  %v6199_v53 = vsel %vm6186_vm4, %v6182_v61, %v12633_v44 }
 0x8f9   : > { %v5849_v45 = vpop.permute.xlu0 %5848 }
 0x8fa   : > { %v11569_v29 = vsel %vm6237_vm7, %v6229_v5, %v5849_v45  ;;  %v5863_v49 = vpop.permute.xlu1 %5862 }
 0x8fb   : > { %v11575_v21 = vsel %vm6237_vm7, %v11343_v48, %v5863_v49  ;;  %6092 = vrot.lane.b32.xlu0 %v7634_v56, %s7685_s30  ;;  %v6231_v48 = vsel %vm6220_vm6, %v6214_v1, %v11353_v62  ;;  %v6216_v62 = vsel %vm6203_vm5, %v6199_v53, %v12634_v39 }
 0x8fc   : > { %6106 = vrot.lane.b32.xlu1 %v7635_v41, %s7685_s30  ;;  %v6233_v27 = vsel %vm6220_vm6, %v6216_v62, %v11376_v6 }
 0x8fd   : > { %v5853_v3 = vpop.permute.xlu0 %5852 }
 0x8fe   : > { %v6248_v54 = vsel %vm6237_vm7, %v6231_v48, %v5853_v3  ;;  %v5899_v12 = vpop.permute.xlu1 %5898 }
 0x8ff   : > { %v11594_v36 = vsel %vm6254_vm8, %v11364_v7, %v5899_v12  ;;  %6096 = vrot.lane.b32.xlu0 %v7636_v19, %s7685_s30 }
 0x900   : > { %6110 = vrot.lane.b32.xlu1 %v7637_v50, %s7685_s30 }
 0x901   : > { %v5857_v42 = vpop.permute.xlu0 %5856 }
 0x902   : > { %v6250_v26 = vsel %vm6237_vm7, %v6233_v27, %v5857_v42  ;;  %v5903_v16 = vpop.permute.xlu1 %5902 }
 0x903   : > { %v11605_v7 = vsel %vm6254_vm8, %v11391_v43, %v5903_v16  ;;  %6100 = vrot.lane.b32.xlu0 %v7638_v4, %s7685_s30  ;;  %v7641_v43 = vld [vmem:[#allocation3 + $0x1f8] sm:$0xff] }
 0x904   : > { %6114 = vrot.lane.b32.xlu1 %v7639_v2, %s7685_s30 }
 0x905   : > { %v5861_v40 = vpop.permute.xlu0 %5860 }
 0x906   : > { %v6252_v24 = vsel %vm6237_vm7, %v11417_v13, %v5861_v40  ;;  %v5907_v34 = vpop.permute.xlu1 %5906 }
 0x907   : > { %v11613_v6 = vsel %vm6254_vm8, %v11425_v18, %v5907_v34  ;;  %6104 = vrot.lane.b32.xlu0 %v7640_v31, %s7685_s30 }
 0x908   : > { %6118 = vrot.lane.b32.xlu1 %v7641_v43, %s7685_s30 }
 0x909   : > { %v5897_v35 = vpop.permute.xlu0 %5896 }
 0x90a   : > { %v11619_v30 = vsel %vm6254_vm8, %v11451_v25, %v5897_v35  ;;  %v5911_v60 = vpop.permute.xlu1 %5910  ;;  %v7643_v25 = vld [vmem:[#allocation3 + $0x1e0] sm:$0xff] }
 0x90b   : > { %v11623_v13 = vsel %vm6254_vm8, %v11459_v37, %v5911_v60  ;;  %6108 = vrot.lane.b32.xlu0 %v7642_v52, %s7685_s30 }
 0x90d   : > { %v5901_v18 = vpop.permute.xlu0 %5900 }
 0x90e   : > { %v11628_v57 = vsel %vm6254_vm8, %v11485_v28, %v5901_v18  ;;  %v5915_v22 = vpop.permute.xlu1 %5914  ;;  %v7644_v28 = vld [vmem:[#allocation3 + $0x1f0] sm:$0xff] }
 0x90f   : > { %v11632_v59 = vsel %vm6254_vm8, %v11493_v58, %v5915_v22  ;;  %6112 = vrot.lane.b32.xlu0 %v7643_v25, %s7685_s30 }
 0x911   : > { %v5905_v38 = vpop.permute.xlu0 %5904 }
 0x912   : > { %v11637_v37 = vsel %vm6254_vm8, %v11519_v0, %v5905_v38  ;;  %v5919_v11 = vpop.permute.xlu1 %5918 }
 0x913   : > { %v11641_v5 = vsel %vm6254_vm8, %v11526_v8, %v5919_v11  ;;  %6116 = vrot.lane.b32.xlu0 %v7644_v28, %s7685_s30 }
 0x915   : > { %v5909_v45 = vpop.permute.xlu0 %5908 }
 0x916   : > { %v11646_v58 = vsel %vm6254_vm8, %v11548_v46, %v5909_v45  ;;  %v5923_v63 = vpop.permute.xlu1 %5922 }
 0x917   : > { %v11650_v51 = vsel %vm6254_vm8, %v11553_v14, %v5923_v63 }
 0x919   : > { %v5913_v0 = vpop.permute.xlu0 %5912 }
 0x91a   : > { %v11654_v9 = vsel %vm6254_vm8, %v11569_v29, %v5913_v0  ;;  %v5927_v8 = vpop.permute.xlu1 %5926 }
 0x91b   : > { %v11658_v55 = vsel %vm6254_vm8, %v11575_v21, %v5927_v8 }
 0x91d   : > { %v5917_v49 = vpop.permute.xlu0 %5916 }
 0x91e   : > { %v11661_v33 = vsel %vm6254_vm8, %v6248_v54, %v5917_v49  ;;  %v5963_v46 = vpop.permute.xlu1 %5962 }
 0x91f   : > { %v6273_v34 = vsel %vm6271_vm9, %v11594_v36, %v5963_v46 }
 0x921   : > { %v5921_v23 = vpop.permute.xlu0 %5920 }
 0x922   : > { %v11664_v56 = vsel %vm6254_vm8, %v6250_v26, %v5921_v23  ;;  %v5967_v14 = vpop.permute.xlu1 %5966 }
 0x923   : > { %v6275_v36 = vsel %vm6271_vm9, %v11605_v7, %v5967_v14 }
 0x925   : > { %v5925_v47 = vpop.permute.xlu0 %5924 }
 0x926   : > { %v11667_v15 = vsel %vm6254_vm8, %v6252_v24, %v5925_v47  ;;  %v5971_v29 = vpop.permute.xlu1 %5970 }
 0x927   : > { %v6277_v38 = vsel %vm6271_vm9, %v11613_v6, %v5971_v29 }
 0x929   : > { %v5961_v20 = vpop.permute.xlu0 %5960 }
 0x92a   : > { %v5975_v1 = vpop.permute.xlu1 %5974  ;;  %v6272_v63 = vsel %vm6271_vm9, %v11619_v30, %v5961_v20 }
 0x92b   : > { %v6279_v0 = vsel %vm6271_vm9, %v11623_v13, %v5975_v1 }
 0x92d   : > { %v5965_v41 = vpop.permute.xlu0 %5964 }
 0x92e   : > { %v5979_v21 = vpop.permute.xlu1 %5978  ;;  %v6274_v30 = vsel %vm6271_vm9, %v11628_v57, %v5965_v41 }
 0x92f   : > { %v6281_v13 = vsel %vm6271_vm9, %v11632_v59, %v5979_v21 }
 0x931   : > { %v11669_v32 = vpop.permute.xlu0 %5968 }
 0x932   : > { %v11671_v10 = vpop.permute.xlu1 %5982  ;;  %v6276_v57 = vsel %vm6271_vm9, %v11637_v37, %v11669_v32 }
 0x933   : > { %v6283_v59 = vsel %vm6271_vm9, %v11641_v5, %v11671_v10 }
 0x935   : > { %v11673_v48 = vpop.permute.xlu0 %5972 }
 0x936   : > { %v11675_v3 = vpop.permute.xlu1 %5986  ;;  %v6278_v32 = vsel %vm6271_vm9, %v11646_v58, %v11673_v48 }
 0x937   : > { %v6285_v5 = vsel %vm6271_vm9, %v11650_v51, %v11675_v3 }
 0x939   : > { %v11677_v17 = vpop.permute.xlu0 %5976 }
 0x93a   : > { %v11679_v61 = vpop.permute.xlu1 %5990  ;;  %v6280_v48 = vsel %vm6271_vm9, %v11654_v9, %v11677_v17 }
 0x93b   : > { %v6287_v51 = vsel %vm6271_vm9, %v11658_v55, %v11679_v61 }
 0x93d   : > { %v11681_v54 = vpop.permute.xlu0 %5980 }
 0x93e   : > { %v6027_v12 = vpop.permute.xlu1 %6026  ;;  %v6282_v55 = vsel %vm6271_vm9, %v11661_v33, %v11681_v54 }
 0x93f   : > { %v6290_v43 = vsel %vm6288_vm10, %v6273_v34, %v6027_v12 }
 0x941   : > { %v11683_v44 = vpop.permute.xlu0 %5984 }
 0x942   : > { %v6031_v53 = vpop.permute.xlu1 %6030 }
 0x943   : > { %v6292_v18 = vsel %vm6288_vm10, %v6275_v36, %v6031_v53 }
 0x945   : > { %v11685_v19 = vpop.permute.xlu0 %5988 }
 0x946   : > { %v6035_v39 = vpop.permute.xlu1 %6034  ;;  %v6286_v54 = vsel %vm6271_vm9, %v11667_v15, %v11685_v19 }
 0x947   : > { %v6294_v28 = vsel %vm6288_vm10, %v6277_v38, %v6035_v39 }
 0x949   : > { %v6025_v62 = vpop.permute.xlu0 %6024 }
 0x94a   : > { %v6039_v50 = vpop.permute.xlu1 %6038  ;;  %v6289_v8 = vsel %vm6288_vm10, %v6272_v63, %v6025_v62 }
 0x94b   : > { %v6296_v49 = vsel %vm6288_vm10, %v6279_v0, %v6039_v50 }
 0x94d   : > { %v6029_v27 = vpop.permute.xlu0 %6028 }
 0x94e   : > { %v6043_v42 = vpop.permute.xlu1 %6042  ;;  %v6291_v47 = vsel %vm6288_vm10, %v6274_v30, %v6029_v27 }
 0x94f   : > { %v6298_v20 = vsel %vm6288_vm10, %v6281_v13, %v6043_v42 }
 0x951   : > { %v6033_v26 = vpop.permute.xlu0 %6032 }
 0x952   : > { %v6047_v16 = vpop.permute.xlu1 %6046  ;;  %v6293_v41 = vsel %vm6288_vm10, %v6276_v57, %v6033_v26 }
 0x953   : > { %v6300_v39 = vsel %vm6288_vm10, %v6283_v59, %v6047_v16 }
 0x955   : > { %v6037_v4 = vpop.permute.xlu0 %6036 }
 0x956   : > { %v6051_v2 = vpop.permute.xlu1 %6050  ;;  %v6295_v10 = vsel %vm6288_vm10, %v6278_v32, %v6037_v4 }
 0x957   : > { %v6302_v42 = vsel %vm6288_vm10, %v6285_v5, %v6051_v2 }
 0x959   : > { %v11687_v40 = vpop.permute.xlu0 %6040 }
 0x95a   : > { %v11689_v24 = vpop.permute.xlu1 %6054  ;;  %v6297_v3 = vsel %vm6288_vm10, %v6280_v48, %v11687_v40 }
 0x95b   : > { %v6304_v2 = vsel %vm6288_vm10, %v6287_v51, %v11689_v24  ;;  %v6284_v24 = vsel %vm6271_vm9, %v11664_v56, %v11683_v44 }
 0x95d   : > { %v11693_v31 = vpop.permute.xlu0 %6044 }
 0x95e   : > { %v6091_v35 = vpop.permute.xlu1 %6090  ;;  %v6299_v17 = vsel %vm6288_vm10, %v6282_v55, %v11693_v31 }
 0x95f   : > { %v6307_v60 = vsel %vm6305_vm11, %v6290_v43, %v6091_v35 }
 0x960   : > { %6324 = vst.msk [vmem:[%s11700_s7 + $0x8] sm:$0xff] %vm6322_vm12, %v6307_v60 }
 0x961   : > { %v11708_v52 = vpop.permute.xlu0 %6048 }
 0x962   : > { %v6095_v22 = vpop.permute.xlu1 %6094  ;;  %v6301_v35 = vsel %vm6288_vm10, %v6284_v24, %v11708_v52 }
 0x963   : > { %v6309_v25 = vsel %vm6305_vm11, %v6292_v18, %v6095_v22 }
 0x964   : > { %6326 = vst.msk [vmem:[%s11700_s7 + $0x18] sm:$0xff] %vm6322_vm12, %v6309_v25 }
 0x965   : > { %v11716_v11 = vpop.permute.xlu0 %6052 }
 0x966   : > { %v6099_v45 = vpop.permute.xlu1 %6098  ;;  %v6303_v31 = vsel %vm6288_vm10, %v6286_v54, %v11716_v11 }
 0x967   : > { %v6311_v7 = vsel %vm6305_vm11, %v6294_v28, %v6099_v45 }
 0x968   : > { %6328 = vst.msk [vmem:[%s11700_s7 + $0x28] sm:$0xff] %vm6322_vm12, %v6311_v7 }
 0x969   : > { %v6089_v6 = vpop.permute.xlu0 %6088 }
 0x96a   : > { %v6306_v46 = vsel %vm6305_vm11, %v6289_v8, %v6089_v6  ;;  %v6103_v23 = vpop.permute.xlu1 %6102 }
 0x96b   : > { %6323 = vst.msk [vmem:[%s11700_s7] sm:$0xff] %vm6322_vm12, %v6306_v46  ;;  %v6313_v14 = vsel %vm6305_vm11, %v6296_v49, %v6103_v23 }
 0x96c   : > { %6330 = vst.msk [vmem:[%s11700_s7 + $0x38] sm:$0xff] %vm6322_vm12, %v6313_v14 }
 0x96d   : > { %v6093_v29 = vpop.permute.xlu0 %6092 }
 0x96e   : > { %v6308_v1 = vsel %vm6305_vm11, %v6291_v47, %v6093_v29  ;;  %v6107_v12 = vpop.permute.xlu1 %6106 }
 0x96f   : > { %6325 = vst.msk [vmem:[%s11700_s7 + $0x10] sm:$0xff] %vm6322_vm12, %v6308_v1  ;;  %v6315_v53 = vsel %vm6305_vm11, %v6298_v20, %v6107_v12 }
 0x970   : > { %6332 = vst.msk [vmem:[%s11700_s7 + $0x48] sm:$0xff] %vm6322_vm12, %v6315_v53 }
 0x971   : > { %v6097_v21 = vpop.permute.xlu0 %6096 }
 0x972   : > { %v6310_v62 = vsel %vm6305_vm11, %v6293_v41, %v6097_v21  ;;  %v6111_v50 = vpop.permute.xlu1 %6110 }
 0x973   : > { %6327 = vst.msk [vmem:[%s11700_s7 + $0x20] sm:$0xff] %vm6322_vm12, %v6310_v62  ;;  %v6317_v37 = vsel %vm6305_vm11, %v6300_v39, %v6111_v50 }
 0x974   : > { %6334 = vst.msk [vmem:[%s11700_s7 + $0x58] sm:$0xff] %vm6322_vm12, %v6317_v37 }
 0x975   : > { %v6101_v27 = vpop.permute.xlu0 %6100 }
 0x976   : > { %v6312_v26 = vsel %vm6305_vm11, %v6295_v10, %v6101_v27  ;;  %v6115_v16 = vpop.permute.xlu1 %6114 }
 0x977   : > { %6329 = vst.msk [vmem:[%s11700_s7 + $0x30] sm:$0xff] %vm6322_vm12, %v6312_v26  ;;  %v6319_v58 = vsel %vm6305_vm11, %v6302_v42, %v6115_v16 }
 0x978   : > { %6336 = vst.msk [vmem:[%s11700_s7 + $0x68] sm:$0xff] %vm6322_vm12, %v6319_v58 }
 0x979   : > { %v6105_v4 = vpop.permute.xlu0 %6104 }
 0x97a   : > { %v6314_v34 = vsel %vm6305_vm11, %v6297_v3, %v6105_v4  ;;  %v6119_v43 = vpop.permute.xlu1 %6118 }
 0x97b   : > { %6331 = vst.msk [vmem:[%s11700_s7 + $0x40] sm:$0xff] %vm6322_vm12, %v6314_v34  ;;  %v6321_v9 = vsel %vm6305_vm11, %v6304_v2, %v6119_v43 }
 0x97c   : > { %6338 = vst.msk [vmem:[%s11700_s7 + $0x78] sm:$0xff] %vm6322_vm12, %v6321_v9 }
 0x97d   : > { %v6109_v61 = vpop.permute.xlu0 %6108 }
 0x97e   : > { %v6316_v40 = vsel %vm6305_vm11, %v6299_v17, %v6109_v61 }
 0x97f   : > { %6333 = vst.msk [vmem:[%s11700_s7 + $0x50] sm:$0xff] %vm6322_vm12, %v6316_v40 }
 0x981   : > { %v6113_v60 = vpop.permute.xlu0 %6112 }
 0x982   : > { %v6318_v33 = vsel %vm6305_vm11, %v6301_v35, %v6113_v60 }
 0x983   : > { %6335 = vst.msk [vmem:[%s11700_s7 + $0x60] sm:$0xff] %vm6322_vm12, %v6318_v33 }
 0x985   : > { %v6117_v36 = vpop.permute.xlu0 %6116 }
 0x986   : > { %v6320_v18 = vsel %vm6305_vm11, %v6303_v31, %v6117_v36 }
 0x987   : > { %6337 = vst.msk [vmem:[%s11700_s7 + $0x70] sm:$0xff] %vm6322_vm12, %v6320_v18 }
 0x988 PF: > { %s14_s17 = sadd.s32 1, %s7667_s17   ;;  %s12635_s15 = smov %s7663_s16 }
 0x989   : > { %p11_p6 = scmp.ge.s32.totalorder %s14_s17, 4   ;;  %s12636_s16 = smov %s12638_s18 }
 0x98b   :  { %13 = sbr.rel (!%p11_p6) target bundleno = 2 (0x2), region = 95 }

</bundles_post_ra>
